<compile_context>
chip_gen: v7x
topology: tpu7x:2x2x1
jax: 0.10.0
libtpu: 0.0.40
codegen_flags: <defaults>
</compile_context>

<pallas_src>
import functools

import jax
import jax.numpy as jnp
from jax.experimental import pallas as pl
from jax.experimental.pallas import tpu as pltpu


# ----------------------------------------------------------------------------
# Helpers
# ----------------------------------------------------------------------------

_ACT_DTYPE = jnp.bfloat16     # inter-kernel activation / matmul-weight storage dtype


def _round_up(x, m):
    return (x + m - 1) // m * m


@functools.lru_cache(maxsize=None)
def _vmem_limit_bytes():
    """Generation-aware scoped-VMEM limit: ~75% of physical, capped at 96 MiB."""
    phys = 128 * 1024 * 1024
    try:
        info_fn = getattr(pltpu, "get_tpu_info", None)
        if info_fn is not None:
            phys = int(info_fn().vmem_capacity_bytes)
    except Exception:
        pass
    return min(phys * 3 // 4, 96 * 1024 * 1024)


@functools.lru_cache(maxsize=None)
def _default_tile_m():
    # 128-MiB-VMEM chips (v5e/v6e): 512-row tiles approach the HBM roofline;
    # v7x (64 MiB VMEM -> ~48 MiB limit): smaller tiles leave weight headroom.
    return 512 if _vmem_limit_bytes() > 56 * 1024 * 1024 else 256


def _tile_m(M, cap):
    """Token-axis tile: multiple of 8, no larger than needed."""
    return max(8, min(cap, _round_up(M, 8)))


def _cparams(n_axes):
    return pltpu.CompilerParams(
        dimension_semantics=("parallel",) * n_axes,
        vmem_limit_bytes=_vmem_limit_bytes(),
    )


# ----------------------------------------------------------------------------
# Pallas kernels
# ----------------------------------------------------------------------------

def _make_matmul_bias_kernel(fuse_ln):
    def kernel(x_ref, w_ref, b_ref, g_ref, bt_ref, o_ref):
        acc = jnp.dot(x_ref[...], w_ref[...], preferred_element_type=jnp.float32)
        acc = acc + b_ref[...]
        if fuse_ln:   # fused post-stem LayerNorm epilogue
            mean = jnp.mean(acc, axis=-1, keepdims=True)
            var = jnp.mean(jnp.square(acc - mean), axis=-1, keepdims=True)
            acc = (acc - mean) * jax.lax.rsqrt(var + 1e-5) * g_ref[...] + bt_ref[...]
        o_ref[...] = acc.astype(o_ref.dtype)
    return kernel


def matmul_bias(x, w, b, ln_g=None, ln_b=None, out_dtype=_ACT_DTYPE):
    """(M, K) @ (K, N) + b [optionally followed by LayerNorm over N].

    Tiled over M ("parallel" grid axis); weights stay VMEM-resident across tiles.
    No wrapper-side padding: blocks span the full K/N dims, partial M blocks are
    masked by Pallas (rows are independent, so garbage rows never leak).
    """
    M, K = x.shape
    N = w.shape[1]
    fuse_ln = ln_g is not None

    x = x.astype(_ACT_DTYPE)
    w = w.astype(_ACT_DTYPE)
    b = b.astype(jnp.float32).reshape(1, N)
    g = (ln_g.astype(jnp.float32) if fuse_ln
         else jnp.ones((N,), jnp.float32)).reshape(1, N)
    bt = (ln_b.astype(jnp.float32) if fuse_ln
          else jnp.zeros((N,), jnp.float32)).reshape(1, N)

    TM = _tile_m(M, _default_tile_m())
    return pl.pallas_call(
        _make_matmul_bias_kernel(fuse_ln),
        out_shape=jax.ShapeDtypeStruct((M, N), out_dtype),
        grid=(pl.cdiv(M, TM),),
        in_specs=[
            pl.BlockSpec((TM, K), lambda i: (i, 0)),
            pl.BlockSpec((K, N), lambda i: (0, 0)),
            pl.BlockSpec((1, N), lambda i: (0, 0)),
            pl.BlockSpec((1, N), lambda i: (0, 0)),
            pl.BlockSpec((1, N), lambda i: (0, 0)),
        ],
        out_specs=pl.BlockSpec((TM, N), lambda i: (i, 0)),
        compiler_params=_cparams(1),
    )(x, w, b, g, bt)


def _layernorm_kernel(x_ref, g_ref, b_ref, o_ref):
    x = x_ref[...].astype(jnp.float32)
    mean = jnp.mean(x, axis=-1, keepdims=True)
    var = jnp.mean(jnp.square(x - mean), axis=-1, keepdims=True)
    o_ref[...] = ((x - mean) * jax.lax.rsqrt(var + 1e-5) * g_ref[...]
                  + b_ref[...]).astype(o_ref.dtype)


def layernorm(x, gamma, beta):
    """Standalone tiled LayerNorm (only used when it cannot be fused)."""
    shape = x.shape
    C = shape[-1]
    x2 = x.reshape(-1, C)
    M = x2.shape[0]
    TM = _tile_m(M, 2 * _default_tile_m())
    out = pl.pallas_call(
        _layernorm_kernel,
        out_shape=jax.ShapeDtypeStruct((M, C), jnp.float32),
        grid=(pl.cdiv(M, TM),),
        in_specs=[
            pl.BlockSpec((TM, C), lambda i: (i, 0)),
            pl.BlockSpec((1, C), lambda i: (0, 0)),
            pl.BlockSpec((1, C), lambda i: (0, 0)),
        ],
        out_specs=pl.BlockSpec((TM, C), lambda i: (i, 0)),
        compiler_params=_cparams(1),
    )(x2, gamma.astype(jnp.float32).reshape(1, C),
      beta.astype(jnp.float32).reshape(1, C))
    return out.reshape(shape)


def _make_dwconv_kernel(H, W, K, C, p):
    def kernel(x_ref, w_ref, b_ref, o_ref, xp_scr):
        Hp2, Wp2 = H + 2 * p, W + 2 * p
        # 'same' padding in VMEM: zero only the 4 halo strips, write the interior once.
        if p > 0:
            xp_scr[:, :p, :, :] = jnp.zeros((1, p, Wp2, C), xp_scr.dtype)
            xp_scr[:, p + H:, :, :] = jnp.zeros((1, p, Wp2, C), xp_scr.dtype)
            xp_scr[:, p:p + H, :p, :] = jnp.zeros((1, H, p, C), xp_scr.dtype)
            xp_scr[:, p:p + H, p + W:, :] = jnp.zeros((1, H, p, C), xp_scr.dtype)
        xp_scr[:, p:p + H, p:p + W, :] = x_ref[...]

        w = w_ref[...].astype(jnp.float32)                 # (K, K, C), tiny
        # Per-tap reads directly from the scratch Ref keep only one (H, W, C) strip
        # live at a time (no whole-padded-image value + 49 value slices).
        acc = xp_scr[:, 0:H, 0:W, :].astype(jnp.float32) * w[0, 0]
        for kh in range(K):
            for kw in range(K):
                if kh == 0 and kw == 0:
                    continue
                patch = xp_scr[:, kh:kh + H, kw:kw + W, :].astype(jnp.float32)
                acc = acc + patch * w[kh, kw]
        o_ref[...] = (acc + b_ref[...]).astype(o_ref.dtype)
    return kernel
    # TODO(synk): lane-dense (H, W*C) layout + pltpu.roll for the kw shift would
    #             improve lane utilization when C < 128.


def dwconv(x_nhwc, w_kkc, b_c, K):
    """Depthwise KxK conv, stride 1, 'same' padding (K odd). x: (B, H, W, C)."""
    B, H, W, C = x_nhwc.shape
    p = K // 2
    x_nhwc = x_nhwc.astype(_ACT_DTYPE)
    return pl.pallas_call(
        _make_dwconv_kernel(H, W, K, C, p),
        out_shape=jax.ShapeDtypeStruct((B, H, W, C), _ACT_DTYPE),
        grid=(B,),
        in_specs=[
            pl.BlockSpec((1, H, W, C), lambda b: (b, 0, 0, 0)),
            pl.BlockSpec((K, K, C), lambda b: (0, 0, 0)),
            pl.BlockSpec((1, 1, 1, C), lambda b: (0, 0, 0, 0)),
        ],
        out_specs=pl.BlockSpec((1, H, W, C), lambda b: (b, 0, 0, 0)),
        scratch_shapes=[pltpu.VMEM((1, H + 2 * p, W + 2 * p, C), _ACT_DTYPE)],
        compiler_params=_cparams(1),
    )(x_nhwc, w_kkc.astype(jnp.float32), b_c.astype(jnp.float32).reshape(1, 1, 1, C))


def _make_block_mlp_kernel(F, final_ln):
    def kernel(y_ref, res_ref, g_ref, bt_ref, w1g_ref, b1g_ref, w2_ref, b2_ref,
               g2_ref, bt2_ref, o_ref):
        # Fused: LayerNorm -> [fc1 | gate] single matmul -> GELU * SiLU -> fc2 -> +res
        y = y_ref[...].astype(jnp.float32)
        mean = jnp.mean(y, axis=-1, keepdims=True)
        var = jnp.mean(jnp.square(y - mean), axis=-1, keepdims=True)
        yn = (y - mean) * jax.lax.rsqrt(var + 1e-5) * g_ref[...] + bt_ref[...]

        hg = jnp.dot(yn.astype(w1g_ref.dtype), w1g_ref[...],
                     preferred_element_type=jnp.float32) + b1g_ref[...]
        h = jax.nn.gelu(hg[:, :F], approximate=True)       # main branch
        gt = hg[:, F:]
        h = h * (gt * jax.nn.sigmoid(gt))                  # SiLU gate

        out = jnp.dot(h.astype(w2_ref.dtype), w2_ref[...],
                      preferred_element_type=jnp.float32) + b2_ref[...]
        out = res_ref[...].astype(jnp.float32) + out
        if final_ln:                                       # fused embedding LayerNorm
            m2 = jnp.mean(out, axis=-1, keepdims=True)
            v2 = jnp.mean(jnp.square(out - m2), axis=-1, keepdims=True)
            out = (out - m2) * jax.lax.rsqrt(v2 + 1e-5) * g2_ref[...] + bt2_ref[...]
        o_ref[...] = out.astype(o_ref.dtype)
    return kernel


def block_mlp(y, residual, ln_g, ln_b, w1g, b1g, w2, b2,
              final_g=None, final_b=None):
    M, C = y.shape
    F2 = w1g.shape[1]
    F = F2 // 2

    y = y.astype(_ACT_DTYPE)
    residual = residual.astype(_ACT_DTYPE)
    w1g = w1g.astype(_ACT_DTYPE)
    w2 = w2.astype(_ACT_DTYPE)

    final_ln = final_g is not None
    g2 = (final_g if final_ln else jnp.ones((C,), jnp.float32)) \
        .astype(jnp.float32).reshape(1, C)
    bt2 = (final_b if final_ln else jnp.zeros((C,), jnp.float32)) \
        .astype(jnp.float32).reshape(1, C)

    # Keep the (TM, 2F) f32 intermediate bounded (~8 MiB) so big stages still fit
    # v7x's smaller VMEM; on v5e/v6e this rarely binds.
    inter_cap = max(8, ((8 * 1024 * 1024) // (4 * F2)) // 8 * 8)
    TM = _tile_m(M, min(_default_tile_m(), inter_cap))

    cost = pl.CostEstimate(
        flops=2 * M * C * F2 + 2 * M * F * C,
        transcendentals=M * F2,
        bytes_accessed=2 * (3 * M * C + C * F2 + F * C) + 4 * (2 * F2 + 6 * C),
    )

    return pl.pallas_call(
        _make_block_mlp_kernel(F, final_ln),
        out_shape=jax.ShapeDtypeStruct((M, C), _ACT_DTYPE),
        grid=(pl.cdiv(M, TM),),
        in_specs=[
            pl.BlockSpec((TM, C), lambda i: (i, 0)),   # dwconv output
            pl.BlockSpec((TM, C), lambda i: (i, 0)),   # residual
            pl.BlockSpec((1, C), lambda i: (0, 0)),    # LN gamma
            pl.BlockSpec((1, C), lambda i: (0, 0)),    # LN beta
            pl.BlockSpec((C, F2), lambda i: (0, 0)),   # fused fc1|gate weight
            pl.BlockSpec((1, F2), lambda i: (0, 0)),   # fused fc1|gate bias
            pl.BlockSpec((F, C), lambda i: (0, 0)),    # fc2 weight
            pl.BlockSpec((1, C), lambda i: (0, 0)),    # fc2 bias
            pl.BlockSpec((1, C), lambda i: (0, 0)),    # optional final-LN gamma
            pl.BlockSpec((1, C), lambda i: (0, 0)),    # optional final-LN beta
        ],
        out_specs=pl.BlockSpec((TM, C), lambda i: (i, 0)),
        compiler_params=_cparams(1),
        cost_estimate=cost,
        # Residual (input 1) is dead after this call (its producer x_tokens is
        # replaced by the block output), so aliasing its HBM buffer is safe.
        input_output_aliases={1: 0},
    )(y, residual,
      ln_g.astype(jnp.float32).reshape(1, C), ln_b.astype(jnp.float32).reshape(1, C),
      w1g, b1g.astype(jnp.float32).reshape(1, F2),
      w2, b2.astype(jnp.float32).reshape(1, C), g2, bt2)


# ----------------------------------------------------------------------------
# Model glue (reshapes / param plumbing in plain JAX, compute in Pallas)
# ----------------------------------------------------------------------------

def stem_apply(x_nchw, w_oikk, b_o, patch, ln_g, ln_b):
    """Conv2d(kernel=patch, stride=patch) + fused post-stem LayerNorm."""
    B, Cin, H, W = x_nchw.shape
    Hp, Wp = H // patch, W // patch
    Cout = w_oikk.shape[0]
    patches = (x_nchw
               .reshape(B, Cin, Hp, patch, Wp, patch)
               .transpose(0, 2, 4, 1, 3, 5)              # (B, Hp, Wp, Cin, p, p)
               .reshape(B * Hp * Wp, Cin * patch * patch))
    w2d = w_oikk.reshape(Cout, -1).T                      # (Cin*p*p, Cout)
    out = matmul_bias(patches, w2d, b_o, ln_g=ln_g, ln_b=ln_b)
    return out.reshape(B, Hp * Wp, Cout), (Hp, Wp)


def downsample_apply(x_tokens, size, w_oikk, b_o):
    """Conv2d(kernel=2, stride=2) on token tensor."""
    B, L, C = x_tokens.shape
    H, W = size
    Hp, Wp = H // 2, W // 2
    Cout = w_oikk.shape[0]
    xg = x_tokens.reshape(B, H, W, C)
    patches = (xg
               .reshape(B, Hp, 2, Wp, 2, C)
               .transpose(0, 1, 3, 5, 2, 4)               # (B, Hp, Wp, C, 2, 2)
               .reshape(B * Hp * Wp, C * 4))
    w2d = w_oikk.reshape(Cout, -1).T
    out = matmul_bias(patches, w2d, b_o)
    return out.reshape(B, Hp * Wp, Cout), (Hp, Wp)


def convnext_block_apply(x_tokens, size, p, kernel_size, final_ln=None):
    B, L, C = x_tokens.shape
    H, W = size
    xg = x_tokens.reshape(B, H, W, C)
    y = dwconv(xg, p["dw_w"], p["dw_b"], kernel_size)      # (B, H, W, C)
    y = y.reshape(B * L, C)
    fg, fb = final_ln if final_ln is not None else (None, None)
    out = block_mlp(y, x_tokens.reshape(B * L, C),
                    p["ln_g"], p["ln_b"],
                    p["w1g"], p["b1g"], p["w2"], p["b2"],
                    final_g=fg, final_b=fb)
    return out.reshape(B, L, C)


def convnext_forward(x_nchw, params, cfg, reshape=True):
    x_tok, size = stem_apply(x_nchw, params["stem_w"], params["stem_b"],
                             cfg["patch_size"], params["norm_g"], params["norm_b"])

    n_stages = len(cfg["depths"])
    fused_emb_ln = n_stages > 0 and len(params["stages"][-1]) > 0
    levels = []
    for i in range(n_stages):
        stage = params["stages"][i]
        for j, blk in enumerate(stage):
            # Fuse the final embedding LayerNorm into the very last block's kernel.
            fuse = fused_emb_ln and (i == n_stages - 1) and (j == len(stage) - 1)
            final_ln = (params["emb_g"], params["emb_b"]) if fuse else None
            x_tok = convnext_block_apply(x_tok, size, blk, cfg["kernel_size"], final_ln)
        levels.append(x_tok)
        if i < len(params["downsample"]):
            w_ds, b_ds = params["downsample"][i]
            x_tok, size = downsample_apply(x_tok, size, w_ds, b_ds)
    levels.pop(-1)
    # up_depths = [] (default) -> no up stages / upsample / residual merges

    if not fused_emb_ln:
        x_tok = layernorm(x_tok, params["emb_g"], params["emb_b"])

    x_tok = x_tok.astype(jnp.float32)
    if reshape:
        B, L, C = x_tok.shape
        H, W = size
        return x_tok.reshape(B, H, W, C).transpose(0, 3, 1, 2)   # NCHW (tokens_to_grid)
    return x_tok


# ----------------------------------------------------------------------------
# Deterministic parameter construction
# ----------------------------------------------------------------------------

def init_params(cfg, key):
    keys = iter(jax.random.split(key, 256))

    def nrm(shape, scale=0.02):
        return scale * jax.random.normal(next(keys), shape, dtype=jnp.float32)

    dims = cfg["dims"]
    ffs = cfg["dims_feedforward"]
    k = cfg["kernel_size"]
    p = cfg["patch_size"]
    cin = cfg["in_channels"]

    params = {
        "stem_w": nrm((dims[0], cin, p, p)),
        "stem_b": jnp.zeros((dims[0],), jnp.float32),
        "norm_g": jnp.ones((dims[0],), jnp.float32),
        "norm_b": jnp.zeros((dims[0],), jnp.float32),
        "emb_g": jnp.ones((dims[-1],), jnp.float32),
        "emb_b": jnp.zeros((dims[-1],), jnp.float32),
        "stages": [],
        "downsample": [],
    }
    for i, depth in enumerate(cfg["depths"]):
        dim, ff = dims[i], ffs[i]
        stage = []
        for _ in range(depth):
            w1 = nrm((dim, ff))      # fc1
            wg = nrm((dim, ff))      # gate
            stage.append({
                "dw_w": nrm((k, k, dim)),
                "dw_b": jnp.zeros((dim,), jnp.float32),
                "ln_g": jnp.ones((dim,), jnp.float32),
                "ln_b": jnp.zeros((dim,), jnp.float32),
                "w1g": jnp.concatenate([w1, wg], axis=1),    # fused (C, 2F)
                "b1g": jnp.zeros((2 * ff,), jnp.float32),
                "w2": nrm((ff, dim)),
                "b2": jnp.zeros((dim,), jnp.float32),
            })
        params["stages"].append(stage)
    for i in range(len(cfg["depths"]) - 1):
        params["downsample"].append(
            (nrm((dims[i + 1], dims[i], 2, 2)), jnp.zeros((dims[i + 1],), jnp.float32))
        )
    return params


# ----------------------------------------------------------------------------
# Main
# ----------------------------------------------------------------------------

if __name__ == "__main__":
    cfg = dict(
        in_channels=4,
        depths=(1, 1),
        dims=(32, 64),
        dims_feedforward=(64, 128),
        kernel_size=7,
        patch_size=4,
    )

    key = jax.random.PRNGKey(0)
    k_x, k_p = jax.random.split(key)
    x = jax.random.normal(k_x, (2, cfg["in_channels"], 16, 16), dtype=jnp.float32)  # NCHW
    params = init_params(cfg, k_p)

    @jax.jit
    def fwd(x_in, prm):
        return convnext_forward(x_in, prm, cfg, reshape=True)

    out = fwd(x, params)
    out = jax.block_until_ready(out)

    # Expected: (B, dims[-1], H/(patch*2^(nstages-1)), W/(...)) = (2, 64, 2, 2)
    assert out.shape == (2, 64, 2, 2), out.shape
    assert bool(jnp.all(jnp.isfinite(out)))
    print("KERNEL_OK")
</pallas_src>

<mosaic_0001>
module attributes {stable_mosaic.version = 11 : i64} {
  func.func @kernel(%arg0: i32, %arg1: memref<32x64xbf16, #tpu.memory_space<vmem>>, %arg2: memref<64x32xbf16, #tpu.memory_space<vmem>>, %arg3: memref<1x32xf32, #tpu.memory_space<vmem>>, %arg4: memref<1x32xf32, #tpu.memory_space<vmem>>, %arg5: memref<1x32xf32, #tpu.memory_space<vmem>>, %arg6: memref<32x32xbf16, #tpu.memory_space<vmem>>) attributes {dimension_semantics = [#tpu.dimension_semantics<parallel>], iteration_bounds = array<i64: 1>, scalar_prefetch = 0 : i64, scratch_operands = 0 : i64, tpu.core_type = #tpu.core_type<tc>, window_params = [{transform_indices = @transform_0, window_bounds = array<i64: 32, 64>}, {pipeline_mode = #tpu.pipeline_mode<synchronous>, transform_indices = @transform_1, window_bounds = array<i64: 64, 32>}, {pipeline_mode = #tpu.pipeline_mode<synchronous>, transform_indices = @transform_2, window_bounds = array<i64: 1, 32>}, {pipeline_mode = #tpu.pipeline_mode<synchronous>, transform_indices = @transform_3, window_bounds = array<i64: 1, 32>}, {pipeline_mode = #tpu.pipeline_mode<synchronous>, transform_indices = @transform_4, window_bounds = array<i64: 1, 32>}, {transform_indices = @transform_5, window_bounds = array<i64: 32, 32>}]} {
    %c0 = arith.constant 0 : index
    %c0_0 = arith.constant 0 : index
    %0 = vector.load %arg1[%c0, %c0_0] : memref<32x64xbf16, #tpu.memory_space<vmem>>, vector<32x64xbf16>
    %c0_1 = arith.constant 0 : index
    %c0_2 = arith.constant 0 : index
    %1 = vector.load %arg2[%c0_1, %c0_2] : memref<64x32xbf16, #tpu.memory_space<vmem>>, vector<64x32xbf16>
    %cst = arith.constant dense<0.000000e+00> : vector<32x32xf32>
    %2 = tpu.matmul %0, %1, %cst {dimension_numbers = #tpu.dot_dimension_numbers<[1], [0], [0], [1], [0, 0, 1, 1], [], []>} : vector<32x64xbf16>, vector<64x32xbf16>, vector<32x32xf32> -> vector<32x32xf32>
    %c0_3 = arith.constant 0 : index
    %c0_4 = arith.constant 0 : index
    %3 = vector.load %arg3[%c0_3, %c0_4] : memref<1x32xf32, #tpu.memory_space<vmem>>, vector<1x32xf32>
    %4 = vector.broadcast %3 : vector<1x32xf32> to vector<32x32xf32>
    %5 = arith.addf %2, %4 : vector<32x32xf32>
    %cst_5 = arith.constant dense<0.000000e+00> : vector<32xf32>
    %6 = vector.multi_reduction <add>, %5, %cst_5 [1] : vector<32x32xf32> to vector<32xf32>
    %7 = vector.shape_cast %6 : vector<32xf32> to vector<32x1xf32>
    %cst_6 = arith.constant 3.200000e+01 : f32
    %8 = vector.broadcast %cst_6 : f32 to vector<32x1xf32>
    %9 = arith.divf %7, %8 : vector<32x1xf32>
    %10 = vector.broadcast %9 : vector<32x1xf32> to vector<32x32xf32>
    %11 = arith.subf %5, %10 : vector<32x32xf32>
    %12 = arith.mulf %11, %11 : vector<32x32xf32>
    %cst_7 = arith.constant dense<0.000000e+00> : vector<32xf32>
    %13 = vector.multi_reduction <add>, %12, %cst_7 [1] : vector<32x32xf32> to vector<32xf32>
    %14 = vector.shape_cast %13 : vector<32xf32> to vector<32x1xf32>
    %cst_8 = arith.constant 3.200000e+01 : f32
    %15 = vector.broadcast %cst_8 : f32 to vector<32x1xf32>
    %16 = arith.divf %14, %15 : vector<32x1xf32>
    %17 = vector.broadcast %9 : vector<32x1xf32> to vector<32x32xf32>
    %18 = arith.subf %5, %17 : vector<32x32xf32>
    %cst_9 = arith.constant 9.99999974E-6 : f32
    %19 = vector.broadcast %cst_9 : f32 to vector<32x1xf32>
    %20 = arith.addf %16, %19 : vector<32x1xf32>
    %21 = math.rsqrt %20 : vector<32x1xf32>
    %22 = vector.broadcast %21 : vector<32x1xf32> to vector<32x32xf32>
    %23 = arith.mulf %18, %22 : vector<32x32xf32>
    %c0_10 = arith.constant 0 : index
    %c0_11 = arith.constant 0 : index
    %24 = vector.load %arg4[%c0_10, %c0_11] : memref<1x32xf32, #tpu.memory_space<vmem>>, vector<1x32xf32>
    %25 = vector.broadcast %24 : vector<1x32xf32> to vector<32x32xf32>
    %26 = arith.mulf %23, %25 : vector<32x32xf32>
    %c0_12 = arith.constant 0 : index
    %c0_13 = arith.constant 0 : index
    %27 = vector.load %arg5[%c0_12, %c0_13] : memref<1x32xf32, #tpu.memory_space<vmem>>, vector<1x32xf32>
    %28 = vector.broadcast %27 : vector<1x32xf32> to vector<32x32xf32>
    %29 = arith.addf %26, %28 : vector<32x32xf32>
    %30 = arith.truncf %29 : vector<32x32xf32> to vector<32x32xbf16>
    %c0_14 = arith.constant 0 : index
    %c0_15 = arith.constant 0 : index
    %31 = vector.load %arg6[%c0_14, %c0_15] : memref<32x32xbf16, #tpu.memory_space<vmem>>, vector<32x32xbf16>
    tpu.vector_store %arg6[%c0_14, %c0_15], %30 {strides = array<i32>} : memref<32x32xbf16, #tpu.memory_space<vmem>>, vector<32x32xbf16>,
    return
  }
  func.func @transform_0(%arg0: i32) -> (i32, i32) {
    %c0_i32 = arith.constant 0 : i32
    %c0_i32_0 = arith.constant 0 : i32
    return %arg0, %c0_i32 : i32, i32
  }
  func.func @transform_1(%arg0: i32) -> (i32, i32) {
    %c0_i32 = arith.constant 0 : i32
    %c0_i32_0 = arith.constant 0 : i32
    %c0_i32_1 = arith.constant 0 : i32
    return %c0_i32, %c0_i32_0 : i32, i32
  }
  func.func @transform_2(%arg0: i32) -> (i32, i32) {
    %c0_i32 = arith.constant 0 : i32
    %c0_i32_0 = arith.constant 0 : i32
    %c0_i32_1 = arith.constant 0 : i32
    return %c0_i32, %c0_i32_0 : i32, i32
  }
  func.func @transform_3(%arg0: i32) -> (i32, i32) {
    %c0_i32 = arith.constant 0 : i32
    %c0_i32_0 = arith.constant 0 : i32
    %c0_i32_1 = arith.constant 0 : i32
    return %c0_i32, %c0_i32_0 : i32, i32
  }
  func.func @transform_4(%arg0: i32) -> (i32, i32) {
    %c0_i32 = arith.constant 0 : i32
    %c0_i32_0 = arith.constant 0 : i32
    %c0_i32_1 = arith.constant 0 : i32
    return %c0_i32, %c0_i32_0 : i32, i32
  }
  func.func @transform_5(%arg0: i32) -> (i32, i32) {
    %c0_i32 = arith.constant 0 : i32
    %c0_i32_0 = arith.constant 0 : i32
    return %arg0, %c0_i32 : i32, i32
  }
}

module attributes {stable_mosaic.version = 11 : i64} {
  func.func @kernel(%arg0: i32, %arg1: memref<1x4x4x32xbf16, #tpu.memory_space<vmem>>, %arg2: memref<7x7x32xf32, #tpu.memory_space<vmem>>, %arg3: memref<1x1x1x32xf32, #tpu.memory_space<vmem>>, %arg4: memref<1x4x4x32xbf16, #tpu.memory_space<vmem>>, %arg5: memref<1x10x10x32xbf16, #tpu.memory_space<vmem>>) attributes {dimension_semantics = [#tpu.dimension_semantics<parallel>], iteration_bounds = array<i64: 2>, scalar_prefetch = 0 : i64, scratch_operands = 1 : i64, tpu.core_type = #tpu.core_type<tc>, window_params = [{transform_indices = @transform_0, window_bounds = array<i64: 1, 4, 4, 32>}, {pipeline_mode = #tpu.pipeline_mode<synchronous>, transform_indices = @transform_1, window_bounds = array<i64: 7, 7, 32>}, {pipeline_mode = #tpu.pipeline_mode<synchronous>, transform_indices = @transform_2, window_bounds = array<i64: 1, 1, 1, 32>}, {transform_indices = @transform_3, window_bounds = array<i64: 1, 4, 4, 32>}]} {
    %cst = arith.constant 0.000000e+00 : bf16
    %0 = vector.broadcast %cst : bf16 to vector<1x3x10x32xbf16>
    %c0 = arith.constant 0 : index
    %c0_0 = arith.constant 0 : index
    %c0_1 = arith.constant 0 : index
    %c0_2 = arith.constant 0 : index
    %1 = vector.load %arg5[%c0, %c0_0, %c0_1, %c0_2] : memref<1x10x10x32xbf16, #tpu.memory_space<vmem>>, vector<1x3x10x32xbf16>
    tpu.vector_store %arg5[%c0, %c0_0, %c0_1, %c0_2], %0 {strides = array<i32>} : memref<1x10x10x32xbf16, #tpu.memory_space<vmem>>, vector<1x3x10x32xbf16>,
    %cst_3 = arith.constant 0.000000e+00 : bf16
    %2 = vector.broadcast %cst_3 : bf16 to vector<1x3x10x32xbf16>
    %c0_4 = arith.constant 0 : index
    %c7 = arith.constant 7 : index
    %c0_5 = arith.constant 0 : index
    %c0_6 = arith.constant 0 : index
    %3 = vector.load %arg5[%c0_4, %c7, %c0_5, %c0_6] : memref<1x10x10x32xbf16, #tpu.memory_space<vmem>>, vector<1x3x10x32xbf16>
    tpu.vector_store %arg5[%c0_4, %c7, %c0_5, %c0_6], %2 {strides = array<i32>} : memref<1x10x10x32xbf16, #tpu.memory_space<vmem>>, vector<1x3x10x32xbf16>,
    %cst_7 = arith.constant 0.000000e+00 : bf16
    %4 = vector.broadcast %cst_7 : bf16 to vector<1x4x3x32xbf16>
    %c0_8 = arith.constant 0 : index
    %c3 = arith.constant 3 : index
    %c0_9 = arith.constant 0 : index
    %c0_10 = arith.constant 0 : index
    %5 = vector.load %arg5[%c0_8, %c3, %c0_9, %c0_10] : memref<1x10x10x32xbf16, #tpu.memory_space<vmem>>, vector<1x4x3x32xbf16>
    tpu.vector_store %arg5[%c0_8, %c3, %c0_9, %c0_10], %4 {strides = array<i32>} : memref<1x10x10x32xbf16, #tpu.memory_space<vmem>>, vector<1x4x3x32xbf16>,
    %cst_11 = arith.constant 0.000000e+00 : bf16
    %6 = vector.broadcast %cst_11 : bf16 to vector<1x4x3x32xbf16>
    %c0_12 = arith.constant 0 : index
    %c3_13 = arith.constant 3 : index
    %c7_14 = arith.constant 7 : index
    %c0_15 = arith.constant 0 : index
    %7 = vector.load %arg5[%c0_12, %c3_13, %c7_14, %c0_15] : memref<1x10x10x32xbf16, #tpu.memory_space<vmem>>, vector<1x4x3x32xbf16>
    tpu.vector_store %arg5[%c0_12, %c3_13, %c7_14, %c0_15], %6 {strides = array<i32>} : memref<1x10x10x32xbf16, #tpu.memory_space<vmem>>, vector<1x4x3x32xbf16>,
    %c0_16 = arith.constant 0 : index
    %c0_17 = arith.constant 0 : index
    %c0_18 = arith.constant 0 : index
    %c0_19 = arith.constant 0 : index
    %8 = vector.load %arg1[%c0_16, %c0_17, %c0_18, %c0_19] : memref<1x4x4x32xbf16, #tpu.memory_space<vmem>>, vector<1x4x4x32xbf16>
    %c0_20 = arith.constant 0 : index
    %c3_21 = arith.constant 3 : index
    %c3_22 = arith.constant 3 : index
    %c0_23 = arith.constant 0 : index
    %9 = vector.load %arg5[%c0_20, %c3_21, %c3_22, %c0_23] : memref<1x10x10x32xbf16, #tpu.memory_space<vmem>>, vector<1x4x4x32xbf16>
    tpu.vector_store %arg5[%c0_20, %c3_21, %c3_22, %c0_23], %8 {strides = array<i32>} : memref<1x10x10x32xbf16, #tpu.memory_space<vmem>>, vector<1x4x4x32xbf16>,
    %c0_24 = arith.constant 0 : index
    %c0_25 = arith.constant 0 : index
    %c0_26 = arith.constant 0 : index
    %10 = vector.load %arg2[%c0_24, %c0_25, %c0_26] : memref<7x7x32xf32, #tpu.memory_space<vmem>>, vector<7x7x32xf32>
    %c0_27 = arith.constant 0 : index
    %c0_28 = arith.constant 0 : index
    %c0_29 = arith.constant 0 : index
    %c0_30 = arith.constant 0 : index
    %11 = vector.load %arg5[%c0_27, %c0_28, %c0_29, %c0_30] : memref<1x10x10x32xbf16, #tpu.memory_space<vmem>>, vector<1x4x4x32xbf16>
    %12 = arith.extf %11 : vector<1x4x4x32xbf16> to vector<1x4x4x32xf32>
    %13 = vector.extract_strided_slice %10 {offsets = [0, 0, 0], sizes = [1, 1, 32], strides = [1, 1, 1]} : vector<7x7x32xf32> to vector<1x1x32xf32>
    %14 = vector.shape_cast %13 : vector<1x1x32xf32> to vector<32xf32>
    %15 = vector.shape_cast %14 : vector<32xf32> to vector<1x1x1x32xf32>
    %16 = vector.broadcast %15 : vector<1x1x1x32xf32> to vector<1x4x4x32xf32>
    %17 = arith.mulf %12, %16 : vector<1x4x4x32xf32>
    %c0_31 = arith.constant 0 : index
    %c0_32 = arith.constant 0 : index
    %c1 = arith.constant 1 : index
    %c0_33 = arith.constant 0 : index
    %18 = vector.load %arg5[%c0_31, %c0_32, %c1, %c0_33] : memref<1x10x10x32xbf16, #tpu.memory_space<vmem>>, vector<1x4x4x32xbf16>
    %19 = arith.extf %18 : vector<1x4x4x32xbf16> to vector<1x4x4x32xf32>
    %20 = vector.extract_strided_slice %10 {offsets = [0, 1, 0], sizes = [1, 1, 32], strides = [1, 1, 1]} : vector<7x7x32xf32> to vector<1x1x32xf32>
    %21 = vector.shape_cast %20 : vector<1x1x32xf32> to vector<32xf32>
    %22 = vector.shape_cast %21 : vector<32xf32> to vector<1x1x1x32xf32>
    %23 = vector.broadcast %22 : vector<1x1x1x32xf32> to vector<1x4x4x32xf32>
    %24 = arith.mulf %19, %23 : vector<1x4x4x32xf32>
    %25 = arith.addf %17, %24 : vector<1x4x4x32xf32>
    %c0_34 = arith.constant 0 : index
    %c0_35 = arith.constant 0 : index
    %c2 = arith.constant 2 : index
    %c0_36 = arith.constant 0 : index
    %26 = vector.load %arg5[%c0_34, %c0_35, %c2, %c0_36] : memref<1x10x10x32xbf16, #tpu.memory_space<vmem>>, vector<1x4x4x32xbf16>
    %27 = arith.extf %26 : vector<1x4x4x32xbf16> to vector<1x4x4x32xf32>
    %28 = vector.extract_strided_slice %10 {offsets = [0, 2, 0], sizes = [1, 1, 32], strides = [1, 1, 1]} : vector<7x7x32xf32> to vector<1x1x32xf32>
    %29 = vector.shape_cast %28 : vector<1x1x32xf32> to vector<32xf32>
    %30 = vector.shape_cast %29 : vector<32xf32> to vector<1x1x1x32xf32>
    %31 = vector.broadcast %30 : vector<1x1x1x32xf32> to vector<1x4x4x32xf32>
    %32 = arith.mulf %27, %31 : vector<1x4x4x32xf32>
    %33 = arith.addf %25, %32 : vector<1x4x4x32xf32>
    %c0_37 = arith.constant 0 : index
    %c0_38 = arith.constant 0 : index
    %c3_39 = arith.constant 3 : index
    %c0_40 = arith.constant 0 : index
    %34 = vector.load %arg5[%c0_37, %c0_38, %c3_39, %c0_40] : memref<1x10x10x32xbf16, #tpu.memory_space<vmem>>, vector<1x4x4x32xbf16>
    %35 = arith.extf %34 : vector<1x4x4x32xbf16> to vector<1x4x4x32xf32>
    %36 = vector.extract_strided_slice %10 {offsets = [0, 3, 0], sizes = [1, 1, 32], strides = [1, 1, 1]} : vector<7x7x32xf32> to vector<1x1x32xf32>
    %37 = vector.shape_cast %36 : vector<1x1x32xf32> to vector<32xf32>
    %38 = vector.shape_cast %37 : vector<32xf32> to vector<1x1x1x32xf32>
    %39 = vector.broadcast %38 : vector<1x1x1x32xf32> to vector<1x4x4x32xf32>
    %40 = arith.mulf %35, %39 : vector<1x4x4x32xf32>
    %41 = arith.addf %33, %40 : vector<1x4x4x32xf32>
    %c0_41 = arith.constant 0 : index
    %c0_42 = arith.constant 0 : index
    %c4 = arith.constant 4 : index
    %c0_43 = arith.constant 0 : index
    %42 = vector.load %arg5[%c0_41, %c0_42, %c4, %c0_43] : memref<1x10x10x32xbf16, #tpu.memory_space<vmem>>, vector<1x4x4x32xbf16>
    %43 = arith.extf %42 : vector<1x4x4x32xbf16> to vector<1x4x4x32xf32>
    %44 = vector.extract_strided_slice %10 {offsets = [0, 4, 0], sizes = [1, 1, 32], strides = [1, 1, 1]} : vector<7x7x32xf32> to vector<1x1x32xf32>
    %45 = vector.shape_cast %44 : vector<1x1x32xf32> to vector<32xf32>
    %46 = vector.shape_cast %45 : vector<32xf32> to vector<1x1x1x32xf32>
    %47 = vector.broadcast %46 : vector<1x1x1x32xf32> to vector<1x4x4x32xf32>
    %48 = arith.mulf %43, %47 : vector<1x4x4x32xf32>
    %49 = arith.addf %41, %48 : vector<1x4x4x32xf32>
    %c0_44 = arith.constant 0 : index
    %c0_45 = arith.constant 0 : index
    %c5 = arith.constant 5 : index
    %c0_46 = arith.constant 0 : index
    %50 = vector.load %arg5[%c0_44, %c0_45, %c5, %c0_46] : memref<1x10x10x32xbf16, #tpu.memory_space<vmem>>, vector<1x4x4x32xbf16>
    %51 = arith.extf %50 : vector<1x4x4x32xbf16> to vector<1x4x4x32xf32>
    %52 = vector.extract_strided_slice %10 {offsets = [0, 5, 0], sizes = [1, 1, 32], strides = [1, 1, 1]} : vector<7x7x32xf32> to vector<1x1x32xf32>
    %53 = vector.shape_cast %52 : vector<1x1x32xf32> to vector<32xf32>
    %54 = vector.shape_cast %53 : vector<32xf32> to vector<1x1x1x32xf32>
    %55 = vector.broadcast %54 : vector<1x1x1x32xf32> to vector<1x4x4x32xf32>
    %56 = arith.mulf %51, %55 : vector<1x4x4x32xf32>
    %57 = arith.addf %49, %56 : vector<1x4x4x32xf32>
    %c0_47 = arith.constant 0 : index
    %c0_48 = arith.constant 0 : index
    %c6 = arith.constant 6 : index
    %c0_49 = arith.constant 0 : index
    %58 = vector.load %arg5[%c0_47, %c0_48, %c6, %c0_49] : memref<1x10x10x32xbf16, #tpu.memory_space<vmem>>, vector<1x4x4x32xbf16>
    %59 = arith.extf %58 : vector<1x4x4x32xbf16> to vector<1x4x4x32xf32>
    %60 = vector.extract_strided_slice %10 {offsets = [0, 6, 0], sizes = [1, 1, 32], strides = [1, 1, 1]} : vector<7x7x32xf32> to vector<1x1x32xf32>
    %61 = vector.shape_cast %60 : vector<1x1x32xf32> to vector<32xf32>
    %62 = vector.shape_cast %61 : vector<32xf32> to vector<1x1x1x32xf32>
    %63 = vector.broadcast %62 : vector<1x1x1x32xf32> to vector<1x4x4x32xf32>
    %64 = arith.mulf %59, %63 : vector<1x4x4x32xf32>
    %65 = arith.addf %57, %64 : vector<1x4x4x32xf32>
    %c0_50 = arith.constant 0 : index
    %c1_51 = arith.constant 1 : index
    %c0_52 = arith.constant 0 : index
    %c0_53 = arith.constant 0 : index
    %66 = vector.load %arg5[%c0_50, %c1_51, %c0_52, %c0_53] : memref<1x10x10x32xbf16, #tpu.memory_space<vmem>>, vector<1x4x4x32xbf16>
    %67 = arith.extf %66 : vector<1x4x4x32xbf16> to vector<1x4x4x32xf32>
    %68 = vector.extract_strided_slice %10 {offsets = [1, 0, 0], sizes = [1, 1, 32], strides = [1, 1, 1]} : vector<7x7x32xf32> to vector<1x1x32xf32>
    %69 = vector.shape_cast %68 : vector<1x1x32xf32> to vector<32xf32>
    %70 = vector.shape_cast %69 : vector<32xf32> to vector<1x1x1x32xf32>
    %71 = vector.broadcast %70 : vector<1x1x1x32xf32> to vector<1x4x4x32xf32>
    %72 = arith.mulf %67, %71 : vector<1x4x4x32xf32>
    %73 = arith.addf %65, %72 : vector<1x4x4x32xf32>
    %c0_54 = arith.constant 0 : index
    %c1_55 = arith.constant 1 : index
    %c1_56 = arith.constant 1 : index
    %c0_57 = arith.constant 0 : index
    %74 = vector.load %arg5[%c0_54, %c1_55, %c1_56, %c0_57] : memref<1x10x10x32xbf16, #tpu.memory_space<vmem>>, vector<1x4x4x32xbf16>
    %75 = arith.extf %74 : vector<1x4x4x32xbf16> to vector<1x4x4x32xf32>
    %76 = vector.extract_strided_slice %10 {offsets = [1, 1, 0], sizes = [1, 1, 32], strides = [1, 1, 1]} : vector<7x7x32xf32> to vector<1x1x32xf32>
    %77 = vector.shape_cast %76 : vector<1x1x32xf32> to vector<32xf32>
    %78 = vector.shape_cast %77 : vector<32xf32> to vector<1x1x1x32xf32>
    %79 = vector.broadcast %78 : vector<1x1x1x32xf32> to vector<1x4x4x32xf32>
    %80 = arith.mulf %75, %79 : vector<1x4x4x32xf32>
    %81 = arith.addf %73, %80 : vector<1x4x4x32xf32>
    %c0_58 = arith.constant 0 : index
    %c1_59 = arith.constant 1 : index
    %c2_60 = arith.constant 2 : index
    %c0_61 = arith.constant 0 : index
    %82 = vector.load %arg5[%c0_58, %c1_59, %c2_60, %c0_61] : memref<1x10x10x32xbf16, #tpu.memory_space<vmem>>, vector<1x4x4x32xbf16>
    %83 = arith.extf %82 : vector<1x4x4x32xbf16> to vector<1x4x4x32xf32>
    %84 = vector.extract_strided_slice %10 {offsets = [1, 2, 0], sizes = [1, 1, 32], strides = [1, 1, 1]} : vector<7x7x32xf32> to vector<1x1x32xf32>
    %85 = vector.shape_cast %84 : vector<1x1x32xf32> to vector<32xf32>
    %86 = vector.shape_cast %85 : vector<32xf32> to vector<1x1x1x32xf32>
    %87 = vector.broadcast %86 : vector<1x1x1x32xf32> to vector<1x4x4x32xf32>
    %88 = arith.mulf %83, %87 : vector<1x4x4x32xf32>
    %89 = arith.addf %81, %88 : vector<1x4x4x32xf32>
    %c0_62 = arith.constant 0 : index
    %c1_63 = arith.constant 1 : index
    %c3_64 = arith.constant 3 : index
    %c0_65 = arith.constant 0 : index
    %90 = vector.load %arg5[%c0_62, %c1_63, %c3_64, %c0_65] : memref<1x10x10x32xbf16, #tpu.memory_space<vmem>>, vector<1x4x4x32xbf16>
    %91 = arith.extf %90 : vector<1x4x4x32xbf16> to vector<1x4x4x32xf32>
    %92 = vector.extract_strided_slice %10 {offsets = [1, 3, 0], sizes = [1, 1, 32], strides = [1, 1, 1]} : vector<7x7x32xf32> to vector<1x1x32xf32>
    %93 = vector.shape_cast %92 : vector<1x1x32xf32> to vector<32xf32>
    %94 = vector.shape_cast %93 : vector<32xf32> to vector<1x1x1x32xf32>
    %95 = vector.broadcast %94 : vector<1x1x1x32xf32> to vector<1x4x4x32xf32>
    %96 = arith.mulf %91, %95 : vector<1x4x4x32xf32>
    %97 = arith.addf %89, %96 : vector<1x4x4x32xf32>
    %c0_66 = arith.constant 0 : index
    %c1_67 = arith.constant 1 : index
    %c4_68 = arith.constant 4 : index
    %c0_69 = arith.constant 0 : index
    %98 = vector.load %arg5[%c0_66, %c1_67, %c4_68, %c0_69] : memref<1x10x10x32xbf16, #tpu.memory_space<vmem>>, vector<1x4x4x32xbf16>
    %99 = arith.extf %98 : vector<1x4x4x32xbf16> to vector<1x4x4x32xf32>
    %100 = vector.extract_strided_slice %10 {offsets = [1, 4, 0], sizes = [1, 1, 32], strides = [1, 1, 1]} : vector<7x7x32xf32> to vector<1x1x32xf32>
    %101 = vector.shape_cast %100 : vector<1x1x32xf32> to vector<32xf32>
    %102 = vector.shape_cast %101 : vector<32xf32> to vector<1x1x1x32xf32>
    %103 = vector.broadcast %102 : vector<1x1x1x32xf32> to vector<1x4x4x32xf32>
    %104 = arith.mulf %99, %103 : vector<1x4x4x32xf32>
    %105 = arith.addf %97, %104 : vector<1x4x4x32xf32>
    %c0_70 = arith.constant 0 : index
    %c1_71 = arith.constant 1 : index
    %c5_72 = arith.constant 5 : index
    %c0_73 = arith.constant 0 : index
    %106 = vector.load %arg5[%c0_70, %c1_71, %c5_72, %c0_73] : memref<1x10x10x32xbf16, #tpu.memory_space<vmem>>, vector<1x4x4x32xbf16>
    %107 = arith.extf %106 : vector<1x4x4x32xbf16> to vector<1x4x4x32xf32>
    %108 = vector.extract_strided_slice %10 {offsets = [1, 5, 0], sizes = [1, 1, 32], strides = [1, 1, 1]} : vector<7x7x32xf32> to vector<1x1x32xf32>
    %109 = vector.shape_cast %108 : vector<1x1x32xf32> to vector<32xf32>
    %110 = vector.shape_cast %109 : vector<32xf32> to vector<1x1x1x32xf32>
    %111 = vector.broadcast %110 : vector<1x1x1x32xf32> to vector<1x4x4x32xf32>
    %112 = arith.mulf %107, %111 : vector<1x4x4x32xf32>
    %113 = arith.addf %105, %112 : vector<1x4x4x32xf32>
    %c0_74 = arith.constant 0 : index
    %c1_75 = arith.constant 1 : index
    %c6_76 = arith.constant 6 : index
    %c0_77 = arith.constant 0 : index
    %114 = vector.load %arg5[%c0_74, %c1_75, %c6_76, %c0_77] : memref<1x10x10x32xbf16, #tpu.memory_space<vmem>>, vector<1x4x4x32xbf16>
    %115 = arith.extf %114 : vector<1x4x4x32xbf16> to vector<1x4x4x32xf32>
    %116 = vector.extract_strided_slice %10 {offsets = [1, 6, 0], sizes = [1, 1, 32], strides = [1, 1, 1]} : vector<7x7x32xf32> to vector<1x1x32xf32>
    %117 = vector.shape_cast %116 : vector<1x1x32xf32> to vector<32xf32>
    %118 = vector.shape_cast %117 : vector<32xf32> to vector<1x1x1x32xf32>
    %119 = vector.broadcast %118 : vector<1x1x1x32xf32> to vector<1x4x4x32xf32>
    %120 = arith.mulf %115, %119 : vector<1x4x4x32xf32>
    %121 = arith.addf %113, %120 : vector<1x4x4x32xf32>
    %c0_78 = arith.constant 0 : index
    %c2_79 = arith.constant 2 : index
    %c0_80 = arith.constant 0 : index
    %c0_81 = arith.constant 0 : index
    %122 = vector.load %arg5[%c0_78, %c2_79, %c0_80, %c0_81] : memref<1x10x10x32xbf16, #tpu.memory_space<vmem>>, vector<1x4x4x32xbf16>
    %123 = arith.extf %122 : vector<1x4x4x32xbf16> to vector<1x4x4x32xf32>
    %124 = vector.extract_strided_slice %10 {offsets = [2, 0, 0], sizes = [1, 1, 32], strides = [1, 1, 1]} : vector<7x7x32xf32> to vector<1x1x32xf32>
    %125 = vector.shape_cast %124 : vector<1x1x32xf32> to vector<32xf32>
    %126 = vector.shape_cast %125 : vector<32xf32> to vector<1x1x1x32xf32>
    %127 = vector.broadcast %126 : vector<1x1x1x32xf32> to vector<1x4x4x32xf32>
    %128 = arith.mulf %123, %127 : vector<1x4x4x32xf32>
    %129 = arith.addf %121, %128 : vector<1x4x4x32xf32>
    %c0_82 = arith.constant 0 : index
    %c2_83 = arith.constant 2 : index
    %c1_84 = arith.constant 1 : index
    %c0_85 = arith.constant 0 : index
    %130 = vector.load %arg5[%c0_82, %c2_83, %c1_84, %c0_85] : memref<1x10x10x32xbf16, #tpu.memory_space<vmem>>, vector<1x4x4x32xbf16>
    %131 = arith.extf %130 : vector<1x4x4x32xbf16> to vector<1x4x4x32xf32>
    %132 = vector.extract_strided_slice %10 {offsets = [2, 1, 0], sizes = [1, 1, 32], strides = [1, 1, 1]} : vector<7x7x32xf32> to vector<1x1x32xf32>
    %133 = vector.shape_cast %132 : vector<1x1x32xf32> to vector<32xf32>
    %134 = vector.shape_cast %133 : vector<32xf32> to vector<1x1x1x32xf32>
    %135 = vector.broadcast %134 : vector<1x1x1x32xf32> to vector<1x4x4x32xf32>
    %136 = arith.mulf %131, %135 : vector<1x4x4x32xf32>
    %137 = arith.addf %129, %136 : vector<1x4x4x32xf32>
    %c0_86 = arith.constant 0 : index
    %c2_87 = arith.constant 2 : index
    %c2_88 = arith.constant 2 : index
    %c0_89 = arith.constant 0 : index
    %138 = vector.load %arg5[%c0_86, %c2_87, %c2_88, %c0_89] : memref<1x10x10x32xbf16, #tpu.memory_space<vmem>>, vector<1x4x4x32xbf16>
    %139 = arith.extf %138 : vector<1x4x4x32xbf16> to vector<1x4x4x32xf32>
    %140 = vector.extract_strided_slice %10 {offsets = [2, 2, 0], sizes = [1, 1, 32], strides = [1, 1, 1]} : vector<7x7x32xf32> to vector<1x1x32xf32>
    %141 = vector.shape_cast %140 : vector<1x1x32xf32> to vector<32xf32>
    %142 = vector.shape_cast %141 : vector<32xf32> to vector<1x1x1x32xf32>
    %143 = vector.broadcast %142 : vector<1x1x1x32xf32> to vector<1x4x4x32xf32>
    %144 = arith.mulf %139, %143 : vector<1x4x4x32xf32>
    %145 = arith.addf %137, %144 : vector<1x4x4x32xf32>
    %c0_90 = arith.constant 0 : index
    %c2_91 = arith.constant 2 : index
    %c3_92 = arith.constant 3 : index
    %c0_93 = arith.constant 0 : index
    %146 = vector.load %arg5[%c0_90, %c2_91, %c3_92, %c0_93] : memref<1x10x10x32xbf16, #tpu.memory_space<vmem>>, vector<1x4x4x32xbf16>
    %147 = arith.extf %146 : vector<1x4x4x32xbf16> to vector<1x4x4x32xf32>
    %148 = vector.extract_strided_slice %10 {offsets = [2, 3, 0], sizes = [1, 1, 32], strides = [1, 1, 1]} : vector<7x7x32xf32> to vector<1x1x32xf32>
    %149 = vector.shape_cast %148 : vector<1x1x32xf32> to vector<32xf32>
    %150 = vector.shape_cast %149 : vector<32xf32> to vector<1x1x1x32xf32>
    %151 = vector.broadcast %150 : vector<1x1x1x32xf32> to vector<1x4x4x32xf32>
    %152 = arith.mulf %147, %151 : vector<1x4x4x32xf32>
    %153 = arith.addf %145, %152 : vector<1x4x4x32xf32>
    %c0_94 = arith.constant 0 : index
    %c2_95 = arith.constant 2 : index
    %c4_96 = arith.constant 4 : index
    %c0_97 = arith.constant 0 : index
    %154 = vector.load %arg5[%c0_94, %c2_95, %c4_96, %c0_97] : memref<1x10x10x32xbf16, #tpu.memory_space<vmem>>, vector<1x4x4x32xbf16>
    %155 = arith.extf %154 : vector<1x4x4x32xbf16> to vector<1x4x4x32xf32>
    %156 = vector.extract_strided_slice %10 {offsets = [2, 4, 0], sizes = [1, 1, 32], strides = [1, 1, 1]} : vector<7x7x32xf32> to vector<1x1x32xf32>
    %157 = vector.shape_cast %156 : vector<1x1x32xf32> to vector<32xf32>
    %158 = vector.shape_cast %157 : vector<32xf32> to vector<1x1x1x32xf32>
    %159 = vector.broadcast %158 : vector<1x1x1x32xf32> to vector<1x4x4x32xf32>
    %160 = arith.mulf %155, %159 : vector<1x4x4x32xf32>
    %161 = arith.addf %153, %160 : vector<1x4x4x32xf32>
    %c0_98 = arith.constant 0 : index
    %c2_99 = arith.constant 2 : index
    %c5_100 = arith.constant 5 : index
    %c0_101 = arith.constant 0 : index
    %162 = vector.load %arg5[%c0_98, %c2_99, %c5_100, %c0_101] : memref<1x10x10x32xbf16, #tpu.memory_space<vmem>>, vector<1x4x4x32xbf16>
    %163 = arith.extf %162 : vector<1x4x4x32xbf16> to vector<1x4x4x32xf32>
    %164 = vector.extract_strided_slice %10 {offsets = [2, 5, 0], sizes = [1, 1, 32], strides = [1, 1, 1]} : vector<7x7x32xf32> to vector<1x1x32xf32>
    %165 = vector.shape_cast %164 : vector<1x1x32xf32> to vector<32xf32>
    %166 = vector.shape_cast %165 : vector<32xf32> to vector<1x1x1x32xf32>
    %167 = vector.broadcast %166 : vector<1x1x1x32xf32> to vector<1x4x4x32xf32>
    %168 = arith.mulf %163, %167 : vector<1x4x4x32xf32>
    %169 = arith.addf %161, %168 : vector<1x4x4x32xf32>
    %c0_102 = arith.constant 0 : index
    %c2_103 = arith.constant 2 : index
    %c6_104 = arith.constant 6 : index
    %c0_105 = arith.constant 0 : index
    %170 = vector.load %arg5[%c0_102, %c2_103, %c6_104, %c0_105] : memref<1x10x10x32xbf16, #tpu.memory_space<vmem>>, vector<1x4x4x32xbf16>
    %171 = arith.extf %170 : vector<1x4x4x32xbf16> to vector<1x4x4x32xf32>
    %172 = vector.extract_strided_slice %10 {offsets = [2, 6, 0], sizes = [1, 1, 32], strides = [1, 1, 1]} : vector<7x7x32xf32> to vector<1x1x32xf32>
    %173 = vector.shape_cast %172 : vector<1x1x32xf32> to vector<32xf32>
    %174 = vector.shape_cast %173 : vector<32xf32> to vector<1x1x1x32xf32>
    %175 = vector.broadcast %174 : vector<1x1x1x32xf32> to vector<1x4x4x32xf32>
    %176 = arith.mulf %171, %175 : vector<1x4x4x32xf32>
    %177 = arith.addf %169, %176 : vector<1x4x4x32xf32>
    %c0_106 = arith.constant 0 : index
    %c3_107 = arith.constant 3 : index
    %c0_108 = arith.constant 0 : index
    %c0_109 = arith.constant 0 : index
    %178 = vector.load %arg5[%c0_106, %c3_107, %c0_108, %c0_109] : memref<1x10x10x32xbf16, #tpu.memory_space<vmem>>, vector<1x4x4x32xbf16>
    %179 = arith.extf %178 : vector<1x4x4x32xbf16> to vector<1x4x4x32xf32>
    %180 = vector.extract_strided_slice %10 {offsets = [3, 0, 0], sizes = [1, 1, 32], strides = [1, 1, 1]} : vector<7x7x32xf32> to vector<1x1x32xf32>
    %181 = vector.shape_cast %180 : vector<1x1x32xf32> to vector<32xf32>
    %182 = vector.shape_cast %181 : vector<32xf32> to vector<1x1x1x32xf32>
    %183 = vector.broadcast %182 : vector<1x1x1x32xf32> to vector<1x4x4x32xf32>
    %184 = arith.mulf %179, %183 : vector<1x4x4x32xf32>
    %185 = arith.addf %177, %184 : vector<1x4x4x32xf32>
    %c0_110 = arith.constant 0 : index
    %c3_111 = arith.constant 3 : index
    %c1_112 = arith.constant 1 : index
    %c0_113 = arith.constant 0 : index
    %186 = vector.load %arg5[%c0_110, %c3_111, %c1_112, %c0_113] : memref<1x10x10x32xbf16, #tpu.memory_space<vmem>>, vector<1x4x4x32xbf16>
    %187 = arith.extf %186 : vector<1x4x4x32xbf16> to vector<1x4x4x32xf32>
    %188 = vector.extract_strided_slice %10 {offsets = [3, 1, 0], sizes = [1, 1, 32], strides = [1, 1, 1]} : vector<7x7x32xf32> to vector<1x1x32xf32>
    %189 = vector.shape_cast %188 : vector<1x1x32xf32> to vector<32xf32>
    %190 = vector.shape_cast %189 : vector<32xf32> to vector<1x1x1x32xf32>
    %191 = vector.broadcast %190 : vector<1x1x1x32xf32> to vector<1x4x4x32xf32>
    %192 = arith.mulf %187, %191 : vector<1x4x4x32xf32>
    %193 = arith.addf %185, %192 : vector<1x4x4x32xf32>
    %c0_114 = arith.constant 0 : index
    %c3_115 = arith.constant 3 : index
    %c2_116 = arith.constant 2 : index
    %c0_117 = arith.constant 0 : index
    %194 = vector.load %arg5[%c0_114, %c3_115, %c2_116, %c0_117] : memref<1x10x10x32xbf16, #tpu.memory_space<vmem>>, vector<1x4x4x32xbf16>
    %195 = arith.extf %194 : vector<1x4x4x32xbf16> to vector<1x4x4x32xf32>
    %196 = vector.extract_strided_slice %10 {offsets = [3, 2, 0], sizes = [1, 1, 32], strides = [1, 1, 1]} : vector<7x7x32xf32> to vector<1x1x32xf32>
    %197 = vector.shape_cast %196 : vector<1x1x32xf32> to vector<32xf32>
    %198 = vector.shape_cast %197 : vector<32xf32> to vector<1x1x1x32xf32>
    %199 = vector.broadcast %198 : vector<1x1x1x32xf32> to vector<1x4x4x32xf32>
    %200 = arith.mulf %195, %199 : vector<1x4x4x32xf32>
    %201 = arith.addf %193, %200 : vector<1x4x4x32xf32>
    %c0_118 = arith.constant 0 : index
    %c3_119 = arith.constant 3 : index
    %c3_120 = arith.constant 3 : index
    %c0_121 = arith.constant 0 : index
    %202 = vector.load %arg5[%c0_118, %c3_119, %c3_120, %c0_121] : memref<1x10x10x32xbf16, #tpu.memory_space<vmem>>, vector<1x4x4x32xbf16>
    %203 = arith.extf %202 : vector<1x4x4x32xbf16> to vector<1x4x4x32xf32>
    %204 = vector.extract_strided_slice %10 {offsets = [3, 3, 0], sizes = [1, 1, 32], strides = [1, 1, 1]} : vector<7x7x32xf32> to vector<1x1x32xf32>
    %205 = vector.shape_cast %204 : vector<1x1x32xf32> to vector<32xf32>
    %206 = vector.shape_cast %205 : vector<32xf32> to vector<1x1x1x32xf32>
    %207 = vector.broadcast %206 : vector<1x1x1x32xf32> to vector<1x4x4x32xf32>
    %208 = arith.mulf %203, %207 : vector<1x4x4x32xf32>
    %209 = arith.addf %201, %208 : vector<1x4x4x32xf32>
    %c0_122 = arith.constant 0 : index
    %c3_123 = arith.constant 3 : index
    %c4_124 = arith.constant 4 : index
    %c0_125 = arith.constant 0 : index
    %210 = vector.load %arg5[%c0_122, %c3_123, %c4_124, %c0_125] : memref<1x10x10x32xbf16, #tpu.memory_space<vmem>>, vector<1x4x4x32xbf16>
    %211 = arith.extf %210 : vector<1x4x4x32xbf16> to vector<1x4x4x32xf32>
    %212 = vector.extract_strided_slice %10 {offsets = [3, 4, 0], sizes = [1, 1, 32], strides = [1, 1, 1]} : vector<7x7x32xf32> to vector<1x1x32xf32>
    %213 = vector.shape_cast %212 : vector<1x1x32xf32> to vector<32xf32>
    %214 = vector.shape_cast %213 : vector<32xf32> to vector<1x1x1x32xf32>
    %215 = vector.broadcast %214 : vector<1x1x1x32xf32> to vector<1x4x4x32xf32>
    %216 = arith.mulf %211, %215 : vector<1x4x4x32xf32>
    %217 = arith.addf %209, %216 : vector<1x4x4x32xf32>
    %c0_126 = arith.constant 0 : index
    %c3_127 = arith.constant 3 : index
    %c5_128 = arith.constant 5 : index
    %c0_129 = arith.constant 0 : index
    %218 = vector.load %arg5[%c0_126, %c3_127, %c5_128, %c0_129] : memref<1x10x10x32xbf16, #tpu.memory_space<vmem>>, vector<1x4x4x32xbf16>
    %219 = arith.extf %218 : vector<1x4x4x32xbf16> to vector<1x4x4x32xf32>
    %220 = vector.extract_strided_slice %10 {offsets = [3, 5, 0], sizes = [1, 1, 32], strides = [1, 1, 1]} : vector<7x7x32xf32> to vector<1x1x32xf32>
    %221 = vector.shape_cast %220 : vector<1x1x32xf32> to vector<32xf32>
    %222 = vector.shape_cast %221 : vector<32xf32> to vector<1x1x1x32xf32>
    %223 = vector.broadcast %222 : vector<1x1x1x32xf32> to vector<1x4x4x32xf32>
    %224 = arith.mulf %219, %223 : vector<1x4x4x32xf32>
    %225 = arith.addf %217, %224 : vector<1x4x4x32xf32>
    %c0_130 = arith.constant 0 : index
    %c3_131 = arith.constant 3 : index
    %c6_132 = arith.constant 6 : index
    %c0_133 = arith.constant 0 : index
    %226 = vector.load %arg5[%c0_130, %c3_131, %c6_132, %c0_133] : memref<1x10x10x32xbf16, #tpu.memory_space<vmem>>, vector<1x4x4x32xbf16>
    %227 = arith.extf %226 : vector<1x4x4x32xbf16> to vector<1x4x4x32xf32>
    %228 = vector.extract_strided_slice %10 {offsets = [3, 6, 0], sizes = [1, 1, 32], strides = [1, 1, 1]} : vector<7x7x32xf32> to vector<1x1x32xf32>
    %229 = vector.shape_cast %228 : vector<1x1x32xf32> to vector<32xf32>
    %230 = vector.shape_cast %229 : vector<32xf32> to vector<1x1x1x32xf32>
    %231 = vector.broadcast %230 : vector<1x1x1x32xf32> to vector<1x4x4x32xf32>
    %232 = arith.mulf %227, %231 : vector<1x4x4x32xf32>
    %233 = arith.addf %225, %232 : vector<1x4x4x32xf32>
    %c0_134 = arith.constant 0 : index
    %c4_135 = arith.constant 4 : index
    %c0_136 = arith.constant 0 : index
    %c0_137 = arith.constant 0 : index
    %234 = vector.load %arg5[%c0_134, %c4_135, %c0_136, %c0_137] : memref<1x10x10x32xbf16, #tpu.memory_space<vmem>>, vector<1x4x4x32xbf16>
    %235 = arith.extf %234 : vector<1x4x4x32xbf16> to vector<1x4x4x32xf32>
    %236 = vector.extract_strided_slice %10 {offsets = [4, 0, 0], sizes = [1, 1, 32], strides = [1, 1, 1]} : vector<7x7x32xf32> to vector<1x1x32xf32>
    %237 = vector.shape_cast %236 : vector<1x1x32xf32> to vector<32xf32>
    %238 = vector.shape_cast %237 : vector<32xf32> to vector<1x1x1x32xf32>
    %239 = vector.broadcast %238 : vector<1x1x1x32xf32> to vector<1x4x4x32xf32>
    %240 = arith.mulf %235, %239 : vector<1x4x4x32xf32>
    %241 = arith.addf %233, %240 : vector<1x4x4x32xf32>
    %c0_138 = arith.constant 0 : index
    %c4_139 = arith.constant 4 : index
    %c1_140 = arith.constant 1 : index
    %c0_141 = arith.constant 0 : index
    %242 = vector.load %arg5[%c0_138, %c4_139, %c1_140, %c0_141] : memref<1x10x10x32xbf16, #tpu.memory_space<vmem>>, vector<1x4x4x32xbf16>
    %243 = arith.extf %242 : vector<1x4x4x32xbf16> to vector<1x4x4x32xf32>
    %244 = vector.extract_strided_slice %10 {offsets = [4, 1, 0], sizes = [1, 1, 32], strides = [1, 1, 1]} : vector<7x7x32xf32> to vector<1x1x32xf32>
    %245 = vector.shape_cast %244 : vector<1x1x32xf32> to vector<32xf32>
    %246 = vector.shape_cast %245 : vector<32xf32> to vector<1x1x1x32xf32>
    %247 = vector.broadcast %246 : vector<1x1x1x32xf32> to vector<1x4x4x32xf32>
    %248 = arith.mulf %243, %247 : vector<1x4x4x32xf32>
    %249 = arith.addf %241, %248 : vector<1x4x4x32xf32>
    %c0_142 = arith.constant 0 : index
    %c4_143 = arith.constant 4 : index
    %c2_144 = arith.constant 2 : index
    %c0_145 = arith.constant 0 : index
    %250 = vector.load %arg5[%c0_142, %c4_143, %c2_144, %c0_145] : memref<1x10x10x32xbf16, #tpu.memory_space<vmem>>, vector<1x4x4x32xbf16>
    %251 = arith.extf %250 : vector<1x4x4x32xbf16> to vector<1x4x4x32xf32>
    %252 = vector.extract_strided_slice %10 {offsets = [4, 2, 0], sizes = [1, 1, 32], strides = [1, 1, 1]} : vector<7x7x32xf32> to vector<1x1x32xf32>
    %253 = vector.shape_cast %252 : vector<1x1x32xf32> to vector<32xf32>
    %254 = vector.shape_cast %253 : vector<32xf32> to vector<1x1x1x32xf32>
    %255 = vector.broadcast %254 : vector<1x1x1x32xf32> to vector<1x4x4x32xf32>
    %256 = arith.mulf %251, %255 : vector<1x4x4x32xf32>
    %257 = arith.addf %249, %256 : vector<1x4x4x32xf32>
    %c0_146 = arith.constant 0 : index
    %c4_147 = arith.constant 4 : index
    %c3_148 = arith.constant 3 : index
    %c0_149 = arith.constant 0 : index
    %258 = vector.load %arg5[%c0_146, %c4_147, %c3_148, %c0_149] : memref<1x10x10x32xbf16, #tpu.memory_space<vmem>>, vector<1x4x4x32xbf16>
    %259 = arith.extf %258 : vector<1x4x4x32xbf16> to vector<1x4x4x32xf32>
    %260 = vector.extract_strided_slice %10 {offsets = [4, 3, 0], sizes = [1, 1, 32], strides = [1, 1, 1]} : vector<7x7x32xf32> to vector<1x1x32xf32>
    %261 = vector.shape_cast %260 : vector<1x1x32xf32> to vector<32xf32>
    %262 = vector.shape_cast %261 : vector<32xf32> to vector<1x1x1x32xf32>
    %263 = vector.broadcast %262 : vector<1x1x1x32xf32> to vector<1x4x4x32xf32>
    %264 = arith.mulf %259, %263 : vector<1x4x4x32xf32>
    %265 = arith.addf %257, %264 : vector<1x4x4x32xf32>
    %c0_150 = arith.constant 0 : index
    %c4_151 = arith.constant 4 : index
    %c4_152 = arith.constant 4 : index
    %c0_153 = arith.constant 0 : index
    %266 = vector.load %arg5[%c0_150, %c4_151, %c4_152, %c0_153] : memref<1x10x10x32xbf16, #tpu.memory_space<vmem>>, vector<1x4x4x32xbf16>
    %267 = arith.extf %266 : vector<1x4x4x32xbf16> to vector<1x4x4x32xf32>
    %268 = vector.extract_strided_slice %10 {offsets = [4, 4, 0], sizes = [1, 1, 32], strides = [1, 1, 1]} : vector<7x7x32xf32> to vector<1x1x32xf32>
    %269 = vector.shape_cast %268 : vector<1x1x32xf32> to vector<32xf32>
    %270 = vector.shape_cast %269 : vector<32xf32> to vector<1x1x1x32xf32>
    %271 = vector.broadcast %270 : vector<1x1x1x32xf32> to vector<1x4x4x32xf32>
    %272 = arith.mulf %267, %271 : vector<1x4x4x32xf32>
    %273 = arith.addf %265, %272 : vector<1x4x4x32xf32>
    %c0_154 = arith.constant 0 : index
    %c4_155 = arith.constant 4 : index
    %c5_156 = arith.constant 5 : index
    %c0_157 = arith.constant 0 : index
    %274 = vector.load %arg5[%c0_154, %c4_155, %c5_156, %c0_157] : memref<1x10x10x32xbf16, #tpu.memory_space<vmem>>, vector<1x4x4x32xbf16>
    %275 = arith.extf %274 : vector<1x4x4x32xbf16> to vector<1x4x4x32xf32>
    %276 = vector.extract_strided_slice %10 {offsets = [4, 5, 0], sizes = [1, 1, 32], strides = [1, 1, 1]} : vector<7x7x32xf32> to vector<1x1x32xf32>
    %277 = vector.shape_cast %276 : vector<1x1x32xf32> to vector<32xf32>
    %278 = vector.shape_cast %277 : vector<32xf32> to vector<1x1x1x32xf32>
    %279 = vector.broadcast %278 : vector<1x1x1x32xf32> to vector<1x4x4x32xf32>
    %280 = arith.mulf %275, %279 : vector<1x4x4x32xf32>
    %281 = arith.addf %273, %280 : vector<1x4x4x32xf32>
    %c0_158 = arith.constant 0 : index
    %c4_159 = arith.constant 4 : index
    %c6_160 = arith.constant 6 : index
    %c0_161 = arith.constant 0 : index
    %282 = vector.load %arg5[%c0_158, %c4_159, %c6_160, %c0_161] : memref<1x10x10x32xbf16, #tpu.memory_space<vmem>>, vector<1x4x4x32xbf16>
    %283 = arith.extf %282 : vector<1x4x4x32xbf16> to vector<1x4x4x32xf32>
    %284 = vector.extract_strided_slice %10 {offsets = [4, 6, 0], sizes = [1, 1, 32], strides = [1, 1, 1]} : vector<7x7x32xf32> to vector<1x1x32xf32>
    %285 = vector.shape_cast %284 : vector<1x1x32xf32> to vector<32xf32>
    %286 = vector.shape_cast %285 : vector<32xf32> to vector<1x1x1x32xf32>
    %287 = vector.broadcast %286 : vector<1x1x1x32xf32> to vector<1x4x4x32xf32>
    %288 = arith.mulf %283, %287 : vector<1x4x4x32xf32>
    %289 = arith.addf %281, %288 : vector<1x4x4x32xf32>
    %c0_162 = arith.constant 0 : index
    %c5_163 = arith.constant 5 : index
    %c0_164 = arith.constant 0 : index
    %c0_165 = arith.constant 0 : index
    %290 = vector.load %arg5[%c0_162, %c5_163, %c0_164, %c0_165] : memref<1x10x10x32xbf16, #tpu.memory_space<vmem>>, vector<1x4x4x32xbf16>
    %291 = arith.extf %290 : vector<1x4x4x32xbf16> to vector<1x4x4x32xf32>
    %292 = vector.extract_strided_slice %10 {offsets = [5, 0, 0], sizes = [1, 1, 32], strides = [1, 1, 1]} : vector<7x7x32xf32> to vector<1x1x32xf32>
    %293 = vector.shape_cast %292 : vector<1x1x32xf32> to vector<32xf32>
    %294 = vector.shape_cast %293 : vector<32xf32> to vector<1x1x1x32xf32>
    %295 = vector.broadcast %294 : vector<1x1x1x32xf32> to vector<1x4x4x32xf32>
    %296 = arith.mulf %291, %295 : vector<1x4x4x32xf32>
    %297 = arith.addf %289, %296 : vector<1x4x4x32xf32>
    %c0_166 = arith.constant 0 : index
    %c5_167 = arith.constant 5 : index
    %c1_168 = arith.constant 1 : index
    %c0_169 = arith.constant 0 : index
    %298 = vector.load %arg5[%c0_166, %c5_167, %c1_168, %c0_169] : memref<1x10x10x32xbf16, #tpu.memory_space<vmem>>, vector<1x4x4x32xbf16>
    %299 = arith.extf %298 : vector<1x4x4x32xbf16> to vector<1x4x4x32xf32>
    %300 = vector.extract_strided_slice %10 {offsets = [5, 1, 0], sizes = [1, 1, 32], strides = [1, 1, 1]} : vector<7x7x32xf32> to vector<1x1x32xf32>
    %301 = vector.shape_cast %300 : vector<1x1x32xf32> to vector<32xf32>
    %302 = vector.shape_cast %301 : vector<32xf32> to vector<1x1x1x32xf32>
    %303 = vector.broadcast %302 : vector<1x1x1x32xf32> to vector<1x4x4x32xf32>
    %304 = arith.mulf %299, %303 : vector<1x4x4x32xf32>
    %305 = arith.addf %297, %304 : vector<1x4x4x32xf32>
    %c0_170 = arith.constant 0 : index
    %c5_171 = arith.constant 5 : index
    %c2_172 = arith.constant 2 : index
    %c0_173 = arith.constant 0 : index
    %306 = vector.load %arg5[%c0_170, %c5_171, %c2_172, %c0_173] : memref<1x10x10x32xbf16, #tpu.memory_space<vmem>>, vector<1x4x4x32xbf16>
    %307 = arith.extf %306 : vector<1x4x4x32xbf16> to vector<1x4x4x32xf32>
    %308 = vector.extract_strided_slice %10 {offsets = [5, 2, 0], sizes = [1, 1, 32], strides = [1, 1, 1]} : vector<7x7x32xf32> to vector<1x1x32xf32>
    %309 = vector.shape_cast %308 : vector<1x1x32xf32> to vector<32xf32>
    %310 = vector.shape_cast %309 : vector<32xf32> to vector<1x1x1x32xf32>
    %311 = vector.broadcast %310 : vector<1x1x1x32xf32> to vector<1x4x4x32xf32>
    %312 = arith.mulf %307, %311 : vector<1x4x4x32xf32>
    %313 = arith.addf %305, %312 : vector<1x4x4x32xf32>
    %c0_174 = arith.constant 0 : index
    %c5_175 = arith.constant 5 : index
    %c3_176 = arith.constant 3 : index
    %c0_177 = arith.constant 0 : index
    %314 = vector.load %arg5[%c0_174, %c5_175, %c3_176, %c0_177] : memref<1x10x10x32xbf16, #tpu.memory_space<vmem>>, vector<1x4x4x32xbf16>
    %315 = arith.extf %314 : vector<1x4x4x32xbf16> to vector<1x4x4x32xf32>
    %316 = vector.extract_strided_slice %10 {offsets = [5, 3, 0], sizes = [1, 1, 32], strides = [1, 1, 1]} : vector<7x7x32xf32> to vector<1x1x32xf32>
    %317 = vector.shape_cast %316 : vector<1x1x32xf32> to vector<32xf32>
    %318 = vector.shape_cast %317 : vector<32xf32> to vector<1x1x1x32xf32>
    %319 = vector.broadcast %318 : vector<1x1x1x32xf32> to vector<1x4x4x32xf32>
    %320 = arith.mulf %315, %319 : vector<1x4x4x32xf32>
    %321 = arith.addf %313, %320 : vector<1x4x4x32xf32>
    %c0_178 = arith.constant 0 : index
    %c5_179 = arith.constant 5 : index
    %c4_180 = arith.constant 4 : index
    %c0_181 = arith.constant 0 : index
    %322 = vector.load %arg5[%c0_178, %c5_179, %c4_180, %c0_181] : memref<1x10x10x32xbf16, #tpu.memory_space<vmem>>, vector<1x4x4x32xbf16>
    %323 = arith.extf %322 : vector<1x4x4x32xbf16> to vector<1x4x4x32xf32>
    %324 = vector.extract_strided_slice %10 {offsets = [5, 4, 0], sizes = [1, 1, 32], strides = [1, 1, 1]} : vector<7x7x32xf32> to vector<1x1x32xf32>
    %325 = vector.shape_cast %324 : vector<1x1x32xf32> to vector<32xf32>
    %326 = vector.shape_cast %325 : vector<32xf32> to vector<1x1x1x32xf32>
    %327 = vector.broadcast %326 : vector<1x1x1x32xf32> to vector<1x4x4x32xf32>
    %328 = arith.mulf %323, %327 : vector<1x4x4x32xf32>
    %329 = arith.addf %321, %328 : vector<1x4x4x32xf32>
    %c0_182 = arith.constant 0 : index
    %c5_183 = arith.constant 5 : index
    %c5_184 = arith.constant 5 : index
    %c0_185 = arith.constant 0 : index
    %330 = vector.load %arg5[%c0_182, %c5_183, %c5_184, %c0_185] : memref<1x10x10x32xbf16, #tpu.memory_space<vmem>>, vector<1x4x4x32xbf16>
    %331 = arith.extf %330 : vector<1x4x4x32xbf16> to vector<1x4x4x32xf32>
    %332 = vector.extract_strided_slice %10 {offsets = [5, 5, 0], sizes = [1, 1, 32], strides = [1, 1, 1]} : vector<7x7x32xf32> to vector<1x1x32xf32>
    %333 = vector.shape_cast %332 : vector<1x1x32xf32> to vector<32xf32>
    %334 = vector.shape_cast %333 : vector<32xf32> to vector<1x1x1x32xf32>
    %335 = vector.broadcast %334 : vector<1x1x1x32xf32> to vector<1x4x4x32xf32>
    %336 = arith.mulf %331, %335 : vector<1x4x4x32xf32>
    %337 = arith.addf %329, %336 : vector<1x4x4x32xf32>
    %c0_186 = arith.constant 0 : index
    %c5_187 = arith.constant 5 : index
    %c6_188 = arith.constant 6 : index
    %c0_189 = arith.constant 0 : index
    %338 = vector.load %arg5[%c0_186, %c5_187, %c6_188, %c0_189] : memref<1x10x10x32xbf16, #tpu.memory_space<vmem>>, vector<1x4x4x32xbf16>
    %339 = arith.extf %338 : vector<1x4x4x32xbf16> to vector<1x4x4x32xf32>
    %340 = vector.extract_strided_slice %10 {offsets = [5, 6, 0], sizes = [1, 1, 32], strides = [1, 1, 1]} : vector<7x7x32xf32> to vector<1x1x32xf32>
    %341 = vector.shape_cast %340 : vector<1x1x32xf32> to vector<32xf32>
    %342 = vector.shape_cast %341 : vector<32xf32> to vector<1x1x1x32xf32>
    %343 = vector.broadcast %342 : vector<1x1x1x32xf32> to vector<1x4x4x32xf32>
    %344 = arith.mulf %339, %343 : vector<1x4x4x32xf32>
    %345 = arith.addf %337, %344 : vector<1x4x4x32xf32>
    %c0_190 = arith.constant 0 : index
    %c6_191 = arith.constant 6 : index
    %c0_192 = arith.constant 0 : index
    %c0_193 = arith.constant 0 : index
    %346 = vector.load %arg5[%c0_190, %c6_191, %c0_192, %c0_193] : memref<1x10x10x32xbf16, #tpu.memory_space<vmem>>, vector<1x4x4x32xbf16>
    %347 = arith.extf %346 : vector<1x4x4x32xbf16> to vector<1x4x4x32xf32>
    %348 = vector.extract_strided_slice %10 {offsets = [6, 0, 0], sizes = [1, 1, 32], strides = [1, 1, 1]} : vector<7x7x32xf32> to vector<1x1x32xf32>
    %349 = vector.shape_cast %348 : vector<1x1x32xf32> to vector<32xf32>
    %350 = vector.shape_cast %349 : vector<32xf32> to vector<1x1x1x32xf32>
    %351 = vector.broadcast %350 : vector<1x1x1x32xf32> to vector<1x4x4x32xf32>
    %352 = arith.mulf %347, %351 : vector<1x4x4x32xf32>
    %353 = arith.addf %345, %352 : vector<1x4x4x32xf32>
    %c0_194 = arith.constant 0 : index
    %c6_195 = arith.constant 6 : index
    %c1_196 = arith.constant 1 : index
    %c0_197 = arith.constant 0 : index
    %354 = vector.load %arg5[%c0_194, %c6_195, %c1_196, %c0_197] : memref<1x10x10x32xbf16, #tpu.memory_space<vmem>>, vector<1x4x4x32xbf16>
    %355 = arith.extf %354 : vector<1x4x4x32xbf16> to vector<1x4x4x32xf32>
    %356 = vector.extract_strided_slice %10 {offsets = [6, 1, 0], sizes = [1, 1, 32], strides = [1, 1, 1]} : vector<7x7x32xf32> to vector<1x1x32xf32>
    %357 = vector.shape_cast %356 : vector<1x1x32xf32> to vector<32xf32>
    %358 = vector.shape_cast %357 : vector<32xf32> to vector<1x1x1x32xf32>
    %359 = vector.broadcast %358 : vector<1x1x1x32xf32> to vector<1x4x4x32xf32>
    %360 = arith.mulf %355, %359 : vector<1x4x4x32xf32>
    %361 = arith.addf %353, %360 : vector<1x4x4x32xf32>
    %c0_198 = arith.constant 0 : index
    %c6_199 = arith.constant 6 : index
    %c2_200 = arith.constant 2 : index
    %c0_201 = arith.constant 0 : index
    %362 = vector.load %arg5[%c0_198, %c6_199, %c2_200, %c0_201] : memref<1x10x10x32xbf16, #tpu.memory_space<vmem>>, vector<1x4x4x32xbf16>
    %363 = arith.extf %362 : vector<1x4x4x32xbf16> to vector<1x4x4x32xf32>
    %364 = vector.extract_strided_slice %10 {offsets = [6, 2, 0], sizes = [1, 1, 32], strides = [1, 1, 1]} : vector<7x7x32xf32> to vector<1x1x32xf32>
    %365 = vector.shape_cast %364 : vector<1x1x32xf32> to vector<32xf32>
    %366 = vector.shape_cast %365 : vector<32xf32> to vector<1x1x1x32xf32>
    %367 = vector.broadcast %366 : vector<1x1x1x32xf32> to vector<1x4x4x32xf32>
    %368 = arith.mulf %363, %367 : vector<1x4x4x32xf32>
    %369 = arith.addf %361, %368 : vector<1x4x4x32xf32>
    %c0_202 = arith.constant 0 : index
    %c6_203 = arith.constant 6 : index
    %c3_204 = arith.constant 3 : index
    %c0_205 = arith.constant 0 : index
    %370 = vector.load %arg5[%c0_202, %c6_203, %c3_204, %c0_205] : memref<1x10x10x32xbf16, #tpu.memory_space<vmem>>, vector<1x4x4x32xbf16>
    %371 = arith.extf %370 : vector<1x4x4x32xbf16> to vector<1x4x4x32xf32>
    %372 = vector.extract_strided_slice %10 {offsets = [6, 3, 0], sizes = [1, 1, 32], strides = [1, 1, 1]} : vector<7x7x32xf32> to vector<1x1x32xf32>
    %373 = vector.shape_cast %372 : vector<1x1x32xf32> to vector<32xf32>
    %374 = vector.shape_cast %373 : vector<32xf32> to vector<1x1x1x32xf32>
    %375 = vector.broadcast %374 : vector<1x1x1x32xf32> to vector<1x4x4x32xf32>
    %376 = arith.mulf %371, %375 : vector<1x4x4x32xf32>
    %377 = arith.addf %369, %376 : vector<1x4x4x32xf32>
    %c0_206 = arith.constant 0 : index
    %c6_207 = arith.constant 6 : index
    %c4_208 = arith.constant 4 : index
    %c0_209 = arith.constant 0 : index
    %378 = vector.load %arg5[%c0_206, %c6_207, %c4_208, %c0_209] : memref<1x10x10x32xbf16, #tpu.memory_space<vmem>>, vector<1x4x4x32xbf16>
    %379 = arith.extf %378 : vector<1x4x4x32xbf16> to vector<1x4x4x32xf32>
    %380 = vector.extract_strided_slice %10 {offsets = [6, 4, 0], sizes = [1, 1, 32], strides = [1, 1, 1]} : vector<7x7x32xf32> to vector<1x1x32xf32>
    %381 = vector.shape_cast %380 : vector<1x1x32xf32> to vector<32xf32>
    %382 = vector.shape_cast %381 : vector<32xf32> to vector<1x1x1x32xf32>
    %383 = vector.broadcast %382 : vector<1x1x1x32xf32> to vector<1x4x4x32xf32>
    %384 = arith.mulf %379, %383 : vector<1x4x4x32xf32>
    %385 = arith.addf %377, %384 : vector<1x4x4x32xf32>
    %c0_210 = arith.constant 0 : index
    %c6_211 = arith.constant 6 : index
    %c5_212 = arith.constant 5 : index
    %c0_213 = arith.constant 0 : index
    %386 = vector.load %arg5[%c0_210, %c6_211, %c5_212, %c0_213] : memref<1x10x10x32xbf16, #tpu.memory_space<vmem>>, vector<1x4x4x32xbf16>
    %387 = arith.extf %386 : vector<1x4x4x32xbf16> to vector<1x4x4x32xf32>
    %388 = vector.extract_strided_slice %10 {offsets = [6, 5, 0], sizes = [1, 1, 32], strides = [1, 1, 1]} : vector<7x7x32xf32> to vector<1x1x32xf32>
    %389 = vector.shape_cast %388 : vector<1x1x32xf32> to vector<32xf32>
    %390 = vector.shape_cast %389 : vector<32xf32> to vector<1x1x1x32xf32>
    %391 = vector.broadcast %390 : vector<1x1x1x32xf32> to vector<1x4x4x32xf32>
    %392 = arith.mulf %387, %391 : vector<1x4x4x32xf32>
    %393 = arith.addf %385, %392 : vector<1x4x4x32xf32>
    %c0_214 = arith.constant 0 : index
    %c6_215 = arith.constant 6 : index
    %c6_216 = arith.constant 6 : index
    %c0_217 = arith.constant 0 : index
    %394 = vector.load %arg5[%c0_214, %c6_215, %c6_216, %c0_217] : memref<1x10x10x32xbf16, #tpu.memory_space<vmem>>, vector<1x4x4x32xbf16>
    %395 = arith.extf %394 : vector<1x4x4x32xbf16> to vector<1x4x4x32xf32>
    %396 = vector.extract_strided_slice %10 {offsets = [6, 6, 0], sizes = [1, 1, 32], strides = [1, 1, 1]} : vector<7x7x32xf32> to vector<1x1x32xf32>
    %397 = vector.shape_cast %396 : vector<1x1x32xf32> to vector<32xf32>
    %398 = vector.shape_cast %397 : vector<32xf32> to vector<1x1x1x32xf32>
    %399 = vector.broadcast %398 : vector<1x1x1x32xf32> to vector<1x4x4x32xf32>
    %400 = arith.mulf %395, %399 : vector<1x4x4x32xf32>
    %401 = arith.addf %393, %400 : vector<1x4x4x32xf32>
    %c0_218 = arith.constant 0 : index
    %c0_219 = arith.constant 0 : index
    %c0_220 = arith.constant 0 : index
    %c0_221 = arith.constant 0 : index
    %402 = vector.load %arg3[%c0_218, %c0_219, %c0_220, %c0_221] : memref<1x1x1x32xf32, #tpu.memory_space<vmem>>, vector<1x1x1x32xf32>
    %403 = vector.broadcast %402 : vector<1x1x1x32xf32> to vector<1x4x4x32xf32>
    %404 = arith.addf %401, %403 : vector<1x4x4x32xf32>
    %405 = arith.truncf %404 : vector<1x4x4x32xf32> to vector<1x4x4x32xbf16>
    %c0_222 = arith.constant 0 : index
    %c0_223 = arith.constant 0 : index
    %c0_224 = arith.constant 0 : index
    %c0_225 = arith.constant 0 : index
    %406 = vector.load %arg4[%c0_222, %c0_223, %c0_224, %c0_225] : memref<1x4x4x32xbf16, #tpu.memory_space<vmem>>, vector<1x4x4x32xbf16>
    tpu.vector_store %arg4[%c0_222, %c0_223, %c0_224, %c0_225], %405 {strides = array<i32>} : memref<1x4x4x32xbf16, #tpu.memory_space<vmem>>, vector<1x4x4x32xbf16>,
    return
  }
  func.func @transform_0(%arg0: i32) -> (i32, i32, i32, i32) {
    %c0_i32 = arith.constant 0 : i32
    %c0_i32_0 = arith.constant 0 : i32
    %c0_i32_1 = arith.constant 0 : i32
    %c0_i32_2 = arith.constant 0 : i32
    return %arg0, %c0_i32, %c0_i32_0, %c0_i32_1 : i32, i32, i32, i32
  }
  func.func @transform_1(%arg0: i32) -> (i32, i32, i32) {
    %c0_i32 = arith.constant 0 : i32
    %c0_i32_0 = arith.constant 0 : i32
    %c0_i32_1 = arith.constant 0 : i32
    %c0_i32_2 = arith.constant 0 : i32
    return %c0_i32, %c0_i32_0, %c0_i32_1 : i32, i32, i32
  }
  func.func @transform_2(%arg0: i32) -> (i32, i32, i32, i32) {
    %c0_i32 = arith.constant 0 : i32
    %c0_i32_0 = arith.constant 0 : i32
    %c0_i32_1 = arith.constant 0 : i32
    %c0_i32_2 = arith.constant 0 : i32
    %c0_i32_3 = arith.constant 0 : i32
    return %c0_i32, %c0_i32_0, %c0_i32_1, %c0_i32_2 : i32, i32, i32, i32
  }
  func.func @transform_3(%arg0: i32) -> (i32, i32, i32, i32) {
    %c0_i32 = arith.constant 0 : i32
    %c0_i32_0 = arith.constant 0 : i32
    %c0_i32_1 = arith.constant 0 : i32
    %c0_i32_2 = arith.constant 0 : i32
    return %arg0, %c0_i32, %c0_i32_0, %c0_i32_1 : i32, i32, i32, i32
  }
}

module attributes {stable_mosaic.version = 11 : i64} {
  func.func @kernel(%arg0: i32, %arg1: memref<32x32xbf16, #tpu.memory_space<vmem>>, %arg2: memref<32x32xbf16, #tpu.memory_space<vmem>>, %arg3: memref<1x32xf32, #tpu.memory_space<vmem>>, %arg4: memref<1x32xf32, #tpu.memory_space<vmem>>, %arg5: memref<32x128xbf16, #tpu.memory_space<vmem>>, %arg6: memref<1x128xf32, #tpu.memory_space<vmem>>, %arg7: memref<64x32xbf16, #tpu.memory_space<vmem>>, %arg8: memref<1x32xf32, #tpu.memory_space<vmem>>, %arg9: memref<1x32xf32, #tpu.memory_space<vmem>>, %arg10: memref<1x32xf32, #tpu.memory_space<vmem>>, %arg11: memref<32x32xbf16, #tpu.memory_space<vmem>>) attributes {dimension_semantics = [#tpu.dimension_semantics<parallel>], iteration_bounds = array<i64: 1>, scalar_prefetch = 0 : i64, scratch_operands = 0 : i64, tpu.core_type = #tpu.core_type<tc>, window_params = [{transform_indices = @transform_0, window_bounds = array<i64: 32, 32>}, {transform_indices = @transform_1, window_bounds = array<i64: 32, 32>}, {pipeline_mode = #tpu.pipeline_mode<synchronous>, transform_indices = @transform_2, window_bounds = array<i64: 1, 32>}, {pipeline_mode = #tpu.pipeline_mode<synchronous>, transform_indices = @transform_3, window_bounds = array<i64: 1, 32>}, {pipeline_mode = #tpu.pipeline_mode<synchronous>, transform_indices = @transform_4, window_bounds = array<i64: 32, 128>}, {pipeline_mode = #tpu.pipeline_mode<synchronous>, transform_indices = @transform_5, window_bounds = array<i64: 1, 128>}, {pipeline_mode = #tpu.pipeline_mode<synchronous>, transform_indices = @transform_6, window_bounds = array<i64: 64, 32>}, {pipeline_mode = #tpu.pipeline_mode<synchronous>, transform_indices = @transform_7, window_bounds = array<i64: 1, 32>}, {pipeline_mode = #tpu.pipeline_mode<synchronous>, transform_indices = @transform_8, window_bounds = array<i64: 1, 32>}, {pipeline_mode = #tpu.pipeline_mode<synchronous>, transform_indices = @transform_9, window_bounds = array<i64: 1, 32>}, {transform_indices = @transform_10, window_bounds = array<i64: 32, 32>}]} {
    %c0 = arith.constant 0 : index
    %c0_0 = arith.constant 0 : index
    %0 = vector.load %arg1[%c0, %c0_0] : memref<32x32xbf16, #tpu.memory_space<vmem>>, vector<32x32xbf16>
    %1 = arith.extf %0 : vector<32x32xbf16> to vector<32x32xf32>
    %cst = arith.constant dense<0.000000e+00> : vector<32xf32>
    %2 = vector.multi_reduction <add>, %1, %cst [1] : vector<32x32xf32> to vector<32xf32>
    %3 = vector.shape_cast %2 : vector<32xf32> to vector<32x1xf32>
    %cst_1 = arith.constant 3.200000e+01 : f32
    %4 = vector.broadcast %cst_1 : f32 to vector<32x1xf32>
    %5 = arith.divf %3, %4 : vector<32x1xf32>
    %6 = vector.broadcast %5 : vector<32x1xf32> to vector<32x32xf32>
    %7 = arith.subf %1, %6 : vector<32x32xf32>
    %8 = arith.mulf %7, %7 : vector<32x32xf32>
    %cst_2 = arith.constant dense<0.000000e+00> : vector<32xf32>
    %9 = vector.multi_reduction <add>, %8, %cst_2 [1] : vector<32x32xf32> to vector<32xf32>
    %10 = vector.shape_cast %9 : vector<32xf32> to vector<32x1xf32>
    %cst_3 = arith.constant 3.200000e+01 : f32
    %11 = vector.broadcast %cst_3 : f32 to vector<32x1xf32>
    %12 = arith.divf %10, %11 : vector<32x1xf32>
    %13 = vector.broadcast %5 : vector<32x1xf32> to vector<32x32xf32>
    %14 = arith.subf %1, %13 : vector<32x32xf32>
    %cst_4 = arith.constant 9.99999974E-6 : f32
    %15 = vector.broadcast %cst_4 : f32 to vector<32x1xf32>
    %16 = arith.addf %12, %15 : vector<32x1xf32>
    %17 = math.rsqrt %16 : vector<32x1xf32>
    %18 = vector.broadcast %17 : vector<32x1xf32> to vector<32x32xf32>
    %19 = arith.mulf %14, %18 : vector<32x32xf32>
    %c0_5 = arith.constant 0 : index
    %c0_6 = arith.constant 0 : index
    %20 = vector.load %arg3[%c0_5, %c0_6] : memref<1x32xf32, #tpu.memory_space<vmem>>, vector<1x32xf32>
    %21 = vector.broadcast %20 : vector<1x32xf32> to vector<32x32xf32>
    %22 = arith.mulf %19, %21 : vector<32x32xf32>
    %c0_7 = arith.constant 0 : index
    %c0_8 = arith.constant 0 : index
    %23 = vector.load %arg4[%c0_7, %c0_8] : memref<1x32xf32, #tpu.memory_space<vmem>>, vector<1x32xf32>
    %24 = vector.broadcast %23 : vector<1x32xf32> to vector<32x32xf32>
    %25 = arith.addf %22, %24 : vector<32x32xf32>
    %26 = arith.truncf %25 : vector<32x32xf32> to vector<32x32xbf16>
    %c0_9 = arith.constant 0 : index
    %c0_10 = arith.constant 0 : index
    %27 = vector.load %arg5[%c0_9, %c0_10] : memref<32x128xbf16, #tpu.memory_space<vmem>>, vector<32x128xbf16>
    %cst_11 = arith.constant dense<0.000000e+00> : vector<32x128xf32>
    %28 = tpu.matmul %26, %27, %cst_11 {dimension_numbers = #tpu.dot_dimension_numbers<[1], [0], [0], [1], [0, 0, 1, 1], [], []>} : vector<32x32xbf16>, vector<32x128xbf16>, vector<32x128xf32> -> vector<32x128xf32>
    %c0_12 = arith.constant 0 : index
    %c0_13 = arith.constant 0 : index
    %29 = vector.load %arg6[%c0_12, %c0_13] : memref<1x128xf32, #tpu.memory_space<vmem>>, vector<1x128xf32>
    %30 = vector.broadcast %29 : vector<1x128xf32> to vector<32x128xf32>
    %31 = arith.addf %28, %30 : vector<32x128xf32>
    %32 = vector.extract_strided_slice %31 {offsets = [0, 0], sizes = [32, 64], strides = [1, 1]} : vector<32x128xf32> to vector<32x64xf32>
    %33 = arith.mulf %32, %32 : vector<32x64xf32>
    %34 = arith.mulf %32, %33 : vector<32x64xf32>
    %cst_14 = arith.constant 4.471500e-02 : f32
    %35 = vector.broadcast %cst_14 : f32 to vector<32x64xf32>
    %36 = arith.mulf %35, %34 : vector<32x64xf32>
    %37 = arith.addf %32, %36 : vector<32x64xf32>
    %cst_15 = arith.constant 0.797884583 : f32
    %38 = vector.broadcast %cst_15 : f32 to vector<32x64xf32>
    %39 = arith.mulf %38, %37 : vector<32x64xf32>
    %40 = math.tanh %39 : vector<32x64xf32>
    %cst_16 = arith.constant 1.000000e+00 : f32
    %41 = vector.broadcast %cst_16 : f32 to vector<32x64xf32>
    %42 = arith.addf %41, %40 : vector<32x64xf32>
    %cst_17 = arith.constant 5.000000e-01 : f32
    %43 = vector.broadcast %cst_17 : f32 to vector<32x64xf32>
    %44 = arith.mulf %43, %42 : vector<32x64xf32>
    %45 = arith.mulf %32, %44 : vector<32x64xf32>
    %46 = vector.extract_strided_slice %31 {offsets = [0, 64], sizes = [32, 64], strides = [1, 1]} : vector<32x128xf32> to vector<32x64xf32>
    %47 = arith.negf %46 : vector<32x64xf32>
    %48 = math.exp %47 : vector<32x64xf32>
    %cst_18 = arith.constant 1.000000e+00 : f32
    %49 = vector.broadcast %cst_18 : f32 to vector<32x64xf32>
    %50 = arith.addf %49, %48 : vector<32x64xf32>
    %51 = arith.divf %49, %50 : vector<32x64xf32>
    %52 = arith.mulf %46, %51 : vector<32x64xf32>
    %53 = arith.mulf %45, %52 : vector<32x64xf32>
    %54 = arith.truncf %53 : vector<32x64xf32> to vector<32x64xbf16>
    %c0_19 = arith.constant 0 : index
    %c0_20 = arith.constant 0 : index
    %55 = vector.load %arg7[%c0_19, %c0_20] : memref<64x32xbf16, #tpu.memory_space<vmem>>, vector<64x32xbf16>
    %cst_21 = arith.constant dense<0.000000e+00> : vector<32x32xf32>
    %56 = tpu.matmul %54, %55, %cst_21 {dimension_numbers = #tpu.dot_dimension_numbers<[1], [0], [0], [1], [0, 0, 1, 1], [], []>} : vector<32x64xbf16>, vector<64x32xbf16>, vector<32x32xf32> -> vector<32x32xf32>
    %c0_22 = arith.constant 0 : index
    %c0_23 = arith.constant 0 : index
    %57 = vector.load %arg8[%c0_22, %c0_23] : memref<1x32xf32, #tpu.memory_space<vmem>>, vector<1x32xf32>
    %58 = vector.broadcast %57 : vector<1x32xf32> to vector<32x32xf32>
    %59 = arith.addf %56, %58 : vector<32x32xf32>
    %c0_24 = arith.constant 0 : index
    %c0_25 = arith.constant 0 : index
    %60 = vector.load %arg2[%c0_24, %c0_25] : memref<32x32xbf16, #tpu.memory_space<vmem>>, vector<32x32xbf16>
    %61 = arith.extf %60 : vector<32x32xbf16> to vector<32x32xf32>
    %62 = arith.addf %61, %59 : vector<32x32xf32>
    %63 = arith.truncf %62 : vector<32x32xf32> to vector<32x32xbf16>
    %c0_26 = arith.constant 0 : index
    %c0_27 = arith.constant 0 : index
    %64 = vector.load %arg11[%c0_26, %c0_27] : memref<32x32xbf16, #tpu.memory_space<vmem>>, vector<32x32xbf16>
    tpu.vector_store %arg11[%c0_26, %c0_27], %63 {strides = array<i32>} : memref<32x32xbf16, #tpu.memory_space<vmem>>, vector<32x32xbf16>,
    return
  }
  func.func @transform_0(%arg0: i32) -> (i32, i32) {
    %c0_i32 = arith.constant 0 : i32
    %c0_i32_0 = arith.constant 0 : i32
    return %arg0, %c0_i32 : i32, i32
  }
  func.func @transform_1(%arg0: i32) -> (i32, i32) {
    %c0_i32 = arith.constant 0 : i32
    %c0_i32_0 = arith.constant 0 : i32
    return %arg0, %c0_i32 : i32, i32
  }
  func.func @transform_2(%arg0: i32) -> (i32, i32) {
    %c0_i32 = arith.constant 0 : i32
    %c0_i32_0 = arith.constant 0 : i32
    %c0_i32_1 = arith.constant 0 : i32
    return %c0_i32, %c0_i32_0 : i32, i32
  }
  func.func @transform_3(%arg0: i32) -> (i32, i32) {
    %c0_i32 = arith.constant 0 : i32
    %c0_i32_0 = arith.constant 0 : i32
    %c0_i32_1 = arith.constant 0 : i32
    return %c0_i32, %c0_i32_0 : i32, i32
  }
  func.func @transform_4(%arg0: i32) -> (i32, i32) {
    %c0_i32 = arith.constant 0 : i32
    %c0_i32_0 = arith.constant 0 : i32
    %c0_i32_1 = arith.constant 0 : i32
    return %c0_i32, %c0_i32_0 : i32, i32
  }
  func.func @transform_5(%arg0: i32) -> (i32, i32) {
    %c0_i32 = arith.constant 0 : i32
    %c0_i32_0 = arith.constant 0 : i32
    %c0_i32_1 = arith.constant 0 : i32
    return %c0_i32, %c0_i32_0 : i32, i32
  }
  func.func @transform_6(%arg0: i32) -> (i32, i32) {
    %c0_i32 = arith.constant 0 : i32
    %c0_i32_0 = arith.constant 0 : i32
    %c0_i32_1 = arith.constant 0 : i32
    return %c0_i32, %c0_i32_0 : i32, i32
  }
  func.func @transform_7(%arg0: i32) -> (i32, i32) {
    %c0_i32 = arith.constant 0 : i32
    %c0_i32_0 = arith.constant 0 : i32
    %c0_i32_1 = arith.constant 0 : i32
    return %c0_i32, %c0_i32_0 : i32, i32
  }
  func.func @transform_8(%arg0: i32) -> (i32, i32) {
    %c0_i32 = arith.constant 0 : i32
    %c0_i32_0 = arith.constant 0 : i32
    %c0_i32_1 = arith.constant 0 : i32
    return %c0_i32, %c0_i32_0 : i32, i32
  }
  func.func @transform_9(%arg0: i32) -> (i32, i32) {
    %c0_i32 = arith.constant 0 : i32
    %c0_i32_0 = arith.constant 0 : i32
    %c0_i32_1 = arith.constant 0 : i32
    return %c0_i32, %c0_i32_0 : i32, i32
  }
  func.func @transform_10(%arg0: i32) -> (i32, i32) {
    %c0_i32 = arith.constant 0 : i32
    %c0_i32_0 = arith.constant 0 : i32
    return %arg0, %c0_i32 : i32, i32
  }
}

module attributes {stable_mosaic.version = 11 : i64} {
  func.func @kernel(%arg0: i32, %arg1: memref<1x2x2x64xbf16, #tpu.memory_space<vmem>>, %arg2: memref<7x7x64xf32, #tpu.memory_space<vmem>>, %arg3: memref<1x1x1x64xf32, #tpu.memory_space<vmem>>, %arg4: memref<1x2x2x64xbf16, #tpu.memory_space<vmem>>, %arg5: memref<1x8x8x64xbf16, #tpu.memory_space<vmem>>) attributes {dimension_semantics = [#tpu.dimension_semantics<parallel>], iteration_bounds = array<i64: 2>, scalar_prefetch = 0 : i64, scratch_operands = 1 : i64, tpu.core_type = #tpu.core_type<tc>, window_params = [{transform_indices = @transform_0, window_bounds = array<i64: 1, 2, 2, 64>}, {pipeline_mode = #tpu.pipeline_mode<synchronous>, transform_indices = @transform_1, window_bounds = array<i64: 7, 7, 64>}, {pipeline_mode = #tpu.pipeline_mode<synchronous>, transform_indices = @transform_2, window_bounds = array<i64: 1, 1, 1, 64>}, {transform_indices = @transform_3, window_bounds = array<i64: 1, 2, 2, 64>}]} {
    %cst = arith.constant 0.000000e+00 : bf16
    %0 = vector.broadcast %cst : bf16 to vector<1x3x8x64xbf16>
    %c0 = arith.constant 0 : index
    %c0_0 = arith.constant 0 : index
    %c0_1 = arith.constant 0 : index
    %c0_2 = arith.constant 0 : index
    %1 = vector.load %arg5[%c0, %c0_0, %c0_1, %c0_2] : memref<1x8x8x64xbf16, #tpu.memory_space<vmem>>, vector<1x3x8x64xbf16>
    tpu.vector_store %arg5[%c0, %c0_0, %c0_1, %c0_2], %0 {strides = array<i32>} : memref<1x8x8x64xbf16, #tpu.memory_space<vmem>>, vector<1x3x8x64xbf16>,
    %cst_3 = arith.constant 0.000000e+00 : bf16
    %2 = vector.broadcast %cst_3 : bf16 to vector<1x3x8x64xbf16>
    %c0_4 = arith.constant 0 : index
    %c5 = arith.constant 5 : index
    %c0_5 = arith.constant 0 : index
    %c0_6 = arith.constant 0 : index
    %3 = vector.load %arg5[%c0_4, %c5, %c0_5, %c0_6] : memref<1x8x8x64xbf16, #tpu.memory_space<vmem>>, vector<1x3x8x64xbf16>
    tpu.vector_store %arg5[%c0_4, %c5, %c0_5, %c0_6], %2 {strides = array<i32>} : memref<1x8x8x64xbf16, #tpu.memory_space<vmem>>, vector<1x3x8x64xbf16>,
    %cst_7 = arith.constant 0.000000e+00 : bf16
    %4 = vector.broadcast %cst_7 : bf16 to vector<1x2x3x64xbf16>
    %c0_8 = arith.constant 0 : index
    %c3 = arith.constant 3 : index
    %c0_9 = arith.constant 0 : index
    %c0_10 = arith.constant 0 : index
    %5 = vector.load %arg5[%c0_8, %c3, %c0_9, %c0_10] : memref<1x8x8x64xbf16, #tpu.memory_space<vmem>>, vector<1x2x3x64xbf16>
    tpu.vector_store %arg5[%c0_8, %c3, %c0_9, %c0_10], %4 {strides = array<i32>} : memref<1x8x8x64xbf16, #tpu.memory_space<vmem>>, vector<1x2x3x64xbf16>,
    %cst_11 = arith.constant 0.000000e+00 : bf16
    %6 = vector.broadcast %cst_11 : bf16 to vector<1x2x3x64xbf16>
    %c0_12 = arith.constant 0 : index
    %c3_13 = arith.constant 3 : index
    %c5_14 = arith.constant 5 : index
    %c0_15 = arith.constant 0 : index
    %7 = vector.load %arg5[%c0_12, %c3_13, %c5_14, %c0_15] : memref<1x8x8x64xbf16, #tpu.memory_space<vmem>>, vector<1x2x3x64xbf16>
    tpu.vector_store %arg5[%c0_12, %c3_13, %c5_14, %c0_15], %6 {strides = array<i32>} : memref<1x8x8x64xbf16, #tpu.memory_space<vmem>>, vector<1x2x3x64xbf16>,
    %c0_16 = arith.constant 0 : index
    %c0_17 = arith.constant 0 : index
    %c0_18 = arith.constant 0 : index
    %c0_19 = arith.constant 0 : index
    %8 = vector.load %arg1[%c0_16, %c0_17, %c0_18, %c0_19] : memref<1x2x2x64xbf16, #tpu.memory_space<vmem>>, vector<1x2x2x64xbf16>
    %c0_20 = arith.constant 0 : index
    %c3_21 = arith.constant 3 : index
    %c3_22 = arith.constant 3 : index
    %c0_23 = arith.constant 0 : index
    %9 = vector.load %arg5[%c0_20, %c3_21, %c3_22, %c0_23] : memref<1x8x8x64xbf16, #tpu.memory_space<vmem>>, vector<1x2x2x64xbf16>
    tpu.vector_store %arg5[%c0_20, %c3_21, %c3_22, %c0_23], %8 {strides = array<i32>} : memref<1x8x8x64xbf16, #tpu.memory_space<vmem>>, vector<1x2x2x64xbf16>,
    %c0_24 = arith.constant 0 : index
    %c0_25 = arith.constant 0 : index
    %c0_26 = arith.constant 0 : index
    %10 = vector.load %arg2[%c0_24, %c0_25, %c0_26] : memref<7x7x64xf32, #tpu.memory_space<vmem>>, vector<7x7x64xf32>
    %c0_27 = arith.constant 0 : index
    %c0_28 = arith.constant 0 : index
    %c0_29 = arith.constant 0 : index
    %c0_30 = arith.constant 0 : index
    %11 = vector.load %arg5[%c0_27, %c0_28, %c0_29, %c0_30] : memref<1x8x8x64xbf16, #tpu.memory_space<vmem>>, vector<1x2x2x64xbf16>
    %12 = arith.extf %11 : vector<1x2x2x64xbf16> to vector<1x2x2x64xf32>
    %13 = vector.extract_strided_slice %10 {offsets = [0, 0, 0], sizes = [1, 1, 64], strides = [1, 1, 1]} : vector<7x7x64xf32> to vector<1x1x64xf32>
    %14 = vector.shape_cast %13 : vector<1x1x64xf32> to vector<64xf32>
    %15 = vector.shape_cast %14 : vector<64xf32> to vector<1x1x1x64xf32>
    %16 = vector.broadcast %15 : vector<1x1x1x64xf32> to vector<1x2x2x64xf32>
    %17 = arith.mulf %12, %16 : vector<1x2x2x64xf32>
    %c0_31 = arith.constant 0 : index
    %c0_32 = arith.constant 0 : index
    %c1 = arith.constant 1 : index
    %c0_33 = arith.constant 0 : index
    %18 = vector.load %arg5[%c0_31, %c0_32, %c1, %c0_33] : memref<1x8x8x64xbf16, #tpu.memory_space<vmem>>, vector<1x2x2x64xbf16>
    %19 = arith.extf %18 : vector<1x2x2x64xbf16> to vector<1x2x2x64xf32>
    %20 = vector.extract_strided_slice %10 {offsets = [0, 1, 0], sizes = [1, 1, 64], strides = [1, 1, 1]} : vector<7x7x64xf32> to vector<1x1x64xf32>
    %21 = vector.shape_cast %20 : vector<1x1x64xf32> to vector<64xf32>
    %22 = vector.shape_cast %21 : vector<64xf32> to vector<1x1x1x64xf32>
    %23 = vector.broadcast %22 : vector<1x1x1x64xf32> to vector<1x2x2x64xf32>
    %24 = arith.mulf %19, %23 : vector<1x2x2x64xf32>
    %25 = arith.addf %17, %24 : vector<1x2x2x64xf32>
    %c0_34 = arith.constant 0 : index
    %c0_35 = arith.constant 0 : index
    %c2 = arith.constant 2 : index
    %c0_36 = arith.constant 0 : index
    %26 = vector.load %arg5[%c0_34, %c0_35, %c2, %c0_36] : memref<1x8x8x64xbf16, #tpu.memory_space<vmem>>, vector<1x2x2x64xbf16>
    %27 = arith.extf %26 : vector<1x2x2x64xbf16> to vector<1x2x2x64xf32>
    %28 = vector.extract_strided_slice %10 {offsets = [0, 2, 0], sizes = [1, 1, 64], strides = [1, 1, 1]} : vector<7x7x64xf32> to vector<1x1x64xf32>
    %29 = vector.shape_cast %28 : vector<1x1x64xf32> to vector<64xf32>
    %30 = vector.shape_cast %29 : vector<64xf32> to vector<1x1x1x64xf32>
    %31 = vector.broadcast %30 : vector<1x1x1x64xf32> to vector<1x2x2x64xf32>
    %32 = arith.mulf %27, %31 : vector<1x2x2x64xf32>
    %33 = arith.addf %25, %32 : vector<1x2x2x64xf32>
    %c0_37 = arith.constant 0 : index
    %c0_38 = arith.constant 0 : index
    %c3_39 = arith.constant 3 : index
    %c0_40 = arith.constant 0 : index
    %34 = vector.load %arg5[%c0_37, %c0_38, %c3_39, %c0_40] : memref<1x8x8x64xbf16, #tpu.memory_space<vmem>>, vector<1x2x2x64xbf16>
    %35 = arith.extf %34 : vector<1x2x2x64xbf16> to vector<1x2x2x64xf32>
    %36 = vector.extract_strided_slice %10 {offsets = [0, 3, 0], sizes = [1, 1, 64], strides = [1, 1, 1]} : vector<7x7x64xf32> to vector<1x1x64xf32>
    %37 = vector.shape_cast %36 : vector<1x1x64xf32> to vector<64xf32>
    %38 = vector.shape_cast %37 : vector<64xf32> to vector<1x1x1x64xf32>
    %39 = vector.broadcast %38 : vector<1x1x1x64xf32> to vector<1x2x2x64xf32>
    %40 = arith.mulf %35, %39 : vector<1x2x2x64xf32>
    %41 = arith.addf %33, %40 : vector<1x2x2x64xf32>
    %c0_41 = arith.constant 0 : index
    %c0_42 = arith.constant 0 : index
    %c4 = arith.constant 4 : index
    %c0_43 = arith.constant 0 : index
    %42 = vector.load %arg5[%c0_41, %c0_42, %c4, %c0_43] : memref<1x8x8x64xbf16, #tpu.memory_space<vmem>>, vector<1x2x2x64xbf16>
    %43 = arith.extf %42 : vector<1x2x2x64xbf16> to vector<1x2x2x64xf32>
    %44 = vector.extract_strided_slice %10 {offsets = [0, 4, 0], sizes = [1, 1, 64], strides = [1, 1, 1]} : vector<7x7x64xf32> to vector<1x1x64xf32>
    %45 = vector.shape_cast %44 : vector<1x1x64xf32> to vector<64xf32>
    %46 = vector.shape_cast %45 : vector<64xf32> to vector<1x1x1x64xf32>
    %47 = vector.broadcast %46 : vector<1x1x1x64xf32> to vector<1x2x2x64xf32>
    %48 = arith.mulf %43, %47 : vector<1x2x2x64xf32>
    %49 = arith.addf %41, %48 : vector<1x2x2x64xf32>
    %c0_44 = arith.constant 0 : index
    %c0_45 = arith.constant 0 : index
    %c5_46 = arith.constant 5 : index
    %c0_47 = arith.constant 0 : index
    %50 = vector.load %arg5[%c0_44, %c0_45, %c5_46, %c0_47] : memref<1x8x8x64xbf16, #tpu.memory_space<vmem>>, vector<1x2x2x64xbf16>
    %51 = arith.extf %50 : vector<1x2x2x64xbf16> to vector<1x2x2x64xf32>
    %52 = vector.extract_strided_slice %10 {offsets = [0, 5, 0], sizes = [1, 1, 64], strides = [1, 1, 1]} : vector<7x7x64xf32> to vector<1x1x64xf32>
    %53 = vector.shape_cast %52 : vector<1x1x64xf32> to vector<64xf32>
    %54 = vector.shape_cast %53 : vector<64xf32> to vector<1x1x1x64xf32>
    %55 = vector.broadcast %54 : vector<1x1x1x64xf32> to vector<1x2x2x64xf32>
    %56 = arith.mulf %51, %55 : vector<1x2x2x64xf32>
    %57 = arith.addf %49, %56 : vector<1x2x2x64xf32>
    %c0_48 = arith.constant 0 : index
    %c0_49 = arith.constant 0 : index
    %c6 = arith.constant 6 : index
    %c0_50 = arith.constant 0 : index
    %58 = vector.load %arg5[%c0_48, %c0_49, %c6, %c0_50] : memref<1x8x8x64xbf16, #tpu.memory_space<vmem>>, vector<1x2x2x64xbf16>
    %59 = arith.extf %58 : vector<1x2x2x64xbf16> to vector<1x2x2x64xf32>
    %60 = vector.extract_strided_slice %10 {offsets = [0, 6, 0], sizes = [1, 1, 64], strides = [1, 1, 1]} : vector<7x7x64xf32> to vector<1x1x64xf32>
    %61 = vector.shape_cast %60 : vector<1x1x64xf32> to vector<64xf32>
    %62 = vector.shape_cast %61 : vector<64xf32> to vector<1x1x1x64xf32>
    %63 = vector.broadcast %62 : vector<1x1x1x64xf32> to vector<1x2x2x64xf32>
    %64 = arith.mulf %59, %63 : vector<1x2x2x64xf32>
    %65 = arith.addf %57, %64 : vector<1x2x2x64xf32>
    %c0_51 = arith.constant 0 : index
    %c1_52 = arith.constant 1 : index
    %c0_53 = arith.constant 0 : index
    %c0_54 = arith.constant 0 : index
    %66 = vector.load %arg5[%c0_51, %c1_52, %c0_53, %c0_54] : memref<1x8x8x64xbf16, #tpu.memory_space<vmem>>, vector<1x2x2x64xbf16>
    %67 = arith.extf %66 : vector<1x2x2x64xbf16> to vector<1x2x2x64xf32>
    %68 = vector.extract_strided_slice %10 {offsets = [1, 0, 0], sizes = [1, 1, 64], strides = [1, 1, 1]} : vector<7x7x64xf32> to vector<1x1x64xf32>
    %69 = vector.shape_cast %68 : vector<1x1x64xf32> to vector<64xf32>
    %70 = vector.shape_cast %69 : vector<64xf32> to vector<1x1x1x64xf32>
    %71 = vector.broadcast %70 : vector<1x1x1x64xf32> to vector<1x2x2x64xf32>
    %72 = arith.mulf %67, %71 : vector<1x2x2x64xf32>
    %73 = arith.addf %65, %72 : vector<1x2x2x64xf32>
    %c0_55 = arith.constant 0 : index
    %c1_56 = arith.constant 1 : index
    %c1_57 = arith.constant 1 : index
    %c0_58 = arith.constant 0 : index
    %74 = vector.load %arg5[%c0_55, %c1_56, %c1_57, %c0_58] : memref<1x8x8x64xbf16, #tpu.memory_space<vmem>>, vector<1x2x2x64xbf16>
    %75 = arith.extf %74 : vector<1x2x2x64xbf16> to vector<1x2x2x64xf32>
    %76 = vector.extract_strided_slice %10 {offsets = [1, 1, 0], sizes = [1, 1, 64], strides = [1, 1, 1]} : vector<7x7x64xf32> to vector<1x1x64xf32>
    %77 = vector.shape_cast %76 : vector<1x1x64xf32> to vector<64xf32>
    %78 = vector.shape_cast %77 : vector<64xf32> to vector<1x1x1x64xf32>
    %79 = vector.broadcast %78 : vector<1x1x1x64xf32> to vector<1x2x2x64xf32>
    %80 = arith.mulf %75, %79 : vector<1x2x2x64xf32>
    %81 = arith.addf %73, %80 : vector<1x2x2x64xf32>
    %c0_59 = arith.constant 0 : index
    %c1_60 = arith.constant 1 : index
    %c2_61 = arith.constant 2 : index
    %c0_62 = arith.constant 0 : index
    %82 = vector.load %arg5[%c0_59, %c1_60, %c2_61, %c0_62] : memref<1x8x8x64xbf16, #tpu.memory_space<vmem>>, vector<1x2x2x64xbf16>
    %83 = arith.extf %82 : vector<1x2x2x64xbf16> to vector<1x2x2x64xf32>
    %84 = vector.extract_strided_slice %10 {offsets = [1, 2, 0], sizes = [1, 1, 64], strides = [1, 1, 1]} : vector<7x7x64xf32> to vector<1x1x64xf32>
    %85 = vector.shape_cast %84 : vector<1x1x64xf32> to vector<64xf32>
    %86 = vector.shape_cast %85 : vector<64xf32> to vector<1x1x1x64xf32>
    %87 = vector.broadcast %86 : vector<1x1x1x64xf32> to vector<1x2x2x64xf32>
    %88 = arith.mulf %83, %87 : vector<1x2x2x64xf32>
    %89 = arith.addf %81, %88 : vector<1x2x2x64xf32>
    %c0_63 = arith.constant 0 : index
    %c1_64 = arith.constant 1 : index
    %c3_65 = arith.constant 3 : index
    %c0_66 = arith.constant 0 : index
    %90 = vector.load %arg5[%c0_63, %c1_64, %c3_65, %c0_66] : memref<1x8x8x64xbf16, #tpu.memory_space<vmem>>, vector<1x2x2x64xbf16>
    %91 = arith.extf %90 : vector<1x2x2x64xbf16> to vector<1x2x2x64xf32>
    %92 = vector.extract_strided_slice %10 {offsets = [1, 3, 0], sizes = [1, 1, 64], strides = [1, 1, 1]} : vector<7x7x64xf32> to vector<1x1x64xf32>
    %93 = vector.shape_cast %92 : vector<1x1x64xf32> to vector<64xf32>
    %94 = vector.shape_cast %93 : vector<64xf32> to vector<1x1x1x64xf32>
    %95 = vector.broadcast %94 : vector<1x1x1x64xf32> to vector<1x2x2x64xf32>
    %96 = arith.mulf %91, %95 : vector<1x2x2x64xf32>
    %97 = arith.addf %89, %96 : vector<1x2x2x64xf32>
    %c0_67 = arith.constant 0 : index
    %c1_68 = arith.constant 1 : index
    %c4_69 = arith.constant 4 : index
    %c0_70 = arith.constant 0 : index
    %98 = vector.load %arg5[%c0_67, %c1_68, %c4_69, %c0_70] : memref<1x8x8x64xbf16, #tpu.memory_space<vmem>>, vector<1x2x2x64xbf16>
    %99 = arith.extf %98 : vector<1x2x2x64xbf16> to vector<1x2x2x64xf32>
    %100 = vector.extract_strided_slice %10 {offsets = [1, 4, 0], sizes = [1, 1, 64], strides = [1, 1, 1]} : vector<7x7x64xf32> to vector<1x1x64xf32>
    %101 = vector.shape_cast %100 : vector<1x1x64xf32> to vector<64xf32>
    %102 = vector.shape_cast %101 : vector<64xf32> to vector<1x1x1x64xf32>
    %103 = vector.broadcast %102 : vector<1x1x1x64xf32> to vector<1x2x2x64xf32>
    %104 = arith.mulf %99, %103 : vector<1x2x2x64xf32>
    %105 = arith.addf %97, %104 : vector<1x2x2x64xf32>
    %c0_71 = arith.constant 0 : index
    %c1_72 = arith.constant 1 : index
    %c5_73 = arith.constant 5 : index
    %c0_74 = arith.constant 0 : index
    %106 = vector.load %arg5[%c0_71, %c1_72, %c5_73, %c0_74] : memref<1x8x8x64xbf16, #tpu.memory_space<vmem>>, vector<1x2x2x64xbf16>
    %107 = arith.extf %106 : vector<1x2x2x64xbf16> to vector<1x2x2x64xf32>
    %108 = vector.extract_strided_slice %10 {offsets = [1, 5, 0], sizes = [1, 1, 64], strides = [1, 1, 1]} : vector<7x7x64xf32> to vector<1x1x64xf32>
    %109 = vector.shape_cast %108 : vector<1x1x64xf32> to vector<64xf32>
    %110 = vector.shape_cast %109 : vector<64xf32> to vector<1x1x1x64xf32>
    %111 = vector.broadcast %110 : vector<1x1x1x64xf32> to vector<1x2x2x64xf32>
    %112 = arith.mulf %107, %111 : vector<1x2x2x64xf32>
    %113 = arith.addf %105, %112 : vector<1x2x2x64xf32>
    %c0_75 = arith.constant 0 : index
    %c1_76 = arith.constant 1 : index
    %c6_77 = arith.constant 6 : index
    %c0_78 = arith.constant 0 : index
    %114 = vector.load %arg5[%c0_75, %c1_76, %c6_77, %c0_78] : memref<1x8x8x64xbf16, #tpu.memory_space<vmem>>, vector<1x2x2x64xbf16>
    %115 = arith.extf %114 : vector<1x2x2x64xbf16> to vector<1x2x2x64xf32>
    %116 = vector.extract_strided_slice %10 {offsets = [1, 6, 0], sizes = [1, 1, 64], strides = [1, 1, 1]} : vector<7x7x64xf32> to vector<1x1x64xf32>
    %117 = vector.shape_cast %116 : vector<1x1x64xf32> to vector<64xf32>
    %118 = vector.shape_cast %117 : vector<64xf32> to vector<1x1x1x64xf32>
    %119 = vector.broadcast %118 : vector<1x1x1x64xf32> to vector<1x2x2x64xf32>
    %120 = arith.mulf %115, %119 : vector<1x2x2x64xf32>
    %121 = arith.addf %113, %120 : vector<1x2x2x64xf32>
    %c0_79 = arith.constant 0 : index
    %c2_80 = arith.constant 2 : index
    %c0_81 = arith.constant 0 : index
    %c0_82 = arith.constant 0 : index
    %122 = vector.load %arg5[%c0_79, %c2_80, %c0_81, %c0_82] : memref<1x8x8x64xbf16, #tpu.memory_space<vmem>>, vector<1x2x2x64xbf16>
    %123 = arith.extf %122 : vector<1x2x2x64xbf16> to vector<1x2x2x64xf32>
    %124 = vector.extract_strided_slice %10 {offsets = [2, 0, 0], sizes = [1, 1, 64], strides = [1, 1, 1]} : vector<7x7x64xf32> to vector<1x1x64xf32>
    %125 = vector.shape_cast %124 : vector<1x1x64xf32> to vector<64xf32>
    %126 = vector.shape_cast %125 : vector<64xf32> to vector<1x1x1x64xf32>
    %127 = vector.broadcast %126 : vector<1x1x1x64xf32> to vector<1x2x2x64xf32>
    %128 = arith.mulf %123, %127 : vector<1x2x2x64xf32>
    %129 = arith.addf %121, %128 : vector<1x2x2x64xf32>
    %c0_83 = arith.constant 0 : index
    %c2_84 = arith.constant 2 : index
    %c1_85 = arith.constant 1 : index
    %c0_86 = arith.constant 0 : index
    %130 = vector.load %arg5[%c0_83, %c2_84, %c1_85, %c0_86] : memref<1x8x8x64xbf16, #tpu.memory_space<vmem>>, vector<1x2x2x64xbf16>
    %131 = arith.extf %130 : vector<1x2x2x64xbf16> to vector<1x2x2x64xf32>
    %132 = vector.extract_strided_slice %10 {offsets = [2, 1, 0], sizes = [1, 1, 64], strides = [1, 1, 1]} : vector<7x7x64xf32> to vector<1x1x64xf32>
    %133 = vector.shape_cast %132 : vector<1x1x64xf32> to vector<64xf32>
    %134 = vector.shape_cast %133 : vector<64xf32> to vector<1x1x1x64xf32>
    %135 = vector.broadcast %134 : vector<1x1x1x64xf32> to vector<1x2x2x64xf32>
    %136 = arith.mulf %131, %135 : vector<1x2x2x64xf32>
    %137 = arith.addf %129, %136 : vector<1x2x2x64xf32>
    %c0_87 = arith.constant 0 : index
    %c2_88 = arith.constant 2 : index
    %c2_89 = arith.constant 2 : index
    %c0_90 = arith.constant 0 : index
    %138 = vector.load %arg5[%c0_87, %c2_88, %c2_89, %c0_90] : memref<1x8x8x64xbf16, #tpu.memory_space<vmem>>, vector<1x2x2x64xbf16>
    %139 = arith.extf %138 : vector<1x2x2x64xbf16> to vector<1x2x2x64xf32>
    %140 = vector.extract_strided_slice %10 {offsets = [2, 2, 0], sizes = [1, 1, 64], strides = [1, 1, 1]} : vector<7x7x64xf32> to vector<1x1x64xf32>
    %141 = vector.shape_cast %140 : vector<1x1x64xf32> to vector<64xf32>
    %142 = vector.shape_cast %141 : vector<64xf32> to vector<1x1x1x64xf32>
    %143 = vector.broadcast %142 : vector<1x1x1x64xf32> to vector<1x2x2x64xf32>
    %144 = arith.mulf %139, %143 : vector<1x2x2x64xf32>
    %145 = arith.addf %137, %144 : vector<1x2x2x64xf32>
    %c0_91 = arith.constant 0 : index
    %c2_92 = arith.constant 2 : index
    %c3_93 = arith.constant 3 : index
    %c0_94 = arith.constant 0 : index
    %146 = vector.load %arg5[%c0_91, %c2_92, %c3_93, %c0_94] : memref<1x8x8x64xbf16, #tpu.memory_space<vmem>>, vector<1x2x2x64xbf16>
    %147 = arith.extf %146 : vector<1x2x2x64xbf16> to vector<1x2x2x64xf32>
    %148 = vector.extract_strided_slice %10 {offsets = [2, 3, 0], sizes = [1, 1, 64], strides = [1, 1, 1]} : vector<7x7x64xf32> to vector<1x1x64xf32>
    %149 = vector.shape_cast %148 : vector<1x1x64xf32> to vector<64xf32>
    %150 = vector.shape_cast %149 : vector<64xf32> to vector<1x1x1x64xf32>
    %151 = vector.broadcast %150 : vector<1x1x1x64xf32> to vector<1x2x2x64xf32>
    %152 = arith.mulf %147, %151 : vector<1x2x2x64xf32>
    %153 = arith.addf %145, %152 : vector<1x2x2x64xf32>
    %c0_95 = arith.constant 0 : index
    %c2_96 = arith.constant 2 : index
    %c4_97 = arith.constant 4 : index
    %c0_98 = arith.constant 0 : index
    %154 = vector.load %arg5[%c0_95, %c2_96, %c4_97, %c0_98] : memref<1x8x8x64xbf16, #tpu.memory_space<vmem>>, vector<1x2x2x64xbf16>
    %155 = arith.extf %154 : vector<1x2x2x64xbf16> to vector<1x2x2x64xf32>
    %156 = vector.extract_strided_slice %10 {offsets = [2, 4, 0], sizes = [1, 1, 64], strides = [1, 1, 1]} : vector<7x7x64xf32> to vector<1x1x64xf32>
    %157 = vector.shape_cast %156 : vector<1x1x64xf32> to vector<64xf32>
    %158 = vector.shape_cast %157 : vector<64xf32> to vector<1x1x1x64xf32>
    %159 = vector.broadcast %158 : vector<1x1x1x64xf32> to vector<1x2x2x64xf32>
    %160 = arith.mulf %155, %159 : vector<1x2x2x64xf32>
    %161 = arith.addf %153, %160 : vector<1x2x2x64xf32>
    %c0_99 = arith.constant 0 : index
    %c2_100 = arith.constant 2 : index
    %c5_101 = arith.constant 5 : index
    %c0_102 = arith.constant 0 : index
    %162 = vector.load %arg5[%c0_99, %c2_100, %c5_101, %c0_102] : memref<1x8x8x64xbf16, #tpu.memory_space<vmem>>, vector<1x2x2x64xbf16>
    %163 = arith.extf %162 : vector<1x2x2x64xbf16> to vector<1x2x2x64xf32>
    %164 = vector.extract_strided_slice %10 {offsets = [2, 5, 0], sizes = [1, 1, 64], strides = [1, 1, 1]} : vector<7x7x64xf32> to vector<1x1x64xf32>
    %165 = vector.shape_cast %164 : vector<1x1x64xf32> to vector<64xf32>
    %166 = vector.shape_cast %165 : vector<64xf32> to vector<1x1x1x64xf32>
    %167 = vector.broadcast %166 : vector<1x1x1x64xf32> to vector<1x2x2x64xf32>
    %168 = arith.mulf %163, %167 : vector<1x2x2x64xf32>
    %169 = arith.addf %161, %168 : vector<1x2x2x64xf32>
    %c0_103 = arith.constant 0 : index
    %c2_104 = arith.constant 2 : index
    %c6_105 = arith.constant 6 : index
    %c0_106 = arith.constant 0 : index
    %170 = vector.load %arg5[%c0_103, %c2_104, %c6_105, %c0_106] : memref<1x8x8x64xbf16, #tpu.memory_space<vmem>>, vector<1x2x2x64xbf16>
    %171 = arith.extf %170 : vector<1x2x2x64xbf16> to vector<1x2x2x64xf32>
    %172 = vector.extract_strided_slice %10 {offsets = [2, 6, 0], sizes = [1, 1, 64], strides = [1, 1, 1]} : vector<7x7x64xf32> to vector<1x1x64xf32>
    %173 = vector.shape_cast %172 : vector<1x1x64xf32> to vector<64xf32>
    %174 = vector.shape_cast %173 : vector<64xf32> to vector<1x1x1x64xf32>
    %175 = vector.broadcast %174 : vector<1x1x1x64xf32> to vector<1x2x2x64xf32>
    %176 = arith.mulf %171, %175 : vector<1x2x2x64xf32>
    %177 = arith.addf %169, %176 : vector<1x2x2x64xf32>
    %c0_107 = arith.constant 0 : index
    %c3_108 = arith.constant 3 : index
    %c0_109 = arith.constant 0 : index
    %c0_110 = arith.constant 0 : index
    %178 = vector.load %arg5[%c0_107, %c3_108, %c0_109, %c0_110] : memref<1x8x8x64xbf16, #tpu.memory_space<vmem>>, vector<1x2x2x64xbf16>
    %179 = arith.extf %178 : vector<1x2x2x64xbf16> to vector<1x2x2x64xf32>
    %180 = vector.extract_strided_slice %10 {offsets = [3, 0, 0], sizes = [1, 1, 64], strides = [1, 1, 1]} : vector<7x7x64xf32> to vector<1x1x64xf32>
    %181 = vector.shape_cast %180 : vector<1x1x64xf32> to vector<64xf32>
    %182 = vector.shape_cast %181 : vector<64xf32> to vector<1x1x1x64xf32>
    %183 = vector.broadcast %182 : vector<1x1x1x64xf32> to vector<1x2x2x64xf32>
    %184 = arith.mulf %179, %183 : vector<1x2x2x64xf32>
    %185 = arith.addf %177, %184 : vector<1x2x2x64xf32>
    %c0_111 = arith.constant 0 : index
    %c3_112 = arith.constant 3 : index
    %c1_113 = arith.constant 1 : index
    %c0_114 = arith.constant 0 : index
    %186 = vector.load %arg5[%c0_111, %c3_112, %c1_113, %c0_114] : memref<1x8x8x64xbf16, #tpu.memory_space<vmem>>, vector<1x2x2x64xbf16>
    %187 = arith.extf %186 : vector<1x2x2x64xbf16> to vector<1x2x2x64xf32>
    %188 = vector.extract_strided_slice %10 {offsets = [3, 1, 0], sizes = [1, 1, 64], strides = [1, 1, 1]} : vector<7x7x64xf32> to vector<1x1x64xf32>
    %189 = vector.shape_cast %188 : vector<1x1x64xf32> to vector<64xf32>
    %190 = vector.shape_cast %189 : vector<64xf32> to vector<1x1x1x64xf32>
    %191 = vector.broadcast %190 : vector<1x1x1x64xf32> to vector<1x2x2x64xf32>
    %192 = arith.mulf %187, %191 : vector<1x2x2x64xf32>
    %193 = arith.addf %185, %192 : vector<1x2x2x64xf32>
    %c0_115 = arith.constant 0 : index
    %c3_116 = arith.constant 3 : index
    %c2_117 = arith.constant 2 : index
    %c0_118 = arith.constant 0 : index
    %194 = vector.load %arg5[%c0_115, %c3_116, %c2_117, %c0_118] : memref<1x8x8x64xbf16, #tpu.memory_space<vmem>>, vector<1x2x2x64xbf16>
    %195 = arith.extf %194 : vector<1x2x2x64xbf16> to vector<1x2x2x64xf32>
    %196 = vector.extract_strided_slice %10 {offsets = [3, 2, 0], sizes = [1, 1, 64], strides = [1, 1, 1]} : vector<7x7x64xf32> to vector<1x1x64xf32>
    %197 = vector.shape_cast %196 : vector<1x1x64xf32> to vector<64xf32>
    %198 = vector.shape_cast %197 : vector<64xf32> to vector<1x1x1x64xf32>
    %199 = vector.broadcast %198 : vector<1x1x1x64xf32> to vector<1x2x2x64xf32>
    %200 = arith.mulf %195, %199 : vector<1x2x2x64xf32>
    %201 = arith.addf %193, %200 : vector<1x2x2x64xf32>
    %c0_119 = arith.constant 0 : index
    %c3_120 = arith.constant 3 : index
    %c3_121 = arith.constant 3 : index
    %c0_122 = arith.constant 0 : index
    %202 = vector.load %arg5[%c0_119, %c3_120, %c3_121, %c0_122] : memref<1x8x8x64xbf16, #tpu.memory_space<vmem>>, vector<1x2x2x64xbf16>
    %203 = arith.extf %202 : vector<1x2x2x64xbf16> to vector<1x2x2x64xf32>
    %204 = vector.extract_strided_slice %10 {offsets = [3, 3, 0], sizes = [1, 1, 64], strides = [1, 1, 1]} : vector<7x7x64xf32> to vector<1x1x64xf32>
    %205 = vector.shape_cast %204 : vector<1x1x64xf32> to vector<64xf32>
    %206 = vector.shape_cast %205 : vector<64xf32> to vector<1x1x1x64xf32>
    %207 = vector.broadcast %206 : vector<1x1x1x64xf32> to vector<1x2x2x64xf32>
    %208 = arith.mulf %203, %207 : vector<1x2x2x64xf32>
    %209 = arith.addf %201, %208 : vector<1x2x2x64xf32>
    %c0_123 = arith.constant 0 : index
    %c3_124 = arith.constant 3 : index
    %c4_125 = arith.constant 4 : index
    %c0_126 = arith.constant 0 : index
    %210 = vector.load %arg5[%c0_123, %c3_124, %c4_125, %c0_126] : memref<1x8x8x64xbf16, #tpu.memory_space<vmem>>, vector<1x2x2x64xbf16>
    %211 = arith.extf %210 : vector<1x2x2x64xbf16> to vector<1x2x2x64xf32>
    %212 = vector.extract_strided_slice %10 {offsets = [3, 4, 0], sizes = [1, 1, 64], strides = [1, 1, 1]} : vector<7x7x64xf32> to vector<1x1x64xf32>
    %213 = vector.shape_cast %212 : vector<1x1x64xf32> to vector<64xf32>
    %214 = vector.shape_cast %213 : vector<64xf32> to vector<1x1x1x64xf32>
    %215 = vector.broadcast %214 : vector<1x1x1x64xf32> to vector<1x2x2x64xf32>
    %216 = arith.mulf %211, %215 : vector<1x2x2x64xf32>
    %217 = arith.addf %209, %216 : vector<1x2x2x64xf32>
    %c0_127 = arith.constant 0 : index
    %c3_128 = arith.constant 3 : index
    %c5_129 = arith.constant 5 : index
    %c0_130 = arith.constant 0 : index
    %218 = vector.load %arg5[%c0_127, %c3_128, %c5_129, %c0_130] : memref<1x8x8x64xbf16, #tpu.memory_space<vmem>>, vector<1x2x2x64xbf16>
    %219 = arith.extf %218 : vector<1x2x2x64xbf16> to vector<1x2x2x64xf32>
    %220 = vector.extract_strided_slice %10 {offsets = [3, 5, 0], sizes = [1, 1, 64], strides = [1, 1, 1]} : vector<7x7x64xf32> to vector<1x1x64xf32>
    %221 = vector.shape_cast %220 : vector<1x1x64xf32> to vector<64xf32>
    %222 = vector.shape_cast %221 : vector<64xf32> to vector<1x1x1x64xf32>
    %223 = vector.broadcast %222 : vector<1x1x1x64xf32> to vector<1x2x2x64xf32>
    %224 = arith.mulf %219, %223 : vector<1x2x2x64xf32>
    %225 = arith.addf %217, %224 : vector<1x2x2x64xf32>
    %c0_131 = arith.constant 0 : index
    %c3_132 = arith.constant 3 : index
    %c6_133 = arith.constant 6 : index
    %c0_134 = arith.constant 0 : index
    %226 = vector.load %arg5[%c0_131, %c3_132, %c6_133, %c0_134] : memref<1x8x8x64xbf16, #tpu.memory_space<vmem>>, vector<1x2x2x64xbf16>
    %227 = arith.extf %226 : vector<1x2x2x64xbf16> to vector<1x2x2x64xf32>
    %228 = vector.extract_strided_slice %10 {offsets = [3, 6, 0], sizes = [1, 1, 64], strides = [1, 1, 1]} : vector<7x7x64xf32> to vector<1x1x64xf32>
    %229 = vector.shape_cast %228 : vector<1x1x64xf32> to vector<64xf32>
    %230 = vector.shape_cast %229 : vector<64xf32> to vector<1x1x1x64xf32>
    %231 = vector.broadcast %230 : vector<1x1x1x64xf32> to vector<1x2x2x64xf32>
    %232 = arith.mulf %227, %231 : vector<1x2x2x64xf32>
    %233 = arith.addf %225, %232 : vector<1x2x2x64xf32>
    %c0_135 = arith.constant 0 : index
    %c4_136 = arith.constant 4 : index
    %c0_137 = arith.constant 0 : index
    %c0_138 = arith.constant 0 : index
    %234 = vector.load %arg5[%c0_135, %c4_136, %c0_137, %c0_138] : memref<1x8x8x64xbf16, #tpu.memory_space<vmem>>, vector<1x2x2x64xbf16>
    %235 = arith.extf %234 : vector<1x2x2x64xbf16> to vector<1x2x2x64xf32>
    %236 = vector.extract_strided_slice %10 {offsets = [4, 0, 0], sizes = [1, 1, 64], strides = [1, 1, 1]} : vector<7x7x64xf32> to vector<1x1x64xf32>
    %237 = vector.shape_cast %236 : vector<1x1x64xf32> to vector<64xf32>
    %238 = vector.shape_cast %237 : vector<64xf32> to vector<1x1x1x64xf32>
    %239 = vector.broadcast %238 : vector<1x1x1x64xf32> to vector<1x2x2x64xf32>
    %240 = arith.mulf %235, %239 : vector<1x2x2x64xf32>
    %241 = arith.addf %233, %240 : vector<1x2x2x64xf32>
    %c0_139 = arith.constant 0 : index
    %c4_140 = arith.constant 4 : index
    %c1_141 = arith.constant 1 : index
    %c0_142 = arith.constant 0 : index
    %242 = vector.load %arg5[%c0_139, %c4_140, %c1_141, %c0_142] : memref<1x8x8x64xbf16, #tpu.memory_space<vmem>>, vector<1x2x2x64xbf16>
    %243 = arith.extf %242 : vector<1x2x2x64xbf16> to vector<1x2x2x64xf32>
    %244 = vector.extract_strided_slice %10 {offsets = [4, 1, 0], sizes = [1, 1, 64], strides = [1, 1, 1]} : vector<7x7x64xf32> to vector<1x1x64xf32>
    %245 = vector.shape_cast %244 : vector<1x1x64xf32> to vector<64xf32>
    %246 = vector.shape_cast %245 : vector<64xf32> to vector<1x1x1x64xf32>
    %247 = vector.broadcast %246 : vector<1x1x1x64xf32> to vector<1x2x2x64xf32>
    %248 = arith.mulf %243, %247 : vector<1x2x2x64xf32>
    %249 = arith.addf %241, %248 : vector<1x2x2x64xf32>
    %c0_143 = arith.constant 0 : index
    %c4_144 = arith.constant 4 : index
    %c2_145 = arith.constant 2 : index
    %c0_146 = arith.constant 0 : index
    %250 = vector.load %arg5[%c0_143, %c4_144, %c2_145, %c0_146] : memref<1x8x8x64xbf16, #tpu.memory_space<vmem>>, vector<1x2x2x64xbf16>
    %251 = arith.extf %250 : vector<1x2x2x64xbf16> to vector<1x2x2x64xf32>
    %252 = vector.extract_strided_slice %10 {offsets = [4, 2, 0], sizes = [1, 1, 64], strides = [1, 1, 1]} : vector<7x7x64xf32> to vector<1x1x64xf32>
    %253 = vector.shape_cast %252 : vector<1x1x64xf32> to vector<64xf32>
    %254 = vector.shape_cast %253 : vector<64xf32> to vector<1x1x1x64xf32>
    %255 = vector.broadcast %254 : vector<1x1x1x64xf32> to vector<1x2x2x64xf32>
    %256 = arith.mulf %251, %255 : vector<1x2x2x64xf32>
    %257 = arith.addf %249, %256 : vector<1x2x2x64xf32>
    %c0_147 = arith.constant 0 : index
    %c4_148 = arith.constant 4 : index
    %c3_149 = arith.constant 3 : index
    %c0_150 = arith.constant 0 : index
    %258 = vector.load %arg5[%c0_147, %c4_148, %c3_149, %c0_150] : memref<1x8x8x64xbf16, #tpu.memory_space<vmem>>, vector<1x2x2x64xbf16>
    %259 = arith.extf %258 : vector<1x2x2x64xbf16> to vector<1x2x2x64xf32>
    %260 = vector.extract_strided_slice %10 {offsets = [4, 3, 0], sizes = [1, 1, 64], strides = [1, 1, 1]} : vector<7x7x64xf32> to vector<1x1x64xf32>
    %261 = vector.shape_cast %260 : vector<1x1x64xf32> to vector<64xf32>
    %262 = vector.shape_cast %261 : vector<64xf32> to vector<1x1x1x64xf32>
    %263 = vector.broadcast %262 : vector<1x1x1x64xf32> to vector<1x2x2x64xf32>
    %264 = arith.mulf %259, %263 : vector<1x2x2x64xf32>
    %265 = arith.addf %257, %264 : vector<1x2x2x64xf32>
    %c0_151 = arith.constant 0 : index
    %c4_152 = arith.constant 4 : index
    %c4_153 = arith.constant 4 : index
    %c0_154 = arith.constant 0 : index
    %266 = vector.load %arg5[%c0_151, %c4_152, %c4_153, %c0_154] : memref<1x8x8x64xbf16, #tpu.memory_space<vmem>>, vector<1x2x2x64xbf16>
    %267 = arith.extf %266 : vector<1x2x2x64xbf16> to vector<1x2x2x64xf32>
    %268 = vector.extract_strided_slice %10 {offsets = [4, 4, 0], sizes = [1, 1, 64], strides = [1, 1, 1]} : vector<7x7x64xf32> to vector<1x1x64xf32>
    %269 = vector.shape_cast %268 : vector<1x1x64xf32> to vector<64xf32>
    %270 = vector.shape_cast %269 : vector<64xf32> to vector<1x1x1x64xf32>
    %271 = vector.broadcast %270 : vector<1x1x1x64xf32> to vector<1x2x2x64xf32>
    %272 = arith.mulf %267, %271 : vector<1x2x2x64xf32>
    %273 = arith.addf %265, %272 : vector<1x2x2x64xf32>
    %c0_155 = arith.constant 0 : index
    %c4_156 = arith.constant 4 : index
    %c5_157 = arith.constant 5 : index
    %c0_158 = arith.constant 0 : index
    %274 = vector.load %arg5[%c0_155, %c4_156, %c5_157, %c0_158] : memref<1x8x8x64xbf16, #tpu.memory_space<vmem>>, vector<1x2x2x64xbf16>
    %275 = arith.extf %274 : vector<1x2x2x64xbf16> to vector<1x2x2x64xf32>
    %276 = vector.extract_strided_slice %10 {offsets = [4, 5, 0], sizes = [1, 1, 64], strides = [1, 1, 1]} : vector<7x7x64xf32> to vector<1x1x64xf32>
    %277 = vector.shape_cast %276 : vector<1x1x64xf32> to vector<64xf32>
    %278 = vector.shape_cast %277 : vector<64xf32> to vector<1x1x1x64xf32>
    %279 = vector.broadcast %278 : vector<1x1x1x64xf32> to vector<1x2x2x64xf32>
    %280 = arith.mulf %275, %279 : vector<1x2x2x64xf32>
    %281 = arith.addf %273, %280 : vector<1x2x2x64xf32>
    %c0_159 = arith.constant 0 : index
    %c4_160 = arith.constant 4 : index
    %c6_161 = arith.constant 6 : index
    %c0_162 = arith.constant 0 : index
    %282 = vector.load %arg5[%c0_159, %c4_160, %c6_161, %c0_162] : memref<1x8x8x64xbf16, #tpu.memory_space<vmem>>, vector<1x2x2x64xbf16>
    %283 = arith.extf %282 : vector<1x2x2x64xbf16> to vector<1x2x2x64xf32>
    %284 = vector.extract_strided_slice %10 {offsets = [4, 6, 0], sizes = [1, 1, 64], strides = [1, 1, 1]} : vector<7x7x64xf32> to vector<1x1x64xf32>
    %285 = vector.shape_cast %284 : vector<1x1x64xf32> to vector<64xf32>
    %286 = vector.shape_cast %285 : vector<64xf32> to vector<1x1x1x64xf32>
    %287 = vector.broadcast %286 : vector<1x1x1x64xf32> to vector<1x2x2x64xf32>
    %288 = arith.mulf %283, %287 : vector<1x2x2x64xf32>
    %289 = arith.addf %281, %288 : vector<1x2x2x64xf32>
    %c0_163 = arith.constant 0 : index
    %c5_164 = arith.constant 5 : index
    %c0_165 = arith.constant 0 : index
    %c0_166 = arith.constant 0 : index
    %290 = vector.load %arg5[%c0_163, %c5_164, %c0_165, %c0_166] : memref<1x8x8x64xbf16, #tpu.memory_space<vmem>>, vector<1x2x2x64xbf16>
    %291 = arith.extf %290 : vector<1x2x2x64xbf16> to vector<1x2x2x64xf32>
    %292 = vector.extract_strided_slice %10 {offsets = [5, 0, 0], sizes = [1, 1, 64], strides = [1, 1, 1]} : vector<7x7x64xf32> to vector<1x1x64xf32>
    %293 = vector.shape_cast %292 : vector<1x1x64xf32> to vector<64xf32>
    %294 = vector.shape_cast %293 : vector<64xf32> to vector<1x1x1x64xf32>
    %295 = vector.broadcast %294 : vector<1x1x1x64xf32> to vector<1x2x2x64xf32>
    %296 = arith.mulf %291, %295 : vector<1x2x2x64xf32>
    %297 = arith.addf %289, %296 : vector<1x2x2x64xf32>
    %c0_167 = arith.constant 0 : index
    %c5_168 = arith.constant 5 : index
    %c1_169 = arith.constant 1 : index
    %c0_170 = arith.constant 0 : index
    %298 = vector.load %arg5[%c0_167, %c5_168, %c1_169, %c0_170] : memref<1x8x8x64xbf16, #tpu.memory_space<vmem>>, vector<1x2x2x64xbf16>
    %299 = arith.extf %298 : vector<1x2x2x64xbf16> to vector<1x2x2x64xf32>
    %300 = vector.extract_strided_slice %10 {offsets = [5, 1, 0], sizes = [1, 1, 64], strides = [1, 1, 1]} : vector<7x7x64xf32> to vector<1x1x64xf32>
    %301 = vector.shape_cast %300 : vector<1x1x64xf32> to vector<64xf32>
    %302 = vector.shape_cast %301 : vector<64xf32> to vector<1x1x1x64xf32>
    %303 = vector.broadcast %302 : vector<1x1x1x64xf32> to vector<1x2x2x64xf32>
    %304 = arith.mulf %299, %303 : vector<1x2x2x64xf32>
    %305 = arith.addf %297, %304 : vector<1x2x2x64xf32>
    %c0_171 = arith.constant 0 : index
    %c5_172 = arith.constant 5 : index
    %c2_173 = arith.constant 2 : index
    %c0_174 = arith.constant 0 : index
    %306 = vector.load %arg5[%c0_171, %c5_172, %c2_173, %c0_174] : memref<1x8x8x64xbf16, #tpu.memory_space<vmem>>, vector<1x2x2x64xbf16>
    %307 = arith.extf %306 : vector<1x2x2x64xbf16> to vector<1x2x2x64xf32>
    %308 = vector.extract_strided_slice %10 {offsets = [5, 2, 0], sizes = [1, 1, 64], strides = [1, 1, 1]} : vector<7x7x64xf32> to vector<1x1x64xf32>
    %309 = vector.shape_cast %308 : vector<1x1x64xf32> to vector<64xf32>
    %310 = vector.shape_cast %309 : vector<64xf32> to vector<1x1x1x64xf32>
    %311 = vector.broadcast %310 : vector<1x1x1x64xf32> to vector<1x2x2x64xf32>
    %312 = arith.mulf %307, %311 : vector<1x2x2x64xf32>
    %313 = arith.addf %305, %312 : vector<1x2x2x64xf32>
    %c0_175 = arith.constant 0 : index
    %c5_176 = arith.constant 5 : index
    %c3_177 = arith.constant 3 : index
    %c0_178 = arith.constant 0 : index
    %314 = vector.load %arg5[%c0_175, %c5_176, %c3_177, %c0_178] : memref<1x8x8x64xbf16, #tpu.memory_space<vmem>>, vector<1x2x2x64xbf16>
    %315 = arith.extf %314 : vector<1x2x2x64xbf16> to vector<1x2x2x64xf32>
    %316 = vector.extract_strided_slice %10 {offsets = [5, 3, 0], sizes = [1, 1, 64], strides = [1, 1, 1]} : vector<7x7x64xf32> to vector<1x1x64xf32>
    %317 = vector.shape_cast %316 : vector<1x1x64xf32> to vector<64xf32>
    %318 = vector.shape_cast %317 : vector<64xf32> to vector<1x1x1x64xf32>
    %319 = vector.broadcast %318 : vector<1x1x1x64xf32> to vector<1x2x2x64xf32>
    %320 = arith.mulf %315, %319 : vector<1x2x2x64xf32>
    %321 = arith.addf %313, %320 : vector<1x2x2x64xf32>
    %c0_179 = arith.constant 0 : index
    %c5_180 = arith.constant 5 : index
    %c4_181 = arith.constant 4 : index
    %c0_182 = arith.constant 0 : index
    %322 = vector.load %arg5[%c0_179, %c5_180, %c4_181, %c0_182] : memref<1x8x8x64xbf16, #tpu.memory_space<vmem>>, vector<1x2x2x64xbf16>
    %323 = arith.extf %322 : vector<1x2x2x64xbf16> to vector<1x2x2x64xf32>
    %324 = vector.extract_strided_slice %10 {offsets = [5, 4, 0], sizes = [1, 1, 64], strides = [1, 1, 1]} : vector<7x7x64xf32> to vector<1x1x64xf32>
    %325 = vector.shape_cast %324 : vector<1x1x64xf32> to vector<64xf32>
    %326 = vector.shape_cast %325 : vector<64xf32> to vector<1x1x1x64xf32>
    %327 = vector.broadcast %326 : vector<1x1x1x64xf32> to vector<1x2x2x64xf32>
    %328 = arith.mulf %323, %327 : vector<1x2x2x64xf32>
    %329 = arith.addf %321, %328 : vector<1x2x2x64xf32>
    %c0_183 = arith.constant 0 : index
    %c5_184 = arith.constant 5 : index
    %c5_185 = arith.constant 5 : index
    %c0_186 = arith.constant 0 : index
    %330 = vector.load %arg5[%c0_183, %c5_184, %c5_185, %c0_186] : memref<1x8x8x64xbf16, #tpu.memory_space<vmem>>, vector<1x2x2x64xbf16>
    %331 = arith.extf %330 : vector<1x2x2x64xbf16> to vector<1x2x2x64xf32>
    %332 = vector.extract_strided_slice %10 {offsets = [5, 5, 0], sizes = [1, 1, 64], strides = [1, 1, 1]} : vector<7x7x64xf32> to vector<1x1x64xf32>
    %333 = vector.shape_cast %332 : vector<1x1x64xf32> to vector<64xf32>
    %334 = vector.shape_cast %333 : vector<64xf32> to vector<1x1x1x64xf32>
    %335 = vector.broadcast %334 : vector<1x1x1x64xf32> to vector<1x2x2x64xf32>
    %336 = arith.mulf %331, %335 : vector<1x2x2x64xf32>
    %337 = arith.addf %329, %336 : vector<1x2x2x64xf32>
    %c0_187 = arith.constant 0 : index
    %c5_188 = arith.constant 5 : index
    %c6_189 = arith.constant 6 : index
    %c0_190 = arith.constant 0 : index
    %338 = vector.load %arg5[%c0_187, %c5_188, %c6_189, %c0_190] : memref<1x8x8x64xbf16, #tpu.memory_space<vmem>>, vector<1x2x2x64xbf16>
    %339 = arith.extf %338 : vector<1x2x2x64xbf16> to vector<1x2x2x64xf32>
    %340 = vector.extract_strided_slice %10 {offsets = [5, 6, 0], sizes = [1, 1, 64], strides = [1, 1, 1]} : vector<7x7x64xf32> to vector<1x1x64xf32>
    %341 = vector.shape_cast %340 : vector<1x1x64xf32> to vector<64xf32>
    %342 = vector.shape_cast %341 : vector<64xf32> to vector<1x1x1x64xf32>
    %343 = vector.broadcast %342 : vector<1x1x1x64xf32> to vector<1x2x2x64xf32>
    %344 = arith.mulf %339, %343 : vector<1x2x2x64xf32>
    %345 = arith.addf %337, %344 : vector<1x2x2x64xf32>
    %c0_191 = arith.constant 0 : index
    %c6_192 = arith.constant 6 : index
    %c0_193 = arith.constant 0 : index
    %c0_194 = arith.constant 0 : index
    %346 = vector.load %arg5[%c0_191, %c6_192, %c0_193, %c0_194] : memref<1x8x8x64xbf16, #tpu.memory_space<vmem>>, vector<1x2x2x64xbf16>
    %347 = arith.extf %346 : vector<1x2x2x64xbf16> to vector<1x2x2x64xf32>
    %348 = vector.extract_strided_slice %10 {offsets = [6, 0, 0], sizes = [1, 1, 64], strides = [1, 1, 1]} : vector<7x7x64xf32> to vector<1x1x64xf32>
    %349 = vector.shape_cast %348 : vector<1x1x64xf32> to vector<64xf32>
    %350 = vector.shape_cast %349 : vector<64xf32> to vector<1x1x1x64xf32>
    %351 = vector.broadcast %350 : vector<1x1x1x64xf32> to vector<1x2x2x64xf32>
    %352 = arith.mulf %347, %351 : vector<1x2x2x64xf32>
    %353 = arith.addf %345, %352 : vector<1x2x2x64xf32>
    %c0_195 = arith.constant 0 : index
    %c6_196 = arith.constant 6 : index
    %c1_197 = arith.constant 1 : index
    %c0_198 = arith.constant 0 : index
    %354 = vector.load %arg5[%c0_195, %c6_196, %c1_197, %c0_198] : memref<1x8x8x64xbf16, #tpu.memory_space<vmem>>, vector<1x2x2x64xbf16>
    %355 = arith.extf %354 : vector<1x2x2x64xbf16> to vector<1x2x2x64xf32>
    %356 = vector.extract_strided_slice %10 {offsets = [6, 1, 0], sizes = [1, 1, 64], strides = [1, 1, 1]} : vector<7x7x64xf32> to vector<1x1x64xf32>
    %357 = vector.shape_cast %356 : vector<1x1x64xf32> to vector<64xf32>
    %358 = vector.shape_cast %357 : vector<64xf32> to vector<1x1x1x64xf32>
    %359 = vector.broadcast %358 : vector<1x1x1x64xf32> to vector<1x2x2x64xf32>
    %360 = arith.mulf %355, %359 : vector<1x2x2x64xf32>
    %361 = arith.addf %353, %360 : vector<1x2x2x64xf32>
    %c0_199 = arith.constant 0 : index
    %c6_200 = arith.constant 6 : index
    %c2_201 = arith.constant 2 : index
    %c0_202 = arith.constant 0 : index
    %362 = vector.load %arg5[%c0_199, %c6_200, %c2_201, %c0_202] : memref<1x8x8x64xbf16, #tpu.memory_space<vmem>>, vector<1x2x2x64xbf16>
    %363 = arith.extf %362 : vector<1x2x2x64xbf16> to vector<1x2x2x64xf32>
    %364 = vector.extract_strided_slice %10 {offsets = [6, 2, 0], sizes = [1, 1, 64], strides = [1, 1, 1]} : vector<7x7x64xf32> to vector<1x1x64xf32>
    %365 = vector.shape_cast %364 : vector<1x1x64xf32> to vector<64xf32>
    %366 = vector.shape_cast %365 : vector<64xf32> to vector<1x1x1x64xf32>
    %367 = vector.broadcast %366 : vector<1x1x1x64xf32> to vector<1x2x2x64xf32>
    %368 = arith.mulf %363, %367 : vector<1x2x2x64xf32>
    %369 = arith.addf %361, %368 : vector<1x2x2x64xf32>
    %c0_203 = arith.constant 0 : index
    %c6_204 = arith.constant 6 : index
    %c3_205 = arith.constant 3 : index
    %c0_206 = arith.constant 0 : index
    %370 = vector.load %arg5[%c0_203, %c6_204, %c3_205, %c0_206] : memref<1x8x8x64xbf16, #tpu.memory_space<vmem>>, vector<1x2x2x64xbf16>
    %371 = arith.extf %370 : vector<1x2x2x64xbf16> to vector<1x2x2x64xf32>
    %372 = vector.extract_strided_slice %10 {offsets = [6, 3, 0], sizes = [1, 1, 64], strides = [1, 1, 1]} : vector<7x7x64xf32> to vector<1x1x64xf32>
    %373 = vector.shape_cast %372 : vector<1x1x64xf32> to vector<64xf32>
    %374 = vector.shape_cast %373 : vector<64xf32> to vector<1x1x1x64xf32>
    %375 = vector.broadcast %374 : vector<1x1x1x64xf32> to vector<1x2x2x64xf32>
    %376 = arith.mulf %371, %375 : vector<1x2x2x64xf32>
    %377 = arith.addf %369, %376 : vector<1x2x2x64xf32>
    %c0_207 = arith.constant 0 : index
    %c6_208 = arith.constant 6 : index
    %c4_209 = arith.constant 4 : index
    %c0_210 = arith.constant 0 : index
    %378 = vector.load %arg5[%c0_207, %c6_208, %c4_209, %c0_210] : memref<1x8x8x64xbf16, #tpu.memory_space<vmem>>, vector<1x2x2x64xbf16>
    %379 = arith.extf %378 : vector<1x2x2x64xbf16> to vector<1x2x2x64xf32>
    %380 = vector.extract_strided_slice %10 {offsets = [6, 4, 0], sizes = [1, 1, 64], strides = [1, 1, 1]} : vector<7x7x64xf32> to vector<1x1x64xf32>
    %381 = vector.shape_cast %380 : vector<1x1x64xf32> to vector<64xf32>
    %382 = vector.shape_cast %381 : vector<64xf32> to vector<1x1x1x64xf32>
    %383 = vector.broadcast %382 : vector<1x1x1x64xf32> to vector<1x2x2x64xf32>
    %384 = arith.mulf %379, %383 : vector<1x2x2x64xf32>
    %385 = arith.addf %377, %384 : vector<1x2x2x64xf32>
    %c0_211 = arith.constant 0 : index
    %c6_212 = arith.constant 6 : index
    %c5_213 = arith.constant 5 : index
    %c0_214 = arith.constant 0 : index
    %386 = vector.load %arg5[%c0_211, %c6_212, %c5_213, %c0_214] : memref<1x8x8x64xbf16, #tpu.memory_space<vmem>>, vector<1x2x2x64xbf16>
    %387 = arith.extf %386 : vector<1x2x2x64xbf16> to vector<1x2x2x64xf32>
    %388 = vector.extract_strided_slice %10 {offsets = [6, 5, 0], sizes = [1, 1, 64], strides = [1, 1, 1]} : vector<7x7x64xf32> to vector<1x1x64xf32>
    %389 = vector.shape_cast %388 : vector<1x1x64xf32> to vector<64xf32>
    %390 = vector.shape_cast %389 : vector<64xf32> to vector<1x1x1x64xf32>
    %391 = vector.broadcast %390 : vector<1x1x1x64xf32> to vector<1x2x2x64xf32>
    %392 = arith.mulf %387, %391 : vector<1x2x2x64xf32>
    %393 = arith.addf %385, %392 : vector<1x2x2x64xf32>
    %c0_215 = arith.constant 0 : index
    %c6_216 = arith.constant 6 : index
    %c6_217 = arith.constant 6 : index
    %c0_218 = arith.constant 0 : index
    %394 = vector.load %arg5[%c0_215, %c6_216, %c6_217, %c0_218] : memref<1x8x8x64xbf16, #tpu.memory_space<vmem>>, vector<1x2x2x64xbf16>
    %395 = arith.extf %394 : vector<1x2x2x64xbf16> to vector<1x2x2x64xf32>
    %396 = vector.extract_strided_slice %10 {offsets = [6, 6, 0], sizes = [1, 1, 64], strides = [1, 1, 1]} : vector<7x7x64xf32> to vector<1x1x64xf32>
    %397 = vector.shape_cast %396 : vector<1x1x64xf32> to vector<64xf32>
    %398 = vector.shape_cast %397 : vector<64xf32> to vector<1x1x1x64xf32>
    %399 = vector.broadcast %398 : vector<1x1x1x64xf32> to vector<1x2x2x64xf32>
    %400 = arith.mulf %395, %399 : vector<1x2x2x64xf32>
    %401 = arith.addf %393, %400 : vector<1x2x2x64xf32>
    %c0_219 = arith.constant 0 : index
    %c0_220 = arith.constant 0 : index
    %c0_221 = arith.constant 0 : index
    %c0_222 = arith.constant 0 : index
    %402 = vector.load %arg3[%c0_219, %c0_220, %c0_221, %c0_222] : memref<1x1x1x64xf32, #tpu.memory_space<vmem>>, vector<1x1x1x64xf32>
    %403 = vector.broadcast %402 : vector<1x1x1x64xf32> to vector<1x2x2x64xf32>
    %404 = arith.addf %401, %403 : vector<1x2x2x64xf32>
    %405 = arith.truncf %404 : vector<1x2x2x64xf32> to vector<1x2x2x64xbf16>
    %c0_223 = arith.constant 0 : index
    %c0_224 = arith.constant 0 : index
    %c0_225 = arith.constant 0 : index
    %c0_226 = arith.constant 0 : index
    %406 = vector.load %arg4[%c0_223, %c0_224, %c0_225, %c0_226] : memref<1x2x2x64xbf16, #tpu.memory_space<vmem>>, vector<1x2x2x64xbf16>
    tpu.vector_store %arg4[%c0_223, %c0_224, %c0_225, %c0_226], %405 {strides = array<i32>} : memref<1x2x2x64xbf16, #tpu.memory_space<vmem>>, vector<1x2x2x64xbf16>,
    return
  }
  func.func @transform_0(%arg0: i32) -> (i32, i32, i32, i32) {
    %c0_i32 = arith.constant 0 : i32
    %c0_i32_0 = arith.constant 0 : i32
    %c0_i32_1 = arith.constant 0 : i32
    %c0_i32_2 = arith.constant 0 : i32
    return %arg0, %c0_i32, %c0_i32_0, %c0_i32_1 : i32, i32, i32, i32
  }
  func.func @transform_1(%arg0: i32) -> (i32, i32, i32) {
    %c0_i32 = arith.constant 0 : i32
    %c0_i32_0 = arith.constant 0 : i32
    %c0_i32_1 = arith.constant 0 : i32
    %c0_i32_2 = arith.constant 0 : i32
    return %c0_i32, %c0_i32_0, %c0_i32_1 : i32, i32, i32
  }
  func.func @transform_2(%arg0: i32) -> (i32, i32, i32, i32) {
    %c0_i32 = arith.constant 0 : i32
    %c0_i32_0 = arith.constant 0 : i32
    %c0_i32_1 = arith.constant 0 : i32
    %c0_i32_2 = arith.constant 0 : i32
    %c0_i32_3 = arith.constant 0 : i32
    return %c0_i32, %c0_i32_0, %c0_i32_1, %c0_i32_2 : i32, i32, i32, i32
  }
  func.func @transform_3(%arg0: i32) -> (i32, i32, i32, i32) {
    %c0_i32 = arith.constant 0 : i32
    %c0_i32_0 = arith.constant 0 : i32
    %c0_i32_1 = arith.constant 0 : i32
    %c0_i32_2 = arith.constant 0 : i32
    return %arg0, %c0_i32, %c0_i32_0, %c0_i32_1 : i32, i32, i32, i32
  }
}

module attributes {stable_mosaic.version = 11 : i64} {
  func.func @kernel(%arg0: i32, %arg1: memref<8x128xbf16, #tpu.memory_space<vmem>>, %arg2: memref<128x64xbf16, #tpu.memory_space<vmem>>, %arg3: memref<1x64xf32, #tpu.memory_space<vmem>>, %arg4: memref<1x64xf32, #tpu.memory_space<vmem>>, %arg5: memref<1x64xf32, #tpu.memory_space<vmem>>, %arg6: memref<8x64xbf16, #tpu.memory_space<vmem>>) attributes {dimension_semantics = [#tpu.dimension_semantics<parallel>], iteration_bounds = array<i64: 1>, scalar_prefetch = 0 : i64, scratch_operands = 0 : i64, tpu.core_type = #tpu.core_type<tc>, window_params = [{transform_indices = @transform_0, window_bounds = array<i64: 8, 128>}, {pipeline_mode = #tpu.pipeline_mode<synchronous>, transform_indices = @transform_1, window_bounds = array<i64: 128, 64>}, {pipeline_mode = #tpu.pipeline_mode<synchronous>, transform_indices = @transform_2, window_bounds = array<i64: 1, 64>}, {pipeline_mode = #tpu.pipeline_mode<synchronous>, transform_indices = @transform_3, window_bounds = array<i64: 1, 64>}, {pipeline_mode = #tpu.pipeline_mode<synchronous>, transform_indices = @transform_4, window_bounds = array<i64: 1, 64>}, {transform_indices = @transform_5, window_bounds = array<i64: 8, 64>}]} {
    %c0 = arith.constant 0 : index
    %c0_0 = arith.constant 0 : index
    %0 = vector.load %arg1[%c0, %c0_0] : memref<8x128xbf16, #tpu.memory_space<vmem>>, vector<8x128xbf16>
    %c0_1 = arith.constant 0 : index
    %c0_2 = arith.constant 0 : index
    %1 = vector.load %arg2[%c0_1, %c0_2] : memref<128x64xbf16, #tpu.memory_space<vmem>>, vector<128x64xbf16>
    %cst = arith.constant dense<0.000000e+00> : vector<8x64xf32>
    %2 = tpu.matmul %0, %1, %cst {dimension_numbers = #tpu.dot_dimension_numbers<[1], [0], [0], [1], [0, 0, 1, 1], [], []>} : vector<8x128xbf16>, vector<128x64xbf16>, vector<8x64xf32> -> vector<8x64xf32>
    %c0_3 = arith.constant 0 : index
    %c0_4 = arith.constant 0 : index
    %3 = vector.load %arg3[%c0_3, %c0_4] : memref<1x64xf32, #tpu.memory_space<vmem>>, vector<1x64xf32>
    %4 = vector.broadcast %3 : vector<1x64xf32> to vector<8x64xf32>
    %5 = arith.addf %2, %4 : vector<8x64xf32>
    %6 = arith.truncf %5 : vector<8x64xf32> to vector<8x64xbf16>
    %c0_5 = arith.constant 0 : index
    %c0_6 = arith.constant 0 : index
    %7 = vector.load %arg6[%c0_5, %c0_6] : memref<8x64xbf16, #tpu.memory_space<vmem>>, vector<8x64xbf16>
    tpu.vector_store %arg6[%c0_5, %c0_6], %6 {strides = array<i32>} : memref<8x64xbf16, #tpu.memory_space<vmem>>, vector<8x64xbf16>,
    return
  }
  func.func @transform_0(%arg0: i32) -> (i32, i32) {
    %c0_i32 = arith.constant 0 : i32
    %c0_i32_0 = arith.constant 0 : i32
    return %arg0, %c0_i32 : i32, i32
  }
  func.func @transform_1(%arg0: i32) -> (i32, i32) {
    %c0_i32 = arith.constant 0 : i32
    %c0_i32_0 = arith.constant 0 : i32
    %c0_i32_1 = arith.constant 0 : i32
    return %c0_i32, %c0_i32_0 : i32, i32
  }
  func.func @transform_2(%arg0: i32) -> (i32, i32) {
    %c0_i32 = arith.constant 0 : i32
    %c0_i32_0 = arith.constant 0 : i32
    %c0_i32_1 = arith.constant 0 : i32
    return %c0_i32, %c0_i32_0 : i32, i32
  }
  func.func @transform_3(%arg0: i32) -> (i32, i32) {
    %c0_i32 = arith.constant 0 : i32
    %c0_i32_0 = arith.constant 0 : i32
    %c0_i32_1 = arith.constant 0 : i32
    return %c0_i32, %c0_i32_0 : i32, i32
  }
  func.func @transform_4(%arg0: i32) -> (i32, i32) {
    %c0_i32 = arith.constant 0 : i32
    %c0_i32_0 = arith.constant 0 : i32
    %c0_i32_1 = arith.constant 0 : i32
    return %c0_i32, %c0_i32_0 : i32, i32
  }
  func.func @transform_5(%arg0: i32) -> (i32, i32) {
    %c0_i32 = arith.constant 0 : i32
    %c0_i32_0 = arith.constant 0 : i32
    return %arg0, %c0_i32 : i32, i32
  }
}

module attributes {stable_mosaic.version = 11 : i64} {
  func.func @kernel(%arg0: i32, %arg1: memref<8x64xbf16, #tpu.memory_space<vmem>>, %arg2: memref<8x64xbf16, #tpu.memory_space<vmem>>, %arg3: memref<1x64xf32, #tpu.memory_space<vmem>>, %arg4: memref<1x64xf32, #tpu.memory_space<vmem>>, %arg5: memref<64x256xbf16, #tpu.memory_space<vmem>>, %arg6: memref<1x256xf32, #tpu.memory_space<vmem>>, %arg7: memref<128x64xbf16, #tpu.memory_space<vmem>>, %arg8: memref<1x64xf32, #tpu.memory_space<vmem>>, %arg9: memref<1x64xf32, #tpu.memory_space<vmem>>, %arg10: memref<1x64xf32, #tpu.memory_space<vmem>>, %arg11: memref<8x64xbf16, #tpu.memory_space<vmem>>) attributes {dimension_semantics = [#tpu.dimension_semantics<parallel>], iteration_bounds = array<i64: 1>, scalar_prefetch = 0 : i64, scratch_operands = 0 : i64, tpu.core_type = #tpu.core_type<tc>, window_params = [{transform_indices = @transform_0, window_bounds = array<i64: 8, 64>}, {transform_indices = @transform_1, window_bounds = array<i64: 8, 64>}, {pipeline_mode = #tpu.pipeline_mode<synchronous>, transform_indices = @transform_2, window_bounds = array<i64: 1, 64>}, {pipeline_mode = #tpu.pipeline_mode<synchronous>, transform_indices = @transform_3, window_bounds = array<i64: 1, 64>}, {pipeline_mode = #tpu.pipeline_mode<synchronous>, transform_indices = @transform_4, window_bounds = array<i64: 64, 256>}, {pipeline_mode = #tpu.pipeline_mode<synchronous>, transform_indices = @transform_5, window_bounds = array<i64: 1, 256>}, {pipeline_mode = #tpu.pipeline_mode<synchronous>, transform_indices = @transform_6, window_bounds = array<i64: 128, 64>}, {pipeline_mode = #tpu.pipeline_mode<synchronous>, transform_indices = @transform_7, window_bounds = array<i64: 1, 64>}, {pipeline_mode = #tpu.pipeline_mode<synchronous>, transform_indices = @transform_8, window_bounds = array<i64: 1, 64>}, {pipeline_mode = #tpu.pipeline_mode<synchronous>, transform_indices = @transform_9, window_bounds = array<i64: 1, 64>}, {transform_indices = @transform_10, window_bounds = array<i64: 8, 64>}]} {
    %c0 = arith.constant 0 : index
    %c0_0 = arith.constant 0 : index
    %0 = vector.load %arg1[%c0, %c0_0] : memref<8x64xbf16, #tpu.memory_space<vmem>>, vector<8x64xbf16>
    %1 = arith.extf %0 : vector<8x64xbf16> to vector<8x64xf32>
    %cst = arith.constant dense<0.000000e+00> : vector<8xf32>
    %2 = vector.multi_reduction <add>, %1, %cst [1] : vector<8x64xf32> to vector<8xf32>
    %3 = vector.shape_cast %2 : vector<8xf32> to vector<8x1xf32>
    %cst_1 = arith.constant 6.400000e+01 : f32
    %4 = vector.broadcast %cst_1 : f32 to vector<8x1xf32>
    %5 = arith.divf %3, %4 : vector<8x1xf32>
    %6 = vector.broadcast %5 : vector<8x1xf32> to vector<8x64xf32>
    %7 = arith.subf %1, %6 : vector<8x64xf32>
    %8 = arith.mulf %7, %7 : vector<8x64xf32>
    %cst_2 = arith.constant dense<0.000000e+00> : vector<8xf32>
    %9 = vector.multi_reduction <add>, %8, %cst_2 [1] : vector<8x64xf32> to vector<8xf32>
    %10 = vector.shape_cast %9 : vector<8xf32> to vector<8x1xf32>
    %cst_3 = arith.constant 6.400000e+01 : f32
    %11 = vector.broadcast %cst_3 : f32 to vector<8x1xf32>
    %12 = arith.divf %10, %11 : vector<8x1xf32>
    %13 = vector.broadcast %5 : vector<8x1xf32> to vector<8x64xf32>
    %14 = arith.subf %1, %13 : vector<8x64xf32>
    %cst_4 = arith.constant 9.99999974E-6 : f32
    %15 = vector.broadcast %cst_4 : f32 to vector<8x1xf32>
    %16 = arith.addf %12, %15 : vector<8x1xf32>
    %17 = math.rsqrt %16 : vector<8x1xf32>
    %18 = vector.broadcast %17 : vector<8x1xf32> to vector<8x64xf32>
    %19 = arith.mulf %14, %18 : vector<8x64xf32>
    %c0_5 = arith.constant 0 : index
    %c0_6 = arith.constant 0 : index
    %20 = vector.load %arg3[%c0_5, %c0_6] : memref<1x64xf32, #tpu.memory_space<vmem>>, vector<1x64xf32>
    %21 = vector.broadcast %20 : vector<1x64xf32> to vector<8x64xf32>
    %22 = arith.mulf %19, %21 : vector<8x64xf32>
    %c0_7 = arith.constant 0 : index
    %c0_8 = arith.constant 0 : index
    %23 = vector.load %arg4[%c0_7, %c0_8] : memref<1x64xf32, #tpu.memory_space<vmem>>, vector<1x64xf32>
    %24 = vector.broadcast %23 : vector<1x64xf32> to vector<8x64xf32>
    %25 = arith.addf %22, %24 : vector<8x64xf32>
    %26 = arith.truncf %25 : vector<8x64xf32> to vector<8x64xbf16>
    %c0_9 = arith.constant 0 : index
    %c0_10 = arith.constant 0 : index
    %27 = vector.load %arg5[%c0_9, %c0_10] : memref<64x256xbf16, #tpu.memory_space<vmem>>, vector<64x256xbf16>
    %cst_11 = arith.constant dense<0.000000e+00> : vector<8x256xf32>
    %28 = tpu.matmul %26, %27, %cst_11 {dimension_numbers = #tpu.dot_dimension_numbers<[1], [0], [0], [1], [0, 0, 1, 1], [], []>} : vector<8x64xbf16>, vector<64x256xbf16>, vector<8x256xf32> -> vector<8x256xf32>
    %c0_12 = arith.constant 0 : index
    %c0_13 = arith.constant 0 : index
    %29 = vector.load %arg6[%c0_12, %c0_13] : memref<1x256xf32, #tpu.memory_space<vmem>>, vector<1x256xf32>
    %30 = vector.broadcast %29 : vector<1x256xf32> to vector<8x256xf32>
    %31 = arith.addf %28, %30 : vector<8x256xf32>
    %32 = vector.extract_strided_slice %31 {offsets = [0, 0], sizes = [8, 128], strides = [1, 1]} : vector<8x256xf32> to vector<8x128xf32>
    %33 = arith.mulf %32, %32 : vector<8x128xf32>
    %34 = arith.mulf %32, %33 : vector<8x128xf32>
    %cst_14 = arith.constant 4.471500e-02 : f32
    %35 = vector.broadcast %cst_14 : f32 to vector<8x128xf32>
    %36 = arith.mulf %35, %34 : vector<8x128xf32>
    %37 = arith.addf %32, %36 : vector<8x128xf32>
    %cst_15 = arith.constant 0.797884583 : f32
    %38 = vector.broadcast %cst_15 : f32 to vector<8x128xf32>
    %39 = arith.mulf %38, %37 : vector<8x128xf32>
    %40 = math.tanh %39 : vector<8x128xf32>
    %cst_16 = arith.constant 1.000000e+00 : f32
    %41 = vector.broadcast %cst_16 : f32 to vector<8x128xf32>
    %42 = arith.addf %41, %40 : vector<8x128xf32>
    %cst_17 = arith.constant 5.000000e-01 : f32
    %43 = vector.broadcast %cst_17 : f32 to vector<8x128xf32>
    %44 = arith.mulf %43, %42 : vector<8x128xf32>
    %45 = arith.mulf %32, %44 : vector<8x128xf32>
    %46 = vector.extract_strided_slice %31 {offsets = [0, 128], sizes = [8, 128], strides = [1, 1]} : vector<8x256xf32> to vector<8x128xf32>
    %47 = arith.negf %46 : vector<8x128xf32>
    %48 = math.exp %47 : vector<8x128xf32>
    %cst_18 = arith.constant 1.000000e+00 : f32
    %49 = vector.broadcast %cst_18 : f32 to vector<8x128xf32>
    %50 = arith.addf %49, %48 : vector<8x128xf32>
    %51 = arith.divf %49, %50 : vector<8x128xf32>
    %52 = arith.mulf %46, %51 : vector<8x128xf32>
    %53 = arith.mulf %45, %52 : vector<8x128xf32>
    %54 = arith.truncf %53 : vector<8x128xf32> to vector<8x128xbf16>
    %c0_19 = arith.constant 0 : index
    %c0_20 = arith.constant 0 : index
    %55 = vector.load %arg7[%c0_19, %c0_20] : memref<128x64xbf16, #tpu.memory_space<vmem>>, vector<128x64xbf16>
    %cst_21 = arith.constant dense<0.000000e+00> : vector<8x64xf32>
    %56 = tpu.matmul %54, %55, %cst_21 {dimension_numbers = #tpu.dot_dimension_numbers<[1], [0], [0], [1], [0, 0, 1, 1], [], []>} : vector<8x128xbf16>, vector<128x64xbf16>, vector<8x64xf32> -> vector<8x64xf32>
    %c0_22 = arith.constant 0 : index
    %c0_23 = arith.constant 0 : index
    %57 = vector.load %arg8[%c0_22, %c0_23] : memref<1x64xf32, #tpu.memory_space<vmem>>, vector<1x64xf32>
    %58 = vector.broadcast %57 : vector<1x64xf32> to vector<8x64xf32>
    %59 = arith.addf %56, %58 : vector<8x64xf32>
    %c0_24 = arith.constant 0 : index
    %c0_25 = arith.constant 0 : index
    %60 = vector.load %arg2[%c0_24, %c0_25] : memref<8x64xbf16, #tpu.memory_space<vmem>>, vector<8x64xbf16>
    %61 = arith.extf %60 : vector<8x64xbf16> to vector<8x64xf32>
    %62 = arith.addf %61, %59 : vector<8x64xf32>
    %cst_26 = arith.constant dense<0.000000e+00> : vector<8xf32>
    %63 = vector.multi_reduction <add>, %62, %cst_26 [1] : vector<8x64xf32> to vector<8xf32>
    %64 = vector.shape_cast %63 : vector<8xf32> to vector<8x1xf32>
    %cst_27 = arith.constant 6.400000e+01 : f32
    %65 = vector.broadcast %cst_27 : f32 to vector<8x1xf32>
    %66 = arith.divf %64, %65 : vector<8x1xf32>
    %67 = vector.broadcast %66 : vector<8x1xf32> to vector<8x64xf32>
    %68 = arith.subf %62, %67 : vector<8x64xf32>
    %69 = arith.mulf %68, %68 : vector<8x64xf32>
    %cst_28 = arith.constant dense<0.000000e+00> : vector<8xf32>
    %70 = vector.multi_reduction <add>, %69, %cst_28 [1] : vector<8x64xf32> to vector<8xf32>
    %71 = vector.shape_cast %70 : vector<8xf32> to vector<8x1xf32>
    %cst_29 = arith.constant 6.400000e+01 : f32
    %72 = vector.broadcast %cst_29 : f32 to vector<8x1xf32>
    %73 = arith.divf %71, %72 : vector<8x1xf32>
    %74 = vector.broadcast %66 : vector<8x1xf32> to vector<8x64xf32>
    %75 = arith.subf %62, %74 : vector<8x64xf32>
    %cst_30 = arith.constant 9.99999974E-6 : f32
    %76 = vector.broadcast %cst_30 : f32 to vector<8x1xf32>
    %77 = arith.addf %73, %76 : vector<8x1xf32>
    %78 = math.rsqrt %77 : vector<8x1xf32>
    %79 = vector.broadcast %78 : vector<8x1xf32> to vector<8x64xf32>
    %80 = arith.mulf %75, %79 : vector<8x64xf32>
    %c0_31 = arith.constant 0 : index
    %c0_32 = arith.constant 0 : index
    %81 = vector.load %arg9[%c0_31, %c0_32] : memref<1x64xf32, #tpu.memory_space<vmem>>, vector<1x64xf32>
    %82 = vector.broadcast %81 : vector<1x64xf32> to vector<8x64xf32>
    %83 = arith.mulf %80, %82 : vector<8x64xf32>
    %c0_33 = arith.constant 0 : index
    %c0_34 = arith.constant 0 : index
    %84 = vector.load %arg10[%c0_33, %c0_34] : memref<1x64xf32, #tpu.memory_space<vmem>>, vector<1x64xf32>
    %85 = vector.broadcast %84 : vector<1x64xf32> to vector<8x64xf32>
    %86 = arith.addf %83, %85 : vector<8x64xf32>
    %87 = arith.truncf %86 : vector<8x64xf32> to vector<8x64xbf16>
    %c0_35 = arith.constant 0 : index
    %c0_36 = arith.constant 0 : index
    %88 = vector.load %arg11[%c0_35, %c0_36] : memref<8x64xbf16, #tpu.memory_space<vmem>>, vector<8x64xbf16>
    tpu.vector_store %arg11[%c0_35, %c0_36], %87 {strides = array<i32>} : memref<8x64xbf16, #tpu.memory_space<vmem>>, vector<8x64xbf16>,
    return
  }
  func.func @transform_0(%arg0: i32) -> (i32, i32) {
    %c0_i32 = arith.constant 0 : i32
    %c0_i32_0 = arith.constant 0 : i32
    return %arg0, %c0_i32 : i32, i32
  }
  func.func @transform_1(%arg0: i32) -> (i32, i32) {
    %c0_i32 = arith.constant 0 : i32
    %c0_i32_0 = arith.constant 0 : i32
    return %arg0, %c0_i32 : i32, i32
  }
  func.func @transform_2(%arg0: i32) -> (i32, i32) {
    %c0_i32 = arith.constant 0 : i32
    %c0_i32_0 = arith.constant 0 : i32
    %c0_i32_1 = arith.constant 0 : i32
    return %c0_i32, %c0_i32_0 : i32, i32
  }
  func.func @transform_3(%arg0: i32) -> (i32, i32) {
    %c0_i32 = arith.constant 0 : i32
    %c0_i32_0 = arith.constant 0 : i32
    %c0_i32_1 = arith.constant 0 : i32
    return %c0_i32, %c0_i32_0 : i32, i32
  }
  func.func @transform_4(%arg0: i32) -> (i32, i32) {
    %c0_i32 = arith.constant 0 : i32
    %c0_i32_0 = arith.constant 0 : i32
    %c0_i32_1 = arith.constant 0 : i32
    return %c0_i32, %c0_i32_0 : i32, i32
  }
  func.func @transform_5(%arg0: i32) -> (i32, i32) {
    %c0_i32 = arith.constant 0 : i32
    %c0_i32_0 = arith.constant 0 : i32
    %c0_i32_1 = arith.constant 0 : i32
    return %c0_i32, %c0_i32_0 : i32, i32
  }
  func.func @transform_6(%arg0: i32) -> (i32, i32) {
    %c0_i32 = arith.constant 0 : i32
    %c0_i32_0 = arith.constant 0 : i32
    %c0_i32_1 = arith.constant 0 : i32
    return %c0_i32, %c0_i32_0 : i32, i32
  }
  func.func @transform_7(%arg0: i32) -> (i32, i32) {
    %c0_i32 = arith.constant 0 : i32
    %c0_i32_0 = arith.constant 0 : i32
    %c0_i32_1 = arith.constant 0 : i32
    return %c0_i32, %c0_i32_0 : i32, i32
  }
  func.func @transform_8(%arg0: i32) -> (i32, i32) {
    %c0_i32 = arith.constant 0 : i32
    %c0_i32_0 = arith.constant 0 : i32
    %c0_i32_1 = arith.constant 0 : i32
    return %c0_i32, %c0_i32_0 : i32, i32
  }
  func.func @transform_9(%arg0: i32) -> (i32, i32) {
    %c0_i32 = arith.constant 0 : i32
    %c0_i32_0 = arith.constant 0 : i32
    %c0_i32_1 = arith.constant 0 : i32
    return %c0_i32, %c0_i32_0 : i32, i32
  }
  func.func @transform_10(%arg0: i32) -> (i32, i32) {
    %c0_i32 = arith.constant 0 : i32
    %c0_i32_0 = arith.constant 0 : i32
    return %arg0, %c0_i32 : i32, i32
  }
}

</mosaic_0001>

<bundles_post_ra>
// kernel: fwd.6
= control target key start
LH: loop header
LB: loop body
LE: loop exit
PB: predicated region body
PF: predicated region fallthrough
CT: control target
= control target key end

     0   :  { %10 = vsyncpa [#allocation3], 0  ;;  %s647_s0 = inlined_call_operand.hbm [shape: bf16[32,64], index: 0, kind: input, shape index: {}]   ;;  %s648_s1 = inlined_call_operand.hbm [shape: bf16[64,32], index: 1, kind: input, shape index: {}]   ;;  %s649_s2 = inlined_call_operand.hbm [shape: f32[1,32], index: 2, kind: input, shape index: {}]   ;;  %s650_s3 = inlined_call_operand.hbm [shape: f32[1,32], index: 3, kind: input, shape index: {}]   ;;  %s651_s4 = inlined_call_operand.hbm [shape: f32[1,32], index: 4, kind: input, shape index: {}]   ;;  %s652_s5 = inlined_call_operand.hbm [shape: bf16[32,32], index: 5, kind: output, shape index: {}]  }
   0x1   :  { %11 = vsyncpa [#allocation6], 0 }
   0x2   :  { %12 = vsyncpa [#allocation9], 0 }
   0x3   :  { %13 = vsyncpa [#allocation4], 0  ;;  %s508_s18 = smov [#allocation5]   ;;  %s509_s20 = smov [#allocation8]  }
   0x4   :  { %s31_s19 = sshll.u32 %s508_s18, 4  ;;  %s54_s21 = sshll.u32 %s509_s20, 4  ;;  %s32_s19 = int_to_ptr.vmem [resolvable:$true] %s31_s19  ;;  %s546_s21 = int_to_ptr.vmem [resolvable:$true] %s54_s21 }
   0x5   :  { %s368_s24 = scalar_lea.hbm %s648_s1, 512 }
   0x6   :  { %p369_p0 = scmp.ne.s32.totalorder %s648_s1, %s368_s24  ;;  %p372_p1 = scmp.lt.u32.totalorder %s368_s24, %s648_s1 }
   0x8   :  { %p374_p2 = pnand %p372_p1, %p369_p0 }
   0xa   :  { %377 = shalt.err (!%p374_p2)
}
   0xb   :  { %s378_s29 = scalar_lea.vmem %s32_s19, 512  ;;  %p383_p4 = scmp.lt.s32.totalorder %s32_s19, %s32_s19 }
   0xc   :  { %p379_p3 = scmp.ne.s32.totalorder %s32_s19, %s378_s29  ;;  %p384_p5 = scmp.lt.s32.totalorder %s378_s29, %s378_s29 }
   0xe   :  { %p385_p6 = por %p384_p5, %p383_p4 }
  0x10   :  { %p386_p7 = pnand %p385_p6, %p379_p3 }
  0x12   :  { %389 = shalt.err (!%p386_p7)
}
  0x13   :  { %s510_s30 = smov 64   ;;  %s511_s6 = smov 4  }
  0x14   :  { %37 = dma.hbm_to_vmem [thread:$0]  %s648_s1, 512, %s32_s19, [#allocation6], %s510_s30, %s510_s30, %s511_s6  }
  0x15   :  { %s390_s11 = scalar_lea.hbm %s650_s3, 16 }
  0x16   :  { %p391_p8 = scmp.ne.s32.totalorder %s650_s3, %s390_s11  ;;  %p394_p9 = scmp.lt.u32.totalorder %s390_s11, %s650_s3 }
  0x18   :  { %p396_p10 = pnand %p394_p9, %p391_p8 }
  0x1a   :  { %399 = shalt.err (!%p396_p10)
}
  0x1b   :  { %s400_s16 = scalar_lea.vmem %s546_s21, 16  ;;  %s404_s1 = scalar_lea.vmem %s546_s21, 32 }
  0x1c   :  { %p401_p11 = scmp.ne.s32.totalorder %s546_s21, %s400_s16  ;;  %p405_p12 = scmp.lt.s32.totalorder %s546_s21, %s546_s21 }
  0x1d   :  { %p406_p13 = scmp.lt.s32.totalorder %s404_s1, %s400_s16 }
  0x1f   :  { %p407_p0 = por %p406_p13, %p405_p12 }
  0x21   :  { %p408_p1 = pnand %p407_p0, %p401_p11 }
  0x23   :  { %411 = shalt.err (!%p408_p1)
}
  0x24   :  { %57 = dma.hbm_to_vmem [thread:$0]  %s650_s3, 16, %s546_s21, [#allocation9]  }
  0x25   :  { %s512_s19 = smov [#allocation2]   ;;  %s513_s22 = smov [#allocation7]  }
  0x26   :  { %s19_s20 = sshll.u32 %s512_s19, 4  ;;  %s44_s23 = sshll.u32 %s513_s22, 4  ;;  %s20_s20 = int_to_ptr.vmem [resolvable:$true] %s19_s20  ;;  %s45_s23 = int_to_ptr.vmem [resolvable:$true] %s44_s23 }
  0x27   :  { %s412_s26 = scalar_lea.hbm %s647_s0, 256 }
  0x28   :  { %p413_p2 = scmp.ne.s32.totalorder %s647_s0, %s412_s26  ;;  %p416_p3 = scmp.lt.u32.totalorder %s412_s26, %s647_s0 }
  0x2a   :  { %p418_p4 = pnand %p416_p3, %p413_p2 }
  0x2c   :  { %421 = shalt.err (!%p418_p4)
}
  0x2d   :  { %s422_s3 = scalar_lea.vmem %s20_s20, 256  ;;  %p427_p6 = scmp.lt.s32.totalorder %s20_s20, %s20_s20 }
  0x2e   :  { %p423_p5 = scmp.ne.s32.totalorder %s20_s20, %s422_s3  ;;  %p428_p7 = scmp.lt.s32.totalorder %s422_s3, %s422_s3 }
  0x30   :  { %p429_p8 = por %p428_p7, %p427_p6 }
  0x32   :  { %p430_p9 = pnand %p429_p8, %p423_p5 }
  0x34   :  { %433 = shalt.err (!%p430_p9)
}
  0x35   :  { %25 = dma.hbm_to_vmem [thread:$0]  %s647_s0, 256, %s20_s20, [#allocation3], %s510_s30, %s510_s30, %s511_s6  }
  0x36   :  { %s434_s11 = scalar_lea.hbm %s649_s2, 16 }
  0x37   :  { %p435_p10 = scmp.ne.s32.totalorder %s649_s2, %s434_s11  ;;  %p438_p11 = scmp.lt.u32.totalorder %s434_s11, %s649_s2 }
  0x39   :  { %p440_p12 = pnand %p438_p11, %p435_p10 }
  0x3b   :  { %443 = shalt.err (!%p440_p12)
}
  0x3c   :  { %s444_s16 = scalar_lea.vmem %s45_s23, 16  ;;  %s448_s1 = scalar_lea.vmem %s45_s23, 32 }
  0x3d   :  { %p445_p13 = scmp.ne.s32.totalorder %s45_s23, %s444_s16  ;;  %p449_p0 = scmp.lt.s32.totalorder %s45_s23, %s45_s23 }
  0x3e   :  { %p450_p1 = scmp.lt.s32.totalorder %s448_s1, %s444_s16 }
  0x40   :  { %p451_p2 = por %p450_p1, %p449_p0 }
  0x42   :  { %p452_p3 = pnand %p451_p2, %p445_p13 }
  0x44   :  { %455 = shalt.err (!%p452_p3)
}
  0x45   :  { %47 = dma.hbm_to_vmem [thread:$0]  %s649_s2, 16, %s45_s23, [#allocation6]  }
  0x46   :  { %s514_s18 = smov [#allocation10]   ;;  %s456_s24 = scalar_lea.hbm %s651_s4, 16 }
  0x47   :  { %s64_s19 = sshll.u32 %s514_s18, 4  ;;  %p457_p4 = scmp.ne.s32.totalorder %s651_s4, %s456_s24  ;;  %s65_s19 = int_to_ptr.vmem [resolvable:$true] %s64_s19 }
  0x48   :  { %p460_p5 = scmp.lt.u32.totalorder %s456_s24, %s651_s4 }
  0x4a   :  { %p462_p6 = pnand %p460_p5, %p457_p4 }
  0x4c   :  { %465 = shalt.err (!%p462_p6)
}
  0x4d   :  { %s466_s29 = scalar_lea.vmem %s65_s19, 16  ;;  %s470_s2 = scalar_lea.vmem %s65_s19, 32 }
  0x4e   :  { %p467_p7 = scmp.ne.s32.totalorder %s65_s19, %s466_s29  ;;  %p471_p8 = scmp.lt.s32.totalorder %s65_s19, %s65_s19 }
  0x4f   :  { %p472_p9 = scmp.lt.s32.totalorder %s470_s2, %s466_s29 }
  0x51   :  { %p473_p10 = por %p472_p9, %p471_p8 }
  0x53   :  { %p474_p11 = pnand %p473_p10, %p467_p7 }
  0x55   :  { %477 = shalt.err (!%p474_p11)
}
  0x56   :  { %67 = dma.hbm_to_vmem [thread:$0]  %s651_s4, 16, %s65_s19, [#allocation9]  }
  0x57   :  { %500 = dma.done.wait [#allocation3], 256  }
  0x58   :  { %501 = vsyncadd [#allocation3], 4294967040 }
  0x59   :  { %502 = dma.done.wait [#allocation6], 528  }
  0x5a   :  { %503 = vsyncadd [#allocation6], 4294966768 }
  0x5b   :  { %504 = dma.done.wait [#allocation9], 32  }
  0x5c   :  { %505 = vsyncadd [#allocation9], 4294967264  ;;  %v354_v0 = vld [vmem:[#allocation5] sm:$0xff]   ;;  %v355_v1 = vld [vmem:[#allocation5 + $0x8] sm:$0xff]   ;;  %vm137_vm0 = vcmask 523264   ;;  %vm193_vm1 = vcmask 261120  }
  0x5d   :  { %334 = vmatprep.subr.bf16.mxu0 %v354_v0  ;;  %v356_v2 = vld [vmem:[#allocation5 + $0x10] sm:$0xff]   ;;  %v357_v4 = vld [vmem:[#allocation5 + $0x18] sm:$0xff]   ;;  %v309_v6 = vld [vmem:[#allocation7] ss:$0 sm:$0xff]  ;;  %vm285_vm2 = vcmask 257024   ;;  %s515_s4 = smov [#allocation11]  }
  0x5e   :  { %335 = vmatpush3.bf16.msra.mxu0 %v354_v0  ;;  %v358_v3 = vld [vmem:[#allocation2] sm:$0xff]   ;;  %v359_v5 = vld [vmem:[#allocation2 + $0x8] sm:$0xff]   ;;  %v318_v52 = vld [vmem:[#allocation8] ss:$0 sm:$0xff]  ;;  %s295_s3 = sshll.u32 %s515_s4, 4  ;;  %s296_s3 = int_to_ptr.vmem [resolvable:$true] %s295_s3 }
  0x5f   :  { %336 = vmatprep.subr.bf16.mxu0 %v355_v1  ;;  %342 = vmatprep.mubr.msk.bf16.mxu0 %vm137_vm0, %v358_v3  ;;  %v319_v54 = vld [vmem:[#allocation10] ss:$0 sm:$0xff]  ;;  %s478_s21 = scalar_lea.vmem %s296_s3, 256  ;;  %p483_p13 = scmp.lt.s32.totalorder %s296_s3, %s296_s3 }
  0x60   :  { %p479_p12 = scmp.ne.s32.totalorder %s296_s3, %s478_s21  ;;  %p484_p0 = scmp.lt.s32.totalorder %s478_s21, %s478_s21 }
  0x62   :  { %337 = vmatpush3.bf16.msra.mxu0 %v355_v1  ;;  %p485_p1 = por %p484_p0, %p483_p13 }
  0x63   :  { %338 = vmatprep.subr.bf16.mxu0 %v356_v2 }
  0x64   :  { %p486_p2 = pnand %p485_p1, %p479_p12 }
  0x66   :  { %339 = vmatpush3.bf16.msra.mxu0 %v356_v2 }
  0x67   :  { %340 = vmatprep.subr.bf16.mxu0 %v357_v4 }
  0x6a   :  { %341 = vmatpush3.bf16.msra.mxu0 %v357_v4 }
  0x6d   :  { %343 = vmatmul.mubr.msk.bf16.vlgmr.msra.gmra.mrb[0].mxu0 %vm137_vm0, %v359_v5 }
 0x140   :  { %v344_v7 = vpop.f32.mrb[0].mxu0 }
 0x141   :  { %v187_v8 = vadd.f32 %v344_v7, %v309_v6  ;;  %v178_v9 = vpop.f32.mrb[1].mxu0 }
 0x142   :  { %v179_v10 = vadd.f32 %v309_v6, %v178_v9  ;;  %v345_v11 = vpop.f32.mrb[2].mxu0 }
 0x143   :  { %v190_v12 = vadd.f32 %v345_v11, %v309_v6  ;;  %v181_v13 = vpop.f32.mrb[3].mxu0  ;;  %v200_v14 = vsel %vm193_vm1, %v187_v8, 0.0 }
 0x144   :  { %v182_v15 = vadd.f32 %v309_v6, %v181_v13  ;;  %201 = vadd.xlane.f32.xlu1 %v200_v14  ;;  %v194_v16 = vsel %vm193_vm1, %v179_v10, 0.0 }
 0x145   :  { %195 = vadd.xlane.f32.xlu0 %v194_v16  ;;  %v203_v17 = vsel %vm193_vm1, %v190_v12, 0.0 }
 0x146   :  { %v197_v18 = vsel %vm193_vm1, %v182_v15, 0.0 }
 0x148   :  { %204 = vadd.xlane.f32.xlu1 %v203_v17 }
 0x149   :  { %198 = vadd.xlane.f32.xlu0 %v197_v18 }
 0x1d1   :  { %v202_v19 = vpop.xlane.xlu1 %201 }
 0x1d2   :  { %v209_v20 = vmul.f32 0.03125, %v202_v19  ;;  %v196_v21 = vpop.xlane.xlu0 %195 }
 0x1d3   :  { %v207_v22 = vmul.f32 0.03125, %v196_v21 }
 0x1d4   :  { %v213_v23 = vsub.f32 %v187_v8, %v209_v20 }
 0x1d5   :  { %v211_v24 = vsub.f32 %v179_v10, %v207_v22  ;;  %v205_v25 = vpop.xlane.xlu1 %204 }
 0x1d6   :  { %v210_v26 = vmul.f32 0.03125, %v205_v25  ;;  %v199_v27 = vpop.xlane.xlu0 %198  ;;  %v217_v33 = vmul.f32 %v213_v23, %v213_v23 }
 0x1d7   :  { %v208_v28 = vmul.f32 0.03125, %v199_v27  ;;  %v215_v29 = vmul.f32 %v211_v24, %v211_v24 }
 0x1d8   :  { %v214_v30 = vsub.f32 %v190_v12, %v210_v26  ;;  %v225_v35 = vsel %vm193_vm1, %v217_v33, 0.0 }
 0x1d9   :  { %v212_v31 = vsub.f32 %v182_v15, %v208_v28  ;;  %v219_v32 = vsel %vm193_vm1, %v215_v29, 0.0 }
 0x1da   :  { %220 = vadd.xlane.f32.xlu0 %v219_v32  ;;  %v218_v37 = vmul.f32 %v214_v30, %v214_v30 }
 0x1db   :  { %v216_v34 = vmul.f32 %v212_v31, %v212_v31 }
 0x1dc   :  { %v228_v38 = vsel %vm193_vm1, %v218_v37, 0.0 }
 0x1dd   :  { %v222_v36 = vsel %vm193_vm1, %v216_v34, 0.0 }
 0x1de   :  { %226 = vadd.xlane.f32.xlu0 %v225_v35  ;;  %223 = vadd.xlane.f32.xlu1 %v222_v36 }
 0x1e2   :  { %229 = vadd.xlane.f32.xlu1 %v228_v38 }
 0x267   :  { %v221_v39 = vpop.xlane.xlu0 %220 }
 0x268   :  { %v231_v40 = vmul.f32 0.03125, %v221_v39 }
 0x26a   :  { %v235_v41 = vadd.f32 1e-05, %v231_v40 }
 0x26b   :  { %v224_v42 = vpop.xlane.xlu1 %223  ;;  %v227_v43 = vpop.xlane.xlu0 %226 }
 0x26c   :  { %360 = vrsqrt.f32 %v235_v41  ;;  %v232_v44 = vmul.f32 0.03125, %v224_v42  ;;  %v233_v45 = vmul.f32 0.03125, %v227_v43 }
 0x26e   :  { %v236_v46 = vadd.f32 1e-05, %v232_v44  ;;  %v237_v47 = vadd.f32 1e-05, %v233_v45 }
 0x26f   :  { %v230_v48 = vpop.xlane.xlu1 %229 }
 0x270   :  { %362 = vrsqrt.f32 %v236_v46  ;;  %v234_v49 = vmul.f32 0.03125, %v230_v48 }
 0x271   :  { %364 = vrsqrt.f32 %v237_v47 }
 0x272   :  { %v238_v50 = vadd.f32 1e-05, %v234_v49 }
 0x274   :  { %366 = vrsqrt.f32 %v238_v50 }
 0x276   :  { %v361_v51 = vpop.eup %360 }
 0x277   :  { %v243_v53 = vmul.f32 %v361_v51, %v211_v24 }
 0x279   :  { %v254_v55 = vmul.f32 %v318_v52, %v243_v53 }
 0x27a   :  { %v363_v56 = vpop.eup %362 }
 0x27b   :  { %v365_v57 = vpop.eup %364  ;;  %v244_v58 = vmul.f32 %v363_v56, %v212_v31  ;;  %v265_v59 = vadd.f32 %v319_v54, %v254_v55 }
 0x27c   :  { %v245_v60 = vmul.f32 %v365_v57, %v213_v23 }
 0x27d   :  { %v255_v61 = vmul.f32 %v318_v52, %v244_v58  ;;  %v324_v62 = vpack.c.bf16 %v265_v59, %v265_v59 }
 0x27e   :  { %v367_v63 = vpop.eup %366  ;;  %v256_v0 = vmul.f32 %v318_v52, %v245_v60 }
 0x27f   :  { %v246_v1 = vmul.f32 %v367_v63, %v214_v30  ;;  %v266_v2 = vadd.f32 %v319_v54, %v255_v61  ;;  %286 = vst.msk [vmem:[#allocation11] sm:$0xf] %vm285_vm2, %v324_v62 }
 0x280   :  { %v267_v3 = vadd.f32 %v319_v54, %v256_v0 }
 0x281   :  { %v257_v4 = vmul.f32 %v318_v52, %v246_v1  ;;  %v325_v5 = vpack.c.bf16 %v266_v2, %v266_v2 }
 0x282   :  { %v326_v6 = vpack.c.bf16 %v267_v3, %v267_v3 }
 0x283   :  { %v268_v7 = vadd.f32 %v319_v54, %v257_v4  ;;  %287 = vst.msk [vmem:[#allocation11 + $0x4] sm:$0xf] %vm285_vm2, %v325_v5 }
 0x284   :  { %288 = vst.msk [vmem:[#allocation11 + $0x8] sm:$0xf] %vm285_vm2, %v326_v6 }
 0x285   :  { %v327_v8 = vpack.c.bf16 %v268_v7, %v268_v7 }
 0x287   :  { %289 = vst.msk [vmem:[#allocation11 + $0xc] sm:$0xf] %vm285_vm2, %v327_v8 }
 0x288   :  { %489 = shalt.err (!%p486_p2)
}
 0x289   :  { %s490_s10 = scalar_lea.hbm %s652_s5, 256 }
 0x28a   :  { %p491_p3 = scmp.ne.s32.totalorder %s652_s5, %s490_s10  ;;  %p494_p4 = scmp.lt.u32.totalorder %s490_s10, %s652_s5 }
 0x28c   :  { %p496_p5 = pnand %p494_p4, %p491_p3 }
 0x28e   :  { %499 = shalt.err (!%p496_p5)
}
 0x28f   :  { %301 = dma.vmem_to_hbm [thread:$0]  %s296_s3, 256, %s652_s5, [#allocation4], %s510_s30, %s510_s30, %s511_s6  }
 0x290   :  { %506 = dma.done.wait [#allocation4], 256  }
 0x291   :  { %507 = vsyncadd [#allocation4], 4294967040 }
 0x292   :  { %305 = vsyncpa [#allocation3], 1 }
 0x293   :  { %306 = vsyncpa [#allocation6], 1 }
 0x294   :  { %307 = vsyncpa [#allocation9], 1 }
 0x295   :  { %308 = vsyncpa [#allocation4], 1 }

// kernel: fwd.8
= control target key start
LH: loop header
LB: loop body
LE: loop exit
PB: predicated region body
PF: predicated region fallthrough
CT: control target
= control target key end

     0   :  { %15 = vsyncpa [#allocation3], 0  ;;  %s1222_s0 = inlined_call_operand.hbm [shape: bf16[32,32], index: 0, kind: input, shape index: {}]   ;;  %s1223_s1 = inlined_call_operand.hbm [shape: bf16[32,32], index: 1, kind: input, shape index: {}, may-alias: {1,10}]   ;;  %s1224_s2 = inlined_call_operand.hbm [shape: f32[1,32], index: 2, kind: input, shape index: {}]   ;;  %s1225_s3 = inlined_call_operand.hbm [shape: f32[1,32], index: 3, kind: input, shape index: {}]   ;;  %s1226_s4 = inlined_call_operand.hbm [shape: bf16[32,128], index: 4, kind: input, shape index: {}]   ;;  %s1227_s5 = inlined_call_operand.hbm [shape: f32[1,128], index: 5, kind: input, shape index: {}]   ;;  %s1228_s6 = inlined_call_operand.hbm [shape: bf16[64,32], index: 6, kind: input, shape index: {}]   ;;  %s1229_s7 = inlined_call_operand.hbm [shape: f32[1,32], index: 7, kind: input, shape index: {}]   ;;  %s1230_s8 = inlined_call_operand.hbm [shape: f32[1,32], index: 8, kind: input, shape index: {}]   ;;  %s1231_s9 = inlined_call_operand.hbm [shape: f32[1,32], index: 9, kind: input, shape index: {}]   ;;  %s1232_s10 = inlined_call_operand.hbm [shape: bf16[32,32], index: 10, kind: output, shape index: {}, may-alias: {1,10}]  }
   0x1   :  { %16 = vsyncpa [#allocation6], 0 }
   0x2   :  { %17 = vsyncpa [#allocation9], 0 }
   0x3   :  { %18 = vsyncpa [#allocation12], 0 }
   0x4   :  { %19 = vsyncpa [#allocation15], 0 }
   0x5   :  { %20 = vsyncpa [#allocation18], 0 }
   0x6   :  { %21 = vsyncpa [#allocation4], 0  ;;  %s942_s13 = smov [#allocation5]   ;;  %s943_s15 = smov [#allocation8]  }
   0x7   :  { %s39_s14 = sshll.u32 %s942_s13, 4  ;;  %s62_s16 = sshll.u32 %s943_s15, 4  ;;  %s40_s14 = int_to_ptr.vmem [resolvable:$true] %s39_s14  ;;  %s1010_s16 = int_to_ptr.vmem [resolvable:$true] %s62_s16 }
   0x8   :  { %s686_s19 = scalar_lea.hbm %s1223_s1, 256 }
   0x9   :  { %p687_p0 = scmp.ne.s32.totalorder %s1223_s1, %s686_s19  ;;  %p690_p1 = scmp.lt.u32.totalorder %s686_s19, %s1223_s1 }
   0xb   :  { %p692_p2 = pnand %p690_p1, %p687_p0 }
   0xd   :  { %695 = shalt.err (!%p692_p2)
}
   0xe   :  { %s696_s24 = scalar_lea.vmem %s40_s14, 256  ;;  %p701_p4 = scmp.lt.s32.totalorder %s40_s14, %s40_s14 }
   0xf   :  { %p697_p3 = scmp.ne.s32.totalorder %s40_s14, %s696_s24  ;;  %p702_p5 = scmp.lt.s32.totalorder %s696_s24, %s696_s24 }
  0x11   :  { %p703_p6 = por %p702_p5, %p701_p4 }
  0x13   :  { %p704_p7 = pnand %p703_p6, %p697_p3 }
  0x15   :  { %707 = shalt.err (!%p704_p7)
}
  0x16   :  { %s944_s25 = smov 64   ;;  %s945_s26 = smov 4  }
  0x17   :  { %45 = dma.hbm_to_vmem [thread:$0]  %s1223_s1, 256, %s40_s14, [#allocation6], %s944_s25, %s944_s25, %s945_s26  }
  0x18   :  { %s708_s11 = scalar_lea.hbm %s1225_s3, 16 }
  0x19   :  { %p709_p8 = scmp.ne.s32.totalorder %s1225_s3, %s708_s11  ;;  %p712_p9 = scmp.lt.u32.totalorder %s708_s11, %s1225_s3 }
  0x1b   :  { %p714_p10 = pnand %p712_p9, %p709_p8 }
  0x1d   :  { %717 = shalt.err (!%p714_p10)
}
  0x1e   :  { %s718_s18 = scalar_lea.vmem %s1010_s16, 16  ;;  %s722_s1 = scalar_lea.vmem %s1010_s16, 32 }
  0x1f   :  { %p719_p11 = scmp.ne.s32.totalorder %s1010_s16, %s718_s18  ;;  %p723_p12 = scmp.lt.s32.totalorder %s1010_s16, %s1010_s16 }
  0x20   :  { %p724_p13 = scmp.lt.s32.totalorder %s722_s1, %s718_s18 }
  0x22   :  { %p725_p0 = por %p724_p13, %p723_p12 }
  0x24   :  { %p726_p1 = pnand %p725_p0, %p719_p11 }
  0x26   :  { %729 = shalt.err (!%p726_p1)
}
  0x27   :  { %65 = dma.hbm_to_vmem [thread:$0]  %s1225_s3, 16, %s1010_s16, [#allocation9]  }
  0x28   :  { %s946_s20 = smov [#allocation11]   ;;  %s947_s22 = smov [#allocation14]  }
  0x29   :  { %s84_s21 = sshll.u32 %s946_s20, 4  ;;  %s106_s23 = sshll.u32 %s947_s22, 4  ;;  %s85_s21 = int_to_ptr.vmem [resolvable:$true] %s84_s21  ;;  %s107_s23 = int_to_ptr.vmem [resolvable:$true] %s106_s23 }
  0x2a   :  { %s730_s28 = scalar_lea.hbm %s1227_s5, 16 }
  0x2b   :  { %p731_p2 = scmp.ne.s32.totalorder %s1227_s5, %s730_s28  ;;  %p734_p3 = scmp.lt.u32.totalorder %s730_s28, %s1227_s5 }
  0x2d   :  { %p736_p4 = pnand %p734_p3, %p731_p2 }
  0x2f   :  { %739 = shalt.err (!%p736_p4)
}
  0x30   :  { %s740_s3 = scalar_lea.vmem %s85_s21, 16  ;;  %s744_s16 = scalar_lea.vmem %s85_s21, 32 }
  0x31   :  { %p741_p5 = scmp.ne.s32.totalorder %s85_s21, %s740_s3  ;;  %p745_p6 = scmp.lt.s32.totalorder %s85_s21, %s85_s21 }
  0x32   :  { %p746_p7 = scmp.lt.s32.totalorder %s744_s16, %s740_s3 }
  0x34   :  { %p747_p8 = por %p746_p7, %p745_p6 }
  0x36   :  { %p748_p9 = pnand %p747_p8, %p741_p5 }
  0x38   :  { %751 = shalt.err (!%p748_p9)
}
  0x39   :  { %87 = dma.hbm_to_vmem [thread:$0]  %s1227_s5, 16, %s85_s21, [#allocation12]  }
  0x3a   :  { %s752_s1 = scalar_lea.hbm %s1229_s7, 16 }
  0x3b   :  { %p753_p10 = scmp.ne.s32.totalorder %s1229_s7, %s752_s1  ;;  %p756_p11 = scmp.lt.u32.totalorder %s752_s1, %s1229_s7 }
  0x3d   :  { %p758_p12 = pnand %p756_p11, %p753_p10 }
  0x3f   :  { %761 = shalt.err (!%p758_p12)
}
  0x40   :  { %s762_s24 = scalar_lea.vmem %s107_s23, 16  ;;  %s766_s27 = scalar_lea.vmem %s107_s23, 32 }
  0x41   :  { %p763_p13 = scmp.ne.s32.totalorder %s107_s23, %s762_s24  ;;  %p767_p0 = scmp.lt.s32.totalorder %s107_s23, %s107_s23 }
  0x42   :  { %p768_p1 = scmp.lt.s32.totalorder %s766_s27, %s762_s24 }
  0x44   :  { %p769_p2 = por %p768_p1, %p767_p0 }
  0x46   :  { %p770_p3 = pnand %p769_p2, %p763_p13 }
  0x48   :  { %773 = shalt.err (!%p770_p3)
}
  0x49   :  { %109 = dma.hbm_to_vmem [thread:$0]  %s1229_s7, 16, %s107_s23, [#allocation15]  }
  0x4a   :  { %s948_s28 = smov [#allocation2]   ;;  %s949_s30 = smov [#allocation7]  }
  0x4b   :  { %s27_s29 = sshll.u32 %s948_s28, 4  ;;  %s52_s11 = sshll.u32 %s949_s30, 4  ;;  %s28_s29 = int_to_ptr.vmem [resolvable:$true] %s27_s29  ;;  %s53_s11 = int_to_ptr.vmem [resolvable:$true] %s52_s11 }
  0x4c   :  { %s774_s16 = scalar_lea.hbm %s1222_s0, 256 }
  0x4d   :  { %p775_p4 = scmp.ne.s32.totalorder %s1222_s0, %s774_s16  ;;  %p778_p5 = scmp.lt.u32.totalorder %s774_s16, %s1222_s0 }
  0x4f   :  { %p780_p6 = pnand %p778_p5, %p775_p4 }
  0x51   :  { %783 = shalt.err (!%p780_p6)
}
  0x52   :  { %s784_s7 = scalar_lea.vmem %s28_s29, 256  ;;  %p789_p8 = scmp.lt.s32.totalorder %s28_s29, %s28_s29 }
  0x53   :  { %p785_p7 = scmp.ne.s32.totalorder %s28_s29, %s784_s7  ;;  %p790_p9 = scmp.lt.s32.totalorder %s784_s7, %s784_s7 }
  0x55   :  { %p791_p10 = por %p790_p9, %p789_p8 }
  0x57   :  { %p792_p11 = pnand %p791_p10, %p785_p7 }
  0x59   :  { %795 = shalt.err (!%p792_p11)
}
  0x5a   :  { %33 = dma.hbm_to_vmem [thread:$0]  %s1222_s0, 256, %s28_s29, [#allocation3], %s944_s25, %s944_s25, %s945_s26  }
  0x5b   :  { %s796_s20 = scalar_lea.hbm %s1224_s2, 16 }
  0x5c   :  { %p797_p12 = scmp.ne.s32.totalorder %s1224_s2, %s796_s20  ;;  %p800_p13 = scmp.lt.u32.totalorder %s796_s20, %s1224_s2 }
  0x5e   :  { %p802_p0 = pnand %p800_p13, %p797_p12 }
  0x60   :  { %805 = shalt.err (!%p802_p0)
}
  0x61   :  { %s806_s21 = scalar_lea.vmem %s53_s11, 16  ;;  %s810_s28 = scalar_lea.vmem %s53_s11, 32 }
  0x62   :  { %p807_p1 = scmp.ne.s32.totalorder %s53_s11, %s806_s21  ;;  %p811_p2 = scmp.lt.s32.totalorder %s53_s11, %s53_s11 }
  0x63   :  { %p812_p3 = scmp.lt.s32.totalorder %s810_s28, %s806_s21 }
  0x65   :  { %p813_p4 = por %p812_p3, %p811_p2 }
  0x67   :  { %p814_p5 = pnand %p813_p4, %p807_p1 }
  0x69   :  { %817 = shalt.err (!%p814_p5)
}
  0x6a   :  { %55 = dma.hbm_to_vmem [thread:$0]  %s1224_s2, 16, %s53_s11, [#allocation6]  }
  0x6b   :  { %s950_s30 = smov [#allocation10]   ;;  %s951_s3 = smov [#allocation13]  }
  0x6c   :  { %s71_s12 = sshll.u32 %s950_s30, 4  ;;  %s93_s16 = sshll.u32 %s951_s3, 4  ;;  %s72_s12 = int_to_ptr.vmem [resolvable:$true] %s71_s12  ;;  %s1096_s16 = int_to_ptr.vmem [resolvable:$true] %s93_s16 }
  0x6d   :  { %s818_s17 = scalar_lea.hbm %s1226_s4, 256 }
  0x6e   :  { %p819_p6 = scmp.ne.s32.totalorder %s1226_s4, %s818_s17  ;;  %p822_p7 = scmp.lt.u32.totalorder %s818_s17, %s1226_s4 }
  0x70   :  { %p824_p8 = pnand %p822_p7, %p819_p6 }
  0x72   :  { %827 = shalt.err (!%p824_p8)
}
  0x73   :  { %s828_s2 = scalar_lea.vmem %s72_s12, 256  ;;  %p833_p10 = scmp.lt.s32.totalorder %s72_s12, %s72_s12 }
  0x74   :  { %p829_p9 = scmp.ne.s32.totalorder %s72_s12, %s828_s2  ;;  %p834_p11 = scmp.lt.s32.totalorder %s828_s2, %s828_s2 }
  0x76   :  { %p835_p12 = por %p834_p11, %p833_p10 }
  0x78   :  { %p836_p13 = pnand %p835_p12, %p829_p9 }
  0x7a   :  { %839 = shalt.err (!%p836_p13)
}
  0x7b   :  { %77 = dma.hbm_to_vmem [thread:$0]  %s1226_s4, 256, %s72_s12, [#allocation9], %s944_s25, %s944_s25, %s945_s26  }
  0x7c   :  { %s840_s22 = scalar_lea.hbm %s1228_s6, 512 }
  0x7d   :  { %p841_p0 = scmp.ne.s32.totalorder %s1228_s6, %s840_s22  ;;  %p844_p1 = scmp.lt.u32.totalorder %s840_s22, %s1228_s6 }
  0x7f   :  { %p846_p2 = pnand %p844_p1, %p841_p0 }
  0x81   :  { %849 = shalt.err (!%p846_p2)
}
  0x82   :  { %s850_s28 = scalar_lea.vmem %s1096_s16, 512  ;;  %p855_p4 = scmp.lt.s32.totalorder %s1096_s16, %s1096_s16 }
  0x83   :  { %p851_p3 = scmp.ne.s32.totalorder %s1096_s16, %s850_s28  ;;  %p856_p5 = scmp.lt.s32.totalorder %s850_s28, %s850_s28 }
  0x85   :  { %p857_p6 = por %p856_p5, %p855_p4 }
  0x87   :  { %p858_p7 = pnand %p857_p6, %p851_p3 }
  0x89   :  { %861 = shalt.err (!%p858_p7)
}
  0x8a   :  { %99 = dma.hbm_to_vmem [thread:$0]  %s1228_s6, 512, %s1096_s16, [#allocation12], %s944_s25, %s944_s25, %s945_s26  }
  0x8b   :  { %s952_s29 = smov [#allocation16]   ;;  %s953_s12 = smov [#allocation17]  }
  0x8c   :  { %s116_s30 = sshll.u32 %s952_s29, 4  ;;  %s126_s3 = sshll.u32 %s953_s12, 4  ;;  %s117_s30 = int_to_ptr.vmem [resolvable:$true] %s116_s30  ;;  %s127_s3 = int_to_ptr.vmem [resolvable:$true] %s126_s3 }
  0x8d   :  { %s862_s17 = scalar_lea.hbm %s1230_s8, 16 }
  0x8e   :  { %p863_p8 = scmp.ne.s32.totalorder %s1230_s8, %s862_s17  ;;  %p866_p9 = scmp.lt.u32.totalorder %s862_s17, %s1230_s8 }
  0x90   :  { %p868_p10 = pnand %p866_p9, %p863_p8 }
  0x92   :  { %871 = shalt.err (!%p868_p10)
}
  0x93   :  { %s872_s6 = scalar_lea.vmem %s117_s30, 16  ;;  %s876_s16 = scalar_lea.vmem %s117_s30, 32 }
  0x94   :  { %p873_p11 = scmp.ne.s32.totalorder %s117_s30, %s872_s6  ;;  %p877_p12 = scmp.lt.s32.totalorder %s117_s30, %s117_s30 }
  0x95   :  { %p878_p13 = scmp.lt.s32.totalorder %s876_s16, %s872_s6 }
  0x97   :  { %p879_p0 = por %p878_p13, %p877_p12 }
  0x99   :  { %p880_p1 = pnand %p879_p0, %p873_p11 }
  0x9b   :  { %883 = shalt.err (!%p880_p1)
}
  0x9c   :  { %119 = dma.hbm_to_vmem [thread:$0]  %s1230_s8, 16, %s117_s30, [#allocation15]  }
  0x9d   :  { %s884_s20 = scalar_lea.hbm %s1231_s9, 16 }
  0x9e   :  { %p885_p2 = scmp.ne.s32.totalorder %s1231_s9, %s884_s20  ;;  %p888_p3 = scmp.lt.u32.totalorder %s884_s20, %s1231_s9 }
  0xa0   :  { %p890_p4 = pnand %p888_p3, %p885_p2 }
  0xa2   :  { %893 = shalt.err (!%p890_p4)
}
  0xa3   :  { %s894_s21 = scalar_lea.vmem %s127_s3, 16  ;;  %s898_s28 = scalar_lea.vmem %s127_s3, 32 }
  0xa4   :  { %p895_p5 = scmp.ne.s32.totalorder %s127_s3, %s894_s21  ;;  %p899_p6 = scmp.lt.s32.totalorder %s127_s3, %s127_s3 }
  0xa5   :  { %p900_p7 = scmp.lt.s32.totalorder %s898_s28, %s894_s21 }
  0xa7   :  { %p901_p8 = por %p900_p7, %p899_p6 }
  0xa9   :  { %p902_p9 = pnand %p901_p8, %p895_p5 }
  0xab   :  { %905 = shalt.err (!%p902_p9)
}
  0xac   :  { %129 = dma.hbm_to_vmem [thread:$0]  %s1231_s9, 16, %s127_s3, [#allocation18]  }
  0xad   :  { %928 = dma.done.wait [#allocation3], 256  }
  0xae   :  { %929 = vsyncadd [#allocation3], 4294967040 }
  0xaf   :  { %930 = dma.done.wait [#allocation6], 272  }
  0xb0   :  { %931 = vsyncadd [#allocation6], 4294967024 }
  0xb1   :  { %932 = dma.done.wait [#allocation9], 272  }
  0xb2   :  { %933 = vsyncadd [#allocation9], 4294967024 }
  0xb3   :  { %934 = dma.done.wait [#allocation12], 528  }
  0xb4   :  { %935 = vsyncadd [#allocation12], 4294966768 }
  0xb5   :  { %936 = dma.done.wait [#allocation15], 32  }
  0xb6   :  { %937 = vsyncadd [#allocation15], 4294967264 }
  0xb7   :  { %938 = dma.done.wait [#allocation18], 16  }
  0xb8   :  { %939 = vsyncadd [#allocation18], 4294967280  ;;  %v588_v0 = vld [vmem:[#allocation2] sm:$0xff]   ;;  %vm169_vm0 = vcmask 261120   ;;  %v603_v1 = vld [vmem:[#allocation2 + $0x8] sm:$0xff]   ;;  %vm450_vm1 = vcmask 523264  }
  0xb9   :  { %v589_v2 = vunpack.c.l.bf16 %v588_v0  ;;  %v593_v3 = vunpack.c.l.bf16 %v603_v1  ;;  %v590_v4 = vunpack.c.h.bf16 %v588_v0  ;;  %v594_v5 = vunpack.c.h.bf16 %v603_v1  ;;  %v648_v30 = vld [vmem:[#allocation10] sm:$0xff]   ;;  %v649_v31 = vld [vmem:[#allocation10 + $0x8] sm:$0xff]   ;;  %v561_v46 = vld [vmem:[#allocation7] ss:$0 sm:$0xff]  ;;  %s954_s9 = smov [#allocation19]  }
  0xba   :  { %615 = vmatprep.subr.bf16.mxu0 %v648_v30  ;;  %v562_v52 = vld [vmem:[#allocation8] ss:$0 sm:$0xff]  ;;  %v650_v0 = vld [vmem:[#allocation13] sm:$0xff]   ;;  %v563_v1 = vld [vmem:[#allocation11] ss:$0 sm:$0xff]  ;;  %vm534_vm2 = vcmask 257024  }
  0xbb   :  { %v170_v6 = vsel %vm169_vm0, %v589_v2, 0.0  ;;  %v176_v7 = vsel %vm169_vm0, %v593_v3, 0.0  ;;  %v173_v8 = vsel %vm169_vm0, %v590_v4, 0.0  ;;  %v179_v9 = vsel %vm169_vm0, %v594_v5, 0.0  ;;  %616 = vmatpush3.bf16.msra.mxu0 %v648_v30  ;;  %623 = vmatprep.subr.bf16.mxu1 %v650_v0  ;;  %s544_s0 = sshll.u32 %s954_s9, 4  ;;  %s545_s0 = int_to_ptr.vmem [resolvable:$true] %s544_s0 }
  0xbc   :  { %171 = vadd.xlane.f32.xlu0 %v170_v6  ;;  %177 = vadd.xlane.f32.xlu1 %v176_v7  ;;  %s906_s29 = scalar_lea.vmem %s545_s0, 256  ;;  %p911_p11 = scmp.lt.s32.totalorder %s545_s0, %s545_s0 }
  0xbd   :  { %617 = vmatprep.subr.bf16.mxu0 %v649_v31  ;;  %624 = vmatpush3.bf16.msra.mxu1 %v650_v0  ;;  %p907_p10 = scmp.ne.s32.totalorder %s545_s0, %s906_s29  ;;  %p912_p12 = scmp.lt.s32.totalorder %s906_s29, %s906_s29 }
  0xbf   :  { %618 = vmatpush3.bf16.msra.mxu0 %v649_v31  ;;  %p913_p13 = por %p912_p12, %p911_p11 }
  0xc0   :  { %174 = vadd.xlane.f32.xlu0 %v173_v8  ;;  %180 = vadd.xlane.f32.xlu1 %v179_v9 }
  0xc1   :  { %p914_p0 = pnand %p913_p13, %p907_p10 }
 0x149   :  { %v172_v10 = vpop.xlane.xlu0 %171  ;;  %v178_v11 = vpop.xlane.xlu1 %177 }
 0x14a   :  { %v183_v12 = vmul.f32 0.03125, %v172_v10  ;;  %v185_v13 = vmul.f32 0.03125, %v178_v11 }
 0x14c   :  { %v187_v14 = vsub.f32 %v589_v2, %v183_v12  ;;  %v189_v15 = vsub.f32 %v593_v3, %v185_v13 }
 0x14d   :  { %v175_v16 = vpop.xlane.xlu0 %174  ;;  %v181_v17 = vpop.xlane.xlu1 %180 }
 0x14e   :  { %v184_v18 = vmul.f32 0.03125, %v175_v16  ;;  %v186_v19 = vmul.f32 0.03125, %v181_v17  ;;  %v191_v20 = vmul.f32 %v187_v14, %v187_v14  ;;  %v193_v21 = vmul.f32 %v189_v15, %v189_v15 }
 0x150   :  { %v188_v22 = vsub.f32 %v590_v4, %v184_v18  ;;  %v190_v23 = vsub.f32 %v594_v5, %v186_v19  ;;  %v195_v24 = vsel %vm169_vm0, %v191_v20, 0.0  ;;  %v201_v25 = vsel %vm169_vm0, %v193_v21, 0.0  ;;  %v651_v19 = vld [vmem:[#allocation13 + $0x8] sm:$0xff]  }
 0x151   :  { %196 = vadd.xlane.f32.xlu0 %v195_v24  ;;  %625 = vmatprep.subr.bf16.mxu1 %v651_v19  ;;  %v653_v24 = vld [vmem:[#allocation13 + $0x18] sm:$0xff]  }
 0x152   :  { %v192_v26 = vmul.f32 %v188_v22, %v188_v22  ;;  %v194_v27 = vmul.f32 %v190_v23, %v190_v23  ;;  %626 = vmatpush3.bf16.msra.mxu1 %v651_v19  ;;  %v604_v19 = vld [vmem:[#allocation5 + $0x8] sm:$0xff]  }
 0x154   :  { %v198_v28 = vsel %vm169_vm0, %v192_v26, 0.0  ;;  %v204_v29 = vsel %vm169_vm0, %v194_v27, 0.0 }
 0x155   :  { %202 = vadd.xlane.f32.xlu0 %v201_v25  ;;  %199 = vadd.xlane.f32.xlu1 %v198_v28 }
 0x159   :  { %205 = vadd.xlane.f32.xlu1 %v204_v29 }
 0x1de   :  { %v197_v32 = vpop.xlane.xlu0 %196 }
 0x1df   :  { %v207_v33 = vmul.f32 0.03125, %v197_v32 }
 0x1e1   :  { %v211_v34 = vadd.f32 1e-05, %v207_v33 }
 0x1e2   :  { %v200_v35 = vpop.xlane.xlu1 %199  ;;  %v203_v36 = vpop.xlane.xlu0 %202 }
 0x1e3   :  { %654 = vrsqrt.f32 %v211_v34  ;;  %v208_v37 = vmul.f32 0.03125, %v200_v35  ;;  %v209_v38 = vmul.f32 0.03125, %v203_v36 }
 0x1e5   :  { %v212_v39 = vadd.f32 1e-05, %v208_v37  ;;  %v213_v40 = vadd.f32 1e-05, %v209_v38 }
 0x1e6   :  { %v206_v41 = vpop.xlane.xlu1 %205 }
 0x1e7   :  { %656 = vrsqrt.f32 %v212_v39  ;;  %v210_v42 = vmul.f32 0.03125, %v206_v41 }
 0x1e8   :  { %658 = vrsqrt.f32 %v213_v40 }
 0x1e9   :  { %v214_v43 = vadd.f32 1e-05, %v210_v42 }
 0x1eb   :  { %660 = vrsqrt.f32 %v214_v43 }
 0x1ed   :  { %v655_v44 = vpop.eup %654 }
 0x1ee   :  { %v219_v45 = vmul.f32 %v655_v44, %v187_v14 }
 0x1f0   :  { %v230_v50 = vmul.f32 %v561_v46, %v219_v45 }
 0x1f1   :  { %v657_v47 = vpop.eup %656 }
 0x1f2   :  { %v659_v48 = vpop.eup %658  ;;  %v220_v49 = vmul.f32 %v657_v47, %v188_v22  ;;  %v241_v56 = vadd.f32 %v562_v52, %v230_v50 }
 0x1f3   :  { %v221_v51 = vmul.f32 %v659_v48, %v189_v15 }
 0x1f4   :  { %v231_v53 = vmul.f32 %v561_v46, %v220_v49 }
 0x1f5   :  { %v661_v54 = vpop.eup %660  ;;  %v232_v58 = vmul.f32 %v561_v46, %v221_v51 }
 0x1f6   :  { %v222_v55 = vmul.f32 %v661_v54, %v190_v23  ;;  %v242_v57 = vadd.f32 %v562_v52, %v231_v53  ;;  %v652_v23 = vld [vmem:[#allocation13 + $0x10] sm:$0xff]  }
 0x1f7   :  { %v243_v61 = vadd.f32 %v562_v52, %v232_v58  ;;  %627 = vmatprep.subr.bf16.mxu1 %v652_v23 }
 0x1f8   :  { %v245_v59 = vpack.c.bf16 %v242_v57, %v241_v56  ;;  %v233_v60 = vmul.f32 %v561_v46, %v222_v55  ;;  %628 = vmatpush3.bf16.msra.mxu1 %v652_v23 }
 0x1f9   :  { %629 = vmatprep.subr.bf16.mxu1 %v653_v24 }
 0x1fa   :  { %619 = vmatprep.mubr.msk.bf16.mxu0 %vm169_vm0, %v245_v59  ;;  %v244_v62 = vadd.f32 %v562_v52, %v233_v60 }
 0x1fc   :  { %v246_v63 = vpack.c.bf16 %v244_v62, %v243_v61  ;;  %630 = vmatpush3.bf16.msra.mxu1 %v653_v24 }
 0x1fe   :  { %620 = vmatmul.mubr.msk.bf16.vlgmr.msra.gmra.mrb[0].mxu0 %vm169_vm0, %v246_v63 }
 0x2d1   :  { %v621_v2 = vpop.f32.mrb[0].mxu0 }
 0x2d2   :  { %v1167_v3 = vadd.f32 %v621_v2, %v563_v1  ;;  %v310_v4 = vpop.f32.mrb[1].mxu0 }
 0x2d3   :  { %v1169_v5 = vadd.f32 %v563_v1, %v310_v4  ;;  %v622_v6 = vpop.f32.mrb[2].mxu0 }
 0x2d4   :  { %v1171_v7 = vadd.f32 %v622_v6, %v563_v1  ;;  %v313_v8 = vpop.f32.mrb[3].mxu0  ;;  %v570_v9 = vmul.f32 -1.442695, %v1167_v3  ;;  %v327_v35 = vmul.f32 %v1167_v3, %v1167_v3 }
 0x2d5   :  { %v1174_v10 = vadd.f32 %v563_v1, %v313_v8  ;;  %v568_v11 = vmul.f32 -1.442695, %v1169_v5  ;;  %v325_v33 = vmul.f32 %v1169_v5, %v1169_v5 }
 0x2d6   :  { %662 = vpow2.f32 %v570_v9  ;;  %v571_v12 = vmul.f32 -1.442695, %v1171_v7  ;;  %v328_v38 = vmul.f32 %v1171_v7, %v1171_v7  ;;  %v331_v39 = vmul.f32 %v327_v35, %v1167_v3 }
 0x2d7   :  { %664 = vpow2.f32 %v568_v11  ;;  %v569_v13 = vmul.f32 -1.442695, %v1174_v10  ;;  %v326_v34 = vmul.f32 %v1174_v10, %v1174_v10  ;;  %v329_v36 = vmul.f32 %v325_v33, %v1169_v5 }
 0x2d8   :  { %666 = vpow2.f32 %v571_v12  ;;  %v332_v42 = vmul.f32 %v328_v38, %v1171_v7  ;;  %v335_v43 = vmul.f32 0.044715, %v331_v39 }
 0x2d9   :  { %668 = vpow2.f32 %v569_v13  ;;  %v330_v37 = vmul.f32 %v326_v34, %v1174_v10  ;;  %v333_v40 = vmul.f32 0.044715, %v329_v36 }
 0x2da   :  { %v336_v46 = vmul.f32 0.044715, %v332_v42  ;;  %v339_v47 = vadd.f32 %v335_v43, %v1167_v3 }
 0x2db   :  { %v334_v41 = vmul.f32 0.044715, %v330_v37  ;;  %v337_v44 = vadd.f32 %v333_v40, %v1169_v5 }
 0x2dc   :  { %v340_v50 = vadd.f32 %v336_v46, %v1171_v7  ;;  %v343_v51 = vmul.f32 0.7978846, %v339_v47 }
 0x2dd   :  { %v338_v45 = vadd.f32 %v334_v41, %v1174_v10  ;;  %v341_v48 = vmul.f32 0.7978846, %v337_v44 }
 0x2de   :  { %v344_v52 = vmul.f32 0.7978846, %v340_v50 }
 0x2df   :  { %v342_v49 = vmul.f32 0.7978846, %v338_v45 }
 0x2e0   :  { %v663_v14 = vpop.eup %662 }
 0x2e1   :  { %v665_v15 = vpop.eup %664  ;;  %v375_v16 = vadd.f32 1.0, %v663_v14 }
 0x2e2   :  { %v667_v17 = vpop.eup %666  ;;  %v373_v18 = vadd.f32 1.0, %v665_v15 }
 0x2e3   :  { %v669_v20 = vpop.eup %668  ;;  %670 = vrcp.f32 %v375_v16  ;;  %v376_v22 = vadd.f32 1.0, %v667_v17 }
 0x2e4   :  { %672 = vrcp.f32 %v373_v18  ;;  %v374_v21 = vadd.f32 1.0, %v669_v20  ;;  %v572_v20 = vld [vmem:[#allocation14] ss:$0 sm:$0xff] }
 0x2e6   :  { %674 = vrcp.f32 %v374_v21 }
 0x2e7   :  { %676 = vrcp.f32 %v376_v22 }
 0x2e8   :  { %678 = vtanh.f32 %v341_v48 }
 0x2e9   :  { %680 = vtanh.f32 %v342_v49 }
 0x2ea   :  { %682 = vtanh.f32 %v343_v51 }
 0x2eb   :  { %684 = vtanh.f32 %v344_v52 }
 0x2ed   :  { %v671_v25 = vpop.eup %670 }
 0x2ee   :  { %v673_v26 = vpop.eup %672  ;;  %v387_v27 = vmul.f32 %v671_v25, %v1167_v3  ;;  %v602_v25 = vunpack.c.h.bf16 %v604_v19 }
 0x2ef   :  { %v385_v28 = vmul.f32 %v673_v26, %v1169_v5 }
 0x2f0   :  { %v675_v29 = vpop.eup %674  ;;  %397 = vrot.lane.b32.xlu1 %v387_v27, %s944_s25 }
 0x2f1   :  { %393 = vrot.lane.b32.xlu0 %v385_v28, %s944_s25  ;;  %v386_v30 = vmul.f32 %v675_v29, %v1174_v10  ;;  %v677_v31 = vpop.eup %676 }
 0x2f2   :  { %v388_v32 = vmul.f32 %v677_v31, %v1171_v7  ;;  %v679_v53 = vpop.eup %678 }
 0x2f3   :  { %v681_v54 = vpop.eup %680  ;;  %v349_v56 = vadd.f32 1.0, %v679_v53 }
 0x2f4   :  { %395 = vrot.lane.b32.xlu1 %v386_v30, %s944_s25  ;;  %v683_v55 = vpop.eup %682  ;;  %v350_v57 = vadd.f32 1.0, %v681_v54 }
 0x2f5   :  { %v685_v58 = vpop.eup %684  ;;  %v351_v59 = vadd.f32 1.0, %v683_v55  ;;  %v353_v60 = vmul.f32 0.5, %v349_v56 }
 0x2f6   :  { %v354_v61 = vmul.f32 0.5, %v350_v57  ;;  %v352_v62 = vadd.f32 1.0, %v685_v58 }
 0x2f7   :  { %v355_v1 = vmul.f32 0.5, %v351_v59  ;;  %v357_v2 = vmul.f32 %v353_v60, %v1169_v5  ;;  %v596_v5 = vld [vmem:[#allocation5] sm:$0xff]  }
 0x2f8   :  { %399 = vrot.lane.b32.xlu1 %v388_v32, %s944_s25  ;;  %v358_v4 = vmul.f32 %v354_v61, %v1174_v10  ;;  %v356_v6 = vmul.f32 0.5, %v352_v62  ;;  %v601_v10 = vunpack.c.l.bf16 %v604_v19  ;;  %v597_v22 = vunpack.c.l.bf16 %v596_v5 }
 0x2f9   :  { %v359_v12 = vmul.f32 %v355_v1, %v1167_v3  ;;  %v598_v27 = vunpack.c.h.bf16 %v596_v5 }
 0x2fa   :  { %v360_v13 = vmul.f32 %v356_v6, %v1171_v7 }
 0x362   :  { %v398_v63 = vpop.permute.xlu1 %397 }
 0x363   :  { %v394_v0 = vpop.permute.xlu0 %393  ;;  %v407_v16 = vmul.f32 %v398_v63, %v359_v12 }
 0x364   :  { %v405_v9 = vmul.f32 %v394_v0, %v357_v2 }
 0x366   :  { %v396_v8 = vpop.permute.xlu1 %395 }
 0x367   :  { %v406_v11 = vmul.f32 %v396_v8, %v358_v4 }
 0x369   :  { %v409_v14 = vpack.c.bf16 %v406_v11, %v405_v9 }
 0x36a   :  { %v400_v15 = vpop.permute.xlu1 %399 }
 0x36b   :  { %v408_v17 = vmul.f32 %v400_v15, %v360_v13  ;;  %631 = vmatprep.mubr.msk.bf16.mxu1 %vm450_vm1, %v409_v14 }
 0x36d   :  { %v410_v18 = vpack.c.bf16 %v408_v17, %v407_v16 }
 0x36f   :  { %632 = vmatmul.mubr.msk.bf16.vlgmr.msra.gmra.mrb[0].mxu1 %vm450_vm1, %v410_v18 }
 0x442   :  { %v633_v21 = vpop.f32.mrb[0].mxu1 }
 0x443   :  { %v500_v23 = vadd.f32 %v633_v21, %v572_v20  ;;  %v491_v24 = vpop.f32.mrb[1].mxu1 }
 0x444   :  { %v492_v26 = vadd.f32 %v572_v20, %v491_v24  ;;  %v634_v3 = vpop.f32.mrb[2].mxu1 }
 0x445   :  { %v516_v7 = vadd.f32 %v601_v10, %v500_v23  ;;  %v503_v28 = vadd.f32 %v634_v3, %v572_v20  ;;  %v494_v29 = vpop.f32.mrb[3].mxu1 }
 0x446   :  { %v514_v30 = vadd.f32 %v597_v22, %v492_v26  ;;  %v495_v31 = vadd.f32 %v572_v20, %v494_v29 }
 0x447   :  { %v585_v32 = vpack.c.bf16 %v516_v7, %v516_v7  ;;  %v517_v33 = vadd.f32 %v602_v25, %v503_v28 }
 0x448   :  { %v583_v34 = vpack.c.bf16 %v514_v30, %v514_v30  ;;  %v515_v35 = vadd.f32 %v598_v27, %v495_v31 }
 0x449   :  { %537 = vst.msk [vmem:[#allocation19 + $0x8] sm:$0xf] %vm534_vm2, %v585_v32  ;;  %v586_v36 = vpack.c.bf16 %v517_v33, %v517_v33 }
 0x44a   :  { %535 = vst.msk [vmem:[#allocation19] sm:$0xf] %vm534_vm2, %v583_v34  ;;  %v584_v37 = vpack.c.bf16 %v515_v35, %v515_v35 }
 0x44b   :  { %538 = vst.msk [vmem:[#allocation19 + $0xc] sm:$0xf] %vm534_vm2, %v586_v36 }
 0x44c   :  { %536 = vst.msk [vmem:[#allocation19 + $0x4] sm:$0xf] %vm534_vm2, %v584_v37 }
 0x44d   :  { %917 = shalt.err (!%p914_p0)
}
 0x44e   :  { %s918_s3 = scalar_lea.hbm %s1232_s10, 256 }
 0x44f   :  { %p919_p1 = scmp.ne.s32.totalorder %s1232_s10, %s918_s3  ;;  %p922_p2 = scmp.lt.u32.totalorder %s918_s3, %s1232_s10 }
 0x451   :  { %p924_p3 = pnand %p922_p2, %p919_p1 }
 0x453   :  { %927 = shalt.err (!%p924_p3)
}
 0x454   :  { %550 = dma.vmem_to_hbm [thread:$0]  %s545_s0, 256, %s1232_s10, [#allocation4], %s944_s25, %s944_s25, %s945_s26  }
 0x455   :  { %940 = dma.done.wait [#allocation4], 256  }
 0x456   :  { %941 = vsyncadd [#allocation4], 4294967040 }
 0x457   :  { %554 = vsyncpa [#allocation3], 1 }
 0x458   :  { %555 = vsyncpa [#allocation6], 1 }
 0x459   :  { %556 = vsyncpa [#allocation9], 1 }
 0x45a   :  { %557 = vsyncpa [#allocation12], 1 }
 0x45b   :  { %558 = vsyncpa [#allocation15], 1 }
 0x45c   :  { %559 = vsyncpa [#allocation18], 1 }
 0x45d   :  { %560 = vsyncpa [#allocation4], 1 }

// kernel: fwd.9
= control target key start
LH: loop header
LB: loop body
LE: loop exit
PB: predicated region body
PF: predicated region fallthrough
CT: control target
= control target key end

     0   :  { %10 = vsyncpa [#allocation3], 0  ;;  %s522_s0 = inlined_call_operand.hbm [shape: bf16[8,128], index: 0, kind: input, shape index: {}]   ;;  %s523_s1 = inlined_call_operand.hbm [shape: bf16[128,64], index: 1, kind: input, shape index: {}]   ;;  %s524_s2 = inlined_call_operand.hbm [shape: f32[1,64], index: 2, kind: input, shape index: {}]   ;;  %s525_s3 = inlined_call_operand.hbm [shape: f32[1,64], index: 3, kind: input, shape index: {}]   ;;  %s526_s4 = inlined_call_operand.hbm [shape: f32[1,64], index: 4, kind: input, shape index: {}]   ;;  %s527_s5 = inlined_call_operand.hbm [shape: bf16[8,64], index: 5, kind: output, shape index: {}]  }
   0x1   :  { %11 = vsyncpa [#allocation6], 0 }
   0x2   :  { %12 = vsyncpa [#allocation9], 0 }
   0x3   :  { %13 = vsyncpa [#allocation4], 0  ;;  %s410_s18 = smov [#allocation5]   ;;  %s270_s22 = scalar_lea.hbm %s523_s1, 1024 }
   0x4   :  { %s29_s19 = sshll.u32 %s410_s18, 4  ;;  %p271_p0 = scmp.ne.s32.totalorder %s523_s1, %s270_s22  ;;  %s30_s19 = int_to_ptr.vmem [resolvable:$true] %s29_s19 }
   0x5   :  { %p274_p1 = scmp.lt.u32.totalorder %s270_s22, %s523_s1 }
   0x7   :  { %p276_p2 = pnand %p274_p1, %p271_p0 }
   0x9   :  { %279 = shalt.err (!%p276_p2)
}
   0xa   :  { %s280_s27 = scalar_lea.vmem %s30_s19, 1024  ;;  %p285_p4 = scmp.lt.s32.totalorder %s30_s19, %s30_s19 }
   0xb   :  { %p281_p3 = scmp.ne.s32.totalorder %s30_s19, %s280_s27  ;;  %p286_p5 = scmp.lt.s32.totalorder %s280_s27, %s280_s27 }
   0xd   :  { %p287_p6 = por %p286_p5, %p285_p4 }
   0xf   :  { %p288_p7 = pnand %p287_p6, %p281_p3 }
  0x11   :  { %291 = shalt.err (!%p288_p7)
}
  0x12   :  { %s411_s28 = smov 64   ;;  %s412_s29 = smov 4  }
  0x13   :  { %35 = dma.hbm_to_vmem [thread:$0]  %s523_s1, 1024, %s30_s19, [#allocation6], %s411_s28, %s411_s28, %s412_s29  }
  0x14   :  { %s413_s7 = smov [#allocation8]   ;;  %s414_s9 = smov [#allocation2]  }
  0x15   :  { %s52_s8 = sshll.u32 %s413_s7, 4  ;;  %s20_s10 = sshll.u32 %s414_s9, 4  ;;  %s53_s8 = int_to_ptr.vmem [resolvable:$true] %s52_s8  ;;  %s21_s10 = int_to_ptr.vmem [resolvable:$true] %s20_s10 }
  0x16   :  { %s292_s13 = scalar_lea.hbm %s525_s3, 16 }
  0x17   :  { %p293_p8 = scmp.ne.s32.totalorder %s525_s3, %s292_s13  ;;  %p296_p9 = scmp.lt.u32.totalorder %s292_s13, %s525_s3 }
  0x19   :  { %p298_p10 = pnand %p296_p9, %p293_p8 }
  0x1b   :  { %301 = shalt.err (!%p298_p10)
}
  0x1c   :  { %s302_s1 = scalar_lea.vmem %s53_s8, 16  ;;  %s306_s18 = scalar_lea.vmem %s53_s8, 32 }
  0x1d   :  { %p303_p11 = scmp.ne.s32.totalorder %s53_s8, %s302_s1  ;;  %p307_p12 = scmp.lt.s32.totalorder %s53_s8, %s53_s8 }
  0x1e   :  { %p308_p13 = scmp.lt.s32.totalorder %s306_s18, %s302_s1 }
  0x20   :  { %p309_p0 = por %p308_p13, %p307_p12 }
  0x22   :  { %p310_p1 = pnand %p309_p0, %p303_p11 }
  0x24   :  { %313 = shalt.err (!%p310_p1)
}
  0x25   :  { %55 = dma.hbm_to_vmem [thread:$0]  %s525_s3, 16, %s53_s8, [#allocation9]  }
  0x26   :  { %s314_s23 = scalar_lea.hbm %s522_s0, 64 }
  0x27   :  { %p315_p2 = scmp.ne.s32.totalorder %s522_s0, %s314_s23  ;;  %p318_p3 = scmp.lt.u32.totalorder %s314_s23, %s522_s0 }
  0x29   :  { %p320_p4 = pnand %p318_p3, %p315_p2 }
  0x2b   :  { %323 = shalt.err (!%p320_p4)
}
  0x2c   :  { %s324_s28 = scalar_lea.vmem %s21_s10, 64  ;;  %p329_p6 = scmp.lt.s32.totalorder %s21_s10, %s21_s10 }
  0x2d   :  { %p325_p5 = scmp.ne.s32.totalorder %s21_s10, %s324_s28  ;;  %p330_p7 = scmp.lt.s32.totalorder %s324_s28, %s324_s28 }
  0x2f   :  { %p331_p8 = por %p330_p7, %p329_p6 }
  0x31   :  { %p332_p9 = pnand %p331_p8, %p325_p5 }
  0x33   :  { %335 = shalt.err (!%p332_p9)
}
  0x34   :  { %23 = dma.hbm_to_vmem [thread:$0]  %s522_s0, 64, %s21_s10, [#allocation3]  }
  0x35   :  { %s415_s30 = smov [#allocation7]   ;;  %s416_s7 = smov [#allocation10]  }
  0x36   :  { %s42_s6 = sshll.u32 %s415_s30, 4  ;;  %s62_s8 = sshll.u32 %s416_s7, 4  ;;  %s43_s6 = int_to_ptr.vmem [resolvable:$true] %s42_s6  ;;  %s63_s8 = int_to_ptr.vmem [resolvable:$true] %s62_s8 }
  0x37   :  { %s336_s12 = scalar_lea.hbm %s524_s2, 16 }
  0x38   :  { %p337_p10 = scmp.ne.s32.totalorder %s524_s2, %s336_s12  ;;  %p340_p11 = scmp.lt.u32.totalorder %s336_s12, %s524_s2 }
  0x3a   :  { %p342_p12 = pnand %p340_p11, %p337_p10 }
  0x3c   :  { %345 = shalt.err (!%p342_p12)
}
  0x3d   :  { %s346_s0 = scalar_lea.vmem %s43_s6, 16  ;;  %s350_s10 = scalar_lea.vmem %s43_s6, 32 }
  0x3e   :  { %p347_p13 = scmp.ne.s32.totalorder %s43_s6, %s346_s0  ;;  %p351_p0 = scmp.lt.s32.totalorder %s43_s6, %s43_s6 }
  0x3f   :  { %p352_p1 = scmp.lt.s32.totalorder %s350_s10, %s346_s0 }
  0x41   :  { %p353_p2 = por %p352_p1, %p351_p0 }
  0x43   :  { %p354_p3 = pnand %p353_p2, %p347_p13 }
  0x45   :  { %357 = shalt.err (!%p354_p3)
}
  0x46   :  { %45 = dma.hbm_to_vmem [thread:$0]  %s524_s2, 16, %s43_s6, [#allocation6]  }
  0x47   :  { %s358_s20 = scalar_lea.hbm %s526_s4, 16 }
  0x48   :  { %p359_p4 = scmp.ne.s32.totalorder %s526_s4, %s358_s20  ;;  %p362_p5 = scmp.lt.u32.totalorder %s358_s20, %s526_s4 }
  0x4a   :  { %p364_p6 = pnand %p362_p5, %p359_p4 }
  0x4c   :  { %367 = shalt.err (!%p364_p6)
}
  0x4d   :  { %s368_s25 = scalar_lea.vmem %s63_s8, 16  ;;  %s372_s26 = scalar_lea.vmem %s63_s8, 32 }
  0x4e   :  { %p369_p7 = scmp.ne.s32.totalorder %s63_s8, %s368_s25  ;;  %p373_p8 = scmp.lt.s32.totalorder %s63_s8, %s63_s8 }
  0x4f   :  { %p374_p9 = scmp.lt.s32.totalorder %s372_s26, %s368_s25 }
  0x51   :  { %p375_p10 = por %p374_p9, %p373_p8 }
  0x53   :  { %p376_p11 = pnand %p375_p10, %p369_p7 }
  0x55   :  { %379 = shalt.err (!%p376_p11)
}
  0x56   :  { %65 = dma.hbm_to_vmem [thread:$0]  %s526_s4, 16, %s63_s8, [#allocation9]  }
  0x57   :  { %402 = dma.done.wait [#allocation3], 64  }
  0x58   :  { %403 = vsyncadd [#allocation3], 4294967232 }
  0x59   :  { %404 = dma.done.wait [#allocation6], 1040  }
  0x5a   :  { %405 = vsyncadd [#allocation6], 4294966256 }
  0x5b   :  { %406 = dma.done.wait [#allocation9], 32  }
  0x5c   :  { %407 = vsyncadd [#allocation9], 4294967264  ;;  %v417_v0 = vmov 0.0   ;;  %vm418_vm0 = vmmov 0   ;;  %v262_v1 = vld [vmem:[#allocation5] sm:$0xff]   ;;  %v263_v2 = vld [vmem:[#allocation5 + $0x8] sm:$0xff]  }
  0x5d   :  { %232 = vmatprep.subr.bf16.mxu0 %v417_v0  ;;  %248 = vmatprep.mubr.msk.bf16.mxu0 %vm418_vm0, %v417_v0  ;;  %v264_v3 = vld [vmem:[#allocation5 + $0x10] sm:$0xff]   ;;  %v265_v4 = vld [vmem:[#allocation5 + $0x18] sm:$0xff]   ;;  %v266_v5 = vld [vmem:[#allocation5 + $0x20] sm:$0xff]   ;;  %s419_s4 = smov [#allocation11]   ;;  %vm195_vm1 = vcmask 519168  }
  0x5e   :  { %233 = vmatpush3.bf16.msra.mxu0 %v262_v1  ;;  %v267_v6 = vld [vmem:[#allocation5 + $0x28] sm:$0xff]   ;;  %v268_v7 = vld [vmem:[#allocation5 + $0x30] sm:$0xff]   ;;  %v269_v8 = vld [vmem:[#allocation5 + $0x38] sm:$0xff]   ;;  %s203_s28 = sshll.u32 %s419_s4, 4  ;;  %s204_s28 = int_to_ptr.vmem [resolvable:$true] %s203_s28 }
  0x5f   :  { %234 = vmatprep.subr.bf16.mxu0 %v417_v0  ;;  %v82_v9 = vld [vmem:[#allocation2] sm:$0xf]  ;;  %v214_v10 = vld [vmem:[#allocation7] ss:$0 sm:$0xff]  ;;  %s380_s3 = scalar_lea.vmem %s204_s28, 64  ;;  %p385_p13 = scmp.lt.s32.totalorder %s204_s28, %s204_s28 }
  0x60   :  { %p381_p12 = scmp.ne.s32.totalorder %s204_s28, %s380_s3  ;;  %p386_p0 = scmp.lt.s32.totalorder %s380_s3, %s380_s3 }
  0x62   :  { %235 = vmatpush3.bf16.msra.mxu0 %v263_v2  ;;  %p387_p1 = por %p386_p0, %p385_p13 }
  0x63   :  { %236 = vmatprep.subr.bf16.mxu0 %v417_v0 }
  0x64   :  { %p388_p2 = pnand %p387_p1, %p381_p12 }
  0x66   :  { %237 = vmatpush3.bf16.msra.mxu0 %v264_v3 }
  0x67   :  { %238 = vmatprep.subr.bf16.mxu0 %v417_v0 }
  0x6a   :  { %239 = vmatpush3.bf16.msra.mxu0 %v265_v4 }
  0x6b   :  { %240 = vmatprep.subr.bf16.mxu0 %v417_v0 }
  0x6e   :  { %241 = vmatpush3.bf16.msra.mxu0 %v266_v5 }
  0x6f   :  { %242 = vmatprep.subr.bf16.mxu0 %v417_v0 }
  0x72   :  { %243 = vmatpush3.bf16.msra.mxu0 %v267_v6 }
  0x73   :  { %244 = vmatprep.subr.bf16.mxu0 %v417_v0 }
  0x76   :  { %245 = vmatpush3.bf16.msra.mxu0 %v268_v7 }
  0x77   :  { %246 = vmatprep.subr.bf16.mxu0 %v417_v0 }
  0x7a   :  { %247 = vmatpush3.bf16.msra.mxu0 %v269_v8 }
  0x7d   :  { %249 = vmatmul.mubr.bf16.vlgmr.msra.gmra.mrb[0].mxu0 %v82_v9 }
 0x150   :  { %v188_v11 = vpop.f32.mrb[0].mxu0 }
 0x151   :  { %v189_v12 = vadd.f32 %v214_v10, %v188_v11  ;;  %v250_v13 = vpop.f32.mrb[1].mxu0 }
 0x152   :  { %v191_v14 = vpop.f32.mrb[2].mxu0 }
 0x153   :  { %v194_v15 = vpack.c.bf16 %v189_v12, %v189_v12  ;;  %v251_v16 = vpop.f32.mrb[3].mxu0 }
 0x155   :  { %196 = vst.msk [vmem:[#allocation11] sm:$0xf] %vm195_vm1, %v194_v15 }
 0x156   :  { %391 = shalt.err (!%p388_p2)
}
 0x157   :  { %s392_s6 = scalar_lea.hbm %s527_s5, 64 }
 0x158   :  { %p393_p3 = scmp.ne.s32.totalorder %s527_s5, %s392_s6  ;;  %p396_p4 = scmp.lt.u32.totalorder %s392_s6, %s527_s5 }
 0x15a   :  { %p398_p5 = pnand %p396_p4, %p393_p3 }
 0x15c   :  { %401 = shalt.err (!%p398_p5)
}
 0x15d   :  { %206 = dma.vmem_to_hbm [thread:$0]  %s204_s28, 64, %s527_s5, [#allocation4]  }
 0x15e   :  { %408 = dma.done.wait [#allocation4], 64  }
 0x15f   :  { %409 = vsyncadd [#allocation4], 4294967232 }
 0x160   :  { %210 = vsyncpa [#allocation3], 1 }
 0x161   :  { %211 = vsyncpa [#allocation6], 1 }
 0x162   :  { %212 = vsyncpa [#allocation9], 1 }
 0x163   :  { %213 = vsyncpa [#allocation4], 1 }

// kernel: fwd.7
= control target key start
LH: loop header
LB: loop body
LE: loop exit
PB: predicated region body
PF: predicated region fallthrough
CT: control target
= control target key end

     0   :  { %8 = vsyncpa [#allocation4], 0  ;;  %s4005_s0 = inlined_call_operand.hbm [shape: bf16[2,4,4,32], index: 0, kind: input, shape index: {}]   ;;  %s4006_s1 = inlined_call_operand.hbm [shape: f32[7,7,32], index: 1, kind: input, shape index: {}]   ;;  %s4007_s2 = inlined_call_operand.hbm [shape: f32[1,1,1,32], index: 2, kind: input, shape index: {}]   ;;  %s4008_s3 = inlined_call_operand.hbm [shape: bf16[2,4,4,32], index: 3, kind: output, shape index: {}]  }
   0x1   :  { %10 = vsyncpa [#allocation4 + $0x1], 0 }
   0x2   :  { %11 = vsyncpa [#allocation7], 0 }
   0x3   :  { %12 = vsyncpa [#allocation5], 0 }
   0x4   :  { %14 = vsyncpa [#allocation5 + $0x1], 0  ;;  %s2486_s12 = smov 0   ;;  %s2488_s13 = smov 0  }
   0x5   :  { %s2490_s14 = smov 0   ;;  %s2492_s15 = smov 0  }
   0x6 LB: > { %s2507_s16 = sadd.s32 4294967295, %s2453_s15   ;;  %s2198_s17 = sadd.s32 4294967294, %s2453_s15   ;;  %s2453_s15 = sphi %s2492_s15, %s4502_s15   ;;  %s2449_s14 = sphi %s2490_s14, %s4501_s14   ;;  %s2445_s13 = sphi %s2488_s13, %s4500_s13   ;;  %s2441_s12 = sphi %s2486_s12, %s4499_s12  }
   0x7   : > { %p40_p0 = scmp.ne.s32.totalorder %s2445_s13, %s2441_s12  ;;  %p4009_p1 = scmp.eq.s32.totalorder %s2507_s16, 0 }
   0x8   : > { %p112_p3 = scmp.eq.s32.totalorder %s2198_s17, 1  ;;  %p2199_p5 = scmp.ge.s32.totalorder %s2453_s15, 1 }
   0x9   : > { %p2516_p4 = por %p4009_p1, %p40_p0  ;;  %p119_p7 = scmp.lt.s32.totalorder %s2453_s15, 3 }
   0xa   : > { %p2521_p6 = por %p112_p3, %p40_p0  ;;  %s2455_s21 = smov [#allocation6]  }
   0xb   : > { %s4146_s18 = scalar_select %p2516_p4, 1, 0 }
   0xc   : > { %s4147_s19 = scalar_select %p2521_p6, 1, 0 }
   0xd   : > { %p2526_p8 = pnand %p2199_p5, %p119_p7  ;;  %s131_s22 = sshll.u32 %s2455_s21, 4  ;;  %s2530_s22 = int_to_ptr.vmem [resolvable:$true] %s131_s22 }
   0xe   : > { %s2456_s24 = smov [#allocation8]   ;;  %s2297_s28 = scalar_lea.hbm %s4006_s1, 896 }
   0xf   : > { %p2235_p9 = pneg %p2526_p8  ;;  %s145_s25 = sshll.u32 %s2456_s24, 4  ;;  %s2541_s25 = int_to_ptr.vmem [resolvable:$true] %s145_s25 }
  0x10   : > { %p2298_p12 = scmp.ne.s32.totalorder %s4006_s1, %s2297_s28  ;;  %p2304_p5 = scmp.lt.u32.totalorder %s2297_s28, %s4006_s1 }
  0x11   : > { %p2537_p11 = pnand %p2235_p9, %p4009_p1 }
  0x13   : > { %p2299_p13 = pneg %p2537_p11 }
  0x15   : > { %p2300_p0 = pnand %p2299_p13, %p2298_p12 }
  0x17   : > { %p2301_p3 = pneg %p2300_p0 }
  0x19   : > { %p2306_p7 = pnand %p2304_p5, %p2301_p3 }
  0x1b   : > { %2309 = shalt.err (!%p2306_p7)
}
  0x1c   : > { %s2310_s6 = scalar_lea.vmem %s2530_s22, 896  ;;  %p2318_p2 = scmp.lt.s32.totalorder %s2530_s22, %s2530_s22 }
  0x1d   : > { %p2311_p9 = scmp.ne.s32.totalorder %s2530_s22, %s2310_s6  ;;  %p2319_p12 = scmp.lt.s32.totalorder %s2310_s6, %s2310_s6 }
  0x1f   : > { %p2313_p10 = pnand %p2311_p9, %p2299_p13  ;;  %p2320_p0 = por %p2319_p12, %p2318_p2 }
  0x21   : > { %p2314_p1 = pneg %p2313_p10 }
  0x23   : > { %p2321_p6 = pnand %p2320_p0, %p2314_p1 }
  0x25   : > { %2324 = shalt.err (!%p2321_p6)
}
  0x26   : > { %s2457_s7 = smov 128   ;;  %s2458_s8 = smov 8  }
  0x27   : > { %2238 = dma.hbm_to_vmem [thread:$0]  (!%p2537_p11), %s4006_s1, 896, %s2530_s22, [#allocation7], %s2457_s7, %s2457_s7, %s2458_s8  }
  0x28   : > { %s2325_s21 = scalar_lea.hbm %s4007_s2, 16 }
  0x29   : > { %p2326_p2 = scmp.ne.s32.totalorder %s4007_s2, %s2325_s21  ;;  %p2332_p10 = scmp.lt.u32.totalorder %s2325_s21, %s4007_s2 }
  0x2b   : > { %p2328_p1 = pnand %p2326_p2, %p2299_p13 }
  0x2d   : > { %p2329_p6 = pneg %p2328_p1 }
  0x2f   : > { %p2334_p3 = pnand %p2332_p10, %p2329_p6 }
  0x31   : > { %2337 = shalt.err (!%p2334_p3)
}
  0x32   : > { %s2338_s22 = scalar_lea.vmem %s2541_s25, 16  ;;  %s2345_s29 = scalar_lea.vmem %s2541_s25, 32 }
  0x33   : > { %p2339_p5 = scmp.ne.s32.totalorder %s2541_s25, %s2338_s22  ;;  %p2346_p12 = scmp.lt.s32.totalorder %s2541_s25, %s2541_s25 }
  0x34   : > { %p2347_p0 = scmp.lt.s32.totalorder %s2345_s29, %s2338_s22 }
  0x35   : > { %p2341_p7 = pnand %p2339_p5, %p2299_p13 }
  0x36   : > { %p2348_p2 = por %p2347_p0, %p2346_p12 }
  0x37   : > { %p2342_p9 = pneg %p2341_p7 }
  0x39   : > { %p2349_p1 = pnand %p2348_p2, %p2342_p9 }
  0x3b   : > { %2352 = shalt.err (!%p2349_p1)
}
  0x3c   : > { %2241 = dma.hbm_to_vmem [thread:$0]  (!%p2537_p11), %s4007_s2, 16, %s2541_s25, [#allocation7]  }
  0x3d   : > { %s2597_s5 = sadd.s32 1, %s2453_s15   ;;  %s27_s23 = sadd.s32 1, %s2449_s14 }
  0x3e   : > { %s24_s6 = ssub.s32 %s2453_s15, %s2597_s5  ;;  %p34_p13 = scmp.ne.s32.totalorder %s2449_s14, %s2445_s13 }
  0x3f   : > { %p25_p6 = scmp.eq.s32.totalorder %s24_s6, 0  ;;  %p35_p10 = scmp.eq.s32.totalorder %s2453_s15, 0 }
  0x40   : > { %p4150_p3 = scmp.eq.s32.totalorder %s2507_s16, 1  ;;  %p2252_p7 = scmp.lt.s32.totalorder %s2453_s15, 2 }
  0x41   : > { %s2613_s8 = scalar_select %p25_p6, %s2449_s14, %s27_s23  }
  0x42   : > { %p2607_p5 = por %p4150_p3, %p34_p13  ;;  %p36_p9 = por %p35_p10, %p34_p13 }
  0x43   : > { %s156_s9 = sand.u32 1, %s2449_s14   ;;  %s2221_s25 = sshll.u32 %s2453_s15, 7 }
  0x44   : > { %s4151_s7 = scalar_select %p2607_p5, 1, 0 }
  0x45   : > { %s2203_s10 = sshll.u32 %s156_s9, 3  ;;  %s2620_s21 = scalar_lea.hbm %s4005_s0, %s2221_s25 }
  0x46   : > { %s160_s24 = scalar_lea.vmem [#allocation3], %s2203_s10  ;;  %p2624_p11 = pnand %p2252_p7, %p36_p9 }
  0x47   : > { %s167_s26 = sshll.u32 %s160_s24, 4  ;;  %s2628_s28 = scalar_lea.sflag [#allocation4], %s156_s9  ;;  %s2622_s26 = int_to_ptr.vmem [resolvable:$true] %s167_s26 }
  0x48   : > { %s2353_s22 = scalar_lea.hbm %s2620_s21, 128  ;;  %p2355_p0 = pneg %p2624_p11 }
  0x49   : > { %p2354_p12 = scmp.ne.s32.totalorder %s2620_s21, %s2353_s22  ;;  %s2358_s4 = scalar_lea.hbm %s4005_s0, 256 }
  0x4a   : > { %p2359_p13 = scmp.lt.u32.totalorder %s2620_s21, %s4005_s0  ;;  %p2360_p6 = scmp.lt.u32.totalorder %s2358_s4, %s2353_s22 }
  0x4b   : > { %p2356_p2 = pnand %p2355_p0, %p2354_p12  ;;  %p2362_p3 = scmp.lt.u32.totalorder %s2353_s22, %s2620_s21 }
  0x4c   : > { %p2361_p10 = por %p2360_p6, %p2359_p13 }
  0x4d   : > { %p2357_p1 = pneg %p2356_p2 }
  0x4e   : > { %p2363_p7 = por %p2362_p3, %p2361_p10 }
  0x50   : > { %p2364_p9 = pnand %p2363_p7, %p2357_p1 }
  0x52   : > { %2367 = shalt.err (!%p2364_p9)
}
  0x53   : > { %s2368_s9 = scalar_lea.vmem %s2622_s26, 128  ;;  %s2459_s10 = smov [#allocation3]  }
  0x54   : > { %p2369_p12 = scmp.ne.s32.totalorder %s2622_s26, %s2368_s9  ;;  %s2373_s25 = sshll.u32 %s2459_s10, 4  ;;  %s2374_s25 = int_to_ptr.vmem [resolvable:$false] %s2373_s25 }
  0x55   : > { %s2375_s11 = scalar_lea.vmem %s2374_s25, 256  ;;  %p2376_p4 = scmp.lt.s32.totalorder %s2622_s26, %s2374_s25 }
  0x56   : > { %p2371_p2 = pnand %p2369_p12, %p2355_p0  ;;  %p2377_p13 = scmp.lt.s32.totalorder %s2375_s11, %s2368_s9 }
  0x58   : > { %p2372_p5 = pneg %p2371_p2  ;;  %p2378_p6 = por %p2377_p13, %p2376_p4 }
  0x5a   : > { %p2379_p10 = pnand %p2378_p6, %p2372_p5 }
  0x5c   : > { %2382 = shalt.err (!%p2379_p10)
}
  0x5d   : > { %s2460_s17 = smov 32   ;;  %s2461_s24 = smov 2  }
  0x5e   : > { %2245 = dma.hbm_to_vmem [thread:$0]  (!%p2624_p11), %s2620_s21, 128, %s2622_s26, %s2628_s28, %s2460_s17, %s2460_s17, %s2461_s24  }
  0x5f   : > { %179 = sbr.rel (%p2526_p8) target bundleno = 412 (0x19c), region = 32 }
  0x66   : > { %s2659_s22 = sand.u32 1, %s2445_s13   ;;  %p4153_p4 = scmp.ne.s32.totalorder %s4146_s18, 0 }
  0x67   : > { %s2207_s29 = sshll.u32 %s2659_s22, 3  ;;  %s182_s30 = scalar_lea.sflag [#allocation4], %s2659_s22 }
  0x68   : > { %s2665_s4 = scalar_lea.vmem [#allocation3], %s2207_s29 }
  0x69   : > { %2428 = dma.done.wait (%p4153_p4), %s182_s30, 128  }
  0x6a   : > { %2430 = vsyncadd (%p4153_p4), %s182_s30, 4294967168  ;;  %p4154_p5 = scmp.eq.s32.totalorder %s2507_s16, 0 }
  0x6c   : > { %2432 = dma.done.wait (%p4154_p5), [#allocation7], 912   ;;  %p4155_p8 = pmov %p4154_p5 }
  0x6d   : > { %vm217_vm0 = vcmask 257024   ;;  %v369_v0 = vlaneseq  ;;  %vm219_vm1 = vcmask 253952   ;;  %v2462_v1 = vmov 0   ;;  %v354_v9 = vld [vmem:[#allocation6] sm:$0x7f]  ;;  %s3895_s18 = scalar_lea.vmem [#allocation9], %s2207_s29 }
  0x6e   : > { %2434 = vsyncadd (%p4155_p8), [#allocation7], 4294966384  ;;  %218 = vst.msk [vmem:[#allocation2] sm:$0xf] %vm217_vm0, %v2462_v1  ;;  %vm533_vm2 = vcmask 1042432   ;;  %vm582_vm3 = vcmask 1041408  }
  0x6f   : > { %221 = vst.msk [vmem:[#allocation2 + $0x8] sm:$0xf] %vm217_vm0, %v2462_v1  ;;  %223 = vst.msk [vmem:[#allocation2 + $0x10] sm:$0xf] %vm217_vm0, %v2462_v1  ;;  %v370_v2 = vshrl.u32 %v369_v0, 7  ;;  %vm233_vm4 = vcmask 254976  }
  0x70   : > { %226 = vst.msk [vmem:[#allocation2 + $0x38] sm:$0xf] %vm217_vm0, %v2462_v1  ;;  %228 = vst.msk [vmem:[#allocation2 + $0x40] sm:$0xf] %vm217_vm0, %v2462_v1  ;;  %vm234_vm5 = vsmask.f32 1280 }
  0x71   : > { %230 = vst.msk [vmem:[#allocation2 + $0x48] sm:$0xf] %vm217_vm0, %v2462_v1  ;;  %v2685_v3 = vsub.s32 0, %v370_v2  ;;  %v2687_v4 = vsub.s32 1, %v370_v2  ;;  %v2689_v5 = vsub.s32 2, %v370_v2  ;;  %v2691_v6 = vsub.s32 3, %v370_v2  ;;  %vm3123_vm10 = vmand %vm233_vm4, %vm234_vm5 }
  0x72   : > { %220 = vst.msk [vmem:[#allocation2 + $0x4] sm:$0x1] %vm219_vm1, %v2462_v1  ;;  %222 = vst.msk [vmem:[#allocation2 + $0xc] sm:$0x1] %vm219_vm1, %v2462_v1  ;;  %v2693_v7 = vsub.s32 4, %v370_v2  ;;  %v2695_v8 = vsub.s32 5, %v370_v2 }
  0x73   : > { %224 = vst.msk [vmem:[#allocation2 + $0x14] sm:$0x1] %vm219_vm1, %v2462_v1  ;;  %227 = vst.msk [vmem:[#allocation2 + $0x3c] sm:$0x1] %vm219_vm1, %v2462_v1  ;;  %v2697_v10 = vsub.s32 6, %v370_v2  ;;  %v2700_v12 = vrot.slane %v354_v9, %v2685_v3  ;;  %v2703_v14 = vrot.slane %v354_v9, %v2687_v4  ;;  %v2706_v16 = vrot.slane %v354_v9, %v2689_v5  ;;  %s2106_s20 = sshll.u32 %s3895_s18, 4  ;;  %s3953_s20 = int_to_ptr.vmem [resolvable:$true] %s2106_s20 }
  0x74   : > { %229 = vst.msk [vmem:[#allocation2 + $0x44] sm:$0x1] %vm219_vm1, %v2462_v1  ;;  %231 = vst.msk [vmem:[#allocation2 + $0x4c] sm:$0x1] %vm219_vm1, %v2462_v1  ;;  %v2709_v17 = vrot.slane %v354_v9, %v2691_v6  ;;  %v2712_v23 = vrot.slane %v354_v9, %v2693_v7  ;;  %v2715_v27 = vrot.slane %v354_v9, %v2695_v8  ;;  %vm248_vm6 = vcmask 257027   ;;  %s2222_s21 = sshll.u32 %s2507_s16, 7 }
  0x75   : > { %254 = vst.msk [vmem:[#allocation2 + $0x1c] sm:$0x1] %vm219_vm1, %v2462_v1  ;;  %258 = vst.msk [vmem:[#allocation2 + $0x24] sm:$0x1] %vm219_vm1, %v2462_v1  ;;  %v361_v11 = vld [vmem:[#allocation2] sm:$0x3]  ;;  %v2721_v34 = vrot.slane %v354_v9, %v2697_v10  ;;  %s3959_s28 = scalar_lea.hbm %s4008_s3, %s2222_s21 }
  0x76   : > { %262 = vst.msk [vmem:[#allocation2 + $0x2c] sm:$0x1] %vm219_vm1, %v2462_v1  ;;  %266 = vst.msk [vmem:[#allocation2 + $0x34] sm:$0x1] %vm219_vm1, %v2462_v1  ;;  %v377_v13 = vld [vmem:[#allocation2] sm:$0x7]  ;;  %v365_v18 = vunpack.c.l.bf16 %v361_v11 }
  0x77   : > { %4156 = vst [vmem:[#allocation13_spill] sm:$0xff] %v2685_v3  ;;  %4157 = vst [vmem:[#allocation14_spill] sm:$0xff] %v2687_v4  ;;  %v409_v15 = vld [vmem:[#allocation2] sm:$0x6]  ;;  %v381_v19 = vunpack.c.l.bf16 %v377_v13  ;;  %v554_v24 = vld [vmem:[#allocation2] sm:$0x8] }
  0x78   : > { %4158 = vst [vmem:[#allocation15_spill] sm:$0xff] %v2689_v5  ;;  %4159 = vst [vmem:[#allocation16_spill] sm:$0xff] %v2691_v6  ;;  %v413_v20 = vunpack.c.l.bf16 %v409_v15  ;;  %v441_v21 = vld [vmem:[#allocation2] sm:$0xe]  ;;  %v558_v28 = vunpack.c.l.bf16 %v554_v24  ;;  %v362_v29 = vld [vmem:[#allocation2 + $0x8] sm:$0x3]  ;;  %v373_v31 = vmul.f32 %v2700_v12, %v365_v18 }
  0x79   : > { %4160 = vst [vmem:[#allocation17_spill] sm:$0xff] %v2693_v7  ;;  %4161 = vst [vmem:[#allocation18_spill] sm:$0xff] %v2695_v8  ;;  %v473_v22 = vld [vmem:[#allocation2] sm:$0xc]  ;;  %v445_v25 = vunpack.c.l.bf16 %v441_v21  ;;  %v363_v30 = vld [vmem:[#allocation2 + $0x10] sm:$0x3]  ;;  %v389_v32 = vmul.f32 %v2703_v14, %v381_v19  ;;  %v366_v39 = vunpack.c.l.bf16 %v362_v29 }
  0x7a   : > { %4162 = vst [vmem:[#allocation19_spill] sm:$0xff] %v2697_v10  ;;  %4163 = vst [vmem:[#allocation20_spill] sm:$0xff] %v2700_v12  ;;  %v477_v26 = vunpack.c.l.bf16 %v473_v22  ;;  %v421_v33 = vmul.f32 %v2706_v16, %v413_v20  ;;  %v378_v35 = vld [vmem:[#allocation2 + $0x8] sm:$0x7]  ;;  %v379_v40 = vld [vmem:[#allocation2 + $0x10] sm:$0x7]  ;;  %v367_v45 = vunpack.c.l.bf16 %v363_v30  ;;  %v2730_v51 = vmul.f32 %v2721_v34, %v558_v28 }
  0x7b   : > { %4164 = vst [vmem:[#allocation21_spill] sm:$0xff] %v2703_v14  ;;  %4165 = vst [vmem:[#allocation22_spill] sm:$0xff] %v2706_v16  ;;  %v453_v36 = vmul.f32 %v2709_v17, %v445_v25  ;;  %v410_v41 = vld [vmem:[#allocation2 + $0x8] sm:$0x6]  ;;  %v411_v42 = vld [vmem:[#allocation2 + $0x10] sm:$0x6]  ;;  %v374_v54 = vmul.f32 %v2700_v12, %v366_v39  ;;  %v382_v56 = vunpack.c.l.bf16 %v378_v35  ;;  %v383_v57 = vunpack.c.l.bf16 %v379_v40 }
  0x7c   : > { %4166 = vst [vmem:[#allocation23_spill] sm:$0xff] %v2709_v17  ;;  %4167 = vst [vmem:[#allocation24_spill] sm:$0xff] %v2712_v23  ;;  %v485_v37 = vmul.f32 %v2712_v23, %v477_v26  ;;  %v2726_v38 = vmul.f32 %v2715_v27, %v477_v26  ;;  %v397_v43 = vrot.slane %v389_v32, 1  ;;  %v429_v44 = vrot.slane %v421_v33, 2  ;;  %v442_v46 = vld [vmem:[#allocation2 + $0x8] sm:$0xe] }
  0x7d   : > { %v443_v47 = vld [vmem:[#allocation2 + $0x10] sm:$0xe]  ;;  %v461_v48 = vrot.slane %v453_v36, 3  ;;  %v474_v52 = vld [vmem:[#allocation2 + $0x8] sm:$0xc]  ;;  %v375_v55 = vmul.f32 %v2700_v12, %v367_v45  ;;  %v414_v58 = vunpack.c.l.bf16 %v410_v41  ;;  %v415_v59 = vunpack.c.l.bf16 %v411_v42  ;;  %s2093_s23 = scalar_lea.sflag [#allocation5], %s2659_s22 }
  0x7e   : > { %v493_v49 = vrot.slane %v485_v37, 4  ;;  %v405_v53 = vadd.f32 %v397_v43, %v373_v31  ;;  %v446_v60 = vunpack.c.l.bf16 %v442_v46  ;;  %v475_v61 = vld [vmem:[#allocation2 + $0x10] sm:$0xc]  ;;  %v390_v63 = vmul.f32 %v2703_v14, %v382_v56  ;;  %v555_v21 = vld [vmem:[#allocation2 + $0x8] sm:$0x8]  ;;  %s2383_s6 = scalar_lea.vmem %s3953_s20, 128 }
  0x7f   : > { %v447_v0 = vunpack.c.l.bf16 %v443_v47  ;;  %v478_v1 = vunpack.c.l.bf16 %v474_v52  ;;  %v391_v2 = vmul.f32 %v2703_v14, %v383_v57  ;;  %v422_v9 = vmul.f32 %v2706_v16, %v414_v58  ;;  %v556_v28 = vld [vmem:[#allocation2 + $0x10] sm:$0x8]  ;;  %v604_v39 = vld [vmem:[#allocation2 + $0x8] sm:$0x3]  ;;  %v2872_v50 = vld [vmem:[#allocation2 + $0x38] sm:$0xe]  ;;  %p2384_p11 = scmp.ne.s32.totalorder %s3953_s20, %s2383_s6 }
  0x80   : > { %v437_v62 = vadd.f32 %v429_v44, %v405_v53  ;;  %v423_v11 = vmul.f32 %v2706_v16, %v415_v59  ;;  %v454_v13 = vmul.f32 %v2709_v17, %v446_v60  ;;  %v398_v18 = vrot.slane %v390_v63, 1  ;;  %v2749_v40 = vld [vmem:[#allocation6 + $0x8] sm:$0x7f]  ;;  %v605_v53 = vld [vmem:[#allocation2 + $0x10] sm:$0x3]  ;;  %4181 = vst [vmem:[#allocation38_spill] sm:$0xff] %v2872_v50 }
  0x81   : > { %v455_v19 = vmul.f32 %v2709_v17, %v447_v0  ;;  %v479_v20 = vunpack.c.l.bf16 %v475_v61  ;;  %v399_v24 = vrot.slane %v391_v2, 1  ;;  %v430_v25 = vrot.slane %v422_v9, 2  ;;  %v624_v45 = vld [vmem:[#allocation2 + $0x8] sm:$0x7]  ;;  %v657_v63 = vld [vmem:[#allocation2 + $0x10] sm:$0x6] }
  0x82   : > { %v469_v22 = vadd.f32 %v461_v48, %v437_v62  ;;  %v431_v26 = vrot.slane %v423_v11, 2  ;;  %v406_v29 = vadd.f32 %v398_v18, %v374_v54  ;;  %v462_v30 = vrot.slane %v454_v13, 3  ;;  %v625_v54 = vld [vmem:[#allocation2 + $0x10] sm:$0x7]  ;;  %v656_v59 = vld [vmem:[#allocation2 + $0x8] sm:$0x6] }
  0x83   : > { %v463_v31 = vrot.slane %v455_v19, 3  ;;  %v486_v32 = vmul.f32 %v2712_v23, %v478_v1  ;;  %v407_v33 = vadd.f32 %v399_v24, %v375_v55  ;;  %v487_v35 = vmul.f32 %v2712_v23, %v479_v20  ;;  %v688_v0 = vld [vmem:[#allocation2 + $0x8] sm:$0xe]  ;;  %v689_v13 = vld [vmem:[#allocation2 + $0x10] sm:$0xe]  ;;  %p4496_p0 = scmp.ne.s32.totalorder %s4151_s7, 0 }
  0x84   : > { %v2744_v36 = vmul.f32 %v2715_v27, %v478_v1  ;;  %v2747_v37 = vmul.f32 %v2715_v27, %v479_v20  ;;  %v438_v41 = vadd.f32 %v430_v25, %v406_v29  ;;  %v559_v43 = vunpack.c.l.bf16 %v555_v21  ;;  %v721_v24 = vld [vmem:[#allocation2 + $0x10] sm:$0xc]  ;;  %v2859_v2 = vld [vmem:[#allocation2 + $0x38] sm:$0x3]  ;;  %v2919_v17 = vld [vmem:[#allocation2 + $0x38] sm:$0xc] }
  0x85   : > { %v494_v42 = vrot.slane %v486_v32, 4  ;;  %v560_v44 = vunpack.c.l.bf16 %v556_v28  ;;  %v2751_v46 = vadd.f32 %v493_v49, %v469_v22  ;;  %v439_v47 = vadd.f32 %v431_v26, %v407_v33  ;;  %v720_v22 = vld [vmem:[#allocation2 + $0x8] sm:$0xc]  ;;  %v933_v19 = vld [vmem:[#allocation2 + $0x10] sm:$0xe]  ;;  %4178 = vst [vmem:[#allocation35_spill] sm:$0xff] %v2859_v2  ;;  %p2385_p1 = pnand %p2384_p11, %p4496_p0 }
  0x86   : > { %v495_v48 = vrot.slane %v487_v35, 4  ;;  %v470_v55 = vadd.f32 %v462_v30, %v438_v41  ;;  %v2755_v56 = vmul.f32 %v2721_v34, %v559_v43  ;;  %v608_v58 = vunpack.c.l.bf16 %v604_v39  ;;  %v800_v43 = vld [vmem:[#allocation2 + $0x8] sm:$0x8]  ;;  %v1045_v61 = vld [vmem:[#allocation2 + $0x10] sm:$0x8]  ;;  %4193 = vst [vmem:[#allocation50_spill] sm:$0xff] %v2919_v17 }
  0x87   : > { %v2758_v57 = vmul.f32 %v2721_v34, %v560_v44  ;;  %v471_v60 = vadd.f32 %v463_v31, %v439_v47  ;;  %v2763_v49 = vrot.slane %v2749_v40, %v2685_v3  ;;  %v628_v62 = vunpack.c.l.bf16 %v624_v45  ;;  %v801_v44 = vld [vmem:[#allocation2 + $0x10] sm:$0x8]  ;;  %v752_v50 = vld [vmem:[#allocation2 + $0xc] sm:$0x1]  ;;  %v754_v16 = vld [vmem:[#allocation2 + $0x1c] sm:$0x1]  ;;  %p2386_p3 = pneg %p2385_p1 }
  0x88   : > { %v2765_v1 = vadd.f32 %v494_v42, %v470_v55  ;;  %v609_v9 = vunpack.c.l.bf16 %v605_v53  ;;  %v629_v11 = vunpack.c.l.bf16 %v625_v54  ;;  %v2776_v21 = vrot.slane %v2749_v40, %v2687_v4  ;;  %v356_v45 = vld [vmem:[#allocation6 + $0x10] sm:$0x7f]  ;;  %v251_v17 = vld [vmem:[#allocation2 + $0x18] sm:$0x8]  ;;  %s2463_s16 = smov [#allocation9]  }
  0x89   : > { %4168 = vst [vmem:[#allocation25_spill] sm:$0xff] %v2763_v49  ;;  %v2768_v18 = vadd.f32 %v495_v48, %v471_v60  ;;  %v2772_v20 = vmul.f32 %v2763_v49, %v608_v58  ;;  %v660_v25 = vunpack.c.l.bf16 %v656_v59  ;;  %v661_v26 = vunpack.c.l.bf16 %v657_v63  ;;  %v869_v63 = vld [vmem:[#allocation2 + $0x10] sm:$0x7]  ;;  %v2861_v48 = vld [vmem:[#allocation2 + $0x38] sm:$0x7]  ;;  %s2387_s9 = sshll.u32 %s2463_s16, 4  ;;  %s2388_s9 = int_to_ptr.vmem [resolvable:$false] %s2387_s9 }
  0x8a   : > { %4169 = vst [vmem:[#allocation26_spill] sm:$0xff] %v2776_v21  ;;  %v2780_v28 = vrot.slane %v2749_v40, %v2689_v5  ;;  %v692_v29 = vunpack.c.l.bf16 %v688_v0  ;;  %v2783_v30 = vmul.f32 %v2776_v21, %v628_v62  ;;  %v2786_v31 = vmul.f32 %v2776_v21, %v629_v11  ;;  %v849_v62 = vld [vmem:[#allocation2 + $0x10] sm:$0x3]  ;;  %v965_v53 = vld [vmem:[#allocation2 + $0x10] sm:$0xc]  ;;  %4179 = vst [vmem:[#allocation36_spill] sm:$0xff] %v2861_v48  ;;  %p2390_p7 = scmp.lt.s32.totalorder %s3953_s20, %s2388_s9 }
  0x8b   : > { %v693_v32 = vunpack.c.l.bf16 %v689_v13  ;;  %v2790_v33 = vrot.slane %v2749_v40, %v2691_v6  ;;  %v724_v41 = vunpack.c.l.bf16 %v720_v22  ;;  %v725_v42 = vunpack.c.l.bf16 %v721_v24  ;;  %v901_v0 = vld [vmem:[#allocation2 + $0x10] sm:$0x6]  ;;  %v2903_v21 = vld [vmem:[#allocation2 + $0x38] sm:$0x6]  ;;  %s2389_s10 = scalar_lea.vmem %s2388_s9, 256 }
  0x8c   : > { %4170 = vst [vmem:[#allocation27_spill] sm:$0xff] %v2780_v28  ;;  %v2793_v35 = vmul.f32 %v2780_v28, %v660_v25  ;;  %v2796_v39 = vmul.f32 %v2780_v28, %v661_v26  ;;  %v2799_v47 = vmul.f32 %v2763_v49, %v609_v9  ;;  %v2812_v59 = vrot.slane %v2749_v40, %v2693_v7  ;;  %v2905_v49 = vld [vmem:[#allocation2 + $0x40] sm:$0x6]  ;;  %p2391_p9 = scmp.lt.s32.totalorder %s2389_s10, %s2383_s6 }
  0x8d   : > { %4171 = vst [vmem:[#allocation28_spill] sm:$0xff] %v2790_v33  ;;  %v2804_v54 = vmul.f32 %v2790_v33, %v692_v29  ;;  %v2808_v58 = vmul.f32 %v2790_v33, %v693_v32  ;;  %v2816_v60 = vrot.slane %v2749_v40, %v2695_v8  ;;  %v804_v11 = vunpack.c.l.bf16 %v800_v43  ;;  %4188 = vst [vmem:[#allocation45_spill] sm:$0xff] %v2903_v21 }
  0x8e   : > { %4172 = vst [vmem:[#allocation29_spill] sm:$0xff] %v2812_v59  ;;  %v805_v13 = vunpack.c.l.bf16 %v801_v44  ;;  %v2821_v22 = vmul.f32 %v2812_v59, %v724_v41  ;;  %v2824_v24 = vmul.f32 %v2812_v59, %v725_v42  ;;  %v2834_v29 = vrot.slane %v2749_v40, %v2697_v10  ;;  %4189 = vst [vmem:[#allocation46_spill] sm:$0xff] %v2905_v49  ;;  %p2392_p12 = por %p2391_p9, %p2390_p7 }
  0x8f   : > { %v2827_v25 = vmul.f32 %v2816_v60, %v724_v41  ;;  %v2830_v26 = vmul.f32 %v2816_v60, %v725_v42  ;;  %v853_v32 = vunpack.c.l.bf16 %v849_v62  ;;  %v2837_v43 = vrot.slane %v356_v45, %v2685_v3 }
  0x90   : > { %4173 = vst [vmem:[#allocation30_spill] sm:$0xff] %v2824_v24  ;;  %v873_v44 = vunpack.c.l.bf16 %v869_v63  ;;  %v2845_v40 = vmul.f32 %v2834_v29, %v804_v11  ;;  %v2848_v62 = vmul.f32 %v2834_v29, %v805_v13  ;;  %v2851_v63 = vrot.slane %v356_v45, %v2687_v4  ;;  %v2863_v11 = vld [vmem:[#allocation2 + $0x38] sm:$0x6]  ;;  %v2888_v13 = vld [vmem:[#allocation2 + $0x38] sm:$0x8]  ;;  %p2393_p2 = pnand %p2392_p12, %p2386_p3 }
  0x91   : > { %4174 = vst [vmem:[#allocation31_spill] sm:$0xff] %v2837_v43  ;;  %v905_v9 = vunpack.c.l.bf16 %v901_v0  ;;  %v2854_v55 = vrot.slane %v356_v45, %v2689_v5  ;;  %v937_v41 = vunpack.c.l.bf16 %v933_v19  ;;  %v2857_v42 = vrot.slane %v356_v45, %v2691_v6  ;;  %4180 = vst [vmem:[#allocation37_spill] sm:$0xff] %v2863_v11  ;;  %v2874_v19 = vld [vmem:[#allocation2 + $0x38] sm:$0xc]  ;;  %v505_v24 = vld [vmem:[#allocation2 + $0x4] sm:$0x1] }
  0x92   : > { %4175 = vst [vmem:[#allocation32_spill] sm:$0xff] %v2851_v63  ;;  %v2867_v52 = vmul.f32 %v2837_v43, %v853_v32  ;;  %v2870_v0 = vmul.f32 %v2851_v63, %v873_v44  ;;  %v969_v15 = vunpack.c.l.bf16 %v965_v53  ;;  %4182 = vst [vmem:[#allocation39_spill] sm:$0xff] %v2874_v19  ;;  %v2883_v28 = vrot.slane %v356_v45, %v2693_v7  ;;  %v2890_v44 = vld [vmem:[#allocation2 + $0x38] sm:$0x3]  ;;  %v2892_v53 = vld [vmem:[#allocation2 + $0x40] sm:$0x3] }
  0x93   : > { %4176 = vst [vmem:[#allocation33_spill] sm:$0xff] %v2854_v55  ;;  %4177 = vst [vmem:[#allocation34_spill] sm:$0xff] %v2857_v42  ;;  %v2877_v59 = vmul.f32 %v2854_v55, %v905_v9  ;;  %v2880_v33 = vmul.f32 %v2857_v42, %v937_v41  ;;  %v2886_v32 = vrot.slane %v356_v45, %v2695_v8  ;;  %v1049_v55 = vunpack.c.l.bf16 %v1045_v61  ;;  %v2899_v42 = vld [vmem:[#allocation2 + $0x38] sm:$0x7]  ;;  %v2901_v43 = vld [vmem:[#allocation2 + $0x40] sm:$0x7] }
  0x94   : > { %4183 = vst [vmem:[#allocation40_spill] sm:$0xff] %v2883_v28  ;;  %4184 = vst [vmem:[#allocation41_spill] sm:$0xff] %v2890_v44  ;;  %v2897_v41 = vrot.slane %v356_v45, %v2697_v10  ;;  %v2909_v23 = vmul.f32 %v2883_v28, %v969_v15  ;;  %v2915_v45 = vld [vmem:[#allocation2 + $0x38] sm:$0xe]  ;;  %v2917_v9 = vld [vmem:[#allocation2 + $0x40] sm:$0xe]  ;;  %v509_v61 = vunpack.c.l.bf16 %v505_v24  ;;  %v756_v49 = vunpack.c.l.bf16 %v752_v50 }
  0x95   : > { %4185 = vst [vmem:[#allocation42_spill] sm:$0xff] %v2892_v53  ;;  %4186 = vst [vmem:[#allocation43_spill] sm:$0xff] %v2899_v42  ;;  %v2912_v63 = vmul.f32 %v2886_v32, %v969_v15  ;;  %v2927_v7 = vld [vmem:[#allocation2 + $0x40] sm:$0xc]  ;;  %v2929_v15 = vld [vmem:[#allocation2 + $0x38] sm:$0x8] }
  0x96   : > { %4187 = vst [vmem:[#allocation44_spill] sm:$0xff] %v2901_v43  ;;  %4190 = vst [vmem:[#allocation47_spill] sm:$0xff] %v2909_v23  ;;  %v2923_v14 = vmul.f32 %v2897_v41, %v1049_v55  ;;  %v2935_v55 = vld [vmem:[#allocation2 + $0x40] sm:$0x8]  ;;  %v506_v5 = vld [vmem:[#allocation2 + $0xc] sm:$0x1]  ;;  %v518_v44 = vmul.f32 %v2715_v27, %v509_v61  ;;  %v567_v12 = vmul.f32 %v2721_v34, %v509_v61  ;;  %v758_v61 = vunpack.c.l.bf16 %v754_v16 }
  0x97   : > { %4191 = vst [vmem:[#allocation48_spill] sm:$0xff] %v2915_v45  ;;  %4192 = vst [vmem:[#allocation49_spill] sm:$0xff] %v2917_v9  ;;  %v507_v4 = vld [vmem:[#allocation2 + $0x14] sm:$0x1]  ;;  %v508_v19 = vld [vmem:[#allocation2 + $0x1c] sm:$0x1]  ;;  %v510_v42 = vunpack.c.l.bf16 %v506_v5 }
  0x98   : > { %4194 = vst [vmem:[#allocation51_spill] sm:$0xff] %v2927_v7  ;;  %4195 = vst [vmem:[#allocation52_spill] sm:$0xff] %v2929_v15  ;;  %v753_v23 = vld [vmem:[#allocation2 + $0x14] sm:$0x1]  ;;  %v511_v2 = vunpack.c.l.bf16 %v507_v4  ;;  %v512_v21 = vunpack.c.l.bf16 %v508_v19  ;;  %v584_v50 = vrot.slane %v567_v12, 6  ;;  %v4197_v15 = vrot.slane %v2726_v38, 5 }
  0x99   : > { %4196 = vst [vmem:[#allocation53_spill] sm:$0xff] %v2935_v55  ;;  %v757_v43 = vunpack.c.l.bf16 %v753_v23  ;;  %v520_v28 = vmul.f32 %v2715_v27, %v510_v42  ;;  %v569_v5 = vmul.f32 %v2721_v34, %v510_v42  ;;  %v535_v23 = vrot.slane %v518_v44, 5  ;;  %v755_v6 = vld [vmem:[#allocation2 + $0x24] sm:$0x1]  ;;  %v3085_v16 = vld [vmem:[#allocation2 + $0x3c] sm:$0x1] }
  0x9a   : > { %v522_v11 = vmul.f32 %v2715_v27, %v511_v2  ;;  %v2956_v48 = vmul.f32 %v2715_v27, %v512_v21  ;;  %v2960_v4 = vmul.f32 %v2721_v34, %v511_v2  ;;  %v2963_v24 = vmul.f32 %v2721_v34, %v512_v21  ;;  %v239_v45 = vld [vmem:[#allocation2 + $0x20] sm:$0x3] }
  0x9b   : > { %v538_v19 = vrot.slane %v520_v28, 5  ;;  %v587_v7 = vrot.slane %v569_v5, 6  ;;  %v536_v42 = vsel %vm533_vm2, %v4197_v15, %v535_v23  ;;  %v4198_v2 = vrot.slane %v2730_v51, 6 }
  0x9c   : > { %v541_v53 = vrot.slane %v522_v11, 5  ;;  %v4199_v44 = vrot.slane %v2744_v36, 5  ;;  %v550_v28 = vadd.f32 %v536_v42, %v2751_v46  ;;  %v4200_v5 = vrot.slane %v2755_v56, 6 }
  0x9d   : > { %v585_v21 = vsel %vm582_vm3, %v4198_v2, %v584_v50  ;;  %v759_v55 = vunpack.c.l.bf16 %v755_v6  ;;  %v765_v15 = vmul.f32 %v2816_v60, %v756_v49  ;;  %v767_v51 = vmul.f32 %v2816_v60, %v757_v43 }
  0x9e   : > { %v539_v12 = vsel %vm533_vm2, %v4199_v44, %v538_v19  ;;  %v588_v38 = vsel %vm582_vm3, %v4200_v5, %v587_v7  ;;  %v2985_v23 = vmul.f32 %v2816_v60, %v758_v61  ;;  %v813_v36 = vmul.f32 %v2834_v29, %v756_v49  ;;  %v997_v44 = vld [vmem:[#allocation2 + $0x14] sm:$0x1] }
  0x9f   : > { %v551_v11 = vadd.f32 %v539_v12, %v2765_v1  ;;  %v599_v50 = vadd.f32 %v585_v21, %v550_v28  ;;  %v2989_v46 = vmul.f32 %v2816_v60, %v759_v55  ;;  %v2992_v1 = vmul.f32 %v2834_v29, %v757_v43  ;;  %v998_v28 = vld [vmem:[#allocation2 + $0x1c] sm:$0x1]  ;;  %v236_v12 = vld [vmem:[#allocation2 + $0x18] sm:$0x3] }
  0xa0   : > { %v4202_v7 = vrot.slane %v2747_v37, 5  ;;  %v781_v56 = vrot.slane %v765_v15, 5  ;;  %v784_v42 = vrot.slane %v767_v51, 5  ;;  %v3000_v2 = vmul.f32 %v2834_v29, %v758_v61  ;;  %v999_v37 = vld [vmem:[#allocation2 + $0x24] sm:$0x1] }
  0xa1   : > { %v600_v19 = vadd.f32 %v588_v38, %v551_v11  ;;  %4201 = vst [vmem:[#allocation54_spill] sm:$0xff] %v2989_v46  ;;  %v620_v49 = vadd.f32 %v2772_v20, %v599_v50  ;;  %v3006_v43 = vmul.f32 %v2834_v29, %v759_v55  ;;  %v4205_v5 = vrot.slane %v2830_v26, 5  ;;  %v1241_v15 = vld [vmem:[#allocation2 + $0x1c] sm:$0x1] }
  0xa2   : > { %v2997_v6 = vsel %vm533_vm2, %v4202_v7, %v541_v53  ;;  %v4204_v53 = vrot.slane %v2827_v25, 5  ;;  %v829_v38 = vrot.slane %v813_v36, 6  ;;  %v4206_v51 = vrot.slane %v2783_v30, 1 }
  0xa3   : > { %v621_v21 = vadd.f32 %v2799_v47, %v600_v19  ;;  %4203 = vst [vmem:[#allocation55_spill] sm:$0xff] %v3006_v43  ;;  %v3014_v61 = vsel %vm533_vm2, %v4205_v5, %v784_v42  ;;  %v1000_v47 = vld [vmem:[#allocation2 + $0x2c] sm:$0x1]  ;;  %v4207_v50 = vrot.slane %v2786_v31, 1  ;;  %v1002_v42 = vunpack.c.l.bf16 %v998_v28 }
  0xa4   : > { %v782_v11 = vsel %vm533_vm2, %v4204_v53, %v781_v56  ;;  %v652_v55 = vadd.f32 %v4206_v51, %v620_v49  ;;  %v1001_v56 = vunpack.c.l.bf16 %v997_v44  ;;  %v1003_v53 = vunpack.c.l.bf16 %v999_v37  ;;  %v3041_v37 = vld [vmem:[#allocation6 + $0x18] sm:$0x7f] }
  0xa5   : > { %v3021_v19 = vadd.f32 %v4207_v50, %v621_v21  ;;  %v4208_v36 = vrot.slane %v2793_v35, 2  ;;  %v4209_v30 = vrot.slane %v2845_v40, 6  ;;  %v1004_v49 = vunpack.c.l.bf16 %v1000_v47  ;;  %v1242_v21 = vld [vmem:[#allocation2 + $0x24] sm:$0x1] }
  0xa6   : > { %v1245_v51 = vunpack.c.l.bf16 %v1241_v15  ;;  %vm249_vm7 = vsmask.f32 7950  ;;  %v1010_v50 = vmul.f32 %v2886_v32, %v1001_v56  ;;  %v3033_v44 = vmul.f32 %v2886_v32, %v1002_v42 }
  0xa7   : > { %v684_v5 = vadd.f32 %v4208_v36, %v652_v55  ;;  %v830_v31 = vsel %vm582_vm3, %v4209_v30, %v829_v38  ;;  %v3036_v28 = vmul.f32 %v2886_v32, %v1003_v53  ;;  %v3039_v35 = vmul.f32 %v2897_v41, %v1001_v56  ;;  %v1243_v36 = vld [vmem:[#allocation2 + $0x2c] sm:$0x1]  ;;  %v1244_v30 = vld [vmem:[#allocation2 + $0x34] sm:$0x1]  ;;  %vm3136_vm11 = vmand %vm248_vm6, %vm249_vm7 }
  0xa8   : > { %v4211_v40 = vrot.slane %v2804_v54, 3  ;;  %v3046_v47 = vmul.f32 %v2886_v32, %v1004_v49  ;;  %v3049_v15 = vmul.f32 %v2897_v41, %v1002_v42  ;;  %v3052_v55 = vmul.f32 %v2897_v41, %v1003_v53  ;;  %v3058_v54 = vld [vmem:[#allocation2 + $0x24] sm:$0x1] }
  0xa9   : > { %4210 = vst [vmem:[#allocation56_spill] sm:$0xff] %v3036_v28  ;;  %v1026_v26 = vrot.slane %v1010_v50, 5  ;;  %v3056_v20 = vmul.f32 %v2897_v41, %v1004_v49  ;;  %v1246_v7 = vunpack.c.l.bf16 %v1242_v21  ;;  %v3067_v50 = vld [vmem:[#allocation2 + $0x34] sm:$0x1]  ;;  %v4216_v56 = vrot.slane %v2912_v63, 5 }
  0xaa   : > { %v716_v38 = vadd.f32 %v4211_v40, %v684_v5  ;;  %4212 = vst [vmem:[#allocation57_spill] sm:$0xff] %v3046_v47  ;;  %4213 = vst [vmem:[#allocation58_spill] sm:$0xff] %v3052_v55  ;;  %v3060_v5 = vld [vmem:[#allocation2 + $0x2c] sm:$0x1]  ;;  %v4215_v40 = vrot.slane %v2821_v22, 4  ;;  %v1247_v9 = vunpack.c.l.bf16 %v1243_v36  ;;  %v3082_v53 = vrot.slane %v3041_v37, %v2697_v10 }
  0xab   : > { %4214 = vst [vmem:[#allocation59_spill] sm:$0xff] %v3056_v20  ;;  %v3072_v49 = vsel %vm533_vm2, %v4216_v56, %v1026_v26  ;;  %v3099_v21 = vld [vmem:[#allocation2 + $0x2c] sm:$0x1]  ;;  %v3101_v63 = vld [vmem:[#allocation2 + $0x34] sm:$0x1]  ;;  %vm339_vm8 = vcmask 257025  }
  0xac   : > { %v748_v42 = vadd.f32 %v4215_v40, %v716_v38  ;;  %v1248_v38 = vunpack.c.l.bf16 %v1244_v30  ;;  %v3078_v40 = vrot.slane %v3041_v37, %v2695_v8  ;;  %4219 = vst [vmem:[#allocation62_spill] sm:$0xff] %v3099_v21  ;;  %4220 = vst [vmem:[#allocation63_spill] sm:$0xff] %v3101_v63  ;;  %v3103_v26 = vld [vmem:[#allocation2 + $0x3c] sm:$0x1]  ;;  %v3115_v36 = vmul.f32 %v3082_v53, %v1247_v9  ;;  %v255_v55 = vld [vmem:[#allocation2 + $0x20] sm:$0x8] }
  0xad   : > { %4221 = vst [vmem:[#allocation64_spill] sm:$0xff] %v3103_v26  ;;  %vm340_vm9 = vsmask.f32 3334  ;;  %v4233_v47 = vrot.slane %v2870_v0, 1  ;;  %v252_v0 = vsel %vm3136_vm11, 0, %v251_v17  ;;  %v4269_v63 = vld [vmem:[#allocation38_spill] sm:$0xff] }
  0xae   : > { %v796_v22 = vadd.f32 %v782_v11, %v748_v42  ;;  %v3091_v30 = vmul.f32 %v3078_v40, %v1245_v51  ;;  %v3094_v42 = vmul.f32 %v3078_v40, %v1246_v7  ;;  %v3097_v25 = vmul.f32 %v3078_v40, %v1247_v9  ;;  %4225 = vst [vmem:[#allocation68_spill] sm:$0xff] %v3115_v36  ;;  %v2211_v9 = vld.sshfl [vmem:[%s2665_s4] sm:$0x3 pattern:$0x76325410]  ;;  %vm3208_vm12 = vmand %vm339_vm8, %vm340_vm9 }
  0xaf   : > { %v3106_v56 = vmul.f32 %v3078_v40, %v1248_v38  ;;  %v3131_v46 = vmul.f32 %v3082_v53, %v1248_v38  ;;  %v304_v38 = vshrl.u32 %v2211_v9, 16  ;;  %253 = vst [vmem:[#allocation2 + $0x18] sm:$0x8] %v252_v0  ;;  %v307_v43 = vshll.u32 %v2211_v9, 16 }
  0xb0   : > { %v844_v11 = vadd.f32 %v830_v31, %v796_v22  ;;  %4217 = vst [vmem:[#allocation60_spill] sm:$0xff] %v3094_v42  ;;  %4218 = vst [vmem:[#allocation61_spill] sm:$0xff] %v3097_v25  ;;  %v3109_v31 = vmul.f32 %v3082_v53, %v1245_v51  ;;  %v3112_v22 = vmul.f32 %v3082_v53, %v1246_v7  ;;  %v4226_v7 = vmov 0 }
  0xb1   : > { %4222 = vst [vmem:[#allocation65_spill] sm:$0xff] %v3106_v56  ;;  %v4227_v7 = vsel %vm3123_vm10, 4294967295, %v4226_v7  ;;  %4229 = vst [vmem:[#allocation70_spill] sm:$0xff] %v3131_v46  ;;  %v3146_v56 = vld [vmem:[#allocation2 + $0x44] sm:$0x1]  ;;  %v552_v25 = vadd.f32 %v2997_v6, %v2768_v18  ;;  %v306_v28 = vrot.slane %v304_v38, 6 }
  0xb2   : > { %4223 = vst [vmem:[#allocation66_spill] sm:$0xff] %v3109_v31  ;;  %4224 = vst [vmem:[#allocation67_spill] sm:$0xff] %v3112_v22  ;;  %v865_v20 = vadd.f32 %v2867_v52, %v844_v11  ;;  %v4230_v11 = vmov 0  ;;  %v237_v31 = vsel %vm3123_vm10, 0, %v236_v12  ;;  %v4235_v12 = vrot.slane %v2960_v4, 6  ;;  %v4263_v46 = vld [vmem:[#allocation36_spill] sm:$0xff] }
  0xb3   : > { %4228 = vst [vmem:[#allocation69_spill] sm:$0xff] %v4227_v7  ;;  %v4231_v11 = vsel %vm3136_vm11, 4294967295, %v4230_v11  ;;  %4234 = vst [vmem:[#allocation72_spill] sm:$0xff] %v3146_v56  ;;  %v4238_v0 = vrot.slane %v2992_v1, 6  ;;  %v4239_v9 = vrot.slane %v2848_v62, 6  ;;  %v4240_v18 = vrot.slane %v2877_v59, 2 }
  0xb4   : > { %4232 = vst [vmem:[#allocation71_spill] sm:$0xff] %v4231_v11  ;;  %v897_v51 = vadd.f32 %v4233_v47, %v865_v20  ;;  %238 = vst [vmem:[#allocation2 + $0x18] sm:$0x3] %v237_v31  ;;  %v240_v20 = vsel %vm3123_vm10, 0, %v239_v45  ;;  %v256_v47 = vsel %vm3136_vm11, 0, %v255_v55  ;;  %v4236_v31 = vrot.slane %v2758_v57, 6 }
  0xb5   : > { %241 = vst [vmem:[#allocation2 + $0x20] sm:$0x3] %v240_v20  ;;  %257 = vst [vmem:[#allocation2 + $0x20] sm:$0x8] %v256_v47  ;;  %v4237_v45 = vrot.slane %v2796_v39, 2  ;;  %v833_v20 = vsel %vm582_vm3, %v4239_v9, %v4238_v0  ;;  %v309_v57 = vrot.slane %v307_v43, 7  ;;  %v3190_v59 = vrot.slane %v3041_v37, %v2685_v3 }
  0xb6   : > { %v591_v17 = vsel %vm582_vm3, %v4236_v31, %v4235_v12  ;;  %v929_v4 = vadd.f32 %v4240_v18, %v897_v51  ;;  %v2212_v6 = vld.sshfl [vmem:[%s2665_s4 + $0x2] sm:$0x3 pattern:$0x76325410]  ;;  %v4241_v12 = vrot.slane %v2808_v58, 3  ;;  %v4243_v38 = vrot.slane %v2923_v14, 6 }
  0xb7   : > { %v685_v52 = vadd.f32 %v4237_v45, %v3021_v19  ;;  %v3177_v47 = vadd.f32 %v591_v17, %v552_v25  ;;  %v4242_v19 = vrot.slane %v3039_v35, 6  ;;  %v358_v31 = vld [vmem:[#allocation6 + $0x20] sm:$0x7f]  ;;  %v4244_v62 = vrot.slane %v2880_v33, 3  ;;  %v4245_v43 = vld [vmem:[#allocation14_spill] sm:$0xff]  ;;  %v4300_v7 = vld [vmem:[#allocation41_spill] sm:$0xff] }
  0xb8   : > { %v3194_v25 = vrot.slane %v3041_v37, %v4245_v43  ;;  %v4246_v58 = vld [vmem:[#allocation15_spill] sm:$0xff]  ;;  %v310_v35 = vor.u32 %v309_v57, %v306_v28  ;;  %v4247_v14 = vld [vmem:[#allocation30_spill] sm:$0xff]  ;;  %v4249_v0 = vld [vmem:[#allocation16_spill] sm:$0xff]  ;;  %v312_v9 = vshrl.u32 %v2212_v6, 16  ;;  %v4250_v18 = vmov 0 }
  0xb9   : > { %v717_v39 = vadd.f32 %v4241_v12, %v685_v52  ;;  %v1075_v1 = vsel %vm582_vm3, %v4243_v38, %v4242_v19  ;;  %v961_v45 = vadd.f32 %v4244_v62, %v929_v4  ;;  %v3198_v51 = vrot.slane %v3041_v37, %v4246_v58  ;;  %v4253_v4 = vld [vmem:[#allocation47_spill] sm:$0xff]  ;;  %v4255_v38 = vld [vmem:[#allocation17_spill] sm:$0xff] }
  0xba   : > { %v4248_v52 = vrot.slane %v4247_v14, 4  ;;  %v3204_v33 = vrot.slane %v3041_v37, %v4249_v0  ;;  %v4251_v18 = vsel %vm3208_vm12, 4294967295, %v4250_v18  ;;  %v4254_v12 = vrot.slane %v4253_v4, 4 }
  0xbb   : > { %4252 = vst [vmem:[#allocation30_spill] sm:$0xff] %v4251_v18  ;;  %v3216_v28 = vrot.slane %v3041_v37, %v4255_v38  ;;  %v315_v57 = vshll.u32 %v2212_v6, 16  ;;  %v314_v14 = vrot.slane %v312_v9, 6  ;;  %v3226_v55 = vrot.slane %v358_v31, %v4246_v58  ;;  %v342_v42 = vld [vmem:[#allocation2 + $0x18] sm:$0xe] }
  0xbc   : > { %v749_v17 = vadd.f32 %v4248_v52, %v717_v39  ;;  %v993_v19 = vadd.f32 %v4254_v12, %v961_v45  ;;  %v3219_v39 = vrot.slane %v358_v31, %v2685_v3  ;;  %v3223_v52 = vrot.slane %v358_v31, %v4245_v43  ;;  %v345_v9 = vld [vmem:[#allocation2 + $0x20] sm:$0xe] }
  0xbd   : > { %v317_v4 = vrot.slane %v315_v57, 7  ;;  %v3230_v37 = vrot.slane %v358_v31, %v4249_v0  ;;  %v3233_v6 = vrot.slane %v358_v31, %v2695_v8  ;;  %v3240_v12 = vrot.slane %v358_v31, %v4255_v38 }
  0xbe   : > { %v797_v62 = vadd.f32 %v3014_v61, %v749_v17  ;;  %v1041_v45 = vadd.f32 %v3072_v49, %v993_v19  ;;  %v343_v61 = vsel %vm3208_vm12, %v310_v35, %v342_v42  ;;  %v3243_v56 = vrot.slane %v358_v31, %v2697_v10  ;;  %v4260_v19 = vld [vmem:[#allocation35_spill] sm:$0xff] }
  0xbf   : > { %4256 = vst [vmem:[#allocation47_spill] sm:$0xff] %v3230_v37  ;;  %4257 = vst [vmem:[#allocation73_spill] sm:$0xff] %v3233_v6  ;;  %v318_v49 = vor.u32 %v317_v4, %v314_v14  ;;  %v4261_v57 = vunpack.c.l.bf16 %v4260_v19  ;;  %v4264_v36 = vunpack.c.l.bf16 %v4263_v46  ;;  %v4270_v31 = vunpack.c.l.bf16 %v4269_v63  ;;  %v4272_v14 = vld [vmem:[#allocation39_spill] sm:$0xff] }
  0xc0   : > { %v3237_v17 = vadd.f32 %v833_v20, %v797_v62  ;;  %4258 = vst [vmem:[#allocation74_spill] sm:$0xff] %v3240_v12  ;;  %4259 = vst [vmem:[#allocation75_spill] sm:$0xff] %v3243_v56  ;;  %v4266_v20 = vld [vmem:[#allocation37_spill] sm:$0xff]  ;;  %v4273_v4 = vunpack.c.l.bf16 %v4272_v14  ;;  %v4275_v46 = vunpack.c.l.bf16 %v3058_v54  ;;  %v3293_v10 = vadd.f32 %v1075_v1, %v1041_v45 }
  0xc1   : > { %344 = vst [vmem:[#allocation2 + $0x18] sm:$0xe] %v343_v61  ;;  %v3248_v26 = vmul.f32 %v3219_v39, %v4261_v57  ;;  %v3253_v42 = vmul.f32 %v3223_v52, %v4264_v36  ;;  %v4267_v35 = vunpack.c.l.bf16 %v4266_v20  ;;  %v3263_v61 = vmul.f32 %v3230_v37, %v4270_v31 }
  0xc2   : > { %v3268_v19 = vmul.f32 %v3240_v12, %v4273_v4  ;;  %v3273_v36 = vmul.f32 %v3233_v6, %v4275_v46  ;;  %v4277_v57 = vunpack.c.l.bf16 %v3060_v5  ;;  %v346_v63 = vsel %vm3208_vm12, %v318_v49, %v345_v9 }
  0xc3   : > { %4262 = vst [vmem:[#allocation35_spill] sm:$0xff] %v3248_v26  ;;  %4265 = vst [vmem:[#allocation36_spill] sm:$0xff] %v3253_v42  ;;  %v3258_v62 = vmul.f32 %v3226_v55, %v4267_v35  ;;  %v242_v35 = vld [vmem:[#allocation2 + $0x28] sm:$0x3]  ;;  %v4279_v31 = vunpack.c.l.bf16 %v3067_v50  ;;  %v1504_v21 = vmul.f32 %v3233_v6, %v4273_v4  ;;  %v4281_v46 = vunpack.c.l.bf16 %v3085_v16 }
  0xc4   : > { %4271 = vst [vmem:[#allocation38_spill] sm:$0xff] %v3263_v61  ;;  %4274 = vst [vmem:[#allocation39_spill] sm:$0xff] %v3268_v19  ;;  %v3278_v20 = vmul.f32 %v3233_v6, %v4277_v57  ;;  %v4282_v57 = vunpack.c.l.bf16 %v3058_v54  ;;  %v4284_v49 = vunpack.c.l.bf16 %v3060_v5  ;;  %v4286_v14 = vunpack.c.l.bf16 %v3067_v50 }
  0xc5   : > { %4268 = vst [vmem:[#allocation37_spill] sm:$0xff] %v3258_v62  ;;  %4276 = vst [vmem:[#allocation76_spill] sm:$0xff] %v3273_v36  ;;  %v3285_v26 = vmul.f32 %v3233_v6, %v4279_v31  ;;  %v1505_v38 = vmul.f32 %v3233_v6, %v4281_v46  ;;  %v4288_v46 = vunpack.c.l.bf16 %v2888_v13  ;;  %v243_v54 = vsel %vm3123_vm10, 0, %v242_v35  ;;  %v4308_v36 = vld [vmem:[#allocation27_spill] sm:$0xff] }
  0xc6   : > { %4278 = vst [vmem:[#allocation77_spill] sm:$0xff] %v3278_v20  ;;  %347 = vst [vmem:[#allocation2 + $0x20] sm:$0xe] %v346_v63  ;;  %v3298_v9 = vmul.f32 %v3243_v56, %v4282_v57  ;;  %v3303_v31 = vmul.f32 %v3243_v56, %v4284_v49  ;;  %v3308_v4 = vmul.f32 %v3243_v56, %v4286_v14  ;;  %v3319_v63 = vld [vmem:[#allocation6 + $0x28] sm:$0x7f]  ;;  %v4291_v62 = vunpack.c.l.bf16 %v3085_v16 }
  0xc7   : > { %4280 = vst [vmem:[#allocation78_spill] sm:$0xff] %v3285_v26  ;;  %v3313_v1 = vmul.f32 %v3243_v56, %v4288_v46  ;;  %4290 = vst [vmem:[#allocation83_spill] sm:$0xff] %v3319_v63  ;;  %v1523_v46 = vrot.slane %v1504_v21, 5  ;;  %v1524_v8 = vrot.slane %v1505_v38, 5  ;;  %v3334_v57 = vrot.slane %v3319_v63, %v2685_v3 }
  0xc8   : > { %4283 = vst [vmem:[#allocation79_spill] sm:$0xff] %v3298_v9  ;;  %4285 = vst [vmem:[#allocation80_spill] sm:$0xff] %v3303_v31  ;;  %v364_v45 = vld [vmem:[#allocation2 + $0x18] sm:$0x3]  ;;  %v3338_v50 = vrot.slane %v3319_v63, %v4245_v43  ;;  %v3342_v21 = vrot.slane %v3319_v63, %v4246_v58  ;;  %v476_v16 = vld [vmem:[#allocation2 + $0x18] sm:$0xc] }
  0xc9   : > { %4287 = vst [vmem:[#allocation81_spill] sm:$0xff] %v3308_v4  ;;  %4289 = vst [vmem:[#allocation82_spill] sm:$0xff] %v3313_v1  ;;  %v380_v42 = vld [vmem:[#allocation2 + $0x18] sm:$0x7]  ;;  %v368_v38 = vunpack.c.l.bf16 %v364_v45  ;;  %v557_v49 = vld [vmem:[#allocation2 + $0x18] sm:$0x8]  ;;  %v480_v61 = vunpack.c.l.bf16 %v476_v16  ;;  %v3349_v3 = vsel %vm533_vm2, %v1523_v46, %v1524_v8 }
  0xca   : > { %244 = vst [vmem:[#allocation2 + $0x28] sm:$0x3] %v243_v54  ;;  %v412_v5 = vld [vmem:[#allocation2 + $0x18] sm:$0x6]  ;;  %v3330_v54 = vmul.f32 %v3243_v56, %v4291_v62  ;;  %4293 = vst [vmem:[#allocation85_spill] sm:$0xff] %v3334_v57  ;;  %v384_v14 = vunpack.c.l.bf16 %v380_v42  ;;  %v3346_v62 = vrot.slane %v3319_v63, %v4249_v0  ;;  %v561_v26 = vunpack.c.l.bf16 %v557_v49  ;;  %v4298_v58 = vld [vmem:[#allocation21_spill] sm:$0xff] }
  0xcb   : > { %4294 = vst [vmem:[#allocation86_spill] sm:$0xff] %v3338_v50  ;;  %4295 = vst [vmem:[#allocation87_spill] sm:$0xff] %v3342_v21  ;;  %v416_v13 = vunpack.c.l.bf16 %v412_v5  ;;  %v444_v35 = vld [vmem:[#allocation2 + $0x18] sm:$0xe]  ;;  %v4301_v21 = vunpack.c.l.bf16 %v4300_v7  ;;  %v523_v49 = vmul.f32 %v2715_v27, %v480_v61 }
  0xcc   : > { %4292 = vst [vmem:[#allocation84_spill] sm:$0xff] %v3330_v54  ;;  %4296 = vst [vmem:[#allocation88_spill] sm:$0xff] %v3346_v62  ;;  %v448_v19 = vunpack.c.l.bf16 %v444_v35  ;;  %v606_v20 = vld [vmem:[#allocation2 + $0x18] sm:$0x3]  ;;  %v392_v18 = vmul.f32 %v4298_v58, %v384_v14  ;;  %v4303_v0 = vld [vmem:[#allocation23_spill] sm:$0xff]  ;;  %v3362_v63 = vmul.f32 %v2721_v34, %v561_v26 }
  0xcd   : > { %v626_v43 = vld [vmem:[#allocation2 + $0x18] sm:$0x7]  ;;  %4297 = vst [vmem:[#allocation89_spill] sm:$0xff] %v3349_v3  ;;  %v610_v5 = vunpack.c.l.bf16 %v606_v20  ;;  %v3356_v50 = vmul.f32 %v3334_v57, %v4301_v21  ;;  %v4304_v35 = vld [vmem:[#allocation24_spill] sm:$0xff]  ;;  %v4306_v20 = vld [vmem:[#allocation25_spill] sm:$0xff] }
  0xce   : > { %v4299_v45 = vld [vmem:[#allocation22_spill] sm:$0xff]  ;;  %v456_v62 = vmul.f32 %v4303_v0, %v448_v19  ;;  %v488_v16 = vmul.f32 %v4304_v35, %v480_v61  ;;  %v4305_v58 = vld [vmem:[#allocation20_spill] sm:$0xff]  ;;  %v630_v7 = vunpack.c.l.bf16 %v626_v43  ;;  %v722_v3 = vld [vmem:[#allocation2 + $0x18] sm:$0xc]  ;;  %v543_v19 = vrot.slane %v523_v49, 5 }
  0xcf   : > { %v424_v42 = vmul.f32 %v4299_v45, %v416_v13  ;;  %4302 = vst [vmem:[#allocation21_spill] sm:$0xff] %v3356_v50  ;;  %v658_v8 = vld [vmem:[#allocation2 + $0x18] sm:$0x6]  ;;  %v376_v14 = vmul.f32 %v4305_v58, %v368_v38  ;;  %v400_v13 = vrot.slane %v392_v18, 1  ;;  %v618_v45 = vmul.f32 %v4306_v20, %v610_v5  ;;  %v802_v21 = vld [vmem:[#allocation2 + $0x18] sm:$0x8] }
  0xd0   : > { %v690_v46 = vld [vmem:[#allocation2 + $0x18] sm:$0xe]  ;;  %v464_v57 = vrot.slane %v456_v62, 3  ;;  %v496_v0 = vrot.slane %v488_v16, 4  ;;  %v662_v61 = vunpack.c.l.bf16 %v658_v8  ;;  %v726_v18 = vunpack.c.l.bf16 %v722_v3  ;;  %v4309_v62 = vld [vmem:[#allocation28_spill] sm:$0xff]  ;;  %v4310_v49 = vld [vmem:[#allocation29_spill] sm:$0xff] }
  0xd1   : > { %v432_v50 = vrot.slane %v424_v42, 2  ;;  %v850_v35 = vld [vmem:[#allocation2 + $0x18] sm:$0x3]  ;;  %v408_v9 = vadd.f32 %v400_v13, %v376_v14  ;;  %v622_v27 = vadd.f32 %v618_v45, %v3177_v47  ;;  %v694_v38 = vunpack.c.l.bf16 %v690_v46  ;;  %v1289_v1 = vld [vmem:[#allocation2 + $0x18] sm:$0x8] }
  0xd2   : > { %v4307_v34 = vld [vmem:[#allocation26_spill] sm:$0xff]  ;;  %v806_v58 = vunpack.c.l.bf16 %v802_v21  ;;  %v670_v11 = vmul.f32 %v4308_v36, %v662_v61  ;;  %v854_v42 = vunpack.c.l.bf16 %v850_v35  ;;  %v734_v54 = vmul.f32 %v4310_v49, %v726_v18  ;;  %v966_v21 = vld [vmem:[#allocation2 + $0x18] sm:$0xc] }
  0xd3   : > { %v638_v26 = vmul.f32 %v4307_v34, %v630_v7  ;;  %v440_v5 = vadd.f32 %v432_v50, %v408_v9  ;;  %v702_v16 = vmul.f32 %v4309_v62, %v694_v38  ;;  %v768_v14 = vmul.f32 %v2816_v60, %v726_v18  ;;  %v870_v8 = vld [vmem:[#allocation2 + $0x18] sm:$0x7]  ;;  %v1046_v18 = vld [vmem:[#allocation2 + $0x18] sm:$0x8] }
  0xd4   : > { %v3374_v47 = vmul.f32 %v2834_v29, %v806_v58  ;;  %v902_v13 = vld [vmem:[#allocation2 + $0x18] sm:$0x6]  ;;  %v4311_v3 = vrot.slane %v2956_v48, 5  ;;  %v678_v46 = vrot.slane %v670_v11, 2  ;;  %v874_v31 = vunpack.c.l.bf16 %v870_v8 }
  0xd5   : > { %v646_v43 = vrot.slane %v638_v26, 1  ;;  %v472_v45 = vadd.f32 %v464_v57, %v440_v5  ;;  %v934_v7 = vld [vmem:[#allocation2 + $0x18] sm:$0xe]  ;;  %v710_v35 = vrot.slane %v702_v16, 3  ;;  %v742_v26 = vrot.slane %v734_v54, 4  ;;  %v4314_v16 = vld [vmem:[#allocation32_spill] sm:$0xff] }
  0xd6   : > { %v545_v9 = vsel %vm533_vm2, %v543_v19, %v4311_v3  ;;  %v786_v61 = vrot.slane %v768_v14, 5  ;;  %v4312_v38 = vld [vmem:[#allocation31_spill] sm:$0xff]  ;;  %v906_v48 = vunpack.c.l.bf16 %v902_v13  ;;  %v938_v5 = vunpack.c.l.bf16 %v934_v7  ;;  %v4315_v3 = vld [vmem:[#allocation33_spill] sm:$0xff] }
  0xd7   : > { %v654_v50 = vadd.f32 %v646_v43, %v622_v27  ;;  %v862_v22 = vmul.f32 %v4312_v38, %v854_v42  ;;  %v504_v4 = vadd.f32 %v496_v0, %v472_v45  ;;  %v970_v19 = vunpack.c.l.bf16 %v966_v21  ;;  %v1093_v27 = vld [vmem:[#allocation2 + $0x18] sm:$0x3] }
  0xd8   : > { %v4313_v43 = vrot.slane %v2985_v23, 5  ;;  %v882_v14 = vmul.f32 %v4314_v16, %v874_v31  ;;  %v1050_v42 = vunpack.c.l.bf16 %v1046_v18  ;;  %v914_v0 = vmul.f32 %v4315_v3, %v906_v48  ;;  %v4316_v45 = vld [vmem:[#allocation34_spill] sm:$0xff] }
  0xd9   : > { %v686_v58 = vadd.f32 %v678_v46, %v654_v50  ;;  %v866_v57 = vadd.f32 %v862_v22, %v3237_v17  ;;  %v946_v50 = vmul.f32 %v4316_v45, %v938_v5  ;;  %v4317_v46 = vld [vmem:[#allocation40_spill] sm:$0xff]  ;;  %v1011_v22 = vmul.f32 %v2886_v32, %v970_v19  ;;  %v1113_v17 = vld [vmem:[#allocation2 + $0x18] sm:$0x7] }
  0xda   : > { %v788_v54 = vsel %vm533_vm2, %v786_v61, %v4313_v43  ;;  %v978_v8 = vmul.f32 %v4317_v46, %v970_v19  ;;  %v1145_v13 = vld [vmem:[#allocation2 + $0x18] sm:$0x6]  ;;  %v890_v21 = vrot.slane %v882_v14, 1  ;;  %v1097_v23 = vunpack.c.l.bf16 %v1093_v27  ;;  %v803_v19 = vld [vmem:[#allocation2 + $0x20] sm:$0x8] }
  0xdb   : > { %v718_v11 = vadd.f32 %v710_v35, %v686_v58  ;;  %v3391_v35 = vmul.f32 %v2897_v41, %v1050_v42  ;;  %v1177_v61 = vld [vmem:[#allocation2 + $0x18] sm:$0xe]  ;;  %v553_v31 = vadd.f32 %v545_v9, %v504_v4  ;;  %v922_v18 = vrot.slane %v914_v0, 2 }
  0xdc   : > { %v1209_v58 = vld [vmem:[#allocation2 + $0x18] sm:$0xc]  ;;  %v954_v43 = vrot.slane %v946_v50, 3  ;;  %v1028_v48 = vrot.slane %v1011_v22, 5  ;;  %v898_v56 = vadd.f32 %v890_v21, %v866_v57  ;;  %v986_v6 = vrot.slane %v978_v8, 4 }
  0xdd   : > { %v750_v7 = vadd.f32 %v742_v26, %v718_v11  ;;  %v1105_v26 = vmul.f32 %v3190_v59, %v1097_v23  ;;  %v1117_v11 = vunpack.c.l.bf16 %v1113_v17  ;;  %v1149_v14 = vunpack.c.l.bf16 %v1145_v13  ;;  %v607_v22 = vld [vmem:[#allocation2 + $0x20] sm:$0x3] }
  0xde   : > { %v1181_v42 = vunpack.c.l.bf16 %v1177_v61  ;;  %v930_v12 = vadd.f32 %v922_v18, %v898_v56  ;;  %v4318_v27 = vrot.slane %v3033_v44, 5  ;;  %v1213_v9 = vunpack.c.l.bf16 %v1209_v58  ;;  %v627_v13 = vld [vmem:[#allocation2 + $0x20] sm:$0x7] }
  0xdf   : > { %v3393_v5 = vadd.f32 %v788_v54, %v750_v7  ;;  %v1293_v0 = vunpack.c.l.bf16 %v1289_v1  ;;  %v1109_v50 = vadd.f32 %v1105_v26, %v3293_v10  ;;  %v1125_v54 = vmul.f32 %v3194_v25, %v1117_v11  ;;  %v659_v21 = vld [vmem:[#allocation2 + $0x20] sm:$0x6] }
  0xe0   : > { %v1030_v4 = vsel %vm533_vm2, %v1028_v48, %v4318_v27  ;;  %v1157_v57 = vmul.f32 %v3198_v51, %v1149_v14  ;;  %v1189_v8 = vmul.f32 %v3204_v33, %v1181_v42  ;;  %v962_v7 = vadd.f32 %v954_v43, %v930_v12  ;;  %v691_v1 = vld [vmem:[#allocation2 + $0x20] sm:$0xe] }
  0xe1   : > { %v1221_v17 = vmul.f32 %v3216_v28, %v1213_v9  ;;  %v1253_v56 = vmul.f32 %v3078_v40, %v1213_v9  ;;  %v3407_v44 = vmul.f32 %v3082_v53, %v1293_v0  ;;  %v1133_v23 = vrot.slane %v1125_v54, 1  ;;  %v723_v12 = vld [vmem:[#allocation2 + $0x20] sm:$0xc] }
  0xe2   : > { %v1165_v10 = vrot.slane %v1157_v57, 2  ;;  %v1197_v61 = vrot.slane %v1189_v8, 3  ;;  %v4319_v58 = vrot.slane %v2963_v24, 6  ;;  %v4320_v18 = vrot.slane %v3362_v63, 6 }
  0xe3   : > { %v994_v43 = vadd.f32 %v986_v6, %v962_v7  ;;  %v1229_v26 = vrot.slane %v1221_v17, 4  ;;  %v1269_v11 = vrot.slane %v1253_v56, 5  ;;  %v1141_v42 = vadd.f32 %v1133_v23, %v1109_v50 }
  0xe4   : > { %v594_v48 = vsel %vm582_vm3, %v4320_v18, %v4319_v58  ;;  %v611_v27 = vunpack.c.l.bf16 %v607_v22  ;;  %v631_v9 = vunpack.c.l.bf16 %v627_v13  ;;  %v663_v0 = vunpack.c.l.bf16 %v659_v21 }
  0xe5   : > { %v602_v14 = vadd.f32 %v594_v48, %v553_v31  ;;  %v1042_v37 = vadd.f32 %v1030_v4, %v994_v43  ;;  %v1317_v54 = vrot.slane %v3407_v44, 6  ;;  %v695_v57 = vunpack.c.l.bf16 %v691_v1  ;;  %v851_v4 = vld [vmem:[#allocation2 + $0x20] sm:$0x3]  ;;  %v1047_v43 = vld [vmem:[#allocation2 + $0x20] sm:$0x8] }
  0xe6   : > { %v727_v8 = vunpack.c.l.bf16 %v723_v12  ;;  %v1173_v24 = vadd.f32 %v1165_v10, %v1141_v42  ;;  %v619_v63 = vmul.f32 %v4306_v20, %v611_v27  ;;  %v639_v58 = vmul.f32 %v4307_v34, %v631_v9  ;;  %v871_v1 = vld [vmem:[#allocation2 + $0x20] sm:$0x7] }
  0xe7   : > { %v671_v6 = vmul.f32 %v4308_v36, %v663_v0  ;;  %v703_v7 = vmul.f32 %v4309_v62, %v695_v57  ;;  %v807_v22 = vunpack.c.l.bf16 %v803_v19  ;;  %v4321_v56 = vrot.slane %v3091_v30, 5  ;;  %v903_v34 = vld [vmem:[#allocation2 + $0x20] sm:$0x6] }
  0xe8   : > { %v735_v31 = vmul.f32 %v4310_v49, %v727_v8  ;;  %v3421_v50 = vmul.f32 %v2816_v60, %v727_v8  ;;  %v1205_v17 = vadd.f32 %v1197_v61, %v1173_v24  ;;  %v623_v21 = vadd.f32 %v619_v63, %v602_v14  ;;  %v935_v49 = vld [vmem:[#allocation2 + $0x20] sm:$0xe] }
  0xe9   : > { %v1271_v13 = vsel %vm533_vm2, %v1269_v11, %v4321_v56  ;;  %v647_v20 = vrot.slane %v639_v58, 1  ;;  %v679_v23 = vrot.slane %v671_v6, 2  ;;  %v711_v36 = vrot.slane %v703_v7, 3  ;;  %v967_v12 = vld [vmem:[#allocation2 + $0x20] sm:$0xc] }
  0xea   : > { %v743_v10 = vrot.slane %v735_v31, 4  ;;  %v3427_v62 = vmul.f32 %v2834_v29, %v807_v22  ;;  %v1237_v60 = vadd.f32 %v1229_v26, %v1205_v17  ;;  %v4322_v19 = vrot.slane %v3000_v2, 6  ;;  %v1114_v7 = vld [vmem:[#allocation2 + $0x20] sm:$0x7] }
  0xeb   : > { %v655_v18 = vadd.f32 %v647_v20, %v623_v21  ;;  %v4323_v61 = vrot.slane %v3374_v47, 6  ;;  %v855_v48 = vunpack.c.l.bf16 %v851_v4  ;;  %v789_v11 = vrot.slane %v3421_v50, 5  ;;  %v1146_v20 = vld [vmem:[#allocation2 + $0x20] sm:$0x6] }
  0xec   : > { %v875_v42 = vunpack.c.l.bf16 %v871_v1  ;;  %v907_v27 = vunpack.c.l.bf16 %v903_v34  ;;  %v837_v9 = vrot.slane %v3427_v62, 6  ;;  %v939_v0 = vunpack.c.l.bf16 %v935_v49  ;;  %v1210_v49 = vld [vmem:[#allocation2 + $0x20] sm:$0xc] }
  0xed   : > { %v836_v30 = vsel %vm582_vm3, %v4323_v61, %v4322_v19  ;;  %v687_v29 = vadd.f32 %v679_v23, %v655_v18  ;;  %v863_v26 = vmul.f32 %v4312_v38, %v855_v48  ;;  %v971_v57 = vunpack.c.l.bf16 %v967_v12 }
  0xee   : > { %v846_v14 = vadd.f32 %v836_v30, %v3393_v5  ;;  %v883_v2 = vmul.f32 %v4314_v16, %v875_v42  ;;  %v915_v47 = vmul.f32 %v4315_v3, %v907_v27  ;;  %v1051_v8 = vunpack.c.l.bf16 %v1047_v43  ;;  %v1094_v5 = vld [vmem:[#allocation2 + $0x20] sm:$0x3] }
  0xef   : > { %v1285_v24 = vadd.f32 %v1271_v13, %v1237_v60  ;;  %v719_v63 = vadd.f32 %v711_v36, %v687_v29  ;;  %v947_v6 = vmul.f32 %v4316_v45, %v939_v0  ;;  %v979_v22 = vmul.f32 %v4317_v46, %v971_v57  ;;  %v1178_v13 = vld [vmem:[#allocation2 + $0x20] sm:$0xe] }
  0xf0   : > { %v867_v58 = vadd.f32 %v863_v26, %v846_v14  ;;  %v891_v31 = vrot.slane %v883_v2, 1  ;;  %v3443_v4 = vmul.f32 %v2886_v32, %v971_v57  ;;  %v4324_v17 = vrot.slane %v3049_v15, 6  ;;  %v1290_v60 = vld [vmem:[#allocation2 + $0x20] sm:$0x8] }
  0xf1   : > { %v4325_v56 = vrot.slane %v3391_v35, 6  ;;  %v3450_v1 = vadd.f32 %v743_v10, %v719_v63  ;;  %v923_v34 = vrot.slane %v915_v47, 2  ;;  %v955_v23 = vrot.slane %v947_v6, 3  ;;  %v1358_v63 = vld [vmem:[#allocation2 + $0x20] sm:$0x7] }
  0xf2   : > { %v3453_v36 = vmul.f32 %v2897_v41, %v1051_v8  ;;  %v899_v18 = vadd.f32 %v891_v31, %v867_v58  ;;  %v987_v19 = vrot.slane %v979_v22, 4  ;;  %v1098_v30 = vunpack.c.l.bf16 %v1094_v5  ;;  %v1390_v58 = vld [vmem:[#allocation2 + $0x20] sm:$0x6]  ;;  %v4326_v22 = vld [vmem:[#allocation66_spill] sm:$0xff] }
  0xf3   : > { %v1078_v21 = vsel %vm582_vm3, %v4325_v56, %v4324_v17  ;;  %v1031_v15 = vrot.slane %v3443_v4, 5  ;;  %v1118_v35 = vunpack.c.l.bf16 %v1114_v7  ;;  %v1150_v48 = vunpack.c.l.bf16 %v1146_v20  ;;  %v1422_v6 = vld [vmem:[#allocation2 + $0x20] sm:$0xe] }
  0xf4   : > { %v1090_v61 = vadd.f32 %v1078_v21, %v1042_v37  ;;  %v1182_v12 = vunpack.c.l.bf16 %v1178_v13  ;;  %v931_v43 = vadd.f32 %v923_v34, %v899_v18  ;;  %v1106_v10 = vmul.f32 %v3190_v59, %v1098_v30  ;;  %v1338_v37 = vld [vmem:[#allocation2 + $0x20] sm:$0x3]  ;;  %v1454_v56 = vld [vmem:[#allocation2 + $0x20] sm:$0xc] }
  0xf5   : > { %v1214_v14 = vunpack.c.l.bf16 %v1210_v49  ;;  %v1294_v42 = vunpack.c.l.bf16 %v1290_v60  ;;  %v1079_v27 = vrot.slane %v3453_v36, 6  ;;  %v1126_v29 = vmul.f32 %v3194_v25, %v1118_v35  ;;  %v1534_v21 = vld [vmem:[#allocation2 + $0x20] sm:$0x8] }
  0xf6   : > { %v1158_v26 = vmul.f32 %v3198_v51, %v1150_v48  ;;  %v1190_v0 = vmul.f32 %v3204_v33, %v1182_v12  ;;  %v963_v2 = vadd.f32 %v955_v23, %v931_v43  ;;  %v1110_v47 = vadd.f32 %v1106_v10, %v1090_v61 }
  0xf7   : > { %v1222_v57 = vmul.f32 %v3216_v28, %v1214_v14  ;;  %v1255_v8 = vmul.f32 %v3078_v40, %v1214_v14  ;;  %v1134_v5 = vrot.slane %v1126_v29, 1  ;;  %v3464_v31 = vmul.f32 %v3082_v53, %v1294_v42  ;;  %v4328_v14 = vld [vmem:[#allocation47_spill] sm:$0xff]  ;;  %v4329_v29 = vld [vmem:[#allocation74_spill] sm:$0xff] }
  0xf8   : > { %v1166_v7 = vrot.slane %v1158_v26, 2  ;;  %v4327_v4 = vrot.slane %v4326_v22, 6  ;;  %v995_v20 = vadd.f32 %v987_v19, %v963_v2  ;;  %v1198_v13 = vrot.slane %v1190_v0, 3  ;;  %v4330_v26 = vld [vmem:[#allocation73_spill] sm:$0xff] }
  0xf9   : > { %v1230_v34 = vrot.slane %v1222_v57, 4  ;;  %v1272_v23 = vrot.slane %v1255_v8, 5  ;;  %v1142_v49 = vadd.f32 %v1134_v5, %v1110_v47  ;;  %v1342_v18 = vunpack.c.l.bf16 %v1338_v37  ;;  %v4331_v57 = vld [vmem:[#allocation75_spill] sm:$0xff]  ;;  %v4332_v5 = vld [vmem:[#allocation54_spill] sm:$0xff]  ;;  %v259_v22 = vld [vmem:[#allocation2 + $0x28] sm:$0x8] }
  0xfa   : > { %v1319_v17 = vsel %vm582_vm3, %v1317_v54, %v4327_v4  ;;  %v1362_v61 = vunpack.c.l.bf16 %v1358_v63  ;;  %v1394_v30 = vunpack.c.l.bf16 %v1390_v58  ;;  %v1426_v35 = vunpack.c.l.bf16 %v1422_v6 }
  0xfb   : > { %v1333_v60 = vadd.f32 %v1319_v17, %v1285_v24  ;;  %v1458_v48 = vunpack.c.l.bf16 %v1454_v56  ;;  %v1538_v12 = vunpack.c.l.bf16 %v1534_v21  ;;  %v1174_v43 = vadd.f32 %v1166_v7, %v1142_v49  ;;  %v2213_v49 = vld.sshfl [vmem:[%s2665_s4 + $0x4] sm:$0x3 pattern:$0x76325410] }
  0xfc   : > { %v1320_v10 = vrot.slane %v3464_v31, 6  ;;  %v1350_v44 = vmul.f32 %v3219_v39, %v1342_v18  ;;  %v1370_v54 = vmul.f32 %v3223_v52, %v1362_v61  ;;  %v1402_v19 = vmul.f32 %v3226_v55, %v1394_v30  ;;  %v4336_v61 = vld [vmem:[#allocation60_spill] sm:$0xff] }
  0xfd   : > { %v1434_v42 = vmul.f32 %v4328_v14, %v1426_v35  ;;  %v1466_v24 = vmul.f32 %v4329_v29, %v1458_v48  ;;  %v1498_v0 = vmul.f32 %v4330_v26, %v1458_v48  ;;  %v1206_v37 = vadd.f32 %v1198_v13, %v1174_v43  ;;  %v4334_v13 = vld [vmem:[#allocation56_spill] sm:$0xff]  ;;  %v4339_v43 = vld [vmem:[#allocation82_spill] sm:$0xff] }
  0xfe   : > { %v1354_v2 = vadd.f32 %v1350_v44, %v1333_v60  ;;  %v1378_v47 = vrot.slane %v1370_v54, 1  ;;  %v1546_v8 = vmul.f32 %v4331_v57, %v1538_v12  ;;  %v1410_v63 = vrot.slane %v1402_v19, 2  ;;  %v4338_v48 = vld [vmem:[#allocation80_spill] sm:$0xff]  ;;  %v1913_v12 = vld [vmem:[#allocation2 + $0x38] sm:$0xe] }
  0xff   : > { %v1442_v58 = vrot.slane %v1434_v42, 3  ;;  %v1514_v6 = vrot.slane %v1498_v0, 5  ;;  %v4333_v7 = vrot.slane %v4332_v5, 5  ;;  %v1238_v4 = vadd.f32 %v1230_v34, %v1206_v37  ;;  %v4341_v34 = vld [vmem:[#allocation84_spill] sm:$0xff]  ;;  %v4346_v5 = vld [vmem:[#allocation55_spill] sm:$0xff] }
 0x100   : > { %v1386_v17 = vadd.f32 %v1378_v47, %v1354_v2  ;;  %v1474_v56 = vrot.slane %v1466_v24, 4  ;;  %v1562_v21 = vrot.slane %v1546_v8, 6  ;;  %v4335_v60 = vrot.slane %v4334_v13, 5  ;;  %v4343_v0 = vld [vmem:[#allocation76_spill] sm:$0xff] }
 0x101   : > { %v791_v31 = vsel %vm533_vm2, %v789_v11, %v4333_v7  ;;  %v4337_v30 = vrot.slane %v4336_v61, 5  ;;  %v1571_v50 = vrot.slane %v4339_v43, 6  ;;  %v4340_v11 = vld [vmem:[#allocation81_spill] sm:$0xff]  ;;  %v1572_v19 = vrot.slane %v4341_v34, 6  ;;  %v4348_v61 = vld [vmem:[#allocation58_spill] sm:$0xff] }
 0x102   : > { %v1033_v18 = vsel %vm533_vm2, %v1031_v15, %v4335_v60  ;;  %v1418_v44 = vadd.f32 %v1410_v63, %v1386_v17  ;;  %v260_v24 = vsel %vm3136_vm11, 0, %v259_v22  ;;  %v4344_v37 = vrot.slane %v4343_v0, 5 }
 0x103   : > { %v1274_v35 = vsel %vm533_vm2, %v1272_v23, %v4337_v30  ;;  %261 = vst [vmem:[#allocation2 + $0x28] sm:$0x8] %v260_v24  ;;  %v320_v2 = vshrl.u32 %v2213_v49, 16  ;;  %v323_v47 = vshll.u32 %v2213_v49, 16  ;;  %v799_v23 = vadd.f32 %v791_v31, %v3450_v1 }
 0x104   : > { %v1516_v15 = vsel %vm533_vm2, %v1514_v6, %v4344_v37  ;;  %v1450_v8 = vadd.f32 %v1442_v58, %v1418_v44  ;;  %v3502_v63 = vsel %vm582_vm3, %v1571_v50, %v1572_v19  ;;  %v4347_v7 = vrot.slane %v4346_v5, 6  ;;  %v245_v58 = vld [vmem:[#allocation2 + $0x30] sm:$0x3]  ;;  %v4350_v50 = vld [vmem:[#allocation67_spill] sm:$0xff]  ;;  %v4358_v37 = vld [vmem:[#allocation42_spill] sm:$0xff] }
 0x105   : > { %4345 = vst [vmem:[#allocation22_spill] sm:$0xff] %v3502_v63  ;;  %v1043_v17 = vadd.f32 %v1033_v18, %v995_v20  ;;  %v322_v13 = vrot.slane %v320_v2, 6  ;;  %v325_v60 = vrot.slane %v323_v47, 7  ;;  %v4349_v6 = vrot.slane %v4348_v61, 6  ;;  %v263_v20 = vld [vmem:[#allocation2 + $0x30] sm:$0x8] }
 0x106   : > { %v839_v22 = vsel %vm582_vm3, %v837_v9, %v4347_v7  ;;  %v1286_v1 = vadd.f32 %v1274_v35, %v1238_v4  ;;  %v1482_v31 = vadd.f32 %v1474_v56, %v1450_v8  ;;  %v4351_v62 = vrot.slane %v4350_v50, 6  ;;  %v2214_v18 = vld.sshfl [vmem:[%s2665_s4 + $0x6] sm:$0x3 pattern:$0x76325410]  ;;  %v4360_v47 = vld [vmem:[#allocation85_spill] sm:$0xff] }
 0x107   : > { %v1081_v49 = vsel %vm582_vm3, %v1079_v27, %v4349_v6  ;;  %v3514_v30 = vadd.f32 %v839_v22, %v799_v23  ;;  %v326_v44 = vor.u32 %v325_v60, %v322_v13  ;;  %v4352_v19 = vld [vmem:[#allocation79_spill] sm:$0xff]  ;;  %v4356_v56 = vld [vmem:[#allocation86_spill] sm:$0xff]  ;;  %v4359_v2 = vunpack.c.l.bf16 %v4358_v37  ;;  %v4365_v7 = vld [vmem:[#allocation45_spill] sm:$0xff] }
 0x108   : > { %v3516_v43 = vadd.f32 %v1081_v49, %v1043_v17  ;;  %v1322_v9 = vsel %vm582_vm3, %v1320_v10, %v4351_v62  ;;  %v4353_v36 = vrot.slane %v4352_v19, 6  ;;  %v4354_v4 = vld [vmem:[#allocation43_spill] sm:$0xff]  ;;  %v1530_v0 = vadd.f32 %v1516_v15, %v1482_v31  ;;  %v4362_v10 = vld [vmem:[#allocation44_spill] sm:$0xff]  ;;  %v4369_v13 = vld [vmem:[#allocation46_spill] sm:$0xff] }
 0x109   : > { %v3522_v34 = vadd.f32 %v1322_v9, %v1286_v1  ;;  %v4355_v35 = vunpack.c.l.bf16 %v4354_v4  ;;  %v3535_v23 = vmul.f32 %v4360_v47, %v4359_v2  ;;  %v4363_v8 = vunpack.c.l.bf16 %v4362_v10  ;;  %v4367_v17 = vld [vmem:[#allocation87_spill] sm:$0xff]  ;;  %v360_v31 = vld [vmem:[#allocation6 + $0x30] sm:$0x7f] }
 0x10a   : > { %v1564_v27 = vsel %vm582_vm3, %v1562_v21, %v4353_v36  ;;  %v4366_v22 = vunpack.c.l.bf16 %v4365_v7  ;;  %v4370_v60 = vunpack.c.l.bf16 %v4369_v13  ;;  %v246_v6 = vsel %vm3123_vm10, 0, %v245_v58  ;;  %v348_v50 = vld [vmem:[#allocation2 + $0x28] sm:$0xe]  ;;  %v4374_v58 = vld [vmem:[#allocation18_spill] sm:$0xff]  ;;  %v4375_v2 = vld [vmem:[#allocation83_spill] sm:$0xff] }
 0x10b   : > { %v3530_v24 = vmul.f32 %v4356_v56, %v4355_v35  ;;  %4361 = vst [vmem:[#allocation23_spill] sm:$0xff] %v3535_v23  ;;  %v3540_v5 = vmul.f32 %v4356_v56, %v4363_v8  ;;  %v264_v49 = vsel %vm3136_vm11, 0, %v263_v20  ;;  %v328_v1 = vshrl.u32 %v2214_v18, 16  ;;  %247 = vst [vmem:[#allocation2 + $0x30] sm:$0x3] %v246_v6  ;;  %v4376_v20 = vld [vmem:[#allocation19_spill] sm:$0xff] }
 0x10c   : > { %v3545_v21 = vmul.f32 %v4367_v17, %v4366_v22  ;;  %v3550_v61 = vmul.f32 %v4367_v17, %v4370_v60  ;;  %v3556_v62 = vadd.f32 %v1564_v27, %v1530_v0  ;;  %265 = vst [vmem:[#allocation2 + $0x30] sm:$0x8] %v264_v49  ;;  %v331_v36 = vshll.u32 %v2214_v18, 16  ;;  %v1976_v27 = vld [vmem:[#allocation2 + $0x34] sm:$0x1]  ;;  %v4377_v8 = vld [vmem:[#allocation17_spill] sm:$0xff] }
 0x10d   : > { %4357 = vst [vmem:[#allocation41_spill] sm:$0xff] %v3530_v24  ;;  %4364 = vst [vmem:[#allocation24_spill] sm:$0xff] %v3540_v5  ;;  %v349_v35 = vsel %vm3208_vm12, %v326_v44, %v348_v50  ;;  %v330_v37 = vrot.slane %v328_v1, 6  ;;  %v3564_v42 = vrot.slane %v4375_v2, %v4374_v58  ;;  %v3568_v10 = vrot.slane %v4375_v2, %v4376_v20  ;;  %v4378_v18 = vld [vmem:[#allocation13_spill] sm:$0xff]  ;;  %v4379_v44 = vld [vmem:[#allocation14_spill] sm:$0xff] }
 0x10e   : > { %4368 = vst [vmem:[#allocation20_spill] sm:$0xff] %v3545_v21  ;;  %4371 = vst [vmem:[#allocation25_spill] sm:$0xff] %v3550_v61  ;;  %v333_v0 = vrot.slane %v331_v36, 7  ;;  %v3572_v7 = vrot.slane %v4375_v2, %v4377_v8  ;;  %v3575_v22 = vrot.slane %v360_v31, %v4378_v18  ;;  %v3578_v13 = vrot.slane %v360_v31, %v4379_v44  ;;  %v4380_v60 = vld [vmem:[#allocation62_spill] sm:$0xff]  ;;  %v4383_v50 = vld [vmem:[#allocation15_spill] sm:$0xff] }
 0x10f   : > { %350 = vst [vmem:[#allocation2 + $0x28] sm:$0xe] %v349_v35  ;;  %v4381_v15 = vunpack.c.l.bf16 %v4380_v60  ;;  %v3591_v36 = vrot.slane %v360_v31, %v4383_v50  ;;  %v4385_v35 = vld [vmem:[#allocation16_spill] sm:$0xff]  ;;  %v1829_v18 = vld [vmem:[#allocation2 + $0x38] sm:$0x3]  ;;  %v1980_v9 = vunpack.c.l.bf16 %v1976_v27  ;;  %v3597_v54 = vrot.slane %v360_v31, %v4374_v58  ;;  %v4390_v61 = vld [vmem:[#allocation63_spill] sm:$0xff] }
 0x110   : > { %v3594_v2 = vrot.slane %v360_v31, %v4385_v35  ;;  %v1849_v19 = vld [vmem:[#allocation2 + $0x38] sm:$0x7]  ;;  %v334_v44 = vor.u32 %v333_v0, %v330_v37  ;;  %v3604_v50 = vrot.slane %v360_v31, %v4377_v8  ;;  %v4391_v35 = vunpack.c.l.bf16 %v4390_v61 }
 0x111   : > { %v3583_v6 = vmul.f32 %v3564_v42, %v4381_v15  ;;  %v4382_v49 = vmov %v4381_v15  ;;  %4384 = vst [vmem:[#allocation26_spill] sm:$0xff] %v3591_v36  ;;  %4387 = vst [vmem:[#allocation28_spill] sm:$0xff] %v3597_v54  ;;  %v3600_v15 = vrot.slane %v360_v31, %v4376_v20  ;;  %v1881_v60 = vld [vmem:[#allocation2 + $0x38] sm:$0x6]  ;;  %v3617_v20 = vmul.f32 %v3597_v54, %v1980_v9 }
 0x112   : > { %v3588_v1 = vmul.f32 %v3568_v10, %v4382_v49  ;;  %4386 = vst [vmem:[#allocation27_spill] sm:$0xff] %v3594_v2  ;;  %4389 = vst [vmem:[#allocation31_spill] sm:$0xff] %v3604_v50  ;;  %v3609_v5 = vmul.f32 %v3564_v42, %v4391_v35  ;;  %v4393_v37 = vmov %v4391_v35  ;;  %v1833_v0 = vunpack.c.l.bf16 %v1829_v18  ;;  %v3622_v31 = vld [vmem:[#allocation2 + $0x38] sm:$0xc]  ;;  %v3631_v18 = vld [vmem:[#allocation2 + $0x3c] sm:$0x1] }
 0x113   : > { %4388 = vst [vmem:[#allocation29_spill] sm:$0xff] %v3600_v15  ;;  %v3614_v58 = vmul.f32 %v3568_v10, %v4393_v37  ;;  %4395 = vst [vmem:[#allocation34_spill] sm:$0xff] %v3617_v20  ;;  %v3620_v27 = vmul.f32 %v3600_v15, %v1980_v9  ;;  %v1853_v49 = vunpack.c.l.bf16 %v1849_v19  ;;  %v351_v8 = vld [vmem:[#allocation2 + $0x30] sm:$0xe]  ;;  %v1885_v24 = vunpack.c.l.bf16 %v1881_v60 }
 0x114   : > { %4392 = vst [vmem:[#allocation32_spill] sm:$0xff] %v3609_v5  ;;  %4397 = vst [vmem:[#allocation66_spill] sm:$0xff] %v3622_v31  ;;  %v1917_v61 = vunpack.c.l.bf16 %v1913_v12  ;;  %v352_v37 = vsel %vm3208_vm12, %v334_v44, %v351_v8  ;;  %v3634_v21 = vmul.f32 %v3575_v22, %v1833_v0 }
 0x115   : > { %4394 = vst [vmem:[#allocation33_spill] sm:$0xff] %v3614_v58  ;;  %4396 = vst [vmem:[#allocation40_spill] sm:$0xff] %v3620_v27  ;;  %v3637_v12 = vmul.f32 %v3578_v13, %v1853_v49  ;;  %v3640_v4 = vmul.f32 %v3591_v36, %v1885_v24  ;;  %v4403_v49 = vunpack.c.l.bf16 %v3622_v31 }
 0x116   : > { %4398 = vst [vmem:[#allocation47_spill] sm:$0xff] %v3631_v18  ;;  %v852_v19 = vld [vmem:[#allocation2 + $0x28] sm:$0x3]  ;;  %353 = vst [vmem:[#allocation2 + $0x30] sm:$0xe] %v352_v37  ;;  %v3644_v58 = vmul.f32 %v3594_v2, %v1917_v61 }
 0x117   : > { %v872_v15 = vld [vmem:[#allocation2 + $0x28] sm:$0x7]  ;;  %4399 = vst [vmem:[#allocation74_spill] sm:$0xff] %v3634_v21  ;;  %4400 = vst [vmem:[#allocation73_spill] sm:$0xff] %v3637_v12  ;;  %v856_v60 = vunpack.c.l.bf16 %v852_v19  ;;  %v1048_v23 = vld [vmem:[#allocation2 + $0x28] sm:$0x8] }
 0x118   : > { %v904_v54 = vld [vmem:[#allocation2 + $0x28] sm:$0x6]  ;;  %4401 = vst [vmem:[#allocation75_spill] sm:$0xff] %v3640_v4  ;;  %v876_v8 = vunpack.c.l.bf16 %v872_v15  ;;  %4402 = vst [vmem:[#allocation54_spill] sm:$0xff] %v3644_v58  ;;  %v1052_v21 = vunpack.c.l.bf16 %v1048_v23 }
 0x119   : > { %v908_v9 = vunpack.c.l.bf16 %v904_v54  ;;  %v936_v35 = vld [vmem:[#allocation2 + $0x28] sm:$0xe]  ;;  %v864_v24 = vmul.f32 %v4312_v38, %v856_v60  ;;  %v3660_v38 = vmul.f32 %v3604_v50, %v4403_v49 }
 0x11a   : > { %v968_v63 = vld [vmem:[#allocation2 + $0x28] sm:$0xc]  ;;  %v940_v37 = vunpack.c.l.bf16 %v936_v35  ;;  %v1095_v5 = vld [vmem:[#allocation2 + $0x28] sm:$0x3]  ;;  %v884_v4 = vmul.f32 %v4314_v16, %v876_v8 }
 0x11b   : > { %v972_v0 = vunpack.c.l.bf16 %v968_v63  ;;  %v916_v19 = vmul.f32 %v4315_v3, %v908_v9  ;;  %v1099_v15 = vunpack.c.l.bf16 %v1095_v5  ;;  %v1115_v54 = vld [vmem:[#allocation2 + $0x28] sm:$0x7]  ;;  %4404 = vst [vmem:[#allocation56_spill] sm:$0xff] %v3660_v38  ;;  %v868_v16 = vadd.f32 %v864_v24, %v3514_v30 }
 0x11c   : > { %v948_v44 = vmul.f32 %v4316_v45, %v940_v37  ;;  %v1147_v63 = vld [vmem:[#allocation2 + $0x28] sm:$0x6]  ;;  %v892_v3 = vrot.slane %v884_v4, 1  ;;  %v3664_v5 = vmul.f32 %v2897_v41, %v1052_v21  ;;  %v1119_v38 = vunpack.c.l.bf16 %v1115_v54 }
 0x11d   : > { %v3652_v12 = vmul.f32 %v4317_v46, %v972_v0  ;;  %v3655_v35 = vmul.f32 %v2886_v32, %v972_v0  ;;  %v1179_v23 = vld [vmem:[#allocation2 + $0x28] sm:$0xe]  ;;  %v1107_v45 = vmul.f32 %v3190_v59, %v1099_v15  ;;  %v924_v32 = vrot.slane %v916_v19, 2  ;;  %v1292_v2 = vld [vmem:[#allocation2 + $0x30] sm:$0x8] }
 0x11e   : > { %v1211_v61 = vld [vmem:[#allocation2 + $0x28] sm:$0xc]  ;;  %v1339_v9 = vld [vmem:[#allocation2 + $0x28] sm:$0x3]  ;;  %v956_v60 = vrot.slane %v948_v44, 3  ;;  %v900_v18 = vadd.f32 %v892_v3, %v868_v16  ;;  %v1151_v30 = vunpack.c.l.bf16 %v1147_v63  ;;  %v1183_v4 = vunpack.c.l.bf16 %v1179_v23 }
 0x11f   : > { %v1291_v46 = vld [vmem:[#allocation2 + $0x28] sm:$0x8]  ;;  %v988_v8 = vrot.slane %v3652_v12, 4  ;;  %v1359_v0 = vld [vmem:[#allocation2 + $0x28] sm:$0x7]  ;;  %v1111_v49 = vadd.f32 %v1107_v45, %v3516_v43  ;;  %v1215_v24 = vunpack.c.l.bf16 %v1211_v61  ;;  %v1343_v21 = vunpack.c.l.bf16 %v1339_v9 }
 0x120   : > { %v1295_v41 = vunpack.c.l.bf16 %v1291_v46  ;;  %v932_v31 = vadd.f32 %v924_v32, %v900_v18  ;;  %v1127_v15 = vmul.f32 %v3194_v25, %v1119_v38  ;;  %v1159_v19 = vmul.f32 %v3198_v51, %v1151_v30  ;;  %v1391_v54 = vld [vmem:[#allocation2 + $0x28] sm:$0x6]  ;;  %v1535_v45 = vld [vmem:[#allocation2 + $0x28] sm:$0x8] }
 0x121   : > { %v1363_v44 = vunpack.c.l.bf16 %v1359_v0  ;;  %v1191_v12 = vmul.f32 %v3204_v33, %v1183_v4  ;;  %v1223_v37 = vmul.f32 %v3216_v28, %v1215_v24  ;;  %v3675_v16 = vmul.f32 %v3078_v40, %v1215_v24  ;;  %v1423_v63 = vld [vmem:[#allocation2 + $0x28] sm:$0xe] }
 0x122   : > { %v3678_v43 = vmul.f32 %v3082_v53, %v1295_v41  ;;  %v1455_v23 = vld [vmem:[#allocation2 + $0x28] sm:$0xc]  ;;  %v964_v61 = vadd.f32 %v956_v60, %v932_v31  ;;  %v1082_v18 = vrot.slane %v3664_v5, 6  ;;  %v1135_v38 = vrot.slane %v1127_v15, 1  ;;  %v1583_v46 = vld [vmem:[#allocation2 + $0x28] sm:$0x3] }
 0x123   : > { %v1351_v3 = vmul.f32 %v3219_v39, %v1343_v21  ;;  %v1167_v9 = vrot.slane %v1159_v19, 2  ;;  %v1199_v32 = vrot.slane %v1191_v12, 3  ;;  %v1231_v0 = vrot.slane %v1223_v37, 4  ;;  %v1603_v4 = vld [vmem:[#allocation2 + $0x28] sm:$0x7] }
 0x124   : > { %v1275_v30 = vrot.slane %v3675_v16, 5  ;;  %v1143_v24 = vadd.f32 %v1135_v38, %v1111_v49  ;;  %v1371_v31 = vmul.f32 %v3223_v52, %v1363_v44  ;;  %v1395_v60 = vunpack.c.l.bf16 %v1391_v54  ;;  %v1635_v54 = vld [vmem:[#allocation2 + $0x28] sm:$0x6] }
 0x125   : > { %v1355_v58 = vadd.f32 %v1351_v3, %v3522_v34  ;;  %v1427_v5 = vunpack.c.l.bf16 %v1423_v63  ;;  %v1459_v15 = vunpack.c.l.bf16 %v1455_v23  ;;  %v1539_v27 = vunpack.c.l.bf16 %v1535_v45  ;;  %v3693_v63 = vld [vmem:[#allocation2 + $0x28] sm:$0xe] }
 0x126   : > { %v1175_v21 = vadd.f32 %v1167_v9, %v1143_v24  ;;  %v1379_v20 = vrot.slane %v1371_v31, 1  ;;  %v1587_v50 = vunpack.c.l.bf16 %v1583_v46  ;;  %v1607_v19 = vunpack.c.l.bf16 %v1603_v4  ;;  %v3695_v23 = vld [vmem:[#allocation2 + $0x28] sm:$0xc] }
 0x127   : > { %v1403_v37 = vmul.f32 %v3226_v55, %v1395_v60  ;;  %v1435_v12 = vmul.f32 %v4328_v14, %v1427_v5  ;;  %v1467_v49 = vmul.f32 %v4329_v29, %v1459_v15  ;;  %v1500_v16 = vmul.f32 %v4330_v26, %v1459_v15  ;;  %v3698_v24 = vld [vmem:[#allocation2 + $0x28] sm:$0x8]  ;;  %v1096_v5 = vld [vmem:[#allocation2 + $0x30] sm:$0x3] }
 0x128   : > { %v996_v38 = vadd.f32 %v988_v8, %v964_v61  ;;  %v1207_v34 = vadd.f32 %v1199_v32, %v1175_v21  ;;  %v1387_v3 = vadd.f32 %v1379_v20, %v1355_v58  ;;  %v3691_v44 = vmul.f32 %v4331_v57, %v1539_v27  ;;  %v1116_v15 = vld [vmem:[#allocation2 + $0x30] sm:$0x7] }
 0x129   : > { %v1411_v45 = vrot.slane %v1403_v37, 2  ;;  %v1443_v46 = vrot.slane %v1435_v12, 3  ;;  %v1475_v9 = vrot.slane %v1467_v49, 4  ;;  %v1595_v4 = vmul.f32 %v4360_v47, %v1587_v50  ;;  %v1148_v21 = vld [vmem:[#allocation2 + $0x30] sm:$0x6] }
 0x12a   : > { %v1239_v31 = vadd.f32 %v1231_v0, %v1207_v34  ;;  %v1517_v60 = vrot.slane %v1500_v16, 5  ;;  %v3702_v58 = vmul.f32 %v4356_v56, %v1607_v19  ;;  %v1639_v61 = vunpack.c.l.bf16 %v1635_v54  ;;  %v4405_v12 = vld [vmem:[#allocation57_spill] sm:$0xff]  ;;  %v1212_v34 = vld [vmem:[#allocation2 + $0x30] sm:$0xc]  ;;  %v4410_v0 = vld [vmem:[#allocation59_spill] sm:$0xff] }
 0x12b   : > { %v1419_v20 = vadd.f32 %v1411_v45, %v1387_v3  ;;  %v3705_v27 = vadd.f32 %v1595_v4, %v3556_v62  ;;  %v4406_v49 = vrot.slane %v4405_v12, 5  ;;  %v4407_v19 = vrot.slane %v3655_v35, 5  ;;  %v1180_v62 = vld [vmem:[#allocation2 + $0x30] sm:$0xe] }
 0x12c   : > { %v3717_v54 = vmul.f32 %v4367_v17, %v1639_v61  ;;  %v4408_v45 = vld [vmem:[#allocation61_spill] sm:$0xff]  ;;  %v4411_v8 = vrot.slane %v4410_v0, 6  ;;  %v1100_v12 = vunpack.c.l.bf16 %v1096_v5  ;;  %v1120_v41 = vunpack.c.l.bf16 %v1116_v15 }
 0x12d   : > { %v1036_v16 = vsel %vm533_vm2, %v4407_v19, %v4406_v49  ;;  %v1451_v3 = vadd.f32 %v1443_v46, %v1419_v20  ;;  %v4409_v4 = vrot.slane %v4408_v45, 5  ;;  %v1152_v35 = vunpack.c.l.bf16 %v1148_v21  ;;  %v4412_v49 = vld [vmem:[#allocation77_spill] sm:$0xff] }
 0x12e   : > { %v1044_v50 = vadd.f32 %v1036_v16, %v996_v38  ;;  %v1084_v37 = vsel %vm582_vm3, %v1082_v18, %v4411_v8  ;;  %v4413_v19 = vrot.slane %v4412_v49, 5  ;;  %v1184_v61 = vunpack.c.l.bf16 %v1180_v62  ;;  %v1340_v21 = vld [vmem:[#allocation2 + $0x30] sm:$0x3] }
 0x12f   : > { %v1277_v32 = vsel %vm533_vm2, %v1275_v30, %v4409_v4  ;;  %v1216_v36 = vunpack.c.l.bf16 %v1212_v34  ;;  %v1108_v45 = vmul.f32 %v3190_v59, %v1100_v12  ;;  %v1128_v30 = vmul.f32 %v3194_v25, %v1120_v41  ;;  %v1424_v34 = vld [vmem:[#allocation2 + $0x30] sm:$0xe] }
 0x130   : > { %v1519_v46 = vsel %vm533_vm2, %v1517_v60, %v4413_v19  ;;  %v1092_v20 = vadd.f32 %v1084_v37, %v1044_v50  ;;  %v1160_v38 = vmul.f32 %v3198_v51, %v1152_v35  ;;  %v1287_v0 = vadd.f32 %v1277_v32, %v1239_v31  ;;  %v1360_v60 = vld [vmem:[#allocation2 + $0x30] sm:$0x7]  ;;  %v1536_v19 = vld [vmem:[#allocation2 + $0x30] sm:$0x8] }
 0x131   : > { %v1192_v18 = vmul.f32 %v3204_v33, %v1184_v61  ;;  %v1224_v8 = vmul.f32 %v3216_v28, %v1216_v36  ;;  %v3734_v5 = vmul.f32 %v3078_v40, %v1216_v36  ;;  %v1296_v15 = vunpack.c.l.bf16 %v1292_v2  ;;  %v1392_v50 = vld [vmem:[#allocation2 + $0x30] sm:$0x6]  ;;  %v4414_v33 = vld [vmem:[#allocation68_spill] sm:$0xff] }
 0x132   : > { %v1483_v37 = vadd.f32 %v1475_v9, %v1451_v3  ;;  %v1112_v16 = vadd.f32 %v1108_v45, %v1092_v20  ;;  %v1136_v62 = vrot.slane %v1128_v30, 1  ;;  %v1168_v59 = vrot.slane %v1160_v38, 2  ;;  %v1456_v25 = vld [vmem:[#allocation2 + $0x30] sm:$0xc] }
 0x133   : > { %v1200_v41 = vrot.slane %v1192_v18, 3  ;;  %v1232_v51 = vrot.slane %v1224_v8, 4  ;;  %v1278_v31 = vrot.slane %v3734_v5, 5  ;;  %v4415_v32 = vrot.slane %v4414_v33, 6  ;;  %v1584_v8 = vld [vmem:[#allocation2 + $0x30] sm:$0x3] }
 0x134   : > { %v4416_v28 = vrot.slane %v3678_v43, 6  ;;  %v1144_v36 = vadd.f32 %v1136_v62, %v1112_v16  ;;  %v1344_v4 = vunpack.c.l.bf16 %v1340_v21  ;;  %v1364_v12 = vunpack.c.l.bf16 %v1360_v60  ;;  %v1604_v60 = vld [vmem:[#allocation2 + $0x30] sm:$0x7] }
 0x135   : > { %v1307_v9 = vmul.f32 %v3082_v53, %v1296_v15  ;;  %v1396_v3 = vunpack.c.l.bf16 %v1392_v50  ;;  %v1428_v35 = vunpack.c.l.bf16 %v1424_v34  ;;  %v1460_v49 = vunpack.c.l.bf16 %v1456_v25  ;;  %v1636_v50 = vld [vmem:[#allocation2 + $0x30] sm:$0x6] }
 0x136   : > { %v1325_v40 = vsel %vm582_vm3, %v4416_v28, %v4415_v32  ;;  %v1176_v20 = vadd.f32 %v1168_v59, %v1144_v36  ;;  %v1352_v61 = vmul.f32 %v3219_v39, %v1344_v4  ;;  %v1372_v45 = vmul.f32 %v3223_v52, %v1364_v12  ;;  %v3757_v34 = vld [vmem:[#allocation2 + $0x30] sm:$0xc] }
 0x137   : > { %v1335_v2 = vadd.f32 %v1325_v40, %v1287_v0  ;;  %v1531_v30 = vadd.f32 %v1519_v46, %v1483_v37  ;;  %v1404_v43 = vmul.f32 %v3226_v55, %v1396_v3  ;;  %v1436_v38 = vmul.f32 %v4328_v14, %v1428_v35  ;;  %v3749_v46 = vld [vmem:[#allocation2 + $0x30] sm:$0xe] }
 0x138   : > { %v1468_v0 = vmul.f32 %v4329_v29, %v1460_v49  ;;  %v1502_v18 = vmul.f32 %v4330_v26, %v1460_v49  ;;  %v1208_v53 = vadd.f32 %v1200_v41, %v1176_v20  ;;  %v1380_v15 = vrot.slane %v1372_v45, 1  ;;  %v3759_v28 = vld [vmem:[#allocation2 + $0x30] sm:$0x8]  ;;  %v4419_v3 = vld [vmem:[#allocation65_spill] sm:$0xff] }
 0x139   : > { %v1356_v5 = vadd.f32 %v1352_v61, %v1335_v2  ;;  %v1540_v21 = vunpack.c.l.bf16 %v1536_v19  ;;  %v1326_v16 = vrot.slane %v1307_v9, 6  ;;  %v1412_v39 = vrot.slane %v1404_v43, 2  ;;  %v4421_v19 = vld [vmem:[#allocation70_spill] sm:$0xff] }
 0x13a   : > { %v1444_v62 = vrot.slane %v1436_v38, 3  ;;  %v1520_v52 = vrot.slane %v1502_v18, 5  ;;  %v1240_v55 = vadd.f32 %v1232_v51, %v1208_v53  ;;  %v4417_v29 = vrot.slane %v4338_v48, 6  ;;  %v1828_v38 = vld [vmem:[#allocation2 + $0x30] sm:$0x3] }
 0x13b   : > { %v1388_v37 = vadd.f32 %v1380_v15, %v1356_v5  ;;  %v1550_v14 = vmul.f32 %v4331_v57, %v1540_v21  ;;  %v4418_v26 = vrot.slane %v3691_v44, 6  ;;  %v1588_v41 = vunpack.c.l.bf16 %v1584_v8  ;;  %v4427_v5 = vld [vmem:[#allocation88_spill] sm:$0xff] }
 0x13c   : > { %v1608_v33 = vunpack.c.l.bf16 %v1604_v60  ;;  %v1640_v32 = vunpack.c.l.bf16 %v1636_v50  ;;  %v1476_v36 = vrot.slane %v1468_v0, 4  ;;  %v1672_v2 = vunpack.c.l.bf16 %v3749_v46 }
 0x13d   : > { %v1567_v59 = vsel %vm582_vm3, %v4418_v26, %v4417_v29  ;;  %v1420_v40 = vadd.f32 %v1412_v39, %v1388_v37  ;;  %v1568_v51 = vrot.slane %v1550_v14, 6  ;;  %v1596_v57 = vmul.f32 %v4360_v47, %v1588_v41  ;;  %v1880_v37 = vld [vmem:[#allocation2 + $0x30] sm:$0x6]  ;;  %v4432_v26 = vld [vmem:[#allocation35_spill] sm:$0xff] }
 0x13e   : > { %v1579_v25 = vadd.f32 %v1567_v59, %v1531_v30  ;;  %v1616_v48 = vmul.f32 %v4356_v56, %v1608_v33  ;;  %v3765_v44 = vmul.f32 %v4367_v17, %v1640_v32  ;;  %v1704_v4 = vunpack.c.l.bf16 %v3757_v34  ;;  %v4423_v30 = vld [vmem:[#allocation78_spill] sm:$0xff] }
 0x13f   : > { %v1452_v12 = vadd.f32 %v1444_v62, %v1420_v40  ;;  %v1784_v9 = vunpack.c.l.bf16 %v3759_v28  ;;  %v4420_v35 = vrot.slane %v4419_v3, 5  ;;  %v4422_v20 = vrot.slane %v4421_v19, 6  ;;  %v1912_v41 = vld [vmem:[#allocation2 + $0x30] sm:$0xe] }
 0x140   : > { %v1600_v45 = vadd.f32 %v1596_v57, %v1579_v25  ;;  %v1624_v47 = vrot.slane %v1616_v48, 1  ;;  %v4424_v56 = vrot.slane %v4423_v30, 5  ;;  %v4425_v18 = vrot.slane %v3702_v58, 1  ;;  %v2024_v57 = vld [vmem:[#allocation2 + $0x30] sm:$0x8]  ;;  %v4433_v48 = vld [vmem:[#allocation36_spill] sm:$0xff] }
 0x141   : > { %v1280_v49 = vsel %vm533_vm2, %v1278_v31, %v4420_v35  ;;  %v1328_v61 = vsel %vm582_vm3, %v1326_v16, %v4422_v20  ;;  %v1484_v0 = vadd.f32 %v1476_v36, %v1452_v12  ;;  %v1655_v53 = vrot.slane %v3717_v54, 2  ;;  %v1944_v36 = vld [vmem:[#allocation2 + $0x30] sm:$0xc] }
 0x142   : > { %v1522_v17 = vsel %vm533_vm2, %v1520_v52, %v4424_v56  ;;  %v1288_v43 = vadd.f32 %v1280_v49, %v1240_v55  ;;  %v1631_v8 = vadd.f32 %v4425_v18, %v3705_v27  ;;  %v4426_v31 = vunpack.c.l.bf16 %v3693_v63  ;;  %v1848_v27 = vld [vmem:[#allocation2 + $0x30] sm:$0x7] }
 0x143   : > { %v4428_v60 = vunpack.c.l.bf16 %v3695_v23  ;;  %v4430_v62 = vunpack.c.l.bf16 %v3698_v24  ;;  %v1532_v52 = vadd.f32 %v1522_v17, %v1484_v0  ;;  %v1832_v63 = vunpack.c.l.bf16 %v1828_v38  ;;  %v4437_v17 = vld [vmem:[#allocation37_spill] sm:$0xff]  ;;  %v4439_v0 = vld [vmem:[#allocation26_spill] sm:$0xff] }
 0x144   : > { %v1679_v15 = vmul.f32 %v4427_v5, %v4426_v31  ;;  %v1336_v21 = vadd.f32 %v1328_v61, %v1288_v43  ;;  %v1663_v54 = vadd.f32 %v1655_v53, %v1631_v8  ;;  %v4431_v14 = vrot.slane %v4340_v11, 6  ;;  %v4440_v53 = vld [vmem:[#allocation21_spill] sm:$0xff] }
 0x145   : > { %v1711_v50 = vmul.f32 %v3572_v7, %v4428_v60  ;;  %v4429_v16 = vmov %v4428_v60  ;;  %v1791_v58 = vmul.f32 %v3568_v10, %v4430_v62  ;;  %v1852_v40 = vunpack.c.l.bf16 %v1848_v27 }
 0x146   : > { %v1743_v39 = vmul.f32 %v3564_v42, %v4429_v16  ;;  %v1687_v55 = vrot.slane %v1679_v15, 3  ;;  %v1570_v29 = vsel %vm582_vm3, %v1568_v51, %v4431_v14  ;;  %v1357_v59 = vadd.f32 %v4432_v26, %v1336_v21  ;;  %v4441_v21 = vld [vmem:[#allocation27_spill] sm:$0xff]  ;;  %v4442_v16 = vld [vmem:[#allocation38_spill] sm:$0xff] }
 0x147   : > { %v1807_v23 = vrot.slane %v1791_v58, 6  ;;  %v1580_v33 = vadd.f32 %v1570_v29, %v1532_v52  ;;  %v1719_v24 = vrot.slane %v1711_v50, 4  ;;  %v4434_v12 = vrot.slane %v4433_v48, 1  ;;  %v4444_v58 = vld [vmem:[#allocation31_spill] sm:$0xff]  ;;  %v4445_v52 = vld [vmem:[#allocation28_spill] sm:$0xff] }
 0x148   : > { %v1759_v25 = vrot.slane %v1743_v39, 5  ;;  %v1695_v32 = vadd.f32 %v1687_v55, %v1663_v54  ;;  %v4435_v35 = vrot.slane %v3583_v6, 5  ;;  %v1840_v51 = vmul.f32 %v3575_v22, %v1832_v63  ;;  %v4447_v26 = vld [vmem:[#allocation39_spill] sm:$0xff] }
 0x149   : > { %v1389_v3 = vadd.f32 %v4434_v12, %v1357_v59  ;;  %v1884_v49 = vunpack.c.l.bf16 %v1880_v37  ;;  %v4436_v20 = vrot.slane %v3588_v1, 6  ;;  %v1860_v30 = vmul.f32 %v3578_v13, %v1852_v40  ;;  %v4446_v37 = vld [vmem:[#allocation29_spill] sm:$0xff] }
 0x14a   : > { %v1761_v11 = vsel %vm533_vm2, %v1759_v25, %v4435_v35  ;;  %v1727_v19 = vadd.f32 %v1719_v24, %v1695_v32  ;;  %v1916_v56 = vunpack.c.l.bf16 %v1912_v41  ;;  %v4438_v43 = vrot.slane %v4437_v17, 2  ;;  %v4449_v40 = vld [vmem:[#allocation89_spill] sm:$0xff]  ;;  %v4452_v35 = vld [vmem:[#allocation40_spill] sm:$0xff] }
 0x14b   : > { %v1809_v61 = vsel %vm582_vm3, %v1807_v23, %v4436_v20  ;;  %v1892_v18 = vmul.f32 %v4439_v0, %v1884_v49  ;;  %v1948_v8 = vunpack.c.l.bf16 %v1944_v36  ;;  %v2028_v6 = vunpack.c.l.bf16 %v2024_v57  ;;  %v4455_v17 = vld [vmem:[#allocation73_spill] sm:$0xff] }
 0x14c   : > { %v1421_v38 = vadd.f32 %v4438_v43, %v1389_v3  ;;  %v1601_v31 = vadd.f32 %v4440_v53, %v1580_v33  ;;  %v1775_v15 = vadd.f32 %v1761_v11, %v1727_v19  ;;  %v1924_v60 = vmul.f32 %v4441_v21, %v1916_v56  ;;  %v4450_v3 = vld [vmem:[#allocation34_spill] sm:$0xff] }
 0x14d   : > { %v1632_v50 = vadd.f32 %v1624_v47, %v1600_v45  ;;  %v4443_v1 = vrot.slane %v4442_v16, 3  ;;  %v1868_v62 = vrot.slane %v1860_v30, 1  ;;  %v1956_v27 = vmul.f32 %v4444_v58, %v1948_v8  ;;  %v4454_v19 = vld [vmem:[#allocation22_spill] sm:$0xff] }
 0x14e   : > { %v1988_v54 = vmul.f32 %v4445_v52, %v1948_v8  ;;  %v1823_v55 = vadd.f32 %v1809_v61, %v1775_v15  ;;  %v1900_v63 = vrot.slane %v1892_v18, 2  ;;  %v2036_v14 = vmul.f32 %v4446_v37, %v2028_v6  ;;  %v2025_v8 = vld [vmem:[#allocation2 + $0x38] sm:$0x8] }
 0x14f   : > { %v1453_v39 = vadd.f32 %v4443_v1, %v1421_v38  ;;  %v1656_v29 = vrot.slane %v3765_v44, 2  ;;  %v4448_v59 = vrot.slane %v4447_v26, 4  ;;  %v1932_v23 = vrot.slane %v1924_v60, 3  ;;  %v4456_v38 = vld [vmem:[#allocation75_spill] sm:$0xff]  ;;  %v4458_v60 = vld [vmem:[#allocation32_spill] sm:$0xff] }
 0x150   : > { %v2004_v41 = vrot.slane %v1988_v54, 5  ;;  %v1680_v45 = vmul.f32 %v4427_v5, %v1672_v2  ;;  %v1844_v47 = vadd.f32 %v1840_v51, %v1823_v55  ;;  %v2052_v33 = vrot.slane %v2036_v14, 6  ;;  %v4457_v6 = vld [vmem:[#allocation23_spill] sm:$0xff]  ;;  %v4463_v54 = vld [vmem:[#allocation66_spill] sm:$0xff] }
 0x151   : > { %v1485_v25 = vadd.f32 %v4448_v59, %v1453_v39  ;;  %v1664_v32 = vadd.f32 %v1656_v29, %v1632_v50  ;;  %v1712_v24 = vmul.f32 %v3572_v7, %v1704_v4  ;;  %v1964_v57 = vrot.slane %v1956_v27, 4  ;;  %v4460_v50 = vld [vmem:[#allocation54_spill] sm:$0xff]  ;;  %v4461_v39 = vld [vmem:[#allocation33_spill] sm:$0xff]  ;;  %v4465_v14 = vld [vmem:[#allocation47_spill] sm:$0xff] }
 0x152   : > { %v1688_v44 = vrot.slane %v1680_v45, 3  ;;  %v1745_v48 = vmul.f32 %v3564_v42, %v1704_v4  ;;  %v1876_v12 = vadd.f32 %v1868_v62, %v1844_v47  ;;  %v4451_v46 = vrot.slane %v4450_v3, 5  ;;  %v4468_v47 = vld [vmem:[#allocation41_spill] sm:$0xff] }
 0x153   : > { %v1533_v36 = vadd.f32 %v4449_v40, %v1485_v25  ;;  %v4453_v11 = vrot.slane %v4452_v35, 6  ;;  %v1793_v49 = vmul.f32 %v3568_v10, %v1784_v9  ;;  %v1720_v30 = vrot.slane %v1712_v24, 4  ;;  %v4472_v35 = vld [vmem:[#allocation48_spill] sm:$0xff] }
 0x154   : > { %v2006_v2 = vsel %vm533_vm2, %v2004_v41, %v4451_v46  ;;  %v1696_v61 = vadd.f32 %v1688_v44, %v1664_v32  ;;  %v1762_v34 = vrot.slane %v1745_v48, 5  ;;  %v1908_v56 = vadd.f32 %v1900_v63, %v1876_v12  ;;  %v4471_v12 = vld [vmem:[#allocation56_spill] sm:$0xff] }
 0x155   : > { %v2054_v51 = vsel %vm582_vm3, %v2052_v33, %v4453_v11  ;;  %v1581_v20 = vadd.f32 %v4454_v19, %v1533_v36  ;;  %v1810_v4 = vrot.slane %v1793_v49, 6  ;;  %v1869_v43 = vrot.slane %v4455_v17, 1  ;;  %v4470_v36 = vld [vmem:[#allocation20_spill] sm:$0xff] }
 0x156   : > { %v1901_v18 = vrot.slane %v4456_v38, 2  ;;  %v1728_v15 = vadd.f32 %v1720_v30, %v1696_v61  ;;  %v4459_v28 = vrot.slane %v4458_v60, 5  ;;  %v1933_v16 = vrot.slane %v4460_v50, 3  ;;  %v4474_v30 = vld [vmem:[#allocation50_spill] sm:$0xff]  ;;  %v4480_v50 = vld [vmem:[#allocation52_spill] sm:$0xff] }
 0x157   : > { %v3844_v53 = vadd.f32 %v4457_v6, %v1581_v20  ;;  %v1940_v1 = vadd.f32 %v1932_v23, %v1908_v56  ;;  %v4462_v62 = vrot.slane %v4461_v39, 6  ;;  %v4464_v55 = vunpack.c.l.bf16 %v4463_v54  ;;  %v4476_v56 = vld [vmem:[#allocation74_spill] sm:$0xff] }
 0x158   : > { %v1764_v9 = vsel %vm533_vm2, %v1762_v34, %v4459_v28  ;;  %v4466_v29 = vunpack.c.l.bf16 %v4465_v14  ;;  %v2029_v25 = vunpack.c.l.bf16 %v2025_v8  ;;  %v4469_v23 = vrot.slane %v4468_v47, 1 }
 0x159   : > { %v1812_v27 = vsel %vm582_vm3, %v1810_v4, %v4462_v62  ;;  %v1990_v63 = vmul.f32 %v4445_v52, %v4464_v55  ;;  %v1776_v59 = vadd.f32 %v1764_v9, %v1728_v15  ;;  %v1972_v32 = vadd.f32 %v1964_v57, %v1940_v1  ;;  %v3873_v57 = vld [vmem:[#allocation8] ss:$0 sm:$0xff]  ;;  %v1830_v62 = vld [vmem:[#allocation2 + $0x40] sm:$0x3] }
 0x15a   : > { %v1991_v26 = vmul.f32 %v4445_v52, %v4466_v29  ;;  %v4467_v41 = vmov %v4466_v29  ;;  %v1633_v33 = vadd.f32 %v4469_v23, %v1601_v31  ;;  %v1657_v44 = vrot.slane %v4470_v36, 2  ;;  %v1882_v29 = vld [vmem:[#allocation2 + $0x40] sm:$0x6] }
 0x15b   : > { %v2039_v45 = vmul.f32 %v4446_v37, %v4467_v41  ;;  %v2007_v24 = vrot.slane %v1990_v63, 5  ;;  %v1824_v48 = vadd.f32 %v1812_v27, %v1776_v59  ;;  %v1965_v3 = vrot.slane %v4471_v12, 4  ;;  %v1850_v27 = vld [vmem:[#allocation2 + $0x40] sm:$0x7] }
 0x15c   : > { %v2008_v40 = vrot.slane %v1991_v26, 5  ;;  %v2038_v46 = vmul.f32 %v4446_v37, %v2029_v25  ;;  %v4473_v11 = vunpack.c.l.bf16 %v4472_v35  ;;  %v2020_v19 = vadd.f32 %v2006_v2, %v1972_v32  ;;  %v4478_v2 = vld [vmem:[#allocation64_spill] sm:$0xff] }
 0x15d   : > { %v2056_v20 = vrot.slane %v2039_v45, 6  ;;  %v1665_v61 = vadd.f32 %v1657_v44, %v1633_v33  ;;  %v4475_v34 = vunpack.c.l.bf16 %v4474_v30  ;;  %v1845_v4 = vadd.f32 %v4476_v56, %v1824_v48  ;;  %v1914_v32 = vld [vmem:[#allocation2 + $0x40] sm:$0xe]  ;;  %v1978_v48 = vld [vmem:[#allocation2 + $0x44] sm:$0x1] }
 0x15e   : > { %v1681_v49 = vmul.f32 %v4427_v5, %v4473_v11  ;;  %v2009_v17 = vsel %vm533_vm2, %v2007_v24, %v2008_v40  ;;  %v2068_v15 = vadd.f32 %v2054_v51, %v2020_v19  ;;  %v2055_v60 = vrot.slane %v2038_v46, 6  ;;  %v1946_v24 = vld [vmem:[#allocation2 + $0x40] sm:$0xc] }
 0x15f   : > { %v1713_v31 = vmul.f32 %v3572_v7, %v4475_v34  ;;  %v4477_v8 = vmov %v4475_v34  ;;  %v4479_v28 = vunpack.c.l.bf16 %v4478_v2  ;;  %v4481_v1 = vunpack.c.l.bf16 %v4480_v50  ;;  %v2026_v30 = vld [vmem:[#allocation2 + $0x40] sm:$0x8] }
 0x160   : > { %v1689_v38 = vrot.slane %v1681_v49, 3  ;;  %v1747_v6 = vmul.f32 %v3564_v42, %v4477_v8  ;;  %v1877_v54 = vadd.f32 %v1869_v43, %v1845_v4  ;;  %v2079_v26 = vadd.f32 %v3873_v57, %v2068_v15 }
 0x161   : > { %v1748_v9 = vmul.f32 %v3564_v42, %v4479_v28  ;;  %v1795_v39 = vmul.f32 %v3568_v10, %v4481_v1  ;;  %v1721_v63 = vrot.slane %v1713_v31, 4  ;;  %v4482_v51 = vmov %v4479_v28 }
 0x162   : > { %v1697_v55 = vadd.f32 %v1689_v38, %v1665_v61  ;;  %v1765_v14 = vrot.slane %v1747_v6, 5  ;;  %v1796_v25 = vmul.f32 %v3568_v10, %v4482_v51  ;;  %v1909_v45 = vadd.f32 %v1901_v18, %v1877_v54 }
 0x163   : > { %v1766_v59 = vrot.slane %v1748_v9, 5  ;;  %v1813_v41 = vrot.slane %v1795_v39, 6  ;;  %v1834_v23 = vunpack.c.l.bf16 %v1830_v62  ;;  %v1854_v33 = vunpack.c.l.bf16 %v1850_v27 }
 0x164   : > { %v1729_v47 = vadd.f32 %v1721_v63, %v1697_v55  ;;  %v2083_v43 = vpack.c.bf16 %v2079_v26, %v2079_v26  ;;  %v1814_v36 = vrot.slane %v1796_v25, 6  ;;  %v1886_v44 = vunpack.c.l.bf16 %v1882_v29  ;;  %v4483_v55 = vld [vmem:[#allocation24_spill] sm:$0xff]  ;;  %v4486_v26 = vld [vmem:[#allocation49_spill] sm:$0xff] }
 0x165   : > { %v1767_v40 = vsel %vm533_vm2, %v1765_v14, %v1766_v59  ;;  %v1941_v12 = vadd.f32 %v1933_v16, %v1909_v45  ;;  %v1842_v35 = vmul.f32 %v3575_v22, %v1834_v23  ;;  %v1862_v11 = vmul.f32 %v3578_v13, %v1854_v33 }
 0x166   : > { %v1777_v46 = vadd.f32 %v1767_v40, %v1729_v47  ;;  %2088 = vst.msk [vmem:[%s3895_s18] sm:$0x3] %vm233_vm4, %v2083_v43  ;;  %v1815_v18 = vsel %vm582_vm3, %v1813_v41, %v1814_v36  ;;  %v1894_v49 = vmul.f32 %v4439_v0, %v1886_v44  ;;  %v1918_v19 = vunpack.c.l.bf16 %v1914_v32  ;;  %v4488_v32 = vld [vmem:[#allocation51_spill] sm:$0xff]  ;;  %v1831_v36 = vld [vmem:[#allocation2 + $0x48] sm:$0x3] }
 0x167   : > { %v1950_v61 = vunpack.c.l.bf16 %v1946_v24  ;;  %v1973_v34 = vadd.f32 %v1965_v3, %v1941_v12  ;;  %v1870_v31 = vrot.slane %v1862_v11, 1  ;;  %v1982_v56 = vunpack.c.l.bf16 %v1978_v48  ;;  %v4491_v12 = vld [vmem:[#allocation72_spill] sm:$0xff] }
 0x168   : > { %v1825_v16 = vadd.f32 %v1815_v18, %v1777_v46  ;;  %v2057_v4 = vsel %vm582_vm3, %v2055_v60, %v2056_v20  ;;  %v1926_v38 = vmul.f32 %v4441_v21, %v1918_v19  ;;  %v2030_v9 = vunpack.c.l.bf16 %v2026_v30  ;;  %v1851_v11 = vld [vmem:[#allocation2 + $0x48] sm:$0x7] }
 0x169   : > { %v1958_v8 = vmul.f32 %v4444_v58, %v1950_v61  ;;  %v1992_v6 = vmul.f32 %v4445_v52, %v1950_v61  ;;  %v2021_v15 = vadd.f32 %v2009_v17, %v1973_v34  ;;  %v1993_v28 = vmul.f32 %v4445_v52, %v1982_v56  ;;  %v4485_v17 = vld [vmem:[#allocation25_spill] sm:$0xff] }
 0x16a   : > { %v1846_v2 = vadd.f32 %v1842_v35, %v1825_v16  ;;  %v1902_v50 = vrot.slane %v1894_v49, 2  ;;  %v1934_v1 = vrot.slane %v1926_v38, 3  ;;  %v2041_v3 = vmul.f32 %v4446_v37, %v1982_v56  ;;  %v1883_v18 = vld [vmem:[#allocation2 + $0x48] sm:$0x6] }
 0x16b   : > { %v2010_v39 = vrot.slane %v1992_v6, 5  ;;  %v2069_v62 = vadd.f32 %v2057_v4, %v2021_v15  ;;  %v2011_v54 = vrot.slane %v1993_v28, 5  ;;  %v2040_v20 = vmul.f32 %v4446_v37, %v2030_v9  ;;  %v4493_v30 = vld [vmem:[#allocation53_spill] sm:$0xff] }
 0x16c   : > { %v1878_v27 = vadd.f32 %v1870_v31, %v1846_v2  ;;  %v1966_v60 = vrot.slane %v1958_v8, 4  ;;  %v4484_v63 = vrot.slane %v4483_v55, 1  ;;  %v1658_v29 = vrot.slane %v4485_v17, 2  ;;  %v1915_v8 = vld [vmem:[#allocation2 + $0x48] sm:$0xe] }
 0x16d   : > { %v4487_v59 = vunpack.c.l.bf16 %v4486_v26  ;;  %v2080_v25 = vadd.f32 %v3873_v57, %v2069_v62  ;;  %v2012_v45 = vsel %vm533_vm2, %v2010_v39, %v2011_v54  ;;  %v2059_v47 = vrot.slane %v2041_v3, 6  ;;  %v1947_v28 = vld [vmem:[#allocation2 + $0x48] sm:$0xc]  ;;  %v1979_v9 = vld [vmem:[#allocation2 + $0x4c] sm:$0x1] }
 0x16e   : > { %v1634_v14 = vadd.f32 %v4484_v63, %v3844_v53  ;;  %v1910_v41 = vadd.f32 %v1902_v50, %v1878_v27  ;;  %v4489_v24 = vunpack.c.l.bf16 %v4488_v32  ;;  %v2058_v48 = vrot.slane %v2040_v20, 6 }
 0x16f   : > { %v1682_v51 = vmul.f32 %v4427_v5, %v4487_v59  ;;  %v2084_v44 = vpack.c.bf16 %v2080_v25, %v2080_v25  ;;  %v4492_v46 = vunpack.c.l.bf16 %v4491_v12  ;;  %v4494_v34 = vunpack.c.l.bf16 %v4493_v30 }
 0x170   : > { %v1666_v23 = vadd.f32 %v1658_v29, %v1634_v14  ;;  %v1714_v43 = vmul.f32 %v3572_v7, %v4489_v24  ;;  %v4490_v53 = vmov %v4489_v24  ;;  %v1942_v5 = vadd.f32 %v1934_v1, %v1910_v41  ;;  %v2027_v14 = vld [vmem:[#allocation2 + $0x48] sm:$0x8] }
 0x171   : > { %v1690_v33 = vrot.slane %v1682_v51, 3  ;;  %v1749_v40 = vmul.f32 %v3564_v42, %v4490_v53  ;;  %v1750_v35 = vmul.f32 %v3564_v42, %v4492_v46  ;;  %v1797_v7 = vmul.f32 %v3568_v10, %v4494_v34  ;;  %2089 = vst.msk [vmem:[%s3895_s18 + $0x2] sm:$0x3] %vm233_vm4, %v2084_v44 }
 0x172   : > { %v1722_v19 = vrot.slane %v1714_v43, 4  ;;  %v1974_v16 = vadd.f32 %v1966_v60, %v1942_v5  ;;  %v4495_v56 = vmov %v4492_v46  ;;  %v1835_v38 = vunpack.c.l.bf16 %v1831_v36 }
 0x173   : > { %v1698_v49 = vadd.f32 %v1690_v33, %v1666_v23  ;;  %v1768_v61 = vrot.slane %v1749_v40, 5  ;;  %v1769_v31 = vrot.slane %v1750_v35, 5  ;;  %v1798_v4 = vmul.f32 %v3568_v10, %v4495_v56 }
 0x174   : > { %v1816_v6 = vrot.slane %v1797_v7, 6  ;;  %v1855_v15 = vunpack.c.l.bf16 %v1851_v11  ;;  %v1887_v2 = vunpack.c.l.bf16 %v1883_v18  ;;  %v2022_v50 = vadd.f32 %v2012_v45, %v1974_v16 }
 0x175   : > { %v1730_v42 = vadd.f32 %v1722_v19, %v1698_v49  ;;  %v2060_v1 = vsel %vm582_vm3, %v2058_v48, %v2059_v47  ;;  %v1770_v39 = vsel %vm533_vm2, %v1768_v61, %v1769_v31  ;;  %v1817_v3 = vrot.slane %v1798_v4, 6 }
 0x176   : > { %v1843_v27 = vmul.f32 %v3575_v22, %v1835_v38  ;;  %v1863_v54 = vmul.f32 %v3578_v13, %v1855_v15  ;;  %v1919_v10 = vunpack.c.l.bf16 %v1915_v8  ;;  %v2070_v20 = vadd.f32 %v2060_v1, %v2022_v50 }
 0x177   : > { %v1778_v62 = vadd.f32 %v1770_v39, %v1730_v42  ;;  %v1818_v60 = vsel %vm582_vm3, %v1816_v6, %v1817_v3  ;;  %v1951_v55 = vunpack.c.l.bf16 %v1947_v28  ;;  %v1983_v63 = vunpack.c.l.bf16 %v1979_v9 }
 0x178   : > { %v1871_v29 = vrot.slane %v1863_v54, 1  ;;  %v1895_v26 = vmul.f32 %v4439_v0, %v1887_v2  ;;  %v2081_v59 = vadd.f32 %v3873_v57, %v2070_v20  ;;  %v1927_v25 = vmul.f32 %v4441_v21, %v1919_v10 }
 0x179   : > { %v1826_v17 = vadd.f32 %v1818_v60, %v1778_v62  ;;  %v2031_v22 = vunpack.c.l.bf16 %v2027_v14  ;;  %v1994_v13 = vmul.f32 %v4445_v52, %v1951_v55  ;;  %v1995_v45 = vmul.f32 %v4445_v52, %v1983_v63 }
 0x17a   : > { %v2085_v41 = vpack.c.bf16 %v2081_v59, %v2081_v59  ;;  %v1903_v23 = vrot.slane %v1895_v26, 2  ;;  %v1959_v33 = vmul.f32 %v4444_v58, %v1951_v55  ;;  %v2043_v32 = vmul.f32 %v4446_v37, %v1983_v63 }
 0x17b   : > { %v1847_v51 = vadd.f32 %v1843_v27, %v1826_v17  ;;  %v2042_v0 = vmul.f32 %v4446_v37, %v2031_v22  ;;  %v1935_v21 = vrot.slane %v1927_v25, 3  ;;  %v2013_v43 = vrot.slane %v1994_v13, 5 }
 0x17c   : > { %2090 = vst.msk [vmem:[%s3895_s18 + $0x4] sm:$0x3] %vm233_vm4, %v2085_v41  ;;  %v2014_v53 = vrot.slane %v1995_v45, 5  ;;  %v1967_v52 = vrot.slane %v1959_v33, 4  ;;  %v2062_v44 = vrot.slane %v2043_v32, 6 }
 0x17d   : > { %v1879_v47 = vadd.f32 %v1871_v29, %v1847_v51  ;;  %v2061_v36 = vrot.slane %v2042_v0, 6 }
 0x17e   : > { %v2015_v58 = vsel %vm533_vm2, %v2013_v43, %v2014_v53 }
 0x17f   : > { %v1911_v24 = vadd.f32 %v1903_v23, %v1879_v47  ;;  %v2063_v12 = vsel %vm582_vm3, %v2061_v36, %v2062_v44 }
 0x181   : > { %v1943_v40 = vadd.f32 %v1935_v21, %v1911_v24 }
 0x183   : > { %v1975_v5 = vadd.f32 %v1967_v52, %v1943_v40 }
 0x185   : > { %v2023_v48 = vadd.f32 %v2015_v58, %v1975_v5 }
 0x187   : > { %v2071_v46 = vadd.f32 %v2063_v12, %v2023_v48 }
 0x189   : > { %v2082_v37 = vadd.f32 %v3873_v57, %v2071_v46 }
 0x18b   : > { %v2086_v35 = vpack.c.bf16 %v2082_v37, %v2082_v37 }
 0x18d   : > { %2091 = vst.msk [vmem:[%s3895_s18 + $0x6] sm:$0x3] %vm233_vm4, %v2086_v35 }
 0x18e   : > { %2396 = shalt.err (!%p2393_p2)
}
 0x18f   : > { %s2397_s25 = scalar_lea.hbm %s3959_s28, 128  ;;  %s2401_s24 = scalar_lea.hbm %s4008_s3, 256 }
 0x190   : > { %p2398_p13 = scmp.ne.s32.totalorder %s3959_s28, %s2397_s25  ;;  %p2402_p4 = scmp.lt.u32.totalorder %s3959_s28, %s4008_s3 }
 0x191   : > { %p2403_p5 = scmp.lt.u32.totalorder %s2401_s24, %s2397_s25  ;;  %p2405_p11 = scmp.lt.u32.totalorder %s2397_s25, %s3959_s28 }
 0x192   : > { %p2399_p6 = pnand %p2398_p13, %p4496_p0 }
 0x193   : > { %p2404_p8 = por %p2403_p5, %p2402_p4 }
 0x194   : > { %p2400_p10 = pneg %p2399_p6 }
 0x195   : > { %p2406_p1 = por %p2405_p11, %p2404_p8 }
 0x197   : > { %p2407_p3 = pnand %p2406_p1, %p2400_p10 }
 0x199   : > { %2410 = shalt.err (!%p2407_p3)
}
 0x19a   : > { %s2464_s4 = smov 32   ;;  %s2465_s18 = smov 2  }
 0x19b   : > { %2233 = dma.vmem_to_hbm [thread:$0]  (%p4496_p0), %s3953_s20, 128, %s3959_s28, %s2093_s23, %s2464_s4, %s2464_s4, %s2465_s18  }
 0x19c PF: > { %s2121_s21 = sand.u32 1, %s2441_s12   ;;  %p4497_p7 = scmp.ne.s32.totalorder %s4147_s19, 0 }
 0x19d   : > { %p4498_p9 = scmp.ge.s32.totalorder %s2453_s15, 2  ;;  %s2122_s26 = scalar_lea.sflag [#allocation5], %s2121_s21 }
 0x19f   : > { %p2247_p12 = pnand %p4498_p9, %p4497_p7 }
 0x1a1   : > { %2436 = dma.done.wait (!%p2247_p12), %s2122_s26, 128  }
 0x1a2   : > { %2438 = vsyncadd (!%p2247_p12), %s2122_s26, 4294967168  ;;  %p17_p2 = scmp.ge.s32.totalorder %s2597_s5, 4   ;;  %s4499_s12 = smov %s2445_s13 }
 0x1a3   : > { %s4500_s13 = smov %s2449_s14  ;;  %s4501_s14 = smov %s2613_s8 }
 0x1a4   : > { %s4502_s15 = smov %s2597_s5  ;;  %19 = sbr.rel (!%p17_p2) target bundleno = 6 (0x6), region = 92 }
 0x1ab   :  { %2127 = vsyncpa [#allocation4], 1 }
 0x1ac   :  { %2129 = vsyncpa [#allocation4 + $0x1], 1 }
 0x1ad   :  { %2130 = vsyncpa [#allocation7], 1 }
 0x1ae   :  { %2131 = vsyncpa [#allocation5], 1 }
 0x1af   :  { %2133 = vsyncpa [#allocation5 + $0x1], 1 }

// kernel: fwd.10
= control target key start
LH: loop header
LB: loop body
LE: loop exit
PB: predicated region body
PF: predicated region fallthrough
CT: control target
= control target key end

     0   :  { %8 = vsyncpa [#allocation4], 0  ;;  %s2157_s0 = inlined_call_operand.hbm [shape: bf16[2,2,2,64], index: 0, kind: input, shape index: {}]   ;;  %s2158_s1 = inlined_call_operand.hbm [shape: f32[7,7,64], index: 1, kind: input, shape index: {}]   ;;  %s2159_s2 = inlined_call_operand.hbm [shape: f32[1,1,1,64], index: 2, kind: input, shape index: {}]   ;;  %s2160_s3 = inlined_call_operand.hbm [shape: bf16[2,2,2,64], index: 3, kind: output, shape index: {}]  }
   0x1   :  { %10 = vsyncpa [#allocation4 + $0x1], 0 }
   0x2   :  { %11 = vsyncpa [#allocation7], 0 }
   0x3   :  { %12 = vsyncpa [#allocation5], 0 }
   0x4   :  { %14 = vsyncpa [#allocation5 + $0x1], 0  ;;  %s1560_s12 = smov 0   ;;  %s1562_s13 = smov 0  }
   0x5   :  { %s1564_s14 = smov 0   ;;  %s1566_s15 = smov 0  }
   0x6 LB: > { %s1581_s16 = sadd.s32 4294967295, %s1526_s15   ;;  %s1272_s17 = sadd.s32 4294967294, %s1526_s15   ;;  %s1526_s15 = sphi %s1566_s15, %s2193_s15   ;;  %s1522_s14 = sphi %s1564_s14, %s2192_s14   ;;  %s1518_s13 = sphi %s1562_s13, %s2191_s13   ;;  %s1514_s12 = sphi %s1560_s12, %s2190_s12  }
   0x7   : > { %p40_p0 = scmp.ne.s32.totalorder %s1518_s13, %s1514_s12  ;;  %p2161_p1 = scmp.eq.s32.totalorder %s1581_s16, 0 }
   0x8   : > { %p112_p3 = scmp.eq.s32.totalorder %s1272_s17, 1  ;;  %p1273_p5 = scmp.ge.s32.totalorder %s1526_s15, 1 }
   0x9   : > { %p1590_p4 = por %p2161_p1, %p40_p0  ;;  %p119_p7 = scmp.lt.s32.totalorder %s1526_s15, 3 }
   0xa   : > { %p1595_p6 = por %p112_p3, %p40_p0  ;;  %s1528_s21 = smov [#allocation6]  }
   0xb   : > { %s2164_s18 = scalar_select %p1590_p4, 1, 0 }
   0xc   : > { %s2165_s19 = scalar_select %p1595_p6, 1, 0 }
   0xd   : > { %p1600_p8 = pnand %p1273_p5, %p119_p7  ;;  %s131_s22 = sshll.u32 %s1528_s21, 4  ;;  %s1604_s22 = int_to_ptr.vmem [resolvable:$true] %s131_s22 }
   0xe   : > { %s1529_s24 = smov [#allocation8]   ;;  %s1370_s28 = scalar_lea.hbm %s2158_s1, 896 }
   0xf   : > { %p1307_p9 = pneg %p1600_p8  ;;  %s145_s25 = sshll.u32 %s1529_s24, 4  ;;  %s1615_s25 = int_to_ptr.vmem [resolvable:$true] %s145_s25 }
  0x10   : > { %p1371_p12 = scmp.ne.s32.totalorder %s2158_s1, %s1370_s28  ;;  %p1377_p5 = scmp.lt.u32.totalorder %s1370_s28, %s2158_s1 }
  0x11   : > { %p1611_p11 = pnand %p1307_p9, %p2161_p1 }
  0x13   : > { %p1372_p13 = pneg %p1611_p11 }
  0x15   : > { %p1373_p0 = pnand %p1372_p13, %p1371_p12 }
  0x17   : > { %p1374_p3 = pneg %p1373_p0 }
  0x19   : > { %p1379_p7 = pnand %p1377_p5, %p1374_p3 }
  0x1b   : > { %1382 = shalt.err (!%p1379_p7)
}
  0x1c   : > { %s1383_s6 = scalar_lea.vmem %s1604_s22, 896  ;;  %p1391_p2 = scmp.lt.s32.totalorder %s1604_s22, %s1604_s22 }
  0x1d   : > { %p1384_p9 = scmp.ne.s32.totalorder %s1604_s22, %s1383_s6  ;;  %p1392_p12 = scmp.lt.s32.totalorder %s1383_s6, %s1383_s6 }
  0x1f   : > { %p1386_p10 = pnand %p1384_p9, %p1372_p13  ;;  %p1393_p0 = por %p1392_p12, %p1391_p2 }
  0x21   : > { %p1387_p1 = pneg %p1386_p10 }
  0x23   : > { %p1394_p6 = pnand %p1393_p0, %p1387_p1 }
  0x25   : > { %1397 = shalt.err (!%p1394_p6)
}
  0x26   : > { %s1530_s7 = smov 128   ;;  %s1531_s8 = smov 8  }
  0x27   : > { %1310 = dma.hbm_to_vmem [thread:$0]  (!%p1611_p11), %s2158_s1, 896, %s1604_s22, [#allocation7], %s1530_s7, %s1530_s7, %s1531_s8  }
  0x28   : > { %s1398_s21 = scalar_lea.hbm %s2159_s2, 16 }
  0x29   : > { %p1399_p2 = scmp.ne.s32.totalorder %s2159_s2, %s1398_s21  ;;  %p1405_p10 = scmp.lt.u32.totalorder %s1398_s21, %s2159_s2 }
  0x2b   : > { %p1401_p1 = pnand %p1399_p2, %p1372_p13 }
  0x2d   : > { %p1402_p6 = pneg %p1401_p1 }
  0x2f   : > { %p1407_p3 = pnand %p1405_p10, %p1402_p6 }
  0x31   : > { %1410 = shalt.err (!%p1407_p3)
}
  0x32   : > { %s1411_s22 = scalar_lea.vmem %s1615_s25, 16  ;;  %s1418_s29 = scalar_lea.vmem %s1615_s25, 32 }
  0x33   : > { %p1412_p5 = scmp.ne.s32.totalorder %s1615_s25, %s1411_s22  ;;  %p1419_p12 = scmp.lt.s32.totalorder %s1615_s25, %s1615_s25 }
  0x34   : > { %p1420_p0 = scmp.lt.s32.totalorder %s1418_s29, %s1411_s22 }
  0x35   : > { %p1414_p7 = pnand %p1412_p5, %p1372_p13 }
  0x36   : > { %p1421_p2 = por %p1420_p0, %p1419_p12 }
  0x37   : > { %p1415_p9 = pneg %p1414_p7 }
  0x39   : > { %p1422_p1 = pnand %p1421_p2, %p1415_p9 }
  0x3b   : > { %1425 = shalt.err (!%p1422_p1)
}
  0x3c   : > { %1313 = dma.hbm_to_vmem [thread:$0]  (!%p1611_p11), %s2159_s2, 16, %s1615_s25, [#allocation7]  }
  0x3d   : > { %s1671_s5 = sadd.s32 1, %s1526_s15   ;;  %s27_s23 = sadd.s32 1, %s1522_s14 }
  0x3e   : > { %s24_s6 = ssub.s32 %s1526_s15, %s1671_s5  ;;  %p34_p13 = scmp.ne.s32.totalorder %s1522_s14, %s1518_s13 }
  0x3f   : > { %p25_p6 = scmp.eq.s32.totalorder %s24_s6, 0  ;;  %p35_p10 = scmp.eq.s32.totalorder %s1526_s15, 0 }
  0x40   : > { %p2168_p3 = scmp.eq.s32.totalorder %s1581_s16, 1  ;;  %p1324_p7 = scmp.lt.s32.totalorder %s1526_s15, 2 }
  0x41   : > { %s1687_s8 = scalar_select %p25_p6, %s1522_s14, %s27_s23  }
  0x42   : > { %p1681_p5 = por %p2168_p3, %p34_p13  ;;  %p36_p9 = por %p35_p10, %p34_p13 }
  0x43   : > { %s156_s9 = sand.u32 1, %s1522_s14   ;;  %s1293_s25 = sshll.u32 %s1526_s15, 5 }
  0x44   : > { %s2169_s7 = scalar_select %p1681_p5, 1, 0 }
  0x45   : > { %s1277_s10 = sshll.u32 %s156_s9, 1  ;;  %s1694_s21 = scalar_lea.hbm %s2157_s0, %s1293_s25 }
  0x46   : > { %s160_s24 = scalar_lea.vmem [#allocation3], %s1277_s10  ;;  %p1698_p11 = pnand %p1324_p7, %p36_p9 }
  0x47   : > { %s167_s26 = sshll.u32 %s160_s24, 4  ;;  %s1702_s28 = scalar_lea.sflag [#allocation4], %s156_s9  ;;  %s1696_s26 = int_to_ptr.vmem [resolvable:$true] %s167_s26 }
  0x48   : > { %s1426_s22 = scalar_lea.hbm %s1694_s21, 32  ;;  %p1428_p0 = pneg %p1698_p11 }
  0x49   : > { %p1427_p12 = scmp.ne.s32.totalorder %s1694_s21, %s1426_s22  ;;  %s1431_s4 = scalar_lea.hbm %s2157_s0, 64 }
  0x4a   : > { %p1432_p13 = scmp.lt.u32.totalorder %s1694_s21, %s2157_s0  ;;  %p1433_p6 = scmp.lt.u32.totalorder %s1431_s4, %s1426_s22 }
  0x4b   : > { %p1429_p2 = pnand %p1428_p0, %p1427_p12  ;;  %p1435_p3 = scmp.lt.u32.totalorder %s1426_s22, %s1694_s21 }
  0x4c   : > { %p1434_p10 = por %p1433_p6, %p1432_p13 }
  0x4d   : > { %p1430_p1 = pneg %p1429_p2 }
  0x4e   : > { %p1436_p7 = por %p1435_p3, %p1434_p10 }
  0x50   : > { %p1437_p9 = pnand %p1436_p7, %p1430_p1 }
  0x52   : > { %1440 = shalt.err (!%p1437_p9)
}
  0x53   : > { %s1441_s9 = scalar_lea.vmem %s1696_s26, 32  ;;  %s1532_s10 = smov [#allocation3]  }
  0x54   : > { %p1442_p12 = scmp.ne.s32.totalorder %s1696_s26, %s1441_s9  ;;  %s1446_s25 = sshll.u32 %s1532_s10, 4  ;;  %s1447_s25 = int_to_ptr.vmem [resolvable:$false] %s1446_s25 }
  0x55   : > { %s1448_s11 = scalar_lea.vmem %s1447_s25, 64  ;;  %p1449_p4 = scmp.lt.s32.totalorder %s1696_s26, %s1447_s25 }
  0x56   : > { %p1444_p2 = pnand %p1442_p12, %p1428_p0  ;;  %p1450_p13 = scmp.lt.s32.totalorder %s1448_s11, %s1441_s9 }
  0x58   : > { %p1445_p5 = pneg %p1444_p2  ;;  %p1451_p6 = por %p1450_p13, %p1449_p4 }
  0x5a   : > { %p1452_p10 = pnand %p1451_p6, %p1445_p5 }
  0x5c   : > { %1455 = shalt.err (!%p1452_p10)
}
  0x5d   : > { %s1533_s17 = smov 16   ;;  %s1534_s24 = smov 1  }
  0x5e   : > { %1317 = dma.hbm_to_vmem [thread:$0]  (!%p1698_p11), %s1694_s21, 32, %s1696_s26, %s1702_s28, %s1533_s17, %s1533_s17, %s1534_s24  }
  0x5f   : > { %179 = sbr.rel (%p1600_p8) target bundleno = 259 (0x103), region = 32  ;;  %s1733_s22 = sand.u32 (!%p1600_p8), 1, %s1518_s13  }
  0x60   : > { %s1281_s29 = sshll.u32 (!%p1600_p8), %s1733_s22, 1  ;;  %s182_s30 = scalar_lea.sflag (!%p1600_p8), [#allocation4], %s1733_s22 }
  0x61   : > { %s1739_s4 = scalar_lea.vmem (!%p1600_p8), [#allocation3], %s1281_s29  ;;  %p2171_p4 = scmp.ne.s32.totalorder (!%p1600_p8), %s2164_s18, 0 }
  0x66   : > { %1501 = dma.done.wait (%p2171_p4), %s182_s30, 32  }
  0x67   : > { %1503 = vsyncadd (%p2171_p4), %s182_s30, 4294967264  ;;  %p2172_p5 = scmp.eq.s32.totalorder %s1581_s16, 0 }
  0x69   : > { %1505 = dma.done.wait (%p2172_p5), [#allocation7], 912   ;;  %p2173_p8 = pmov %p2172_p5 }
  0x6a   : > { %vm217_vm0 = vcmask 519168   ;;  %v258_v0 = vlaneseq  ;;  %v1535_v1 = vmov 0   ;;  %v303_v8 = vld [vmem:[#allocation6] sm:$0x7f]  ;;  %v1779_v59 = vld [vmem:[#allocation6 + $0x8] sm:$0x7f] }
  0x6b   : > { %1507 = vsyncadd (%p2173_p8), [#allocation7], 4294966384  ;;  %218 = vst.msk [vmem:[#allocation2] sm:$0xf] %vm217_vm0, %v1535_v1  ;;  %vm226_vm1 = vcmask 517120   ;;  %vm235_vm4 = vcmask 519170  }
  0x6c   : > { %219 = vst.msk [vmem:[#allocation2 + $0x4] sm:$0xf] %vm217_vm0, %v1535_v1  ;;  %220 = vst.msk [vmem:[#allocation2 + $0x8] sm:$0xf] %vm217_vm0, %v1535_v1  ;;  %v1749_v2 = vshrl.u32 %v258_v0, 7  ;;  %vm294_vm7 = vcmask 518145  }
  0x6d   : > { %222 = vst.msk [vmem:[#allocation2 + $0x14] sm:$0xf] %vm217_vm0, %v1535_v1  ;;  %223 = vst.msk [vmem:[#allocation2 + $0x18] sm:$0xf] %vm217_vm0, %v1535_v1  ;;  %vm227_vm2 = vsmask.f32 1280 }
  0x6e   : > { %224 = vst.msk [vmem:[#allocation2 + $0x1c] sm:$0xf] %vm217_vm0, %v1535_v1  ;;  %v1752_v3 = vsub.s32 1, %v1749_v2  ;;  %v1755_v4 = vsub.s32 2, %v1749_v2  ;;  %v1758_v5 = vsub.s32 3, %v1749_v2  ;;  %v1761_v6 = vsub.s32 0, %v1749_v2  ;;  %vm1804_vm3 = vmand %vm226_vm1, %vm227_vm2 }
  0x6f   : > { %v1764_v7 = vsub.s32 4, %v1749_v2  ;;  %v1767_v9 = vsub.s32 5, %v1749_v2  ;;  %v1775_v26 = vsub.s32 6, %v1749_v2  ;;  %vm236_vm5 = vsmask.f32 7946  ;;  %s215_s18 = scalar_lea.vmem [#allocation9], %s1281_s29 }
  0x70   : > { %v327_v12 = vrot.slane %v303_v8, %v1752_v3  ;;  %v345_v14 = vrot.slane %v303_v8, %v1755_v4  ;;  %v363_v15 = vrot.slane %v303_v8, %v1758_v5  ;;  %v317_v17 = vrot.slane %v303_v8, %v1761_v6  ;;  %vm1814_vm6 = vmand %vm235_vm4, %vm236_vm5  ;;  %s1180_s20 = sshll.u32 %s215_s18, 4  ;;  %s1294_s21 = sshll.u32 %s1581_s16, 5  ;;  %s2107_s20 = int_to_ptr.vmem [resolvable:$true] %s1180_s20 }
  0x71   : > { %v381_v25 = vrot.slane %v303_v8, %v1764_v7  ;;  %v399_v34 = vrot.slane %v303_v8, %v1767_v9  ;;  %v417_v44 = vrot.slane %v303_v8, %v1775_v26  ;;  %vm295_vm8 = vsmask.f32 2310  ;;  %s2112_s28 = scalar_lea.hbm %s2160_s3, %s1294_s21  ;;  %s1167_s23 = scalar_lea.sflag [#allocation5], %s1733_s22 }
  0x72   : > { %v310_v10 = vld [vmem:[#allocation2] sm:$0x1]  ;;  %v338_v13 = vld [vmem:[#allocation2] sm:$0x2]  ;;  %v374_v21 = vld [vmem:[#allocation2] sm:$0x4] }
  0x73   : > { %v320_v11 = vld [vmem:[#allocation2] sm:$0x3]  ;;  %v312_v16 = vunpack.c.l.bf16 %v310_v10  ;;  %v340_v19 = vunpack.c.l.bf16 %v338_v13  ;;  %v392_v22 = vld [vmem:[#allocation2] sm:$0xc]  ;;  %v376_v24 = vunpack.c.l.bf16 %v374_v21  ;;  %v311_v27 = vld [vmem:[#allocation2 + $0x4] sm:$0x1] }
  0x74   : > { %v322_v18 = vunpack.c.l.bf16 %v320_v11  ;;  %v356_v20 = vld [vmem:[#allocation2] sm:$0x6]  ;;  %v321_v28 = vld [vmem:[#allocation2 + $0x4] sm:$0x3]  ;;  %v410_v31 = vld [vmem:[#allocation2] sm:$0x8]  ;;  %v394_v33 = vunpack.c.l.bf16 %v392_v22  ;;  %v313_v38 = vunpack.c.l.bf16 %v311_v27 }
  0x75   : > { %v358_v23 = vunpack.c.l.bf16 %v356_v20  ;;  %v346_v30 = vmul.f32 %v345_v14, %v340_v19  ;;  %v339_v35 = vld [vmem:[#allocation2 + $0x4] sm:$0x2]  ;;  %v318_v36 = vmul.f32 %v317_v17, %v312_v16  ;;  %v323_v39 = vunpack.c.l.bf16 %v321_v28  ;;  %v375_v41 = vld [vmem:[#allocation2 + $0x4] sm:$0x4]  ;;  %v429_v61 = vld [vmem:[#allocation2 + $0x4] sm:$0x1] }
  0x76   : > { %v328_v29 = vmul.f32 %v327_v12, %v322_v18  ;;  %v357_v40 = vld [vmem:[#allocation2 + $0x4] sm:$0x6]  ;;  %v382_v42 = vmul.f32 %v381_v25, %v376_v24  ;;  %v412_v43 = vunpack.c.l.bf16 %v410_v31  ;;  %v341_v48 = vunpack.c.l.bf16 %v339_v35  ;;  %v411_v27 = vld [vmem:[#allocation2 + $0x4] sm:$0x8]  ;;  %vm1872_vm9 = vmand %vm294_vm7, %vm295_vm8  ;;  %s1456_s6 = scalar_lea.vmem %s2107_s20, 32  ;;  %p2187_p0 = scmp.ne.s32.totalorder %s2169_s7, 0 }
  0x77   : > { %v364_v32 = vmul.f32 %v363_v15, %v358_v23  ;;  %v350_v46 = vrot.slane %v346_v30, 2  ;;  %v329_v47 = vmul.f32 %v327_v12, %v323_v39  ;;  %v400_v50 = vmul.f32 %v399_v34, %v394_v33  ;;  %v393_v57 = vld [vmem:[#allocation2 + $0x4] sm:$0xc]  ;;  %v441_v8 = vld [vmem:[#allocation2 + $0x4] sm:$0x3]  ;;  %p1457_p11 = scmp.ne.s32.totalorder %s2107_s20, %s1456_s6  ;;  %s1537_s16 = smov [#allocation9]  }
  0x78   : > { %v332_v37 = vrot.slane %v328_v29, 1  ;;  %v359_v51 = vunpack.c.l.bf16 %v357_v40  ;;  %v377_v52 = vunpack.c.l.bf16 %v375_v41  ;;  %v319_v54 = vmul.f32 %v317_v17, %v313_v38  ;;  %v459_v10 = vld [vmem:[#allocation2 + $0x4] sm:$0x2]  ;;  %v495_v33 = vld [vmem:[#allocation2 + $0x4] sm:$0x4]  ;;  %s1460_s9 = sshll.u32 %s1537_s16, 4  ;;  %s1461_s9 = int_to_ptr.vmem [resolvable:$false] %s1460_s9 }
  0x79   : > { %v368_v49 = vrot.slane %v364_v32, 3  ;;  %v333_v55 = vrot.slane %v329_v47, 1  ;;  %v347_v56 = vmul.f32 %v345_v14, %v341_v48  ;;  %v386_v58 = vrot.slane %v382_v42, 4  ;;  %v477_v22 = vld [vmem:[#allocation2 + $0x4] sm:$0x6]  ;;  %p1458_p1 = pnand %p1457_p11, %p2187_p0  ;;  %s1462_s10 = scalar_lea.vmem %s1461_s9, 64 }
  0x7a   : > { %v336_v45 = vadd.f32 %v332_v37, %v318_v36  ;;  %v365_v60 = vmul.f32 %v363_v15, %v359_v51  ;;  %v418_v63 = vmul.f32 %v417_v44, %v412_v43  ;;  %v404_v11 = vrot.slane %v400_v50, 5  ;;  %p1463_p7 = scmp.lt.s32.totalorder %s2107_s20, %s1461_s9  ;;  %p1464_p9 = scmp.lt.s32.totalorder %s1462_s10, %s1456_s6 }
  0x7b   : > { %v337_v0 = vadd.f32 %v333_v55, %v319_v54  ;;  %v351_v1 = vrot.slane %v347_v56, 2  ;;  %v383_v12 = vmul.f32 %v381_v25, %v377_v52  ;;  %v395_v13 = vunpack.c.l.bf16 %v393_v57  ;;  %v513_v52 = vld [vmem:[#allocation2 + $0x4] sm:$0xc]  ;;  %p1459_p3 = pneg %p1458_p1 }
  0x7c   : > { %v354_v53 = vadd.f32 %v350_v46, %v336_v45  ;;  %v431_v17 = vunpack.c.l.bf16 %v429_v61  ;;  %v436_v14 = vrot.slane %v1779_v59, %v1761_v6  ;;  %v369_v19 = vrot.slane %v365_v60, 3  ;;  %v430_v45 = vld [vmem:[#allocation2 + $0x8] sm:$0x1]  ;;  %p1465_p12 = por %p1464_p9, %p1463_p7 }
  0x7d   : > { %v355_v18 = vadd.f32 %v351_v1, %v337_v0  ;;  %v443_v20 = vunpack.c.l.bf16 %v441_v8  ;;  %v448_v15 = vrot.slane %v1779_v59, %v1752_v3  ;;  %v461_v21 = vunpack.c.l.bf16 %v459_v10  ;;  %v442_v46 = vld [vmem:[#allocation2 + $0x8] sm:$0x3] }
  0x7e   : > { %v372_v62 = vadd.f32 %v368_v49, %v354_v53  ;;  %v422_v24 = vrot.slane %v418_v63, 6  ;;  %v466_v25 = vrot.slane %v1779_v59, %v1755_v4  ;;  %v437_v31 = vmul.f32 %v436_v14, %v431_v17  ;;  %v531_v63 = vld [vmem:[#allocation2 + $0x4] sm:$0x8]  ;;  %v460_v0 = vld [vmem:[#allocation2 + $0x8] sm:$0x2]  ;;  %p1466_p2 = pnand %p1465_p12, %p1459_p3 }
  0x7f   : > { %v373_v28 = vadd.f32 %v369_v19, %v355_v18  ;;  %v449_v29 = vmul.f32 %v448_v15, %v443_v20  ;;  %v479_v32 = vunpack.c.l.bf16 %v477_v22  ;;  %v387_v35 = vrot.slane %v383_v12, 4 }
  0x80   : > { %v390_v16 = vadd.f32 %v386_v58, %v372_v62  ;;  %v401_v36 = vmul.f32 %v399_v34, %v395_v13  ;;  %v413_v37 = vunpack.c.l.bf16 %v411_v27  ;;  %v467_v38 = vmul.f32 %v466_v25, %v461_v21 }
  0x81   : > { %v453_v40 = vrot.slane %v449_v29, 1  ;;  %v484_v41 = vrot.slane %v1779_v59, %v1758_v5  ;;  %v391_v42 = vadd.f32 %v387_v35, %v373_v28  ;;  %v497_v43 = vunpack.c.l.bf16 %v495_v33  ;;  %v550_v29 = vld [vmem:[#allocation2 + $0x8] sm:$0x1]  ;;  %v580_v35 = vld [vmem:[#allocation2 + $0x8] sm:$0x2] }
  0x82   : > { %v408_v23 = vadd.f32 %v404_v11, %v390_v16  ;;  %v471_v48 = vrot.slane %v467_v38, 2  ;;  %v1791_v50 = vrot.slane %v1779_v59, %v1764_v7  ;;  %v405_v51 = vrot.slane %v401_v36, 5  ;;  %v478_v11 = vld [vmem:[#allocation2 + $0x8] sm:$0x6]  ;;  %v1887_v28 = vld [vmem:[#allocation2 + $0x14] sm:$0x8] }
  0x83   : > { %v485_v49 = vmul.f32 %v484_v41, %v479_v32  ;;  %v419_v34 = vmul.f32 %v417_v44, %v413_v37  ;;  %v432_v55 = vunpack.c.l.bf16 %v430_v45  ;;  %v444_v56 = vunpack.c.l.bf16 %v442_v46  ;;  %v598_v36 = vld [vmem:[#allocation2 + $0x8] sm:$0x6] }
  0x84   : > { %v426_v30 = vadd.f32 %v422_v24, %v408_v23  ;;  %v409_v54 = vadd.f32 %v405_v51, %v391_v42  ;;  %v503_v58 = vmul.f32 %v1791_v50, %v497_v43  ;;  %v515_v60 = vunpack.c.l.bf16 %v513_v52  ;;  %v514_v42 = vld [vmem:[#allocation2 + $0x8] sm:$0xc] }
  0x85   : > { %v489_v57 = vrot.slane %v485_v49, 3  ;;  %v1796_v61 = vrot.slane %v1779_v59, %v1767_v9  ;;  %v423_v62 = vrot.slane %v419_v34, 6  ;;  %v438_v10 = vmul.f32 %v436_v14, %v432_v55  ;;  %v496_v14 = vld [vmem:[#allocation2 + $0x8] sm:$0x4]  ;;  %v532_v52 = vld [vmem:[#allocation2 + $0x8] sm:$0x8] }
  0x86   : > { %v439_v39 = vadd.f32 %v437_v31, %v426_v30  ;;  %v450_v44 = vmul.f32 %v448_v15, %v444_v56  ;;  %v507_v12 = vrot.slane %v503_v58, 4  ;;  %v533_v16 = vunpack.c.l.bf16 %v531_v63  ;;  %v562_v30 = vld [vmem:[#allocation2 + $0x8] sm:$0x3]  ;;  %v229_v31 = vld [vmem:[#allocation2 + $0xc] sm:$0x3] }
  0x87   : > { %v427_v8 = vadd.f32 %v423_v62, %v409_v54  ;;  %v521_v13 = vmul.f32 %v1796_v61, %v515_v60  ;;  %v1801_v18 = vrot.slane %v1779_v59, %v1775_v26  ;;  %v462_v17 = vunpack.c.l.bf16 %v460_v0  ;;  %v616_v54 = vld [vmem:[#allocation2 + $0x8] sm:$0x4]  ;;  %v1285_v63 = vld.sshfl [vmem:[%s1739_s4] sm:$0x1 pattern:$0x73625140] }
  0x88   : > { %v457_v47 = vadd.f32 %v453_v40, %v439_v39  ;;  %v1536_v19 = vmov 1935823168   ;;  %v454_v23 = vrot.slane %v450_v44, 1  ;;  %v480_v24 = vunpack.c.l.bf16 %v478_v11  ;;  %v1808_v40 = vld [vmem:[#allocation6 + $0x10] sm:$0x7f] }
  0x89   : > { %v256_v20 = vunpack.c.l.s4 %v1536_v19  ;;  %v440_v22 = vadd.f32 %v438_v10, %v427_v8  ;;  %v525_v15 = vrot.slane %v521_v13, 5  ;;  %v539_v27 = vmul.f32 %v1801_v18, %v533_v16  ;;  %v634_v13 = vld [vmem:[#allocation2 + $0x8] sm:$0xc] }
  0x8a   : > { %v475_v53 = vadd.f32 %v471_v48, %v457_v47  ;;  %v468_v59 = vmul.f32 %v466_v25, %v462_v17  ;;  %v486_v38 = vmul.f32 %v484_v41, %v480_v24  ;;  %v498_v39 = vunpack.c.l.bf16 %v496_v14  ;;  %v238_v48 = vld [vmem:[#allocation2 + $0xc] sm:$0xc]  ;;  %v652_v24 = vld [vmem:[#allocation2 + $0x8] sm:$0x8] }
  0x8b   : > { %v257_v32 = vunpack.c.0.s8 %v256_v20  ;;  %v458_v37 = vadd.f32 %v454_v23, %v440_v22  ;;  %v543_v43 = vrot.slane %v539_v27, 6  ;;  %v552_v45 = vunpack.c.l.bf16 %v550_v29  ;;  %v1851_v29 = vld [vmem:[#allocation2 + $0x14] sm:$0x1] }
  0x8c   : > { %v493_v1 = vadd.f32 %v489_v57, %v475_v53  ;;  %v564_v46 = vunpack.c.l.bf16 %v562_v30  ;;  %v230_v47 = vsel %vm1804_vm3, 0, %v229_v31  ;;  %v472_v49 = vrot.slane %v468_v59, 2  ;;  %v1853_v30 = vld [vmem:[#allocation2 + $0x14] sm:$0x3] }
  0x8d   : > { %v582_v41 = vunpack.c.l.bf16 %v580_v35  ;;  %v600_v51 = vunpack.c.l.bf16 %v598_v36  ;;  %231 = vst [vmem:[#allocation2 + $0xc] sm:$0x3] %v230_v47  ;;  %v1819_v34 = vsub.s32 %v257_v32, %v1749_v2  ;;  %v1823_v55 = vrot.slane %v1808_v40, %v1761_v6  ;;  %v1861_v36 = vld [vmem:[#allocation2 + $0x14] sm:$0x2] }
  0x8e   : > { %v511_v21 = vadd.f32 %v507_v12, %v493_v1  ;;  %v1827_v56 = vrot.slane %v1808_v40, %v1752_v3  ;;  %v1831_v57 = vrot.slane %v1808_v40, %v1755_v4  ;;  %v504_v58 = vmul.f32 %v1791_v50, %v498_v39 }
  0x8f   : > { %v516_v60 = vunpack.c.l.bf16 %v514_v42  ;;  %v1836_v2 = vrot.slane %v1808_v40, %v1758_v5  ;;  %v239_v62 = vsel %vm1814_vm6, 0, %v238_v48  ;;  %v476_v0 = vadd.f32 %v472_v49, %v458_v37  ;;  %v241_v42 = vld [vmem:[#allocation2 + $0x10] sm:$0xc]  ;;  %v1864_v48 = vld [vmem:[#allocation2 + $0x14] sm:$0x6] }
  0x90   : > { %v529_v33 = vadd.f32 %v525_v15, %v511_v21  ;;  %v490_v1 = vrot.slane %v486_v38, 3  ;;  %v558_v8 = vmul.f32 %v1823_v55, %v552_v45  ;;  %240 = vst [vmem:[#allocation2 + $0xc] sm:$0xc] %v239_v62  ;;  %v570_v10 = vmul.f32 %v1827_v56, %v564_v46 }
  0x91   : > { %v534_v44 = vunpack.c.l.bf16 %v532_v52  ;;  %v618_v11 = vunpack.c.l.bf16 %v616_v54  ;;  %v1845_v50 = vrot.slane %v1808_v40, %v1764_v7  ;;  %v588_v12 = vmul.f32 %v1831_v57, %v582_v41  ;;  %v1286_v46 = vld.sshfl [vmem:[%s1739_s4 + $0x1] sm:$0x1 pattern:$0x73625140]  ;;  %v1880_v54 = vld [vmem:[#allocation2 + $0x14] sm:$0xc] }
  0x92   : > { %v547_v53 = vadd.f32 %v543_v43, %v529_v33  ;;  %v606_v17 = vmul.f32 %v1836_v2, %v600_v51  ;;  %v574_v19 = vrot.slane %v570_v10, 1  ;;  %v261_v20 = vrot.slane %v1285_v63, %v1819_v34  ;;  %v232_v33 = vld [vmem:[#allocation2 + $0x10] sm:$0x3] }
  0x93   : > { %v508_v21 = vrot.slane %v504_v58, 4  ;;  %v522_v22 = vmul.f32 %v1796_v61, %v516_v60  ;;  %v494_v23 = vadd.f32 %v490_v1, %v476_v0  ;;  %v592_v15 = vrot.slane %v588_v12, 2 }
  0x94   : > { %v560_v16 = vadd.f32 %v558_v8, %v547_v53  ;;  %v277_v27 = vshrl.u32 %v261_v20, 16  ;;  %v636_v59 = vunpack.c.l.bf16 %v634_v13  ;;  %v1857_v31 = vrot.slane %v1808_v40, %v1767_v9  ;;  %v1878_v53 = vld [vmem:[#allocation2 + $0x14] sm:$0x4]  ;;  %v551_v12 = vld [vmem:[#allocation2 + $0xc] sm:$0x1] }
  0x95   : > { %v624_v32 = vmul.f32 %v1845_v50, %v618_v11  ;;  %v280_v61 = vshll.u32 %v261_v20, 16  ;;  %v540_v35 = vmul.f32 %v1801_v18, %v534_v44  ;;  %v610_v38 = vrot.slane %v606_v17, 3  ;;  %v1890_v44 = vld [vmem:[#allocation2 + $0x14] sm:$0x1]  ;;  %v306_v11 = vld [vmem:[#allocation6 + $0x18] sm:$0x7f] }
  0x96   : > { %v578_v14 = vadd.f32 %v574_v19, %v560_v16  ;;  %v279_v39 = vrot.slane %v277_v27, 6  ;;  %v654_v43 = vunpack.c.l.bf16 %v652_v24  ;;  %v512_v47 = vadd.f32 %v508_v21, %v494_v23  ;;  %v1895_v17 = vld [vmem:[#allocation6 + $0x28] sm:$0x7f]  ;;  %v1900_v24 = vld [vmem:[#allocation2 + $0x18] sm:$0x1] }
  0x97   : > { %v282_v45 = vrot.slane %v280_v61, 7  ;;  %v1868_v49 = vrot.slane %v1808_v40, %v1775_v26  ;;  %v297_v51 = vld [vmem:[#allocation2 + $0xc] sm:$0x6]  ;;  %v233_v52 = vsel %vm1804_vm3, 0, %v232_v33  ;;  %v642_v58 = vmul.f32 %v1857_v31, %v636_v59  ;;  %v670_v23 = vld [vmem:[#allocation2 + $0xc] sm:$0x1] }
  0x98   : > { %v596_v37 = vadd.f32 %v592_v15, %v578_v14  ;;  %v628_v60 = vrot.slane %v624_v32, 4  ;;  %234 = vst [vmem:[#allocation2 + $0x10] sm:$0x3] %v233_v52  ;;  %v242_v62 = vsel %vm1814_vm6, 0, %v241_v42  ;;  %v526_v63 = vrot.slane %v522_v22, 5 }
  0x99   : > { %v283_v40 = vor.u32 %v282_v45, %v279_v39  ;;  %v544_v0 = vrot.slane %v540_v35, 6  ;;  %v806_v8 = vunpack.c.l.bf16 %v1853_v30  ;;  %243 = vst [vmem:[#allocation2 + $0x10] sm:$0xc] %v242_v62  ;;  %v275_v16 = vrot.slane %v1286_v46, %v1819_v34 }
  0x9a   : > { %v614_v41 = vadd.f32 %v610_v38, %v596_v37  ;;  %v530_v19 = vadd.f32 %v526_v63, %v512_v47  ;;  %v660_v14 = vmul.f32 %v1868_v49, %v654_v43  ;;  %v646_v15 = vrot.slane %v642_v58, 5  ;;  %v653_v37 = vld [vmem:[#allocation2 + $0xc] sm:$0x8] }
  0x9b   : > { %v298_v25 = vsel %vm1872_vm9, %v283_v40, %v297_v51  ;;  %v285_v27 = vshrl.u32 %v275_v16, 16  ;;  %v288_v59 = vshll.u32 %v275_v16, 16  ;;  %v913_v32 = vunpack.c.l.bf16 %v1890_v44  ;;  %v772_v47 = vld [vmem:[#allocation2 + $0xc] sm:$0x8] }
  0x9c   : > { %v632_v13 = vadd.f32 %v628_v60, %v614_v41  ;;  %299 = vst [vmem:[#allocation2 + $0xc] sm:$0x6] %v298_v25  ;;  %v553_v61 = vunpack.c.l.bf16 %v551_v12  ;;  %v1906_v33 = vrot.slane %v306_v11, %v1761_v6  ;;  %v672_v35 = vunpack.c.l.bf16 %v670_v23 }
  0x9d   : > { %v287_v39 = vrot.slane %v285_v27, 6  ;;  %v290_v42 = vrot.slane %v288_v59, 7  ;;  %v548_v45 = vadd.f32 %v544_v0, %v530_v19  ;;  %v1911_v43 = vrot.slane %v1895_v17, %v1761_v6 }
  0x9e   : > { %v650_v38 = vadd.f32 %v646_v15, %v632_v13  ;;  %v1914_v41 = vrot.slane %v306_v11, %v1775_v26  ;;  %v664_v51 = vrot.slane %v660_v14, 6  ;;  %v1917_v52 = vrot.slane %v306_v11, %v1752_v3  ;;  %v1929_v13 = vld [vmem:[#allocation6 + $0x20] sm:$0x7f] }
  0x9f   : > { %v1920_v58 = vrot.slane %v306_v11, %v1755_v4  ;;  %v291_v60 = vor.u32 %v290_v42, %v287_v39  ;;  %v559_v62 = vmul.f32 %v1823_v55, %v553_v61  ;;  %v655_v63 = vunpack.c.l.bf16 %v653_v37 }
  0xa0   : > { %v300_v40 = vld [vmem:[#allocation2 + $0x10] sm:$0x6]  ;;  %v1924_v0 = vrot.slane %v306_v11, %v1758_v5  ;;  %v1927_v12 = vrot.slane %v306_v11, %v1764_v7  ;;  %v678_v25 = vmul.f32 %v1906_v33, %v672_v35  ;;  %v774_v16 = vunpack.c.l.bf16 %v772_v47 }
  0xa1   : > { %v668_v19 = vadd.f32 %v664_v51, %v650_v38  ;;  %v301_v27 = vsel %vm1872_vm9, %v291_v60, %v300_v40  ;;  %v1935_v42 = vrot.slane %v306_v11, %v1767_v9  ;;  %v561_v34 = vadd.f32 %v559_v62, %v548_v45 }
  0xa2   : > { %302 = vst [vmem:[#allocation2 + $0x10] sm:$0x6] %v301_v27  ;;  %v1939_v21 = vrot.slane %v1929_v13, %v1761_v6  ;;  %v1942_v18 = vmul.f32 %v1868_v49, %v655_v63  ;;  %vm1163_vm10 = vcmask 516096  }
  0xa3   : > { %v563_v23 = vld [vmem:[#allocation2 + $0xc] sm:$0x3]  ;;  %v617_v37 = vld [vmem:[#allocation2 + $0xc] sm:$0x4]  ;;  %v680_v45 = vadd.f32 %v678_v25, %v668_v19 }
  0xa4   : > { %v581_v14 = vld [vmem:[#allocation2 + $0xc] sm:$0x2]  ;;  %v565_v55 = vunpack.c.l.bf16 %v563_v23  ;;  %v619_v22 = vunpack.c.l.bf16 %v617_v37  ;;  %v635_v35 = vld [vmem:[#allocation2 + $0xc] sm:$0xc]  ;;  %v1947_v23 = vmul.f32 %v1914_v41, %v774_v16  ;;  %v1956_v16 = vrot.slane %v1929_v13, %v1775_v26 }
  0xa5   : > { %v599_v15 = vld [vmem:[#allocation2 + $0xc] sm:$0x6]  ;;  %v583_v59 = vunpack.c.l.bf16 %v581_v14  ;;  %v637_v20 = vunpack.c.l.bf16 %v635_v35  ;;  %v1961_v35 = vrot.slane %v1929_v13, %v1752_v3 }
  0xa6   : > { %v601_v61 = vunpack.c.l.bf16 %v599_v15  ;;  %v682_v39 = vld [vmem:[#allocation2 + $0xc] sm:$0x3]  ;;  %v571_v60 = vmul.f32 %v1827_v56, %v565_v55  ;;  %v736_v15 = vld [vmem:[#allocation2 + $0xc] sm:$0x4]  ;;  %v625_v56 = vmul.f32 %v1845_v50, %v619_v22 }
  0xa7   : > { %v684_v47 = vunpack.c.l.bf16 %v682_v39  ;;  %v700_v38 = vld [vmem:[#allocation2 + $0xc] sm:$0x2]  ;;  %v589_v40 = vmul.f32 %v1831_v57, %v583_v59  ;;  %v754_v27 = vld [vmem:[#allocation2 + $0xc] sm:$0xc]  ;;  %v738_v55 = vunpack.c.l.bf16 %v736_v15 }
  0xa8   : > { %v718_v51 = vld [vmem:[#allocation2 + $0xc] sm:$0x6]  ;;  %v702_v11 = vunpack.c.l.bf16 %v700_v38  ;;  %v575_v37 = vrot.slane %v571_v60, 1  ;;  %v607_v39 = vmul.f32 %v1836_v2, %v601_v61  ;;  %v756_v59 = vunpack.c.l.bf16 %v754_v27 }
  0xa9   : > { %v690_v62 = vmul.f32 %v1917_v52, %v684_v47  ;;  %v720_v14 = vunpack.c.l.bf16 %v718_v51  ;;  %v593_v19 = vrot.slane %v589_v40, 2  ;;  %v665_v47 = vrot.slane %v1942_v18, 6  ;;  %v683_v61 = vld [vmem:[#allocation2 + $0x10] sm:$0x3]  ;;  %v857_v1 = vld [vmem:[#allocation2 + $0x10] sm:$0x4] }
  0xaa   : > { %v708_v49 = vmul.f32 %v1920_v58, %v702_v11  ;;  %v579_v25 = vadd.f32 %v575_v37, %v561_v34  ;;  %v611_v22 = vrot.slane %v607_v39, 3  ;;  %v643_v51 = vmul.f32 %v1857_v31, %v637_v20  ;;  %v671_v11 = vld [vmem:[#allocation2 + $0x10] sm:$0x1] }
  0xab   : > { %v694_v63 = vrot.slane %v690_v62, 1  ;;  %v726_v57 = vmul.f32 %v1924_v0, %v720_v14  ;;  %v744_v60 = vmul.f32 %v1927_v12, %v738_v55  ;;  %v784_v34 = vrot.slane %v1947_v23, 6  ;;  %v803_v14 = vld [vmem:[#allocation2 + $0x10] sm:$0x3] }
  0xac   : > { %v712_v2 = vrot.slane %v708_v49, 2  ;;  %v597_v50 = vadd.f32 %v593_v19, %v579_v25  ;;  %v762_v18 = vmul.f32 %v1935_v42, %v756_v59  ;;  %v629_v27 = vrot.slane %v625_v56, 4  ;;  %v791_v37 = vld [vmem:[#allocation2 + $0x10] sm:$0x1]  ;;  %v719_v25 = vld [vmem:[#allocation2 + $0x10] sm:$0x6] }
  0xad   : > { %v698_v38 = vadd.f32 %v694_v63, %v680_v45  ;;  %v730_v62 = vrot.slane %v726_v57, 3  ;;  %v701_v45 = vld [vmem:[#allocation2 + $0x10] sm:$0x2]  ;;  %v685_v49 = vunpack.c.l.bf16 %v683_v61  ;;  %v1969_v39 = vrot.slane %v1929_v13, %v1755_v4 }
  0xae   : > { %v615_v15 = vadd.f32 %v611_v22, %v597_v50  ;;  %v748_v20 = vrot.slane %v744_v60, 4  ;;  %v673_v63 = vunpack.c.l.bf16 %v671_v11  ;;  %v821_v19 = vld [vmem:[#allocation2 + $0x10] sm:$0x2]  ;;  %v1973_v23 = vrot.slane %v1929_v13, %v1758_v5  ;;  %v737_v22 = vld [vmem:[#allocation2 + $0x10] sm:$0x4] }
  0xaf   : > { %v716_v40 = vadd.f32 %v712_v2, %v698_v38  ;;  %v647_v55 = vrot.slane %v643_v51, 5  ;;  %v703_v59 = vunpack.c.l.bf16 %v701_v45  ;;  %v805_v38 = vunpack.c.l.bf16 %v803_v14  ;;  %v839_v56 = vld [vmem:[#allocation2 + $0x10] sm:$0x6] }
  0xb0   : > { %v633_v57 = vadd.f32 %v629_v27, %v615_v15  ;;  %v766_v61 = vrot.slane %v762_v18, 5  ;;  %v793_v50 = vunpack.c.l.bf16 %v791_v37  ;;  %v691_v11 = vmul.f32 %v1917_v52, %v685_v49  ;;  %v755_v15 = vld [vmem:[#allocation2 + $0x10] sm:$0xc] }
  0xb1   : > { %v734_v31 = vadd.f32 %v730_v62, %v716_v40  ;;  %v1977_v40 = vrot.slane %v1929_v13, %v1764_v7  ;;  %v721_v62 = vunpack.c.l.bf16 %v719_v25  ;;  %v823_v10 = vunpack.c.l.bf16 %v821_v19  ;;  %v773_v25 = vld [vmem:[#allocation2 + $0x10] sm:$0x8] }
  0xb2   : > { %v651_v60 = vadd.f32 %v647_v55, %v633_v57  ;;  %v811_v51 = vmul.f32 %v1961_v35, %v805_v38  ;;  %v841_v45 = vunpack.c.l.bf16 %v839_v56  ;;  %v1983_v18 = vrot.slane %v1929_v13, %v1767_v9  ;;  %v893_v38 = vld [vmem:[#allocation2 + $0x10] sm:$0x8] }
  0xb3   : > { %v752_v2 = vadd.f32 %v748_v20, %v734_v31  ;;  %v679_v27 = vmul.f32 %v1906_v33, %v673_v63  ;;  %v709_v37 = vmul.f32 %v1920_v58, %v703_v59  ;;  %v739_v31 = vunpack.c.l.bf16 %v737_v22  ;;  %v875_v20 = vld [vmem:[#allocation2 + $0x10] sm:$0xc]  ;;  %v1991_v59 = vld [vmem:[#allocation2 + $0x18] sm:$0x3] }
  0xb4   : > { %v669_v14 = vadd.f32 %v665_v47, %v651_v60  ;;  %v799_v49 = vmul.f32 %v1939_v21, %v793_v50  ;;  %v829_v19 = vmul.f32 %v1969_v39, %v823_v10  ;;  %v859_v57 = vunpack.c.l.bf16 %v857_v1  ;;  %v923_v47 = vld [vmem:[#allocation2 + $0x14] sm:$0x3] }
  0xb5   : > { %v770_v46 = vadd.f32 %v766_v61, %v752_v2  ;;  %v695_v56 = vrot.slane %v691_v11, 1  ;;  %v727_v13 = vmul.f32 %v1924_v0, %v721_v62  ;;  %v757_v2 = vunpack.c.l.bf16 %v755_v15  ;;  %v941_v62 = vld [vmem:[#allocation2 + $0x14] sm:$0x2] }
  0xb6   : > { %v681_v55 = vadd.f32 %v679_v27, %v669_v14  ;;  %v815_v33 = vrot.slane %v811_v51, 1  ;;  %v847_v58 = vmul.f32 %v1973_v23, %v841_v45  ;;  %v877_v63 = vunpack.c.l.bf16 %v875_v20 }
  0xb7   : > { %v788_v52 = vadd.f32 %v784_v34, %v770_v46  ;;  %v775_v46 = vunpack.c.l.bf16 %v773_v25  ;;  %v713_v50 = vrot.slane %v709_v37, 2  ;;  %v745_v10 = vmul.f32 %v1927_v12, %v739_v31 }
  0xb8   : > { %v699_v34 = vadd.f32 %v695_v56, %v681_v55  ;;  %v895_v1 = vunpack.c.l.bf16 %v893_v38  ;;  %v833_v60 = vrot.slane %v829_v19, 2  ;;  %v865_v11 = vmul.f32 %v1977_v40, %v859_v57  ;;  %v959_v38 = vld [vmem:[#allocation2 + $0x14] sm:$0x6] }
  0xb9   : > { %v801_v61 = vadd.f32 %v799_v49, %v788_v52  ;;  %v925_v0 = vunpack.c.l.bf16 %v923_v47  ;;  %v731_v14 = vrot.slane %v727_v13, 3  ;;  %v763_v51 = vmul.f32 %v1935_v42, %v757_v2 }
  0xba   : > { %v717_v15 = vadd.f32 %v713_v50, %v699_v34  ;;  %v926_v45 = vunpack.c.l.bf16 %v1991_v59  ;;  %v851_v20 = vrot.slane %v847_v58, 3  ;;  %v883_v52 = vmul.f32 %v1983_v18, %v877_v63  ;;  %v2017_v59 = vld [vmem:[#allocation2 + $0x18] sm:$0x2] }
  0xbb   : > { %v819_v22 = vadd.f32 %v815_v33, %v801_v61  ;;  %v930_v12 = vrot.slane %v1895_v17, %v1752_v3  ;;  %v781_v37 = vmul.f32 %v1914_v41, %v775_v46  ;;  %v749_v49 = vrot.slane %v745_v10, 4  ;;  %v977_v46 = vld [vmem:[#allocation2 + $0x14] sm:$0x4] }
  0xbc   : > { %v735_v31 = vadd.f32 %v731_v14, %v717_v15  ;;  %v943_v25 = vunpack.c.l.bf16 %v941_v62  ;;  %v901_v19 = vmul.f32 %v1956_v16, %v895_v1  ;;  %v869_v55 = vrot.slane %v865_v11, 4 }
  0xbd   : > { %v837_v27 = vadd.f32 %v833_v60, %v819_v22  ;;  %v2004_v42 = vrot.slane %v1895_v17, %v1755_v4  ;;  %v767_v13 = vrot.slane %v763_v51, 5  ;;  %v812_v2 = vmul.f32 %v1961_v35, %v806_v8 }
  0xbe   : > { %v753_v56 = vadd.f32 %v749_v49, %v735_v31  ;;  %v919_v41 = vmul.f32 %v1911_v43, %v913_v32  ;;  %v2180_v47 = vunpack.c.l.bf16 %v1900_v24  ;;  %v887_v58 = vrot.slane %v883_v52, 5 }
  0xbf   : > { %v855_v57 = vadd.f32 %v851_v20, %v837_v27  ;;  %v931_v63 = vmul.f32 %v930_v12, %v925_v0  ;;  %v2181_v34 = vunpack.c.l.bf16 %v1851_v29  ;;  %v785_v8 = vrot.slane %v781_v37, 6 }
  0xc0   : > { %v2015_v61 = vmul.f32 %v1911_v43, %v2180_v47  ;;  %v771_v35 = vadd.f32 %v767_v13, %v753_v56  ;;  %v961_v44 = vunpack.c.l.bf16 %v959_v38  ;;  %v905_v50 = vrot.slane %v901_v19, 6  ;;  %v995_v43 = vld [vmem:[#allocation2 + $0x14] sm:$0xc]  ;;  %v1044_v38 = vld [vmem:[#allocation2 + $0x18] sm:$0x3] }
  0xc1   : > { %v873_v33 = vadd.f32 %v869_v55, %v855_v57  ;;  %v800_v30 = vmul.f32 %v1939_v21, %v2181_v34  ;;  %v2024_v24 = vrot.slane %v1895_v17, %v1758_v5  ;;  %v949_v10 = vmul.f32 %v2004_v42, %v943_v25  ;;  %v2049_v57 = vld [vmem:[#allocation6 + $0x30] sm:$0x7f] }
  0xc2   : > { %v789_v1 = vadd.f32 %v785_v8, %v771_v35  ;;  %v2182_v22 = vunpack.c.l.bf16 %v1861_v36  ;;  %v816_v29 = vrot.slane %v812_v2, 1  ;;  %v944_v21 = vunpack.c.l.bf16 %v2017_v59  ;;  %v960_v56 = vld [vmem:[#allocation2 + $0x18] sm:$0x6] }
  0xc3   : > { %v891_v32 = vadd.f32 %v887_v58, %v873_v33  ;;  %v979_v11 = vunpack.c.l.bf16 %v977_v46  ;;  %v2033_v62 = vrot.slane %v1895_v17, %v1764_v7  ;;  %v2183_v15 = vunpack.c.l.bf16 %v1864_v48 }
  0xc4   : > { %v830_v60 = vmul.f32 %v1969_v39, %v2182_v22  ;;  %v802_v51 = vadd.f32 %v800_v30, %v789_v1  ;;  %v997_v27 = vunpack.c.l.bf16 %v995_v43  ;;  %v2040_v36 = vrot.slane %v1895_v17, %v1767_v9  ;;  %v1013_v39 = vld [vmem:[#allocation2 + $0x14] sm:$0x8] }
  0xc5   : > { %v909_v0 = vadd.f32 %v905_v50, %v891_v32  ;;  %v848_v14 = vmul.f32 %v1973_v23, %v2183_v15  ;;  %v935_v20 = vrot.slane %v931_v63, 1  ;;  %v2184_v52 = vunpack.c.l.bf16 %v1878_v53  ;;  %v1032_v63 = vld [vmem:[#allocation2 + $0x18] sm:$0x1] }
  0xc6   : > { %v967_v49 = vmul.f32 %v2024_v24, %v961_v44  ;;  %v2185_v25 = vunpack.c.l.bf16 %v1880_v54  ;;  %v820_v23 = vadd.f32 %v816_v29, %v802_v51  ;;  %v834_v19 = vrot.slane %v830_v60, 2  ;;  %v1098_v29 = vld [vmem:[#allocation2 + $0x18] sm:$0x4] }
  0xc7   : > { %v866_v37 = vmul.f32 %v1977_v40, %v2184_v52  ;;  %v921_v31 = vadd.f32 %v919_v41, %v909_v0  ;;  %v953_v55 = vrot.slane %v949_v10, 2  ;;  %v985_v2 = vmul.f32 %v2033_v62, %v979_v11  ;;  %v1080_v10 = vld [vmem:[#allocation2 + $0x18] sm:$0x6] }
  0xc8   : > { %v884_v48 = vmul.f32 %v1983_v18, %v2185_v25  ;;  %v1015_v53 = vunpack.c.l.bf16 %v1013_v39  ;;  %v2054_v40 = vrot.slane %v1895_v17, %v1775_v26  ;;  %v932_v41 = vmul.f32 %v930_v12, %v926_v45  ;;  %v1062_v45 = vld [vmem:[#allocation2 + $0x18] sm:$0x2] }
  0xc9   : > { %v939_v13 = vadd.f32 %v935_v20, %v921_v31  ;;  %v838_v47 = vadd.f32 %v834_v19, %v820_v23  ;;  %v852_v54 = vrot.slane %v848_v14, 3  ;;  %v1003_v18 = vmul.f32 %v2040_v36, %v997_v27  ;;  %v996_v31 = vld [vmem:[#allocation2 + $0x18] sm:$0xc] }
  0xca   : > { %v971_v58 = vrot.slane %v967_v49, 3  ;;  %v1046_v46 = vunpack.c.l.bf16 %v1044_v38  ;;  %v2059_v34 = vrot.slane %v2049_v57, %v1752_v3  ;;  %v962_v30 = vunpack.c.l.bf16 %v960_v56  ;;  %v1116_v23 = vld [vmem:[#allocation2 + $0x18] sm:$0xc] }
  0xcb   : > { %v957_v33 = vadd.f32 %v953_v55, %v939_v13  ;;  %v2186_v8 = vunpack.c.l.bf16 %v1887_v28  ;;  %v856_v17 = vadd.f32 %v852_v54, %v838_v47  ;;  %v870_v44 = vrot.slane %v866_v37, 4  ;;  %v978_v28 = vld [vmem:[#allocation2 + $0x18] sm:$0x4]  ;;  %v1014_v56 = vld [vmem:[#allocation2 + $0x18] sm:$0x8] }
  0xcc   : > { %v888_v12 = vrot.slane %v884_v48, 5  ;;  %v989_v32 = vrot.slane %v985_v2, 4  ;;  %v1021_v43 = vmul.f32 %v2054_v40, %v1015_v53  ;;  %v1007_v22 = vrot.slane %v1003_v18, 5  ;;  %v1134_v2 = vld [vmem:[#allocation2 + $0x18] sm:$0x8] }
  0xcd   : > { %v902_v35 = vmul.f32 %v1956_v16, %v2186_v8  ;;  %v975_v50 = vadd.f32 %v971_v58, %v957_v33  ;;  %v874_v1 = vadd.f32 %v870_v44, %v856_v17  ;;  %v1034_v60 = vunpack.c.l.bf16 %v1032_v63  ;;  %v1045_v54 = vld [vmem:[#allocation2 + $0x1c] sm:$0x3] }
  0xce   : > { %v2067_v3 = vrot.slane %v2049_v57, %v1761_v6  ;;  %v1052_v16 = vmul.f32 %v2059_v34, %v1046_v46  ;;  %v1064_v0 = vunpack.c.l.bf16 %v1062_v45  ;;  %v2072_v15 = vrot.slane %v2049_v57, %v1755_v4 }
  0xcf   : > { %v993_v11 = vadd.f32 %v989_v32, %v975_v50  ;;  %v906_v14 = vrot.slane %v902_v35, 6  ;;  %v892_v51 = vadd.f32 %v888_v12, %v874_v1  ;;  %v1082_v27 = vunpack.c.l.bf16 %v1080_v10  ;;  %v1063_v32 = vld [vmem:[#allocation2 + $0x1c] sm:$0x2] }
  0xd0   : > { %v2076_v39 = vrot.slane %v2049_v57, %v1758_v5  ;;  %v1025_v6 = vrot.slane %v1021_v43, 6  ;;  %v1100_v52 = vunpack.c.l.bf16 %v1098_v29  ;;  %v2080_v37 = vrot.slane %v2049_v57, %v1764_v7 }
  0xd1   : > { %v1011_v20 = vadd.f32 %v1007_v22, %v993_v11  ;;  %v936_v49 = vrot.slane %v932_v41, 1  ;;  %v950_v4 = vmul.f32 %v2004_v42, %v944_v21  ;;  %v980_v25 = vunpack.c.l.bf16 %v978_v28  ;;  %v1081_v28 = vld [vmem:[#allocation2 + $0x1c] sm:$0x6] }
  0xd2   : > { %v910_v48 = vadd.f32 %v906_v14, %v892_v51  ;;  %v1040_v5 = vmul.f32 %v2067_v3, %v1034_v60  ;;  %v1056_v55 = vrot.slane %v1052_v16, 1  ;;  %v1070_v38 = vmul.f32 %v2072_v15, %v1064_v0  ;;  %v1099_v14 = vld [vmem:[#allocation2 + $0x1c] sm:$0x4] }
  0xd3   : > { %v1029_v19 = vadd.f32 %v1025_v6, %v1011_v20  ;;  %v1088_v7 = vmul.f32 %v2076_v39, %v1082_v27  ;;  %v968_v53 = vmul.f32 %v2024_v24, %v962_v30  ;;  %v998_v59 = vunpack.c.l.bf16 %v996_v31  ;;  %v1033_v30 = vld [vmem:[#allocation2 + $0x1c] sm:$0x1]  ;;  %v1117_v31 = vld [vmem:[#allocation2 + $0x1c] sm:$0xc] }
  0xd4   : > { %v922_v13 = vadd.f32 %v2015_v61, %v910_v48  ;;  %v1106_v42 = vmul.f32 %v2080_v37, %v1100_v52  ;;  %v1118_v21 = vunpack.c.l.bf16 %v1116_v23  ;;  %v1123_v47 = vrot.slane %v2049_v57, %v1767_v9 }
  0xd5   : > { %v1042_v41 = vadd.f32 %v1040_v5, %v1029_v19  ;;  %v954_v33 = vrot.slane %v950_v4, 2  ;;  %v986_v58 = vmul.f32 %v2033_v62, %v980_v25  ;;  %v1016_v63 = vunpack.c.l.bf16 %v1014_v56  ;;  %v1135_v19 = vld [vmem:[#allocation2 + $0x1c] sm:$0x8] }
  0xd6   : > { %v940_v18 = vadd.f32 %v936_v49, %v922_v13  ;;  %v1074_v46 = vrot.slane %v1070_v38, 2  ;;  %v1136_v8 = vunpack.c.l.bf16 %v1134_v2  ;;  %v1141_v24 = vrot.slane %v2049_v57, %v1775_v26  ;;  %v1287_v49 = vld [vmem:[#allocation8] ss:$0 sm:$0xff] }
  0xd7   : > { %v1060_v61 = vadd.f32 %v1056_v55, %v1042_v41  ;;  %v972_v17 = vrot.slane %v968_v53, 3  ;;  %v1004_v44 = vmul.f32 %v2040_v36, %v998_v59  ;;  %v1047_v45 = vunpack.c.l.bf16 %v1045_v54 }
  0xd8   : > { %v958_v35 = vadd.f32 %v954_v33, %v940_v18  ;;  %v1092_v9 = vrot.slane %v1088_v7, 3  ;;  %v1124_v50 = vmul.f32 %v1123_v47, %v1118_v21  ;;  %v990_v10 = vrot.slane %v986_v58, 4 }
  0xd9   : > { %v1078_v12 = vadd.f32 %v1074_v46, %v1060_v61  ;;  %v1022_v62 = vmul.f32 %v2054_v40, %v1016_v63  ;;  %v1035_v1 = vunpack.c.l.bf16 %v1033_v30  ;;  %v1110_v60 = vrot.slane %v1106_v42, 4 }
  0xda   : > { %v976_v43 = vadd.f32 %v972_v17, %v958_v35  ;;  %v1142_v29 = vmul.f32 %v1141_v24, %v1136_v8  ;;  %v1008_v57 = vrot.slane %v1004_v44, 5  ;;  %v1053_v11 = vmul.f32 %v2059_v34, %v1047_v45 }
  0xdb   : > { %v1096_v22 = vadd.f32 %v1092_v9, %v1078_v12  ;;  %v1065_v16 = vunpack.c.l.bf16 %v1063_v32  ;;  %v1128_v0 = vrot.slane %v1124_v50, 5  ;;  %v1026_v27 = vrot.slane %v1022_v62, 6 }
  0xdc   : > { %v994_v26 = vadd.f32 %v990_v10, %v976_v43  ;;  %v1041_v20 = vmul.f32 %v2067_v3, %v1035_v1  ;;  %v1083_v6 = vunpack.c.l.bf16 %v1081_v28  ;;  %v1146_v40 = vrot.slane %v1142_v29, 6 }
  0xdd   : > { %v1114_v36 = vadd.f32 %v1110_v60, %v1096_v22  ;;  %v1057_v25 = vrot.slane %v1053_v11, 1  ;;  %v1071_v48 = vmul.f32 %v2072_v15, %v1065_v16  ;;  %v1101_v23 = vunpack.c.l.bf16 %v1099_v14 }
  0xde   : > { %v1012_v51 = vadd.f32 %v1008_v57, %v994_v26  ;;  %v1089_v55 = vmul.f32 %v2076_v39, %v1083_v6  ;;  %v1119_v38 = vunpack.c.l.bf16 %v1117_v31  ;;  %v1137_v2 = vunpack.c.l.bf16 %v1135_v19 }
  0xdf   : > { %v1132_v52 = vadd.f32 %v1128_v0, %v1114_v36  ;;  %v1075_v13 = vrot.slane %v1071_v48, 2  ;;  %v1107_v7 = vmul.f32 %v2080_v37, %v1101_v23 }
  0xe0   : > { %v1030_v4 = vadd.f32 %v1026_v27, %v1012_v51  ;;  %v1093_v41 = vrot.slane %v1089_v55, 3  ;;  %v1125_v15 = vmul.f32 %v1123_v47, %v1119_v38  ;;  %v1143_v21 = vmul.f32 %v1141_v24, %v1137_v2 }
  0xe1   : > { %v1150_v34 = vadd.f32 %v1146_v40, %v1132_v52  ;;  %v1111_v39 = vrot.slane %v1107_v7, 4 }
  0xe2   : > { %v1043_v5 = vadd.f32 %v1041_v20, %v1030_v4  ;;  %v1129_v18 = vrot.slane %v1125_v15, 5  ;;  %v1147_v58 = vrot.slane %v1143_v21, 6 }
  0xe3   : > { %v1159_v56 = vadd.f32 %v1287_v49, %v1150_v34 }
  0xe4   : > { %v1061_v3 = vadd.f32 %v1057_v25, %v1043_v5 }
  0xe5   : > { %v1161_v53 = vpack.c.bf16 %v1159_v56, %v1159_v56 }
  0xe6   : > { %v1079_v59 = vadd.f32 %v1075_v13, %v1061_v3 }
  0xe7   : > { %1164 = vst.msk [vmem:[%s215_s18] sm:$0x1] %vm1163_vm10, %v1161_v53 }
  0xe8   : > { %v1097_v42 = vadd.f32 %v1093_v41, %v1079_v59 }
  0xea   : > { %v1115_v54 = vadd.f32 %v1111_v39, %v1097_v42 }
  0xec   : > { %v1133_v33 = vadd.f32 %v1129_v18, %v1115_v54 }
  0xee   : > { %v1151_v37 = vadd.f32 %v1147_v58, %v1133_v33 }
  0xf0   : > { %v1160_v47 = vadd.f32 %v1287_v49, %v1151_v37 }
  0xf2   : > { %v1162_v63 = vpack.c.bf16 %v1160_v47, %v1160_v47 }
  0xf4   : > { %1165 = vst.msk [vmem:[%s215_s18 + $0x1] sm:$0x1] %vm1163_vm10, %v1162_v63 }
  0xf5   : > { %1469 = shalt.err (!%p1466_p2)
}
  0xf6   : > { %s1470_s25 = scalar_lea.hbm %s2112_s28, 32  ;;  %s1474_s24 = scalar_lea.hbm %s2160_s3, 64 }
  0xf7   : > { %p1471_p13 = scmp.ne.s32.totalorder %s2112_s28, %s1470_s25  ;;  %p1475_p4 = scmp.lt.u32.totalorder %s2112_s28, %s2160_s3 }
  0xf8   : > { %p1476_p5 = scmp.lt.u32.totalorder %s1474_s24, %s1470_s25  ;;  %p1478_p11 = scmp.lt.u32.totalorder %s1470_s25, %s2112_s28 }
  0xf9   : > { %p1472_p6 = pnand %p1471_p13, %p2187_p0 }
  0xfa   : > { %p1477_p8 = por %p1476_p5, %p1475_p4 }
  0xfb   : > { %p1473_p10 = pneg %p1472_p6 }
  0xfc   : > { %p1479_p1 = por %p1478_p11, %p1477_p8 }
  0xfe   : > { %p1480_p3 = pnand %p1479_p1, %p1473_p10 }
 0x100   : > { %1483 = shalt.err (!%p1480_p3)
}
 0x101   : > { %s1538_s4 = smov 16   ;;  %s1539_s18 = smov 1  }
 0x102   : > { %1305 = dma.vmem_to_hbm [thread:$0]  (%p2187_p0), %s2107_s20, 32, %s2112_s28, %s1167_s23, %s1538_s4, %s1538_s4, %s1539_s18  }
 0x103 PF: > { %s1195_s21 = sand.u32 1, %s1514_s12   ;;  %p2188_p7 = scmp.ne.s32.totalorder %s2165_s19, 0 }
 0x104   : > { %p2189_p9 = scmp.ge.s32.totalorder %s1526_s15, 2  ;;  %s1196_s26 = scalar_lea.sflag [#allocation5], %s1195_s21 }
 0x106   : > { %p1319_p12 = pnand %p2189_p9, %p2188_p7 }
 0x108   : > { %1509 = dma.done.wait (!%p1319_p12), %s1196_s26, 32  }
 0x109   : > { %1511 = vsyncadd (!%p1319_p12), %s1196_s26, 4294967264  ;;  %p17_p2 = scmp.ge.s32.totalorder %s1671_s5, 4   ;;  %s2190_s12 = smov %s1518_s13 }
 0x10a   : > { %s2191_s13 = smov %s1522_s14  ;;  %s2192_s14 = smov %s1687_s8 }
 0x10b   : > { %s2193_s15 = smov %s1671_s5  ;;  %19 = sbr.rel (!%p17_p2) target bundleno = 6 (0x6), region = 91 }
 0x112   :  { %1201 = vsyncpa [#allocation4], 1 }
 0x113   :  { %1203 = vsyncpa [#allocation4 + $0x1], 1 }
 0x114   :  { %1204 = vsyncpa [#allocation7], 1 }
 0x115   :  { %1205 = vsyncpa [#allocation5], 1 }
 0x116   :  { %1207 = vsyncpa [#allocation5 + $0x1], 1 }

// kernel: fwd.11
= control target key start
LH: loop header
LB: loop body
LE: loop exit
PB: predicated region body
PF: predicated region fallthrough
CT: control target
= control target key end

     0   :  { %15 = vsyncpa [#allocation3], 0  ;;  %s1045_s0 = inlined_call_operand.hbm [shape: bf16[8,64], index: 0, kind: input, shape index: {}]   ;;  %s1046_s1 = inlined_call_operand.hbm [shape: bf16[8,64], index: 1, kind: input, shape index: {}, may-alias: {1,10}]   ;;  %s1047_s2 = inlined_call_operand.hbm [shape: f32[1,64], index: 2, kind: input, shape index: {}]   ;;  %s1048_s3 = inlined_call_operand.hbm [shape: f32[1,64], index: 3, kind: input, shape index: {}]   ;;  %s1049_s4 = inlined_call_operand.hbm [shape: bf16[64,256], index: 4, kind: input, shape index: {}]   ;;  %s1050_s5 = inlined_call_operand.hbm [shape: f32[1,256], index: 5, kind: input, shape index: {}]   ;;  %s1051_s6 = inlined_call_operand.hbm [shape: bf16[128,64], index: 6, kind: input, shape index: {}]   ;;  %s1052_s7 = inlined_call_operand.hbm [shape: f32[1,64], index: 7, kind: input, shape index: {}]   ;;  %s1053_s8 = inlined_call_operand.hbm [shape: f32[1,64], index: 8, kind: input, shape index: {}]   ;;  %s1054_s9 = inlined_call_operand.hbm [shape: f32[1,64], index: 9, kind: input, shape index: {}]   ;;  %s1055_s10 = inlined_call_operand.hbm [shape: bf16[8,64], index: 10, kind: output, shape index: {}, may-alias: {1,10}]  }
   0x1   :  { %16 = vsyncpa [#allocation6], 0 }
   0x2   :  { %17 = vsyncpa [#allocation9], 0 }
   0x3   :  { %18 = vsyncpa [#allocation12], 0 }
   0x4   :  { %19 = vsyncpa [#allocation15], 0 }
   0x5   :  { %20 = vsyncpa [#allocation18], 0 }
   0x6   :  { %21 = vsyncpa [#allocation4], 0  ;;  %s835_s13 = smov [#allocation5]   ;;  %s836_s15 = smov [#allocation8]  }
   0x7   :  { %s38_s14 = sshll.u32 %s835_s13, 4  ;;  %s58_s16 = sshll.u32 %s836_s15, 4  ;;  %s39_s14 = int_to_ptr.vmem [resolvable:$true] %s38_s14  ;;  %s59_s16 = int_to_ptr.vmem [resolvable:$true] %s58_s16 }
   0x8   :  { %s579_s19 = scalar_lea.hbm %s1046_s1, 64 }
   0x9   :  { %p580_p0 = scmp.ne.s32.totalorder %s1046_s1, %s579_s19  ;;  %p583_p1 = scmp.lt.u32.totalorder %s579_s19, %s1046_s1 }
   0xb   :  { %p585_p2 = pnand %p583_p1, %p580_p0 }
   0xd   :  { %588 = shalt.err (!%p585_p2)
}
   0xe   :  { %s589_s24 = scalar_lea.vmem %s39_s14, 64  ;;  %p594_p4 = scmp.lt.s32.totalorder %s39_s14, %s39_s14 }
   0xf   :  { %p590_p3 = scmp.ne.s32.totalorder %s39_s14, %s589_s24  ;;  %p595_p5 = scmp.lt.s32.totalorder %s589_s24, %s589_s24 }
  0x11   :  { %p596_p6 = por %p595_p5, %p594_p4 }
  0x13   :  { %p597_p7 = pnand %p596_p6, %p590_p3 }
  0x15   :  { %600 = shalt.err (!%p597_p7)
}
  0x16   :  { %41 = dma.hbm_to_vmem [thread:$0]  %s1046_s1, 64, %s39_s14, [#allocation6]  }
  0x17   :  { %s601_s29 = scalar_lea.hbm %s1048_s3, 16 }
  0x18   :  { %p602_p8 = scmp.ne.s32.totalorder %s1048_s3, %s601_s29  ;;  %p605_p9 = scmp.lt.u32.totalorder %s601_s29, %s1048_s3 }
  0x1a   :  { %p607_p10 = pnand %p605_p9, %p602_p8 }
  0x1c   :  { %610 = shalt.err (!%p607_p10)
}
  0x1d   :  { %s611_s15 = scalar_lea.vmem %s59_s16, 16  ;;  %s615_s17 = scalar_lea.vmem %s59_s16, 32 }
  0x1e   :  { %p612_p11 = scmp.ne.s32.totalorder %s59_s16, %s611_s15  ;;  %p616_p12 = scmp.lt.s32.totalorder %s59_s16, %s59_s16 }
  0x1f   :  { %p617_p13 = scmp.lt.s32.totalorder %s615_s17, %s611_s15 }
  0x21   :  { %p618_p0 = por %p617_p13, %p616_p12 }
  0x23   :  { %p619_p1 = pnand %p618_p0, %p612_p11 }
  0x25   :  { %622 = shalt.err (!%p619_p1)
}
  0x26   :  { %61 = dma.hbm_to_vmem [thread:$0]  %s1048_s3, 16, %s59_s16, [#allocation9]  }
  0x27   :  { %s837_s18 = smov [#allocation11]   ;;  %s838_s20 = smov [#allocation14]  }
  0x28   :  { %s80_s19 = sshll.u32 %s837_s18, 4  ;;  %s102_s21 = sshll.u32 %s838_s20, 4  ;;  %s81_s19 = int_to_ptr.vmem [resolvable:$true] %s80_s19  ;;  %s103_s21 = int_to_ptr.vmem [resolvable:$true] %s102_s21 }
  0x29   :  { %s623_s24 = scalar_lea.hbm %s1050_s5, 32 }
  0x2a   :  { %p624_p2 = scmp.ne.s32.totalorder %s1050_s5, %s623_s24  ;;  %p627_p3 = scmp.lt.u32.totalorder %s623_s24, %s1050_s5 }
  0x2c   :  { %p629_p4 = pnand %p627_p3, %p624_p2 }
  0x2e   :  { %632 = shalt.err (!%p629_p4)
}
  0x2f   :  { %s633_s3 = scalar_lea.vmem %s81_s19, 32  ;;  %p638_p6 = scmp.lt.s32.totalorder %s81_s19, %s81_s19 }
  0x30   :  { %p634_p5 = scmp.ne.s32.totalorder %s81_s19, %s633_s3  ;;  %p639_p7 = scmp.lt.s32.totalorder %s633_s3, %s633_s3 }
  0x32   :  { %p640_p8 = por %p639_p7, %p638_p6 }
  0x34   :  { %p641_p9 = pnand %p640_p8, %p634_p5 }
  0x36   :  { %644 = shalt.err (!%p641_p9)
}
  0x37   :  { %83 = dma.hbm_to_vmem [thread:$0]  %s1050_s5, 32, %s81_s19, [#allocation12]  }
  0x38   :  { %s645_s12 = scalar_lea.hbm %s1052_s7, 16 }
  0x39   :  { %p646_p10 = scmp.ne.s32.totalorder %s1052_s7, %s645_s12  ;;  %p649_p11 = scmp.lt.u32.totalorder %s645_s12, %s1052_s7 }
  0x3b   :  { %p651_p12 = pnand %p649_p11, %p646_p10 }
  0x3d   :  { %654 = shalt.err (!%p651_p12)
}
  0x3e   :  { %s655_s14 = scalar_lea.vmem %s103_s21, 16  ;;  %s659_s18 = scalar_lea.vmem %s103_s21, 32 }
  0x3f   :  { %p656_p13 = scmp.ne.s32.totalorder %s103_s21, %s655_s14  ;;  %p660_p0 = scmp.lt.s32.totalorder %s103_s21, %s103_s21 }
  0x40   :  { %p661_p1 = scmp.lt.s32.totalorder %s659_s18, %s655_s14 }
  0x42   :  { %p662_p2 = por %p661_p1, %p660_p0 }
  0x44   :  { %p663_p3 = pnand %p662_p2, %p656_p13 }
  0x46   :  { %666 = shalt.err (!%p663_p3)
}
  0x47   :  { %105 = dma.hbm_to_vmem [thread:$0]  %s1052_s7, 16, %s103_s21, [#allocation15]  }
  0x48   :  { %s839_s20 = smov [#allocation2]   ;;  %s840_s23 = smov [#allocation7]  }
  0x49   :  { %s28_s22 = sshll.u32 %s839_s20, 4  ;;  %s48_s24 = sshll.u32 %s840_s23, 4  ;;  %s29_s22 = int_to_ptr.vmem [resolvable:$true] %s28_s22  ;;  %s49_s24 = int_to_ptr.vmem [resolvable:$true] %s48_s24 }
  0x4a   :  { %s667_s27 = scalar_lea.hbm %s1045_s0, 64 }
  0x4b   :  { %p668_p4 = scmp.ne.s32.totalorder %s1045_s0, %s667_s27  ;;  %p671_p5 = scmp.lt.u32.totalorder %s667_s27, %s1045_s0 }
  0x4d   :  { %p673_p6 = pnand %p671_p5, %p668_p4 }
  0x4f   :  { %676 = shalt.err (!%p673_p6)
}
  0x50   :  { %s677_s7 = scalar_lea.vmem %s29_s22, 64  ;;  %p682_p8 = scmp.lt.s32.totalorder %s29_s22, %s29_s22 }
  0x51   :  { %p678_p7 = scmp.ne.s32.totalorder %s29_s22, %s677_s7  ;;  %p683_p9 = scmp.lt.s32.totalorder %s677_s7, %s677_s7 }
  0x53   :  { %p684_p10 = por %p683_p9, %p682_p8 }
  0x55   :  { %p685_p11 = pnand %p684_p10, %p678_p7 }
  0x57   :  { %688 = shalt.err (!%p685_p11)
}
  0x58   :  { %31 = dma.hbm_to_vmem [thread:$0]  %s1045_s0, 64, %s29_s22, [#allocation3]  }
  0x59   :  { %s689_s13 = scalar_lea.hbm %s1047_s2, 16 }
  0x5a   :  { %p690_p12 = scmp.ne.s32.totalorder %s1047_s2, %s689_s13  ;;  %p693_p13 = scmp.lt.u32.totalorder %s689_s13, %s1047_s2 }
  0x5c   :  { %p695_p0 = pnand %p693_p13, %p690_p12 }
  0x5e   :  { %698 = shalt.err (!%p695_p0)
}
  0x5f   :  { %s699_s18 = scalar_lea.vmem %s49_s24, 16  ;;  %s703_s5 = scalar_lea.vmem %s49_s24, 32 }
  0x60   :  { %p700_p1 = scmp.ne.s32.totalorder %s49_s24, %s699_s18  ;;  %p704_p2 = scmp.lt.s32.totalorder %s49_s24, %s49_s24 }
  0x61   :  { %p705_p3 = scmp.lt.s32.totalorder %s703_s5, %s699_s18 }
  0x63   :  { %p706_p4 = por %p705_p3, %p704_p2 }
  0x65   :  { %p707_p5 = pnand %p706_p4, %p700_p1 }
  0x67   :  { %710 = shalt.err (!%p707_p5)
}
  0x68   :  { %51 = dma.hbm_to_vmem [thread:$0]  %s1047_s2, 16, %s49_s24, [#allocation6]  }
  0x69   :  { %s841_s20 = smov [#allocation10]   ;;  %s711_s26 = scalar_lea.hbm %s1049_s4, 1024 }
  0x6a   :  { %s67_s22 = sshll.u32 %s841_s20, 4  ;;  %p712_p6 = scmp.ne.s32.totalorder %s1049_s4, %s711_s26  ;;  %s68_s22 = int_to_ptr.vmem [resolvable:$true] %s67_s22 }
  0x6b   :  { %p715_p7 = scmp.lt.u32.totalorder %s711_s26, %s1049_s4 }
  0x6d   :  { %p717_p8 = pnand %p715_p7, %p712_p6 }
  0x6f   :  { %720 = shalt.err (!%p717_p8)
}
  0x70   :  { %s721_s29 = scalar_lea.vmem %s68_s22, 1024  ;;  %p726_p10 = scmp.lt.s32.totalorder %s68_s22, %s68_s22 }
  0x71   :  { %p722_p9 = scmp.ne.s32.totalorder %s68_s22, %s721_s29  ;;  %p727_p11 = scmp.lt.s32.totalorder %s721_s29, %s721_s29 }
  0x73   :  { %p728_p12 = por %p727_p11, %p726_p10 }
  0x75   :  { %p729_p13 = pnand %p728_p12, %p722_p9 }
  0x77   :  { %732 = shalt.err (!%p729_p13)
}
  0x78   :  { %s842_s2 = smov 128   ;;  %s843_s24 = smov 8  }
  0x79   :  { %73 = dma.hbm_to_vmem [thread:$0]  %s1049_s4, 1024, %s68_s22, [#allocation9], %s842_s2, %s842_s2, %s843_s24  }
  0x7a   :  { %s844_s30 = smov [#allocation13]   ;;  %s733_s15 = scalar_lea.hbm %s1051_s6, 1024 }
  0x7b   :  { %s89_s11 = sshll.u32 %s844_s30, 4  ;;  %p734_p0 = scmp.ne.s32.totalorder %s1051_s6, %s733_s15  ;;  %s90_s11 = int_to_ptr.vmem [resolvable:$true] %s89_s11 }
  0x7c   :  { %p737_p1 = scmp.lt.u32.totalorder %s733_s15, %s1051_s6 }
  0x7e   :  { %p739_p2 = pnand %p737_p1, %p734_p0 }
  0x80   :  { %742 = shalt.err (!%p739_p2)
}
  0x81   :  { %s743_s5 = scalar_lea.vmem %s90_s11, 1024  ;;  %p748_p4 = scmp.lt.s32.totalorder %s90_s11, %s90_s11 }
  0x82   :  { %p744_p3 = scmp.ne.s32.totalorder %s90_s11, %s743_s5  ;;  %p749_p5 = scmp.lt.s32.totalorder %s743_s5, %s743_s5 }
  0x84   :  { %p750_p6 = por %p749_p5, %p748_p4 }
  0x86   :  { %p751_p7 = pnand %p750_p6, %p744_p3 }
  0x88   :  { %754 = shalt.err (!%p751_p7)
}
  0x89   :  { %s845_s4 = smov 64   ;;  %s846_s0 = smov 4  }
  0x8a   :  { %95 = dma.hbm_to_vmem [thread:$0]  %s1051_s6, 1024, %s90_s11, [#allocation12], %s845_s4, %s845_s4, %s846_s0  }
  0x8b   :  { %s847_s22 = smov [#allocation16]   ;;  %s848_s25 = smov [#allocation17]  }
  0x8c   :  { %s112_s23 = sshll.u32 %s847_s22, 4  ;;  %s122_s26 = sshll.u32 %s848_s25, 4  ;;  %s113_s23 = int_to_ptr.vmem [resolvable:$true] %s112_s23  ;;  %s123_s26 = int_to_ptr.vmem [resolvable:$true] %s122_s26 }
  0x8d   :  { %s755_s3 = scalar_lea.hbm %s1053_s8, 16 }
  0x8e   :  { %p756_p8 = scmp.ne.s32.totalorder %s1053_s8, %s755_s3  ;;  %p759_p9 = scmp.lt.u32.totalorder %s755_s3, %s1053_s8 }
  0x90   :  { %p761_p10 = pnand %p759_p9, %p756_p8 }
  0x92   :  { %764 = shalt.err (!%p761_p10)
}
  0x93   :  { %s765_s6 = scalar_lea.vmem %s113_s23, 16  ;;  %s769_s7 = scalar_lea.vmem %s113_s23, 32 }
  0x94   :  { %p766_p11 = scmp.ne.s32.totalorder %s113_s23, %s765_s6  ;;  %p770_p12 = scmp.lt.s32.totalorder %s113_s23, %s113_s23 }
  0x95   :  { %p771_p13 = scmp.lt.s32.totalorder %s769_s7, %s765_s6 }
  0x97   :  { %p772_p0 = por %p771_p13, %p770_p12 }
  0x99   :  { %p773_p1 = pnand %p772_p0, %p766_p11 }
  0x9b   :  { %776 = shalt.err (!%p773_p1)
}
  0x9c   :  { %115 = dma.hbm_to_vmem [thread:$0]  %s1053_s8, 16, %s113_s23, [#allocation15]  }
  0x9d   :  { %s777_s13 = scalar_lea.hbm %s1054_s9, 16 }
  0x9e   :  { %p778_p2 = scmp.ne.s32.totalorder %s1054_s9, %s777_s13  ;;  %p781_p3 = scmp.lt.u32.totalorder %s777_s13, %s1054_s9 }
  0xa0   :  { %p783_p4 = pnand %p781_p3, %p778_p2 }
  0xa2   :  { %786 = shalt.err (!%p783_p4)
}
  0xa3   :  { %s787_s18 = scalar_lea.vmem %s123_s26, 16  ;;  %s791_s5 = scalar_lea.vmem %s123_s26, 32 }
  0xa4   :  { %p788_p5 = scmp.ne.s32.totalorder %s123_s26, %s787_s18  ;;  %p792_p6 = scmp.lt.s32.totalorder %s123_s26, %s123_s26 }
  0xa5   :  { %p793_p7 = scmp.lt.s32.totalorder %s791_s5, %s787_s18 }
  0xa7   :  { %p794_p8 = por %p793_p7, %p792_p6 }
  0xa9   :  { %p795_p9 = pnand %p794_p8, %p788_p5 }
  0xab   :  { %798 = shalt.err (!%p795_p9)
}
  0xac   :  { %125 = dma.hbm_to_vmem [thread:$0]  %s1054_s9, 16, %s123_s26, [#allocation18]  }
  0xad   :  { %821 = dma.done.wait [#allocation3], 64  }
  0xae   :  { %822 = vsyncadd [#allocation3], 4294967232 }
  0xaf   :  { %823 = dma.done.wait [#allocation6], 80  }
  0xb0   :  { %824 = vsyncadd [#allocation6], 4294967216 }
  0xb1   :  { %825 = dma.done.wait [#allocation9], 1040  }
  0xb2   :  { %826 = vsyncadd [#allocation9], 4294966256 }
  0xb3   :  { %827 = dma.done.wait [#allocation12], 1056  }
  0xb4   :  { %828 = vsyncadd [#allocation12], 4294966240 }
  0xb5   :  { %829 = dma.done.wait [#allocation15], 32  }
  0xb6   :  { %830 = vsyncadd [#allocation15], 4294967264 }
  0xb7   :  { %831 = dma.done.wait [#allocation18], 16  }
  0xb8   :  { %832 = vsyncadd [#allocation18], 4294967280  ;;  %v157_v0 = vld [vmem:[#allocation2] sm:$0xf]  ;;  %vm159_vm0 = vcmask 523264   ;;  %v849_v16 = vmov 0   ;;  %v201_v36 = vlaneseq }
  0xb9   :  { %v158_v1 = vunpack.c.l.bf16 %v157_v0  ;;  %v549_v8 = vld [vmem:[#allocation10 + $0x4] ss:$8 sps:$4 sm:$0xff]   ;;  %v551_v9 = vld [vmem:[#allocation10] ss:$8 sps:$4 sm:$0xff]   ;;  %v552_v10 = vld [vmem:[#allocation10 + $0x14] ss:$8 sps:$4 sm:$0xff]   ;;  %286 = vmatprep.mubr.bf16.mxu0 %v849_v16 }
  0xba   :  { %254 = vmatprep.subr.bf16.mxu0 %v549_v8  ;;  %v554_v11 = vld [vmem:[#allocation10 + $0x10] ss:$8 sps:$4 sm:$0xff]   ;;  %v555_v12 = vld [vmem:[#allocation10 + $0x24] ss:$8 sps:$4 sm:$0xff]   ;;  %v557_v13 = vld [vmem:[#allocation10 + $0x20] ss:$8 sps:$4 sm:$0xff]  }
  0xbb   :  { %v160_v2 = vsel %vm159_vm0, %v158_v1, 0.0  ;;  %255 = vmatpush1.bf16.msra.mxu0 %v551_v9  ;;  %v558_v14 = vld [vmem:[#allocation10 + $0x34] ss:$8 sps:$4 sm:$0xff]   ;;  %v560_v15 = vld [vmem:[#allocation10 + $0x30] ss:$8 sps:$4 sm:$0xff]   ;;  %v561_v27 = vld [vmem:[#allocation13] sm:$0xff]  }
  0xbc   :  { %161 = vadd.xlane.f32.xlu0 %v160_v2  ;;  %256 = vmatprep.subr.bf16.mxu0 %v552_v10  ;;  %v479_v21 = vld [vmem:[#allocation7] ss:$0 sm:$0xff]  ;;  %v480_v23 = vld [vmem:[#allocation8] ss:$0 sm:$0xff]  ;;  %v850_v28 = vmov 0.0   ;;  %v562_v29 = vld [vmem:[#allocation13 + $0x8] sm:$0xff]  }
  0xbd   :  { %511 = vmatprep.subr.bf16.mxu1 %v850_v28  ;;  %v563_v30 = vld [vmem:[#allocation13 + $0x10] sm:$0xff]   ;;  %v564_v31 = vld [vmem:[#allocation13 + $0x18] sm:$0xff]   ;;  %v565_v32 = vld [vmem:[#allocation13 + $0x20] sm:$0xff]   ;;  %vm851_vm1 = vmmov 0   ;;  %v202_v37 = vshrl.u32 %v201_v36, 7  ;;  %s852_s9 = smov [#allocation19]  }
  0xbe   :  { %512 = vmatpush3.bf16.msra.mxu1 %v561_v27  ;;  %v566_v33 = vld [vmem:[#allocation13 + $0x28] sm:$0xff]   ;;  %v567_v34 = vld [vmem:[#allocation13 + $0x30] sm:$0xff]   ;;  %v568_v35 = vld [vmem:[#allocation13 + $0x38] sm:$0xff]   ;;  %527 = vmatprep.mubr.msk.bf16.mxu1 %vm851_vm1, %v850_v28  ;;  %s465_s0 = sshll.u32 %s852_s9, 4  ;;  %vm457_vm2 = vcmask 519168   ;;  %s466_s0 = int_to_ptr.vmem [resolvable:$true] %s465_s0 }
  0xbf   :  { %257 = vmatpush1.bf16.msra.mxu0 %v554_v11  ;;  %513 = vmatprep.subr.bf16.mxu1 %v850_v28  ;;  %v203_v38 = vsub.s32 0, %v202_v37  ;;  %v199_v39 = vld [vmem:[#allocation11] sm:$0x3]  ;;  %v207_v40 = vsub.s32 1, %v202_v37  ;;  %v491_v2 = vld [vmem:[#allocation14] ss:$0 sm:$0xff]  ;;  %p804_p11 = scmp.lt.s32.totalorder %s466_s0, %s466_s0 }
  0xc0   :  { %258 = vmatprep.subr.bf16.mxu0 %v555_v12  ;;  %s799_s19 = scalar_lea.vmem %s466_s0, 64 }
  0xc1   :  { %v204_v41 = vrot.slane %v199_v39, %v203_v38  ;;  %v208_v42 = vrot.slane %v199_v39, %v207_v40  ;;  %p800_p10 = scmp.ne.s32.totalorder %s466_s0, %s799_s19  ;;  %p805_p12 = scmp.lt.s32.totalorder %s799_s19, %s799_s19 }
  0xc2   :  { %514 = vmatpush3.bf16.msra.mxu1 %v562_v29 }
  0xc3   :  { %259 = vmatpush1.bf16.msra.mxu0 %v557_v13  ;;  %515 = vmatprep.subr.bf16.mxu1 %v850_v28  ;;  %p806_p13 = por %p805_p12, %p804_p11 }
  0xc4   :  { %260 = vmatprep.subr.bf16.mxu0 %v558_v14 }
  0xc5   :  { %p807_p0 = pnand %p806_p13, %p800_p10 }
  0xc6   :  { %516 = vmatpush3.bf16.msra.mxu1 %v563_v30 }
  0xc7   :  { %261 = vmatpush1.bf16.msra.mxu0 %v560_v15  ;;  %517 = vmatprep.subr.bf16.mxu1 %v850_v28 }
  0xca   :  { %518 = vmatpush3.bf16.msra.mxu1 %v564_v31 }
  0xcb   :  { %519 = vmatprep.subr.bf16.mxu1 %v850_v28 }
  0xce   :  { %520 = vmatpush3.bf16.msra.mxu1 %v565_v32 }
  0xcf   :  { %521 = vmatprep.subr.bf16.mxu1 %v850_v28 }
  0xd2   :  { %522 = vmatpush3.bf16.msra.mxu1 %v566_v33 }
  0xd3   :  { %523 = vmatprep.subr.bf16.mxu1 %v850_v28 }
  0xd6   :  { %524 = vmatpush3.bf16.msra.mxu1 %v567_v34 }
  0xd7   :  { %525 = vmatprep.subr.bf16.mxu1 %v850_v28 }
  0xda   :  { %526 = vmatpush3.bf16.msra.mxu1 %v568_v35 }
 0x149   :  { %v162_v3 = vpop.xlane.xlu0 %161 }
 0x14a   :  { %v164_v4 = vmul.f32 0.015625, %v162_v3 }
 0x14c   :  { %v165_v5 = vsub.f32 %v158_v1, %v164_v4  ;;  %v424_v1 = vld [vmem:[#allocation5] sm:$0xf] }
 0x14d   :  { %v425_v3 = vunpack.c.l.bf16 %v424_v1 }
 0x14e   :  { %v166_v6 = vmul.f32 %v165_v5, %v165_v5 }
 0x150   :  { %v167_v7 = vsel %vm159_vm0, %v166_v6, 0.0 }
 0x151   :  { %168 = vadd.xlane.f32.xlu0 %v167_v7 }
 0x1de   :  { %v169_v17 = vpop.xlane.xlu0 %168 }
 0x1df   :  { %v170_v18 = vmul.f32 0.015625, %v169_v17 }
 0x1e1   :  { %v171_v19 = vadd.f32 1e-05, %v170_v18 }
 0x1e3   :  { %569 = vrsqrt.f32 %v171_v19 }
 0x1ed   :  { %v570_v20 = vpop.eup %569 }
 0x1ee   :  { %v173_v22 = vmul.f32 %v570_v20, %v165_v5  ;;  %v500_v20 = vld [vmem:[#allocation16] ss:$0 sm:$0xff] }
 0x1f0   :  { %v181_v24 = vmul.f32 %v479_v21, %v173_v22  ;;  %v501_v22 = vld [vmem:[#allocation17] ss:$0 sm:$0xff] }
 0x1f2   :  { %v189_v25 = vadd.f32 %v480_v23, %v181_v24 }
 0x1f4   :  { %v190_v26 = vpack.c.bf16 %v189_v25, %v189_v25 }
 0x1f6   :  { %489 = vmatmul.mubr.msk.bf16.vlgmr.msra.gmra.mrb[0].mxu0 %vm159_vm0, %v190_v26 }
 0x2c9   :  { %v288_v43 = vpop.f32.mrb[0].mxu0 }
 0x2ca   :  { %v289_v44 = vadd.f32 %v288_v43, %v204_v41  ;;  %v290_v45 = vpop.f32.mrb[1].mxu0 }
 0x2cb   :  { %v291_v46 = vadd.f32 %v290_v45, %v208_v42  ;;  %v292_v47 = vpop.f32.mrb[2].mxu0 }
 0x2cc   :  { %v295_v48 = vmul.f32 %v289_v44, %v289_v44  ;;  %v293_v49 = vpop.f32.mrb[3].mxu0 }
 0x2cd   :  { %v490_v50 = vmul.f32 -1.442695, %v291_v46 }
 0x2ce   :  { %v296_v51 = vmul.f32 %v295_v48, %v289_v44 }
 0x2cf   :  { %571 = vpow2.f32 %v490_v50 }
 0x2d0   :  { %v297_v52 = vmul.f32 0.044715, %v296_v51 }
 0x2d2   :  { %v298_v53 = vadd.f32 %v297_v52, %v289_v44 }
 0x2d4   :  { %v299_v54 = vmul.f32 0.7978846, %v298_v53 }
 0x2d6   :  { %573 = vtanh.f32 %v299_v54 }
 0x2d9   :  { %v572_v55 = vpop.eup %571 }
 0x2da   :  { %v307_v56 = vadd.f32 1.0, %v572_v55 }
 0x2dc   :  { %575 = vrcp.f32 %v307_v56 }
 0x2e0   :  { %v574_v57 = vpop.eup %573 }
 0x2e1   :  { %v301_v58 = vadd.f32 1.0, %v574_v57 }
 0x2e3   :  { %v302_v59 = vmul.f32 0.5, %v301_v58 }
 0x2e5   :  { %v303_v62 = vmul.f32 %v302_v59, %v289_v44 }
 0x2e6   :  { %v576_v60 = vpop.eup %575 }
 0x2e7   :  { %v310_v61 = vmul.f32 %v576_v60, %v291_v46 }
 0x2e9   :  { %v311_v63 = vmul.f32 %v310_v61, %v303_v62 }
 0x2eb   :  { %v312_v0 = vpack.c.bf16 %v311_v63, %v311_v63 }
 0x2ed   :  { %528 = vmatmul.mubr.bf16.vlgmr.msra.gmra.mrb[0].mxu1 %v312_v0 }
 0x3c0   :  { %v418_v4 = vpop.f32.mrb[0].mxu1 }
 0x3c1   :  { %v419_v5 = vadd.f32 %v491_v2, %v418_v4  ;;  %v529_v6 = vpop.f32.mrb[1].mxu1 }
 0x3c2   :  { %v421_v7 = vpop.f32.mrb[2].mxu1 }
 0x3c3   :  { %v530_v8 = vpop.f32.mrb[3].mxu1  ;;  %v426_v9 = vadd.f32 %v425_v3, %v419_v5 }
 0x3c5   :  { %v427_v10 = vsel %vm159_vm0, %v426_v9, 0.0 }
 0x3c6   :  { %428 = vadd.xlane.f32.xlu1 %v427_v10 }
 0x453   :  { %v429_v11 = vpop.xlane.xlu1 %428 }
 0x454   :  { %v430_v12 = vmul.f32 0.015625, %v429_v11 }
 0x456   :  { %v431_v13 = vsub.f32 %v426_v9, %v430_v12 }
 0x458   :  { %v432_v14 = vmul.f32 %v431_v13, %v431_v13 }
 0x45a   :  { %v433_v15 = vsel %vm159_vm0, %v432_v14, 0.0 }
 0x45b   :  { %434 = vadd.xlane.f32.xlu1 %v433_v15 }
 0x4e8   :  { %v435_v16 = vpop.xlane.xlu1 %434 }
 0x4e9   :  { %v436_v17 = vmul.f32 0.015625, %v435_v16 }
 0x4eb   :  { %v437_v18 = vadd.f32 1e-05, %v436_v17 }
 0x4ed   :  { %577 = vrsqrt.f32 %v437_v18 }
 0x4f7   :  { %v578_v19 = vpop.eup %577 }
 0x4f8   :  { %v439_v21 = vmul.f32 %v578_v19, %v431_v13 }
 0x4fa   :  { %v447_v23 = vmul.f32 %v500_v20, %v439_v21 }
 0x4fc   :  { %v455_v24 = vadd.f32 %v501_v22, %v447_v23 }
 0x4fe   :  { %v456_v25 = vpack.c.bf16 %v455_v24, %v455_v24 }
 0x500   :  { %458 = vst.msk [vmem:[#allocation19] sm:$0xf] %vm457_vm2, %v456_v25 }
 0x501   :  { %810 = shalt.err (!%p807_p0)
}
 0x502   :  { %s811_s23 = scalar_lea.hbm %s1055_s10, 64 }
 0x503   :  { %p812_p1 = scmp.ne.s32.totalorder %s1055_s10, %s811_s23  ;;  %p815_p2 = scmp.lt.u32.totalorder %s811_s23, %s1055_s10 }
 0x505   :  { %p817_p3 = pnand %p815_p2, %p812_p1 }
 0x507   :  { %820 = shalt.err (!%p817_p3)
}
 0x508   :  { %468 = dma.vmem_to_hbm [thread:$0]  %s466_s0, 64, %s1055_s10, [#allocation4]  }
 0x509   :  { %833 = dma.done.wait [#allocation4], 64  }
 0x50a   :  { %834 = vsyncadd [#allocation4], 4294967232 }
 0x50b   :  { %472 = vsyncpa [#allocation3], 1 }
 0x50c   :  { %473 = vsyncpa [#allocation6], 1 }
 0x50d   :  { %474 = vsyncpa [#allocation9], 1 }
 0x50e   :  { %475 = vsyncpa [#allocation12], 1 }
 0x50f   :  { %476 = vsyncpa [#allocation15], 1 }
 0x510   :  { %477 = vsyncpa [#allocation18], 1 }
 0x511   :  { %478 = vsyncpa [#allocation4], 1 }

</bundles_post_ra>
